<compile_context>
chip_gen: v7x
topology: tpu7x:2x2x1
jax: 0.10.0
libtpu: 0.0.40
codegen_flags: <defaults>
</compile_context>

<pallas_src>
import jax
import jax.numpy as jnp
from jax.experimental import pallas as pl
from jax.experimental.pallas import tpu as pltpu

_K = 3            # conv kernel size (3x3, stride 1, padding 1)
_CPAD = 128       # channels zero-padded to one full lane tile (aligned im2col)
_HID = 1024       # regressor hidden width
_FEAT = 2048      # per-branch feature width
_TRANS_OUT, _ROT_OUT = 270, 112
_TRANS_PAD, _ROT_PAD = 384, 128     # lane-dense output slots (multiples of 128)


# ---------------------------------------------------------------------------
# Kernels
# ---------------------------------------------------------------------------

def _branch_kernel(x_ref, wc1_ref, bc1_ref, wc2_ref, bc2_ref, wf_ref, bf_ref,
                   o_ref, pad1_ref, pad2_ref):
    """One CNN branch, fully fused: conv3x3+ReLU -> conv3x3+ReLU -> GAP -> Linear.

    Grid axis 0 = branch (0=cam, 1=laser), marked "parallel".
    All intermediates stay in VMEM; only the (N, 2048) feature block is stored,
    directly into its lane-dense slot of the (N, 4096) concat output.
    """
    N, Hp, Wp, _ = pad1_ref.shape
    H, W = Hp - (_K - 1), Wp - (_K - 1)
    cin = x_ref.shape[-1]
    c1 = bc1_ref.shape[-1]
    c2 = bc2_ref.shape[-1]

    def conv_relu(pad_ref, w_ref, b_ref):
        # im2col: 9 shifted, full-lane (128-wide) slices concatenated on the
        # lane axis -> one MXU matmul with K = 9*128 instead of 9 tiny dots.
        cols = [pad_ref[:, kh:kh + H, kw:kw + W, :]
                for kh in range(_K) for kw in range(_K)]
        patches = jnp.concatenate(cols, axis=-1).reshape(
            N * H * W, _K * _K * _CPAD)
        acc = jnp.dot(patches, w_ref[0], preferred_element_type=jnp.float32)
        return jnp.maximum(acc + b_ref[0], 0.0)          # (N*H*W, cout)

    # conv1: in-kernel halo padding into a zeroed VMEM scratch -----------------
    pad1_ref[...] = jnp.zeros(pad1_ref.shape, pad1_ref.dtype)
    pad1_ref[:, 1:H + 1, 1:W + 1, :cin] = x_ref[0]
    h1 = conv_relu(pad1_ref, wc1_ref, bc1_ref)           # (N*H*W, 32)

    # conv2: the 32-channel activation never touches HBM -----------------------
    pad2_ref[...] = jnp.zeros(pad2_ref.shape, pad2_ref.dtype)
    pad2_ref[:, 1:H + 1, 1:W + 1, :c1] = h1.reshape(N, H, W, c1)
    h2 = conv_relu(pad2_ref, wc2_ref, bc2_ref)           # (N*H*W, 64)

    # global average pool + 64->2048 projection (bf16 weights, f32 accum) ------
    pooled = jnp.mean(h2.reshape(N, H * W, c2), axis=1)  # (N, 64)
    feat = jnp.dot(pooled.astype(jnp.bfloat16), wf_ref[0],
                   preferred_element_type=jnp.float32) + bf_ref[0]
    o_ref[...] = feat                                    # (N, 2048), lane-dense


def _regressor_kernel(x_ref, w1_ref, b1_ref, w2_ref, b2_ref, o_ref, acc_ref):
    """Fused trans+rot Regressor, tiled over the (stacked) hidden dimension.

    Per grid step k: h_k = relu(x @ w1[:, k-tile] + b1[k-tile])   (N, TH)
                     acc += h_k @ w2[k-tile, :]                    (N, 512)
    w2 is block-diagonal (trans hidden -> cols [0,384), rot hidden -> [384,512)),
    so the accumulation over all hidden tiles yields both regressor outputs.
    """
    k = pl.program_id(0)

    @pl.when(k == 0)
    def _():
        acc_ref[...] = jnp.zeros(acc_ref.shape, acc_ref.dtype)

    h = jnp.maximum(
        jnp.dot(x_ref[...].astype(jnp.bfloat16), w1_ref[...],
                preferred_element_type=jnp.float32) + b1_ref[...],
        0.0)
    acc_ref[...] += jnp.dot(h.astype(jnp.bfloat16), w2_ref[...],
                            preferred_element_type=jnp.float32)

    @pl.when(k == pl.num_programs(0) - 1)
    def _():
        o_ref[...] = acc_ref[...] + b2_ref[...]


# ---------------------------------------------------------------------------
# pallas_call wrappers
# ---------------------------------------------------------------------------

def branch_features(p, x):
    """x: (2, N, H, W, Cin) stacked [cam, laser] NHWC -> (N, 2*FEAT) features."""
    B, N, H, W, Cin = x.shape
    feat = p["wf"].shape[-1]
    return pl.pallas_call(
        _branch_kernel,
        out_shape=jax.ShapeDtypeStruct((N, B * feat), jnp.float32),
        grid_spec=pltpu.PrefetchScalarGridSpec(
            num_scalar_prefetch=0,
            grid=(B,),
            in_specs=[
                pl.BlockSpec((1, N, H, W, Cin), lambda b: (b, 0, 0, 0, 0)),
                pl.BlockSpec((1,) + p["wc1"].shape[1:], lambda b: (b, 0, 0)),
                pl.BlockSpec((1,) + p["bc1"].shape[1:], lambda b: (b, 0, 0)),
                pl.BlockSpec((1,) + p["wc2"].shape[1:], lambda b: (b, 0, 0)),
                pl.BlockSpec((1,) + p["bc2"].shape[1:], lambda b: (b, 0, 0)),
                pl.BlockSpec((1,) + p["wf"].shape[1:], lambda b: (b, 0, 0)),
                pl.BlockSpec((1,) + p["bf"].shape[1:], lambda b: (b, 0, 0)),
            ],
            out_specs=pl.BlockSpec((N, feat), lambda b: (0, b)),
            scratch_shapes=[
                pltpu.VMEM((N, H + _K - 1, W + _K - 1, _CPAD), jnp.float32),
                pltpu.VMEM((N, H + _K - 1, W + _K - 1, _CPAD), jnp.float32),
            ],
        ),
        compiler_params=pltpu.CompilerParams(
            dimension_semantics=("parallel",),      # one branch per TC on v7x
            vmem_limit_bytes=32 * 1024 * 1024,
        ),
    )(x, p["wc1"], p["bc1"], p["wc2"], p["bc2"], p["wf"], p["bf"])


def fused_regressor(p, x, *, tile_h=256):
    """x: (N, 4096) -> (N, 512) lane-dense slab [trans(384-pad) | rot(128-pad)]."""
    N, in_f = x.shape
    hid2 = p["w1"].shape[1]          # 2048 = trans(1024) + rot(1024)
    out_p = p["w2"].shape[1]         # 512
    return pl.pallas_call(
        _regressor_kernel,
        out_shape=jax.ShapeDtypeStruct((N, out_p), jnp.float32),
        grid_spec=pltpu.PrefetchScalarGridSpec(
            num_scalar_prefetch=0,
            grid=(hid2 // tile_h,),
            in_specs=[
                pl.BlockSpec((N, in_f), lambda k: (0, 0)),
                pl.BlockSpec((in_f, tile_h), lambda k: (0, k)),
                pl.BlockSpec((1, tile_h), lambda k: (0, k)),
                pl.BlockSpec((tile_h, out_p), lambda k: (k, 0)),
                pl.BlockSpec((1, out_p), lambda k: (0, 0)),
            ],
            out_specs=pl.BlockSpec((N, out_p), lambda k: (0, 0)),
            scratch_shapes=[pltpu.VMEM((N, out_p), jnp.float32)],
        ),
        compiler_params=pltpu.CompilerParams(
            dimension_semantics=("arbitrary",)),   # hidden tiles accumulate
    )(x, p["w1"], p["b1"], p["w2"], p["b2"])


def paper_cnn_forward(params, img_nchw, pcd_nchw):
    img = jnp.transpose(img_nchw, (0, 2, 3, 1))            # NCHW -> NHWC
    pcd = jnp.transpose(pcd_nchw, (0, 2, 3, 1))
    x = jnp.stack([img, pcd], axis=0)                      # (branch, N, H, W, C)
    feats = branch_features(params["branch"], x)           # (N, 4096) = [cam|laser]
    out = fused_regressor(params["reg"], feats)            # (N, 512)
    translation = out[:, :_TRANS_OUT]                      # (N, 270)
    rotation = out[:, _TRANS_PAD:_TRANS_PAD + _ROT_OUT]    # (N, 112)
    return translation, rotation


# ---------------------------------------------------------------------------
# Deterministic parameter construction (im2col / fused layouts built at init)
# ---------------------------------------------------------------------------

def _he(key, shape, fan_in):
    return jax.random.normal(key, shape, jnp.float32) * (1.0 / float(fan_in) ** 0.5)


def _im2col_weight(w_hwio):
    """(3,3,Cin,Cout) HWIO -> (9*_CPAD, Cout), channel-padded to 128 lanes."""
    kh, kw, cin, cout = w_hwio.shape
    wp = jnp.zeros((kh, kw, _CPAD, cout), w_hwio.dtype)
    wp = wp.at[:, :, :cin, :].set(w_hwio)
    return wp.reshape(kh * kw * _CPAD, cout)


def _init_branch(key, c_in):
    k = jax.random.split(key, 3)
    return {
        "wc1": _im2col_weight(_he(k[0], (_K, _K, c_in, 32), _K * _K * c_in)),
        "bc1": jnp.zeros((1, 32), jnp.float32),
        "wc2": _im2col_weight(_he(k[1], (_K, _K, 32, 64), _K * _K * 32)),
        "bc2": jnp.zeros((1, 64), jnp.float32),
        "wf":  _he(k[2], (64, _FEAT), 64).astype(jnp.bfloat16),
        "bf":  jnp.zeros((1, _FEAT), jnp.float32),
    }


def _init_fused_regressors(key):
    kt1, kt2, kr1, kr2 = jax.random.split(key, 4)
    in_f = 2 * _FEAT                                        # 4096 after torch.cat
    w1_t = _he(kt1, (in_f, _HID), in_f)
    w1_r = _he(kr1, (in_f, _HID), in_f)
    w2_t = _he(kt2, (_HID, _TRANS_OUT), _HID)
    w2_r = _he(kr2, (_HID, _ROT_OUT), _HID)
    # Stack both regressors along the hidden axis; block-diagonal, lane-padded w2.
    w1 = jnp.concatenate([w1_t, w1_r], axis=1).astype(jnp.bfloat16)   # (4096, 2048)
    b1 = jnp.zeros((1, 2 * _HID), jnp.float32)
    out_p = _TRANS_PAD + _ROT_PAD
    w2 = jnp.zeros((2 * _HID, out_p), jnp.float32)
    w2 = w2.at[:_HID, :_TRANS_OUT].set(w2_t)
    w2 = w2.at[_HID:, _TRANS_PAD:_TRANS_PAD + _ROT_OUT].set(w2_r)
    w2 = w2.astype(jnp.bfloat16)
    b2 = jnp.zeros((1, out_p), jnp.float32)
    return {"w1": w1, "b1": b1, "w2": w2, "b2": b2}


def init_paper_cnn_params(key):
    kc, kl, kr = jax.random.split(key, 3)
    cam = _init_branch(kc, c_in=3)
    laser = _init_branch(kl, c_in=3)
    branch = {name: jnp.stack([cam[name], laser[name]], axis=0) for name in cam}
    return {"branch": branch, "reg": _init_fused_regressors(kr)}


# ---------------------------------------------------------------------------
# Main
# ---------------------------------------------------------------------------

if __name__ == "__main__":
    key = jax.random.PRNGKey(0)
    k_img, k_pcd, k_par = jax.random.split(key, 3)

    # Small shapes consistent with the module's two-branch NCHW inputs.
    img = jax.random.normal(k_img, (2, 3, 16, 16), jnp.float32)   # camera branch
    pcd = jax.random.normal(k_pcd, (2, 3, 16, 16), jnp.float32)   # laser branch

    params = init_paper_cnn_params(k_par)

    translation, rotation = jax.jit(paper_cnn_forward)(params, img, pcd)
    jax.block_until_ready((translation, rotation))

    assert translation.shape == (2, _TRANS_OUT), translation.shape
    assert rotation.shape == (2, _ROT_OUT), rotation.shape
    assert translation.dtype == jnp.float32 and rotation.dtype == jnp.float32

    print("KERNEL_OK")
</pallas_src>

<mosaic_0001>
module attributes {stable_mosaic.version = 11 : i64} {
  func.func @_branch_kernel(%arg0: i32, %arg1: memref<1x2x16x16x3xf32, #tpu.memory_space<vmem>>, %arg2: memref<1x1152x32xf32, #tpu.memory_space<vmem>>, %arg3: memref<1x1x32xf32, #tpu.memory_space<vmem>>, %arg4: memref<1x1152x64xf32, #tpu.memory_space<vmem>>, %arg5: memref<1x1x64xf32, #tpu.memory_space<vmem>>, %arg6: memref<1x64x2048xbf16, #tpu.memory_space<vmem>>, %arg7: memref<1x1x2048xf32, #tpu.memory_space<vmem>>, %arg8: memref<2x2048xf32, #tpu.memory_space<vmem>>, %arg9: memref<2x18x18x128xf32, #tpu.memory_space<vmem>>, %arg10: memref<2x18x18x128xf32, #tpu.memory_space<vmem>>) attributes {dimension_semantics = [#tpu.dimension_semantics<parallel>], iteration_bounds = array<i64: 2>, scalar_prefetch = 0 : i64, scratch_operands = 2 : i64, tpu.core_type = #tpu.core_type<tc>, window_params = [{transform_indices = @transform_0, window_bounds = array<i64: 1, 2, 16, 16, 3>}, {transform_indices = @transform_1, window_bounds = array<i64: 1, 1152, 32>}, {transform_indices = @transform_2, window_bounds = array<i64: 1, 1, 32>}, {transform_indices = @transform_3, window_bounds = array<i64: 1, 1152, 64>}, {transform_indices = @transform_4, window_bounds = array<i64: 1, 1, 64>}, {transform_indices = @transform_5, window_bounds = array<i64: 1, 64, 2048>}, {transform_indices = @transform_6, window_bounds = array<i64: 1, 1, 2048>}, {transform_indices = @transform_7, window_bounds = array<i64: 2, 2048>}]} {
    %cst = arith.constant 0.000000e+00 : f32
    %0 = vector.broadcast %cst : f32 to vector<2x18x18x128xf32>
    %c0 = arith.constant 0 : index
    %c0_0 = arith.constant 0 : index
    %c0_1 = arith.constant 0 : index
    %c0_2 = arith.constant 0 : index
    %1 = vector.load %arg9[%c0, %c0_0, %c0_1, %c0_2] : memref<2x18x18x128xf32, #tpu.memory_space<vmem>>, vector<2x18x18x128xf32>
    tpu.vector_store %arg9[%c0, %c0_0, %c0_1, %c0_2], %0 {strides = array<i32>} : memref<2x18x18x128xf32, #tpu.memory_space<vmem>>, vector<2x18x18x128xf32>,
    %c0_3 = arith.constant 0 : index
    %c0_4 = arith.constant 0 : index
    %c0_5 = arith.constant 0 : index
    %c0_6 = arith.constant 0 : index
    %c0_7 = arith.constant 0 : index
    %2 = vector.load %arg1[%c0_3, %c0_4, %c0_5, %c0_6, %c0_7] : memref<1x2x16x16x3xf32, #tpu.memory_space<vmem>>, vector<1x2x16x16x3xf32>
    %3 = vector.shape_cast %2 : vector<1x2x16x16x3xf32> to vector<2x16x16x3xf32>
    %c0_8 = arith.constant 0 : index
    %c1 = arith.constant 1 : index
    %c1_9 = arith.constant 1 : index
    %c0_10 = arith.constant 0 : index
    %4 = vector.load %arg9[%c0_8, %c1, %c1_9, %c0_10] : memref<2x18x18x128xf32, #tpu.memory_space<vmem>>, vector<2x16x16x3xf32>
    tpu.vector_store %arg9[%c0_8, %c1, %c1_9, %c0_10], %3 {strides = array<i32>} : memref<2x18x18x128xf32, #tpu.memory_space<vmem>>, vector<2x16x16x3xf32>,
    %c0_11 = arith.constant 0 : index
    %c0_12 = arith.constant 0 : index
    %c0_13 = arith.constant 0 : index
    %c0_14 = arith.constant 0 : index
    %5 = vector.load %arg9[%c0_11, %c0_12, %c0_13, %c0_14] : memref<2x18x18x128xf32, #tpu.memory_space<vmem>>, vector<2x16x16x128xf32>
    %c0_15 = arith.constant 0 : index
    %c0_16 = arith.constant 0 : index
    %c1_17 = arith.constant 1 : index
    %c0_18 = arith.constant 0 : index
    %6 = vector.load %arg9[%c0_15, %c0_16, %c1_17, %c0_18] : memref<2x18x18x128xf32, #tpu.memory_space<vmem>>, vector<2x16x16x128xf32>
    %c0_19 = arith.constant 0 : index
    %c0_20 = arith.constant 0 : index
    %c2 = arith.constant 2 : index
    %c0_21 = arith.constant 0 : index
    %7 = vector.load %arg9[%c0_19, %c0_20, %c2, %c0_21] : memref<2x18x18x128xf32, #tpu.memory_space<vmem>>, vector<2x16x16x128xf32>
    %c0_22 = arith.constant 0 : index
    %c1_23 = arith.constant 1 : index
    %c0_24 = arith.constant 0 : index
    %c0_25 = arith.constant 0 : index
    %8 = vector.load %arg9[%c0_22, %c1_23, %c0_24, %c0_25] : memref<2x18x18x128xf32, #tpu.memory_space<vmem>>, vector<2x16x16x128xf32>
    %c0_26 = arith.constant 0 : index
    %c1_27 = arith.constant 1 : index
    %c1_28 = arith.constant 1 : index
    %c0_29 = arith.constant 0 : index
    %9 = vector.load %arg9[%c0_26, %c1_27, %c1_28, %c0_29] : memref<2x18x18x128xf32, #tpu.memory_space<vmem>>, vector<2x16x16x128xf32>
    %c0_30 = arith.constant 0 : index
    %c1_31 = arith.constant 1 : index
    %c2_32 = arith.constant 2 : index
    %c0_33 = arith.constant 0 : index
    %10 = vector.load %arg9[%c0_30, %c1_31, %c2_32, %c0_33] : memref<2x18x18x128xf32, #tpu.memory_space<vmem>>, vector<2x16x16x128xf32>
    %c0_34 = arith.constant 0 : index
    %c2_35 = arith.constant 2 : index
    %c0_36 = arith.constant 0 : index
    %c0_37 = arith.constant 0 : index
    %11 = vector.load %arg9[%c0_34, %c2_35, %c0_36, %c0_37] : memref<2x18x18x128xf32, #tpu.memory_space<vmem>>, vector<2x16x16x128xf32>
    %c0_38 = arith.constant 0 : index
    %c2_39 = arith.constant 2 : index
    %c1_40 = arith.constant 1 : index
    %c0_41 = arith.constant 0 : index
    %12 = vector.load %arg9[%c0_38, %c2_39, %c1_40, %c0_41] : memref<2x18x18x128xf32, #tpu.memory_space<vmem>>, vector<2x16x16x128xf32>
    %c0_42 = arith.constant 0 : index
    %c2_43 = arith.constant 2 : index
    %c2_44 = arith.constant 2 : index
    %c0_45 = arith.constant 0 : index
    %13 = vector.load %arg9[%c0_42, %c2_43, %c2_44, %c0_45] : memref<2x18x18x128xf32, #tpu.memory_space<vmem>>, vector<2x16x16x128xf32>
    %14 = tpu.concatenate %5, %6, %7, %8, %9, %10, %11, %12, %13 in 3 : vector<2x16x16x128xf32>, vector<2x16x16x128xf32>, vector<2x16x16x128xf32>, vector<2x16x16x128xf32>, vector<2x16x16x128xf32>, vector<2x16x16x128xf32>, vector<2x16x16x128xf32>, vector<2x16x16x128xf32>, vector<2x16x16x128xf32> -> vector<2x16x16x1152xf32>
    %15 = vector.shape_cast %14 : vector<2x16x16x1152xf32> to vector<512x1152xf32>
    %c0_46 = arith.constant 0 : index
    %c0_47 = arith.constant 0 : index
    %c0_48 = arith.constant 0 : index
    %16 = vector.load %arg2[%c0_46, %c0_47, %c0_48] : memref<1x1152x32xf32, #tpu.memory_space<vmem>>, vector<1x1152x32xf32>
    %17 = vector.shape_cast %16 : vector<1x1152x32xf32> to vector<1152x32xf32>
    %cst_49 = arith.constant dense<0.000000e+00> : vector<512x32xf32>
    %18 = tpu.matmul %15, %17, %cst_49 {dimension_numbers = #tpu.dot_dimension_numbers<[1], [0], [0], [1], [0, 0, 1, 1], [], []>} : vector<512x1152xf32>, vector<1152x32xf32>, vector<512x32xf32> -> vector<512x32xf32>
    %c0_50 = arith.constant 0 : index
    %c0_51 = arith.constant 0 : index
    %c0_52 = arith.constant 0 : index
    %19 = vector.load %arg3[%c0_50, %c0_51, %c0_52] : memref<1x1x32xf32, #tpu.memory_space<vmem>>, vector<1x1x32xf32>
    %20 = vector.shape_cast %19 : vector<1x1x32xf32> to vector<1x32xf32>
    %21 = vector.broadcast %20 : vector<1x32xf32> to vector<512x32xf32>
    %22 = arith.addf %18, %21 : vector<512x32xf32>
    %cst_53 = arith.constant 0.000000e+00 : f32
    %23 = vector.broadcast %cst_53 : f32 to vector<512x32xf32>
    %24 = arith.maximumf %22, %23 : vector<512x32xf32>
    %cst_54 = arith.constant 0.000000e+00 : f32
    %25 = vector.broadcast %cst_54 : f32 to vector<2x18x18x128xf32>
    %c0_55 = arith.constant 0 : index
    %c0_56 = arith.constant 0 : index
    %c0_57 = arith.constant 0 : index
    %c0_58 = arith.constant 0 : index
    %26 = vector.load %arg10[%c0_55, %c0_56, %c0_57, %c0_58] : memref<2x18x18x128xf32, #tpu.memory_space<vmem>>, vector<2x18x18x128xf32>
    tpu.vector_store %arg10[%c0_55, %c0_56, %c0_57, %c0_58], %25 {strides = array<i32>} : memref<2x18x18x128xf32, #tpu.memory_space<vmem>>, vector<2x18x18x128xf32>,
    %27 = vector.shape_cast %24 : vector<512x32xf32> to vector<2x16x16x32xf32>
    %c0_59 = arith.constant 0 : index
    %c1_60 = arith.constant 1 : index
    %c1_61 = arith.constant 1 : index
    %c0_62 = arith.constant 0 : index
    %28 = vector.load %arg10[%c0_59, %c1_60, %c1_61, %c0_62] : memref<2x18x18x128xf32, #tpu.memory_space<vmem>>, vector<2x16x16x32xf32>
    tpu.vector_store %arg10[%c0_59, %c1_60, %c1_61, %c0_62], %27 {strides = array<i32>} : memref<2x18x18x128xf32, #tpu.memory_space<vmem>>, vector<2x16x16x32xf32>,
    %c0_63 = arith.constant 0 : index
    %c0_64 = arith.constant 0 : index
    %c0_65 = arith.constant 0 : index
    %c0_66 = arith.constant 0 : index
    %29 = vector.load %arg10[%c0_63, %c0_64, %c0_65, %c0_66] : memref<2x18x18x128xf32, #tpu.memory_space<vmem>>, vector<2x16x16x128xf32>
    %c0_67 = arith.constant 0 : index
    %c0_68 = arith.constant 0 : index
    %c1_69 = arith.constant 1 : index
    %c0_70 = arith.constant 0 : index
    %30 = vector.load %arg10[%c0_67, %c0_68, %c1_69, %c0_70] : memref<2x18x18x128xf32, #tpu.memory_space<vmem>>, vector<2x16x16x128xf32>
    %c0_71 = arith.constant 0 : index
    %c0_72 = arith.constant 0 : index
    %c2_73 = arith.constant 2 : index
    %c0_74 = arith.constant 0 : index
    %31 = vector.load %arg10[%c0_71, %c0_72, %c2_73, %c0_74] : memref<2x18x18x128xf32, #tpu.memory_space<vmem>>, vector<2x16x16x128xf32>
    %c0_75 = arith.constant 0 : index
    %c1_76 = arith.constant 1 : index
    %c0_77 = arith.constant 0 : index
    %c0_78 = arith.constant 0 : index
    %32 = vector.load %arg10[%c0_75, %c1_76, %c0_77, %c0_78] : memref<2x18x18x128xf32, #tpu.memory_space<vmem>>, vector<2x16x16x128xf32>
    %c0_79 = arith.constant 0 : index
    %c1_80 = arith.constant 1 : index
    %c1_81 = arith.constant 1 : index
    %c0_82 = arith.constant 0 : index
    %33 = vector.load %arg10[%c0_79, %c1_80, %c1_81, %c0_82] : memref<2x18x18x128xf32, #tpu.memory_space<vmem>>, vector<2x16x16x128xf32>
    %c0_83 = arith.constant 0 : index
    %c1_84 = arith.constant 1 : index
    %c2_85 = arith.constant 2 : index
    %c0_86 = arith.constant 0 : index
    %34 = vector.load %arg10[%c0_83, %c1_84, %c2_85, %c0_86] : memref<2x18x18x128xf32, #tpu.memory_space<vmem>>, vector<2x16x16x128xf32>
    %c0_87 = arith.constant 0 : index
    %c2_88 = arith.constant 2 : index
    %c0_89 = arith.constant 0 : index
    %c0_90 = arith.constant 0 : index
    %35 = vector.load %arg10[%c0_87, %c2_88, %c0_89, %c0_90] : memref<2x18x18x128xf32, #tpu.memory_space<vmem>>, vector<2x16x16x128xf32>
    %c0_91 = arith.constant 0 : index
    %c2_92 = arith.constant 2 : index
    %c1_93 = arith.constant 1 : index
    %c0_94 = arith.constant 0 : index
    %36 = vector.load %arg10[%c0_91, %c2_92, %c1_93, %c0_94] : memref<2x18x18x128xf32, #tpu.memory_space<vmem>>, vector<2x16x16x128xf32>
    %c0_95 = arith.constant 0 : index
    %c2_96 = arith.constant 2 : index
    %c2_97 = arith.constant 2 : index
    %c0_98 = arith.constant 0 : index
    %37 = vector.load %arg10[%c0_95, %c2_96, %c2_97, %c0_98] : memref<2x18x18x128xf32, #tpu.memory_space<vmem>>, vector<2x16x16x128xf32>
    %38 = tpu.concatenate %29, %30, %31, %32, %33, %34, %35, %36, %37 in 3 : vector<2x16x16x128xf32>, vector<2x16x16x128xf32>, vector<2x16x16x128xf32>, vector<2x16x16x128xf32>, vector<2x16x16x128xf32>, vector<2x16x16x128xf32>, vector<2x16x16x128xf32>, vector<2x16x16x128xf32>, vector<2x16x16x128xf32> -> vector<2x16x16x1152xf32>
    %39 = vector.shape_cast %38 : vector<2x16x16x1152xf32> to vector<512x1152xf32>
    %c0_99 = arith.constant 0 : index
    %c0_100 = arith.constant 0 : index
    %c0_101 = arith.constant 0 : index
    %40 = vector.load %arg4[%c0_99, %c0_100, %c0_101] : memref<1x1152x64xf32, #tpu.memory_space<vmem>>, vector<1x1152x64xf32>
    %41 = vector.shape_cast %40 : vector<1x1152x64xf32> to vector<1152x64xf32>
    %cst_102 = arith.constant dense<0.000000e+00> : vector<512x64xf32>
    %42 = tpu.matmul %39, %41, %cst_102 {dimension_numbers = #tpu.dot_dimension_numbers<[1], [0], [0], [1], [0, 0, 1, 1], [], []>} : vector<512x1152xf32>, vector<1152x64xf32>, vector<512x64xf32> -> vector<512x64xf32>
    %c0_103 = arith.constant 0 : index
    %c0_104 = arith.constant 0 : index
    %c0_105 = arith.constant 0 : index
    %43 = vector.load %arg5[%c0_103, %c0_104, %c0_105] : memref<1x1x64xf32, #tpu.memory_space<vmem>>, vector<1x1x64xf32>
    %44 = vector.shape_cast %43 : vector<1x1x64xf32> to vector<1x64xf32>
    %45 = vector.broadcast %44 : vector<1x64xf32> to vector<512x64xf32>
    %46 = arith.addf %42, %45 : vector<512x64xf32>
    %cst_106 = arith.constant 0.000000e+00 : f32
    %47 = vector.broadcast %cst_106 : f32 to vector<512x64xf32>
    %48 = arith.maximumf %46, %47 : vector<512x64xf32>
    %49 = vector.shape_cast %48 : vector<512x64xf32> to vector<2x256x64xf32>
    %cst_107 = arith.constant dense<0.000000e+00> : vector<2x64xf32>
    %50 = vector.multi_reduction <add>, %49, %cst_107 [1] : vector<2x256x64xf32> to vector<2x64xf32>
    %cst_108 = arith.constant 2.560000e+02 : f32
    %51 = vector.broadcast %cst_108 : f32 to vector<2x64xf32>
    %52 = arith.divf %50, %51 : vector<2x64xf32>
    %53 = arith.truncf %52 : vector<2x64xf32> to vector<2x64xbf16>
    %c0_109 = arith.constant 0 : index
    %c0_110 = arith.constant 0 : index
    %c0_111 = arith.constant 0 : index
    %54 = vector.load %arg6[%c0_109, %c0_110, %c0_111] : memref<1x64x2048xbf16, #tpu.memory_space<vmem>>, vector<1x64x2048xbf16>
    %55 = vector.shape_cast %54 : vector<1x64x2048xbf16> to vector<64x2048xbf16>
    %cst_112 = arith.constant dense<0.000000e+00> : vector<2x2048xf32>
    %56 = tpu.matmul %53, %55, %cst_112 {dimension_numbers = #tpu.dot_dimension_numbers<[1], [0], [0], [1], [0, 0, 1, 1], [], []>} : vector<2x64xbf16>, vector<64x2048xbf16>, vector<2x2048xf32> -> vector<2x2048xf32>
    %c0_113 = arith.constant 0 : index
    %c0_114 = arith.constant 0 : index
    %c0_115 = arith.constant 0 : index
    %57 = vector.load %arg7[%c0_113, %c0_114, %c0_115] : memref<1x1x2048xf32, #tpu.memory_space<vmem>>, vector<1x1x2048xf32>
    %58 = vector.shape_cast %57 : vector<1x1x2048xf32> to vector<1x2048xf32>
    %59 = vector.broadcast %58 : vector<1x2048xf32> to vector<2x2048xf32>
    %60 = arith.addf %56, %59 : vector<2x2048xf32>
    %c0_116 = arith.constant 0 : index
    %c0_117 = arith.constant 0 : index
    %61 = vector.load %arg8[%c0_116, %c0_117] : memref<2x2048xf32, #tpu.memory_space<vmem>>, vector<2x2048xf32>
    tpu.vector_store %arg8[%c0_116, %c0_117], %60 {strides = array<i32>} : memref<2x2048xf32, #tpu.memory_space<vmem>>, vector<2x2048xf32>,
    return
  }
  func.func @transform_0(%arg0: i32) -> (i32, i32, i32, i32, i32) {
    %c0_i32 = arith.constant 0 : i32
    %c0_i32_0 = arith.constant 0 : i32
    %c0_i32_1 = arith.constant 0 : i32
    %c0_i32_2 = arith.constant 0 : i32
    %c0_i32_3 = arith.constant 0 : i32
    return %arg0, %c0_i32, %c0_i32_0, %c0_i32_1, %c0_i32_2 : i32, i32, i32, i32, i32
  }
  func.func @transform_1(%arg0: i32) -> (i32, i32, i32) {
    %c0_i32 = arith.constant 0 : i32
    %c0_i32_0 = arith.constant 0 : i32
    %c0_i32_1 = arith.constant 0 : i32
    return %arg0, %c0_i32, %c0_i32_0 : i32, i32, i32
  }
  func.func @transform_2(%arg0: i32) -> (i32, i32, i32) {
    %c0_i32 = arith.constant 0 : i32
    %c0_i32_0 = arith.constant 0 : i32
    %c0_i32_1 = arith.constant 0 : i32
    return %arg0, %c0_i32, %c0_i32_0 : i32, i32, i32
  }
  func.func @transform_3(%arg0: i32) -> (i32, i32, i32) {
    %c0_i32 = arith.constant 0 : i32
    %c0_i32_0 = arith.constant 0 : i32
    %c0_i32_1 = arith.constant 0 : i32
    return %arg0, %c0_i32, %c0_i32_0 : i32, i32, i32
  }
  func.func @transform_4(%arg0: i32) -> (i32, i32, i32) {
    %c0_i32 = arith.constant 0 : i32
    %c0_i32_0 = arith.constant 0 : i32
    %c0_i32_1 = arith.constant 0 : i32
    return %arg0, %c0_i32, %c0_i32_0 : i32, i32, i32
  }
  func.func @transform_5(%arg0: i32) -> (i32, i32, i32) {
    %c0_i32 = arith.constant 0 : i32
    %c0_i32_0 = arith.constant 0 : i32
    %c0_i32_1 = arith.constant 0 : i32
    return %arg0, %c0_i32, %c0_i32_0 : i32, i32, i32
  }
  func.func @transform_6(%arg0: i32) -> (i32, i32, i32) {
    %c0_i32 = arith.constant 0 : i32
    %c0_i32_0 = arith.constant 0 : i32
    %c0_i32_1 = arith.constant 0 : i32
    return %arg0, %c0_i32, %c0_i32_0 : i32, i32, i32
  }
  func.func @transform_7(%arg0: i32) -> (i32, i32) {
    %c0_i32 = arith.constant 0 : i32
    %c0_i32_0 = arith.constant 0 : i32
    return %c0_i32, %arg0 : i32, i32
  }
}

module attributes {stable_mosaic.version = 11 : i64} {
  func.func @_regressor_kernel(%arg0: i32, %arg1: memref<2x4096xf32, #tpu.memory_space<vmem>>, %arg2: memref<4096x256xbf16, #tpu.memory_space<vmem>>, %arg3: memref<1x256xf32, #tpu.memory_space<vmem>>, %arg4: memref<256x512xbf16, #tpu.memory_space<vmem>>, %arg5: memref<1x512xf32, #tpu.memory_space<vmem>>, %arg6: memref<2x512xf32, #tpu.memory_space<vmem>>, %arg7: memref<2x512xf32, #tpu.memory_space<vmem>>) attributes {dimension_semantics = [#tpu.dimension_semantics<arbitrary>], iteration_bounds = array<i64: 8>, scalar_prefetch = 0 : i64, scratch_operands = 1 : i64, tpu.core_type = #tpu.core_type<tc>, window_params = [{pipeline_mode = #tpu.pipeline_mode<synchronous>, transform_indices = @transform_0, window_bounds = array<i64: 2, 4096>}, {transform_indices = @transform_1, window_bounds = array<i64: 4096, 256>}, {transform_indices = @transform_2, window_bounds = array<i64: 1, 256>}, {transform_indices = @transform_3, window_bounds = array<i64: 256, 512>}, {pipeline_mode = #tpu.pipeline_mode<synchronous>, transform_indices = @transform_4, window_bounds = array<i64: 1, 512>}, {pipeline_mode = #tpu.pipeline_mode<synchronous>, transform_indices = @transform_5, window_bounds = array<i64: 2, 512>}]} {
    %c0_i32 = arith.constant 0 : i32
    %0 = arith.cmpi eq, %arg0, %c0_i32 : i32
    %1 = arith.extui %0 : i1 to i32
    %c0_i32_0 = arith.constant 0 : i32
    %2 = arith.cmpi ne, %1, %c0_i32_0 : i32
    scf.if %2 {
      %cst_15 = arith.constant 0.000000e+00 : f32
      %21 = vector.broadcast %cst_15 : f32 to vector<2x512xf32>
      %c0_16 = arith.constant 0 : index
      %c0_17 = arith.constant 0 : index
      %22 = vector.load %arg7[%c0_16, %c0_17] : memref<2x512xf32, #tpu.memory_space<vmem>>, vector<2x512xf32>
      tpu.vector_store %arg7[%c0_16, %c0_17], %21 {strides = array<i32>} : memref<2x512xf32, #tpu.memory_space<vmem>>, vector<2x512xf32>,
    } else {
    }
    %c0 = arith.constant 0 : index
    %c0_1 = arith.constant 0 : index
    %3 = vector.load %arg1[%c0, %c0_1] : memref<2x4096xf32, #tpu.memory_space<vmem>>, vector<2x4096xf32>
    %4 = arith.truncf %3 : vector<2x4096xf32> to vector<2x4096xbf16>
    %c0_2 = arith.constant 0 : index
    %c0_3 = arith.constant 0 : index
    %5 = vector.load %arg2[%c0_2, %c0_3] : memref<4096x256xbf16, #tpu.memory_space<vmem>>, vector<4096x256xbf16>
    %cst = arith.constant dense<0.000000e+00> : vector<2x256xf32>
    %6 = tpu.matmul %4, %5, %cst {dimension_numbers = #tpu.dot_dimension_numbers<[1], [0], [0], [1], [0, 0, 1, 1], [], []>} : vector<2x4096xbf16>, vector<4096x256xbf16>, vector<2x256xf32> -> vector<2x256xf32>
    %c0_4 = arith.constant 0 : index
    %c0_5 = arith.constant 0 : index
    %7 = vector.load %arg3[%c0_4, %c0_5] : memref<1x256xf32, #tpu.memory_space<vmem>>, vector<1x256xf32>
    %8 = vector.broadcast %7 : vector<1x256xf32> to vector<2x256xf32>
    %9 = arith.addf %6, %8 : vector<2x256xf32>
    %cst_6 = arith.constant 0.000000e+00 : f32
    %10 = vector.broadcast %cst_6 : f32 to vector<2x256xf32>
    %11 = arith.maximumf %9, %10 : vector<2x256xf32>
    %c0_7 = arith.constant 0 : index
    %c0_8 = arith.constant 0 : index
    %12 = vector.load %arg7[%c0_7, %c0_8] : memref<2x512xf32, #tpu.memory_space<vmem>>, vector<2x512xf32>
    %13 = arith.truncf %11 : vector<2x256xf32> to vector<2x256xbf16>
    %c0_9 = arith.constant 0 : index
    %c0_10 = arith.constant 0 : index
    %14 = vector.load %arg4[%c0_9, %c0_10] : memref<256x512xbf16, #tpu.memory_space<vmem>>, vector<256x512xbf16>
    %cst_11 = arith.constant dense<0.000000e+00> : vector<2x512xf32>
    %15 = tpu.matmul %13, %14, %cst_11 {dimension_numbers = #tpu.dot_dimension_numbers<[1], [0], [0], [1], [0, 0, 1, 1], [], []>} : vector<2x256xbf16>, vector<256x512xbf16>, vector<2x512xf32> -> vector<2x512xf32>
    %16 = arith.addf %12, %15 : vector<2x512xf32>
    %c0_12 = arith.constant 0 : index
    %c0_13 = arith.constant 0 : index
    %17 = vector.load %arg7[%c0_12, %c0_13] : memref<2x512xf32, #tpu.memory_space<vmem>>, vector<2x512xf32>
    tpu.vector_store %arg7[%c0_12, %c0_13], %16 {strides = array<i32>} : memref<2x512xf32, #tpu.memory_space<vmem>>, vector<2x512xf32>,
    %c7_i32 = arith.constant 7 : i32
    %18 = arith.cmpi eq, %arg0, %c7_i32 : i32
    %19 = arith.extui %18 : i1 to i32
    %c0_i32_14 = arith.constant 0 : i32
    %20 = arith.cmpi ne, %19, %c0_i32_14 : i32
    scf.if %20 {
      %c0_15 = arith.constant 0 : index
      %c0_16 = arith.constant 0 : index
      %21 = vector.load %arg7[%c0_15, %c0_16] : memref<2x512xf32, #tpu.memory_space<vmem>>, vector<2x512xf32>
      %c0_17 = arith.constant 0 : index
      %c0_18 = arith.constant 0 : index
      %22 = vector.load %arg5[%c0_17, %c0_18] : memref<1x512xf32, #tpu.memory_space<vmem>>, vector<1x512xf32>
      %23 = vector.broadcast %22 : vector<1x512xf32> to vector<2x512xf32>
      %24 = arith.addf %21, %23 : vector<2x512xf32>
      %c0_19 = arith.constant 0 : index
      %c0_20 = arith.constant 0 : index
      %25 = vector.load %arg6[%c0_19, %c0_20] : memref<2x512xf32, #tpu.memory_space<vmem>>, vector<2x512xf32>
      tpu.vector_store %arg6[%c0_19, %c0_20], %24 {strides = array<i32>} : memref<2x512xf32, #tpu.memory_space<vmem>>, vector<2x512xf32>,
    } else {
    }
    return
  }
  func.func @transform_0(%arg0: i32) -> (i32, i32) {
    %c0_i32 = arith.constant 0 : i32
    %c0_i32_0 = arith.constant 0 : i32
    %c0_i32_1 = arith.constant 0 : i32
    return %c0_i32, %c0_i32_0 : i32, i32
  }
  func.func @transform_1(%arg0: i32) -> (i32, i32) {
    %c0_i32 = arith.constant 0 : i32
    %c0_i32_0 = arith.constant 0 : i32
    return %c0_i32, %arg0 : i32, i32
  }
  func.func @transform_2(%arg0: i32) -> (i32, i32) {
    %c0_i32 = arith.constant 0 : i32
    %c0_i32_0 = arith.constant 0 : i32
    return %c0_i32, %arg0 : i32, i32
  }
  func.func @transform_3(%arg0: i32) -> (i32, i32) {
    %c0_i32 = arith.constant 0 : i32
    %c0_i32_0 = arith.constant 0 : i32
    return %arg0, %c0_i32 : i32, i32
  }
  func.func @transform_4(%arg0: i32) -> (i32, i32) {
    %c0_i32 = arith.constant 0 : i32
    %c0_i32_0 = arith.constant 0 : i32
    %c0_i32_1 = arith.constant 0 : i32
    return %c0_i32, %c0_i32_0 : i32, i32
  }
  func.func @transform_5(%arg0: i32) -> (i32, i32) {
    %c0_i32 = arith.constant 0 : i32
    %c0_i32_0 = arith.constant 0 : i32
    %c0_i32_1 = arith.constant 0 : i32
    return %c0_i32, %c0_i32_0 : i32, i32
  }
}

</mosaic_0001>

<bundles_post_ra>
// kernel: paper_cnn_forward.3
= control target key start
LH: loop header
LB: loop body
LE: loop exit
PB: predicated region body
PF: predicated region fallthrough
CT: control target
= control target key end

     0   :  { %10 = vsyncpa [#allocation4], 0  ;;  %s7400_s0 = inlined_call_operand.vmem [shape: f32[2,4096], index: 0, kind: input, shape index: {}]   ;;  %s7401_s1 = inlined_call_operand.hbm [shape: bf16[4096,2048], index: 1, kind: input, shape index: {}]   ;;  %s7402_s2 = inlined_call_operand.vmem [shape: f32[1,2048], index: 2, kind: input, shape index: {}]   ;;  %s7403_s3 = inlined_call_operand.vmem [shape: bf16[2048,512], index: 3, kind: input, shape index: {}]   ;;  %s7404_s4 = inlined_call_operand.vmem [shape: f32[1,512], index: 4, kind: input, shape index: {}]   ;;  %s7405_s5 = inlined_call_operand.vmem [shape: f32[2,512], index: 5, kind: output, shape index: {}]  }
   0x1   :  { %12 = vsyncpa [#allocation4 + $0x1], 0  ;;  %s6508_s18 = smov 0   ;;  %s6510_s19 = smov 0  }
   0x2   :  { %s6512_s20 = smov 0   ;;  %s6514_s21 = smov 0  }
   0x3 LB: > { %s6527_s22 = sadd.s32 4294967295, %s6470_s21   ;;  %s6530_s23 = sadd.s32 1, %s6470_s21   ;;  %s6470_s21 = sphi %s6514_s21, %s7411_s21   ;;  %s6466_s20 = sphi %s6512_s20, %s7410_s20   ;;  %s6462_s19 = sphi %s6510_s19, %s7409_s19   ;;  %s6458_s18 = sphi %s6508_s18, %s7408_s18  }
   0x4   : > { %s43_s24 = ssub.s32 %s6470_s21, %s6530_s23  ;;  %s46_s25 = sadd.s32 1, %s6466_s20 }
   0x5   : > { %p44_p0 = scmp.eq.s32.totalorder %s43_s24, 0  ;;  %p53_p1 = scmp.ne.s32.totalorder %s6466_s20, %s6462_s19 }
   0x6   : > { %p54_p2 = scmp.eq.s32.totalorder %s6470_s21, 0  ;;  %p59_p3 = scmp.ne.s32.totalorder %s6462_s19, %s6458_s18 }
   0x7   : > { %s6540_s26 = scalar_select %p44_p0, %s6466_s20, %s46_s25  }
   0x8   : > { %p55_p4 = por %p54_p2, %p53_p1  ;;  %p60_p5 = scmp.eq.s32.totalorder %s6527_s22, 0 }
   0x9   : > { %p5494_p6 = scmp.lt.s32.totalorder %s6470_s21, 8  ;;  %s183_s28 = sand.u32 1, %s6466_s20  }
   0xa   : > { %p6544_p7 = por %p60_p5, %p59_p3  ;;  %s4837_s29 = sshll.u32 %s183_s28, 12 }
   0xb   : > { %s5426_s30 = sshll.u32 %s6470_s21, 7  ;;  %s187_s9 = scalar_lea.vmem [#allocation3], %s4837_s29 }
   0xc   : > { %s6553_s8 = scalar_lea.hbm %s7401_s1, %s5426_s30  ;;  %s194_s10 = sshll.u32 %s187_s9, 4  ;;  %s6555_s10 = int_to_ptr.vmem [resolvable:$true] %s194_s10 }
   0xd   : > { %p6557_p8 = pnand %p5494_p6, %p55_p4  ;;  %s6561_s12 = scalar_lea.sflag [#allocation4], %s183_s28 }
   0xe   : > { %s6406_s13 = scalar_lea.hbm %s6553_s8, 65536  ;;  %s6411_s16 = scalar_lea.hbm %s7401_s1, 524288 }
   0xf   : > { %p6407_p9 = scmp.ne.s32.totalorder %s6553_s8, %s6406_s13  ;;  %p6408_p10 = pneg %p6557_p8 }
  0x10   : > { %p6412_p13 = scmp.lt.u32.totalorder %s6553_s8, %s7401_s1  ;;  %p6413_p0 = scmp.lt.u32.totalorder %s6411_s16, %s6406_s13 }
  0x11   : > { %p6409_p11 = pnand %p6408_p10, %p6407_p9  ;;  %p6415_p2 = scmp.lt.u32.totalorder %s6406_s13, %s6553_s8 }
  0x12   : > { %p6414_p1 = por %p6413_p0, %p6412_p13 }
  0x13   : > { %p6410_p12 = pneg %p6409_p11 }
  0x14   : > { %p6416_p3 = por %p6415_p2, %p6414_p1 }
  0x16   : > { %p6417_p4 = pnand %p6416_p3, %p6410_p12 }
  0x18   : > { %6420 = shalt.err (!%p6417_p4)
}
  0x19   : > { %s6421_s24 = scalar_lea.vmem %s6555_s10, 65536  ;;  %s6472_s25 = smov [#allocation3]  }
  0x1a   : > { %p6422_p5 = scmp.ne.s32.totalorder %s6555_s10, %s6421_s24  ;;  %s6426_s28 = sshll.u32 %s6472_s25, 4  ;;  %s6427_s28 = int_to_ptr.vmem [resolvable:$false] %s6426_s28 }
  0x1b   : > { %s6428_s29 = scalar_lea.vmem %s6427_s28, 131072  ;;  %p6429_p11 = scmp.lt.s32.totalorder %s6555_s10, %s6427_s28 }
  0x1c   : > { %p6424_p6 = pnand %p6422_p5, %p6408_p10  ;;  %p6430_p13 = scmp.lt.s32.totalorder %s6428_s29, %s6421_s24 }
  0x1e   : > { %p6425_p9 = pneg %p6424_p6  ;;  %p6431_p0 = por %p6430_p13, %p6429_p11 }
  0x20   : > { %p6432_p1 = pnand %p6431_p0, %p6425_p9 }
  0x22   : > { %6435 = shalt.err (!%p6432_p1)
}
  0x23   : > { %s6473_s30 = smov 1024   ;;  %s6474_s6 = smov 128  }
  0x24   : > { %s6475_s7 = smov 8   ;;  %p4840_p10 = scmp.ge.s32.totalorder %s6470_s21, 1 }
  0x25   : > { %5493 = dma.hbm_to_vmem [thread:$0]  (!%p6557_p8), %s6553_s8, 65536, %s6555_s10, %s6561_s12, %s6473_s30, %s6474_s6, %s6475_s7  }
  0x26   : > { %p220_p12 = scmp.lt.s32.totalorder %s6470_s21, 9 }
  0x28   : > { %p221_p2 = pnand %p4840_p10, %p220_p12 }
  0x29   : > { %s226_s9 = sand.u32 (!%p221_p2), 1, %s6462_s19  }
  0x2a   : > { %224 = sbr.rel (%p221_p2) target bundleno = 1156 (0x484), region = 40  ;;  %s4841_s13 = sshll.u32 (!%p221_p2), %s226_s9, 12 }
  0x2b   : > { %s227_s14 = scalar_lea.sflag (!%p221_p2), [#allocation4], %s226_s9  ;;  %s6592_s15 = scalar_lea.vmem (!%p221_p2), [#allocation3], %s4841_s13 }
  0x31   : > { %6453 = dma.done.wait (%p6544_p7), %s227_s14, 65536  }
  0x32   : > { %6455 = vsyncadd (%p6544_p7), %s227_s14, 4294901760  ;;  %s4842_s11 = sshll.u32 %s6527_s22, 1  ;;  %s4843_s8 = sshll.u32 %s6527_s22, 5 }
  0x33   : > { %p264_p8 = scmp.lt.s32.totalorder %s4842_s11, 15  ;;  %p269_p3 = scmp.lt.s32.totalorder %s4843_s8, 255 }
  0x34   : > { %p4846_p7 = scmp.ne.s32.totalorder %s6527_s22, 0 }
  0x35   : > { %s7413_s11 = smov (!%p264_p8, %s4842_s11), 15  ;;  %s7415_s8 = smov (!%p269_p3, %s4843_s8), 255 }
  0x36   : > { %s266_s12 = scalar_lea.vmem %s7402_s2, %s7413_s11  ;;  %s5427_s16 = sshll.u32 %s7415_s8, 4  ;;  %v6476_v0 = vmov (!%p4846_p7), 0.0  }
  0x37   : > { %s6609_s27 = scalar_lea.vmem %s7403_s3, %s5427_s16  ;;  %278 = sbr.rel (%p4846_p7) target bundleno = 62 (0x3e), region = 48  ;;  %279 = vst [vmem:[#allocation2] sm:$0xff] (!%p4846_p7), %v6476_v0 }
  0x3e PF: > { %v5532_v1 = vld [vmem:[%s6592_s15 + $0x4] ss:$8 sps:$4 sm:$0xff]   ;;  %v5536_v3 = vld [vmem:[%s6592_s15] ss:$8 sps:$4 sm:$0xff]   ;;  %v5538_v5 = vld [vmem:[%s6592_s15 + $0x14] ss:$8 sps:$4 sm:$0xff]   ;;  %v300_v39 = vlaneseq }
  0x3f   : > { %v5534_v2 = vld [vmem:[%s6592_s15 + $0x704] ss:$8 sps:$4 sm:$0xff]   ;;  %3580 = vmatprep.subr.bf16.mxu1 %v5532_v1  ;;  %v5537_v4 = vld [vmem:[%s6592_s15 + $0x700] ss:$8 sps:$4 sm:$0xff]   ;;  %v5540_v6 = vld [vmem:[%s6592_s15 + $0x714] ss:$8 sps:$4 sm:$0xff]  }
  0x40   : > { %3867 = vmatprep.subr.bf16.mxu0 %v5534_v2  ;;  %3581 = vmatpush1.bf16.msra.mxu1 %v5536_v3  ;;  %v5542_v7 = vld [vmem:[%s6592_s15 + $0x10] ss:$8 sps:$4 sm:$0xff]   ;;  %v5544_v9 = vld [vmem:[%s6592_s15 + $0x24] ss:$8 sps:$4 sm:$0xff]   ;;  %v5548_v11 = vld [vmem:[%s6592_s15 + $0x20] ss:$8 sps:$4 sm:$0xff]  }
  0x41   : > { %3868 = vmatpush1.bf16.msra.mxu0 %v5537_v4  ;;  %3582 = vmatprep.subr.bf16.mxu1 %v5538_v5  ;;  %v5543_v8 = vld [vmem:[%s6592_s15 + $0x710] ss:$8 sps:$4 sm:$0xff]   ;;  %v5546_v10 = vld [vmem:[%s6592_s15 + $0x724] ss:$8 sps:$4 sm:$0xff]   ;;  %v5549_v12 = vld [vmem:[%s6592_s15 + $0x720] ss:$8 sps:$4 sm:$0xff]  }
  0x42   : > { %3869 = vmatprep.subr.bf16.mxu0 %v5540_v6  ;;  %v5550_v13 = vld [vmem:[%s6592_s15 + $0x34] ss:$8 sps:$4 sm:$0xff]   ;;  %v5554_v15 = vld [vmem:[%s6592_s15 + $0x30] ss:$8 sps:$4 sm:$0xff]   ;;  %v5556_v17 = vld [vmem:[%s6592_s15 + $0x44] ss:$8 sps:$4 sm:$0xff]  }
  0x43   : > { %v5552_v14 = vld [vmem:[%s6592_s15 + $0x734] ss:$8 sps:$4 sm:$0xff]   ;;  %v5555_v16 = vld [vmem:[%s6592_s15 + $0x730] ss:$8 sps:$4 sm:$0xff]   ;;  %v5558_v18 = vld [vmem:[%s6592_s15 + $0x744] ss:$8 sps:$4 sm:$0xff]  }
  0x44   : > { %3583 = vmatpush1.bf16.msra.mxu1 %v5542_v7  ;;  %v5560_v19 = vld [vmem:[%s6592_s15 + $0x40] ss:$8 sps:$4 sm:$0xff]   ;;  %v5562_v21 = vld [vmem:[%s6592_s15 + $0x54] ss:$8 sps:$4 sm:$0xff]   ;;  %v5566_v23 = vld [vmem:[%s6592_s15 + $0x50] ss:$8 sps:$4 sm:$0xff]  }
  0x45   : > { %3870 = vmatpush1.bf16.msra.mxu0 %v5543_v8  ;;  %3584 = vmatprep.subr.bf16.mxu1 %v5544_v9  ;;  %v5561_v20 = vld [vmem:[%s6592_s15 + $0x740] ss:$8 sps:$4 sm:$0xff]   ;;  %v5564_v22 = vld [vmem:[%s6592_s15 + $0x754] ss:$8 sps:$4 sm:$0xff]   ;;  %v5567_v24 = vld [vmem:[%s6592_s15 + $0x750] ss:$8 sps:$4 sm:$0xff]  }
  0x46   : > { %3871 = vmatprep.subr.bf16.mxu0 %v5546_v10  ;;  %v5568_v25 = vld [vmem:[%s6592_s15 + $0x64] ss:$8 sps:$4 sm:$0xff]   ;;  %v5572_v27 = vld [vmem:[%s6592_s15 + $0x60] ss:$8 sps:$4 sm:$0xff]   ;;  %v5574_v29 = vld [vmem:[%s6592_s15 + $0x74] ss:$8 sps:$4 sm:$0xff]  }
  0x47   : > { %v5570_v26 = vld [vmem:[%s6592_s15 + $0x764] ss:$8 sps:$4 sm:$0xff]   ;;  %v5573_v28 = vld [vmem:[%s6592_s15 + $0x760] ss:$8 sps:$4 sm:$0xff]   ;;  %v5576_v30 = vld [vmem:[%s6592_s15 + $0x774] ss:$8 sps:$4 sm:$0xff]  }
  0x48   : > { %3585 = vmatpush1.bf16.msra.mxu1 %v5548_v11  ;;  %v5578_v31 = vld [vmem:[%s6592_s15 + $0x70] ss:$8 sps:$4 sm:$0xff]   ;;  %v5580_v33 = vld [vmem:[%s6592_s15 + $0x84] ss:$8 sps:$4 sm:$0xff]   ;;  %v5584_v35 = vld [vmem:[%s6592_s15 + $0x80] ss:$8 sps:$4 sm:$0xff]  }
  0x49   : > { %3872 = vmatpush1.bf16.msra.mxu0 %v5549_v12  ;;  %3586 = vmatprep.subr.bf16.mxu1 %v5550_v13  ;;  %v5579_v32 = vld [vmem:[%s6592_s15 + $0x770] ss:$8 sps:$4 sm:$0xff]   ;;  %v5582_v34 = vld [vmem:[%s6592_s15 + $0x784] ss:$8 sps:$4 sm:$0xff]   ;;  %v5585_v36 = vld [vmem:[%s6592_s15 + $0x780] ss:$8 sps:$4 sm:$0xff]  }
  0x4a   : > { %3873 = vmatprep.subr.bf16.mxu0 %v5552_v14  ;;  %v6477_v37 = vmov 1983009808   ;;  %v5586_v40 = vld [vmem:[%s6592_s15 + $0x94] ss:$8 sps:$4 sm:$0xff]   ;;  %v5590_v42 = vld [vmem:[%s6592_s15 + $0x90] ss:$8 sps:$4 sm:$0xff]  }
  0x4b   : > { %v298_v38 = vunpack.c.l.s4 %v6477_v37  ;;  %v5588_v41 = vld [vmem:[%s6592_s15 + $0x794] ss:$8 sps:$4 sm:$0xff]   ;;  %v6651_v44 = vshrl.u32 %v300_v39, 7  ;;  %v5591_v45 = vld [vmem:[%s6592_s15 + $0x790] ss:$8 sps:$4 sm:$0xff]   ;;  %p5423_p4 = scmp.ne.s32.totalorder %s6527_s22, 7 }
  0x4c   : > { %3587 = vmatpush1.bf16.msra.mxu1 %v5554_v15  ;;  %v5592_v46 = vld [vmem:[%s6592_s15 + $0xa4] ss:$8 sps:$4 sm:$0xff]   ;;  %v5596_v48 = vld [vmem:[%s6592_s15 + $0xa0] ss:$8 sps:$4 sm:$0xff]   ;;  %v5598_v51 = vld [vmem:[%s6592_s15 + $0xb4] ss:$8 sps:$4 sm:$0xff]  }
  0x4d   : > { %3874 = vmatpush1.bf16.msra.mxu0 %v5555_v16  ;;  %3588 = vmatprep.subr.bf16.mxu1 %v5556_v17  ;;  %v299_v43 = vunpack.c.0.s8 %v298_v38  ;;  %v5594_v47 = vld [vmem:[%s6592_s15 + $0x7a4] ss:$8 sps:$4 sm:$0xff]   ;;  %v5597_v49 = vld [vmem:[%s6592_s15 + $0x7a0] ss:$8 sps:$4 sm:$0xff]   ;;  %v5600_v52 = vld [vmem:[%s6592_s15 + $0x7b4] ss:$8 sps:$4 sm:$0xff]  }
  0x4e   : > { %3875 = vmatprep.subr.bf16.mxu0 %v5558_v18  ;;  %v280_v53 = vld [vmem:[%s7400_s0] sm:$0xff]  ;;  %v283_v57 = vld [vmem:[%s7400_s0 + $0x18] sm:$0xff]  ;;  %v5604_v58 = vld [vmem:[%s6592_s15 + $0xc4] ss:$8 sps:$4 sm:$0xff]  }
  0x4f   : > { %v6659_v50 = vsub.s32 %v299_v43, %v6651_v44  ;;  %v5602_v54 = vld [vmem:[%s6592_s15 + $0xb0] ss:$8 sps:$4 sm:$0xff]   ;;  %v5606_v59 = vld [vmem:[%s6592_s15 + $0x7c4] ss:$8 sps:$4 sm:$0xff]   ;;  %v347_v61 = vcombine.high %v283_v57, %v283_v57  ;;  %v5608_v0 = vld [vmem:[%s6592_s15 + $0xc0] ss:$8 sps:$4 sm:$0xff]   ;;  %v296_v10 = vcombine.high %v280_v53, %v280_v53 }
  0x50   : > { %3589 = vmatpush1.bf16.msra.mxu1 %v5560_v19  ;;  %v5603_v56 = vld [vmem:[%s6592_s15 + $0x7b0] ss:$8 sps:$4 sm:$0xff]   ;;  %v5609_v1 = vld [vmem:[%s6592_s15 + $0x7c0] ss:$8 sps:$4 sm:$0xff]   ;;  %v5610_v2 = vld [vmem:[%s6592_s15 + $0xd4] ss:$8 sps:$4 sm:$0xff]  }
  0x51   : > { %3876 = vmatpush1.bf16.msra.mxu0 %v5561_v20  ;;  %3590 = vmatprep.subr.bf16.mxu1 %v5562_v21  ;;  %v6668_v55 = vrot.slane %v280_v53, %v6659_v50  ;;  %v361_v63 = vrot.slane %v347_v61, %v6659_v50  ;;  %v5612_v3 = vld [vmem:[%s6592_s15 + $0x7d4] ss:$8 sps:$4 sm:$0xff]   ;;  %v5614_v6 = vld [vmem:[%s6592_s15 + $0xd0] ss:$8 sps:$4 sm:$0xff]   ;;  %v5616_v8 = vld [vmem:[%s6592_s15 + $0xe4] ss:$8 sps:$4 sm:$0xff]   ;;  %v6692_v15 = vrot.slane %v296_v10, %v6659_v50 }
  0x52   : > { %3877 = vmatprep.subr.bf16.mxu0 %v5564_v22  ;;  %v5615_v7 = vld [vmem:[%s6592_s15 + $0x7d0] ss:$8 sps:$4 sm:$0xff]   ;;  %v5618_v9 = vld [vmem:[%s6592_s15 + $0x7e4] ss:$8 sps:$4 sm:$0xff]   ;;  %v5620_v11 = vld [vmem:[%s6592_s15 + $0xe0] ss:$8 sps:$4 sm:$0xff]  }
  0x53   : > { %v311_v60 = vcombine.high %v6668_v55, %v6668_v55  ;;  %v363_v4 = vcombine.high %v361_v63, %v361_v63  ;;  %v5621_v12 = vld [vmem:[%s6592_s15 + $0x7e0] ss:$8 sps:$4 sm:$0xff]   ;;  %v5622_v13 = vld [vmem:[%s6592_s15 + $0xf4] ss:$8 sps:$4 sm:$0xff]   ;;  %v5626_v16 = vld [vmem:[%s6592_s15 + $0xf0] ss:$8 sps:$4 sm:$0xff]   ;;  %v312_v20 = vcombine.high %v6692_v15, %v6692_v15  ;;  %v464_v21 = vpack.c.bf16 %v6668_v55, %v6668_v55 }
  0x54   : > { %3591 = vmatpush1.bf16.msra.mxu1 %v5566_v23  ;;  %v5624_v14 = vld [vmem:[%s6592_s15 + $0x7f4] ss:$8 sps:$4 sm:$0xff]   ;;  %v5627_v17 = vld [vmem:[%s6592_s15 + $0x7f0] ss:$8 sps:$4 sm:$0xff]   ;;  %v5631_v18 = vld [vmem:[%s6592_s15 + $0x104] ss:$8 sps:$4 sm:$0xff]   ;;  %v478_v22 = vpack.c.bf16 %v361_v63, %v361_v63 }
  0x55   : > { %3878 = vmatpush1.bf16.msra.mxu0 %v5567_v24  ;;  %3592 = vmatprep.subr.bf16.mxu1 %v5568_v25  ;;  %v465_v62 = vpack.c.bf16 %v311_v60, %v311_v60  ;;  %v479_v5 = vpack.c.bf16 %v363_v4, %v363_v4  ;;  %v5635_v19 = vld [vmem:[%s6592_s15 + $0x804] ss:$8 sps:$4 sm:$0xff]   ;;  %v5629_v23 = vld [vmem:[%s6592_s15 + $0x100] ss:$8 sps:$4 sm:$0xff]   ;;  %v5638_v25 = vld [vmem:[%s6592_s15 + $0x114] ss:$8 sps:$4 sm:$0xff]  }
  0x56   : > { %3879 = vmatprep.subr.bf16.mxu0 %v5570_v26  ;;  %v5633_v24 = vld [vmem:[%s6592_s15 + $0x800] ss:$8 sps:$4 sm:$0xff]   ;;  %v5641_v26 = vld [vmem:[%s6592_s15 + $0x814] ss:$8 sps:$4 sm:$0xff]   ;;  %v5651_v37 = vld [vmem:[%s6592_s15 + $0x830] ss:$8 sps:$4 sm:$0xff]  }
  0x57   : > { %3612 = vmatprep.mubr.bf16.mxu1 %v465_v62  ;;  %3899 = vmatprep.mubr.bf16.mxu0 %v479_v5  ;;  %v5656_v38 = vld [vmem:[%s6592_s15 + $0x144] ss:$8 sps:$4 sm:$0xff]   ;;  %v5665_v43 = vld [vmem:[%s6592_s15 + $0x854] ss:$8 sps:$4 sm:$0xff]   ;;  %v5672_v57 = vld [vmem:[%s6592_s15 + $0x170] ss:$8 sps:$4 sm:$0xff]  }
  0x58   : > { %3593 = vmatpush1.bf16.msra.mxu1 %v5572_v27  ;;  %v467_v27 = vpack.c.bf16 %v312_v20, %v312_v20  ;;  %v5659_v39 = vld [vmem:[%s6592_s15 + $0x844] ss:$8 sps:$4 sm:$0xff]   ;;  %v5674_v53 = vld [vmem:[%s6592_s15 + $0x174] ss:$8 sps:$4 sm:$0xff]   ;;  %v5678_v62 = vld [vmem:[%s6592_s15 + $0x180] ss:$8 sps:$4 sm:$0xff]  }
  0x59   : > { %3880 = vmatpush1.bf16.msra.mxu0 %v5573_v28  ;;  %3594 = vmatprep.subr.bf16.mxu1 %v5574_v29  ;;  %v5636_v28 = vld [vmem:[%s6592_s15 + $0x110] ss:$8 sps:$4 sm:$0xff]   ;;  %v5677_v55 = vld [vmem:[%s6592_s15 + $0x874] ss:$8 sps:$4 sm:$0xff]   ;;  %v5683_v61 = vld [vmem:[%s6592_s15 + $0x884] ss:$8 sps:$4 sm:$0xff]  }
  0x5a   : > { %3881 = vmatprep.subr.bf16.mxu0 %v5576_v30  ;;  %v5639_v29 = vld [vmem:[%s6592_s15 + $0x810] ss:$8 sps:$4 sm:$0xff]   ;;  %v5644_v30 = vld [vmem:[%s6592_s15 + $0x124] ss:$8 sps:$4 sm:$0xff]   ;;  %v5681_v63 = vld [vmem:[%s6592_s15 + $0x880] ss:$8 sps:$4 sm:$0xff]  }
  0x5b   : > { %v5692_v4 = vld [vmem:[%s6592_s15 + $0x1a4] ss:$8 sps:$4 sm:$0xff]   ;;  %v5696_v10 = vld [vmem:[%s6592_s15 + $0x1b0] ss:$8 sps:$4 sm:$0xff]  }
  0x5c   : > { %3595 = vmatpush1.bf16.msra.mxu1 %v5578_v31  ;;  %v5647_v31 = vld [vmem:[%s6592_s15 + $0x824] ss:$8 sps:$4 sm:$0xff]   ;;  %v5711_v20 = vld [vmem:[%s6592_s15 + $0x8d0] ss:$8 sps:$4 sm:$0xff]  }
  0x5d   : > { %3882 = vmatpush1.bf16.msra.mxu0 %v5579_v32  ;;  %3596 = vmatprep.subr.bf16.mxu1 %v5580_v33  ;;  %v5642_v32 = vld [vmem:[%s6592_s15 + $0x120] ss:$8 sps:$4 sm:$0xff]   ;;  %v5695_v5 = vld [vmem:[%s6592_s15 + $0x8a4] ss:$8 sps:$4 sm:$0xff]  }
  0x5e   : > { %3883 = vmatprep.subr.bf16.mxu0 %v5582_v34  ;;  %v5645_v33 = vld [vmem:[%s6592_s15 + $0x820] ss:$8 sps:$4 sm:$0xff]   ;;  %v5650_v34 = vld [vmem:[%s6592_s15 + $0x134] ss:$8 sps:$4 sm:$0xff]  }
  0x60   : > { %3597 = vmatpush1.bf16.msra.mxu1 %v5584_v35  ;;  %v5653_v35 = vld [vmem:[%s6592_s15 + $0x834] ss:$8 sps:$4 sm:$0xff]  }
  0x61   : > { %3884 = vmatpush1.bf16.msra.mxu0 %v5585_v36  ;;  %3598 = vmatprep.subr.bf16.mxu1 %v5586_v40  ;;  %v5648_v36 = vld [vmem:[%s6592_s15 + $0x130] ss:$8 sps:$4 sm:$0xff]   ;;  %v5654_v40 = vld [vmem:[%s6592_s15 + $0x140] ss:$8 sps:$4 sm:$0xff]  }
  0x62   : > { %3885 = vmatprep.subr.bf16.mxu0 %v5588_v41  ;;  %v5657_v41 = vld [vmem:[%s6592_s15 + $0x840] ss:$8 sps:$4 sm:$0xff]  }
  0x64   : > { %3599 = vmatpush1.bf16.msra.mxu1 %v5590_v42  ;;  %v5662_v42 = vld [vmem:[%s6592_s15 + $0x154] ss:$8 sps:$4 sm:$0xff]  }
  0x65   : > { %3886 = vmatpush1.bf16.msra.mxu0 %v5591_v45  ;;  %3600 = vmatprep.subr.bf16.mxu1 %v5592_v46  ;;  %v5660_v45 = vld [vmem:[%s6592_s15 + $0x150] ss:$8 sps:$4 sm:$0xff]  }
  0x66   : > { %3887 = vmatprep.subr.bf16.mxu0 %v5594_v47  ;;  %v5663_v46 = vld [vmem:[%s6592_s15 + $0x850] ss:$8 sps:$4 sm:$0xff]   ;;  %v5668_v47 = vld [vmem:[%s6592_s15 + $0x164] ss:$8 sps:$4 sm:$0xff]  }
  0x68   : > { %3601 = vmatpush1.bf16.msra.mxu1 %v5596_v48  ;;  %v5671_v48 = vld [vmem:[%s6592_s15 + $0x864] ss:$8 sps:$4 sm:$0xff]  }
  0x69   : > { %3888 = vmatpush1.bf16.msra.mxu0 %v5597_v49  ;;  %3602 = vmatprep.subr.bf16.mxu1 %v5598_v51  ;;  %v5666_v49 = vld [vmem:[%s6592_s15 + $0x160] ss:$8 sps:$4 sm:$0xff]   ;;  %v6730_v51 = vld [vmem:[%s7400_s0 + $0x20] sm:$0xff] }
  0x6a   : > { %3889 = vmatprep.subr.bf16.mxu0 %v5600_v52  ;;  %v5669_v52 = vld [vmem:[%s6592_s15 + $0x860] ss:$8 sps:$4 sm:$0xff]  }
  0x6c   : > { %3603 = vmatpush1.bf16.msra.mxu1 %v5602_v54  ;;  %v6736_v54 = vrot.slane %v6730_v51, %v6659_v50 }
  0x6d   : > { %3890 = vmatpush1.bf16.msra.mxu0 %v5603_v56  ;;  %3604 = vmatprep.subr.bf16.mxu1 %v5604_v58  ;;  %v5675_v58 = vld [vmem:[%s6592_s15 + $0x870] ss:$8 sps:$4 sm:$0xff]  }
  0x6e   : > { %3891 = vmatprep.subr.bf16.mxu0 %v5606_v59  ;;  %v379_v56 = vcombine.high %v6736_v54, %v6736_v54  ;;  %v5680_v59 = vld [vmem:[%s6592_s15 + $0x184] ss:$8 sps:$4 sm:$0xff]  }
  0x70   : > { %3605 = vmatpush1.bf16.msra.mxu1 %v5608_v0  ;;  %v481_v60 = vpack.c.bf16 %v379_v56, %v379_v56  ;;  %v5686_v0 = vld [vmem:[%s6592_s15 + $0x194] ss:$8 sps:$4 sm:$0xff]   ;;  %v5752_v56 = vld [vmem:[%s6592_s15 + $0x244] ss:$8 sps:$4 sm:$0xff]  }
  0x71   : > { %3892 = vmatpush1.bf16.msra.mxu0 %v5609_v1  ;;  %3606 = vmatprep.subr.bf16.mxu1 %v5610_v2  ;;  %v5689_v1 = vld [vmem:[%s6592_s15 + $0x894] ss:$8 sps:$4 sm:$0xff]   ;;  %v5684_v2 = vld [vmem:[%s6592_s15 + $0x190] ss:$8 sps:$4 sm:$0xff]  }
  0x72   : > { %3893 = vmatprep.subr.bf16.mxu0 %v5612_v3  ;;  %v5687_v3 = vld [vmem:[%s6592_s15 + $0x890] ss:$8 sps:$4 sm:$0xff]  }
  0x74   : > { %3607 = vmatpush1.bf16.msra.mxu1 %v5614_v6  ;;  %v5690_v6 = vld [vmem:[%s6592_s15 + $0x1a0] ss:$8 sps:$4 sm:$0xff]  }
  0x75   : > { %3894 = vmatpush1.bf16.msra.mxu0 %v5615_v7  ;;  %3608 = vmatprep.subr.bf16.mxu1 %v5616_v8  ;;  %v5693_v7 = vld [vmem:[%s6592_s15 + $0x8a0] ss:$8 sps:$4 sm:$0xff]   ;;  %v5698_v8 = vld [vmem:[%s6592_s15 + $0x1b4] ss:$8 sps:$4 sm:$0xff]  }
  0x76   : > { %3895 = vmatprep.subr.bf16.mxu0 %v5618_v9  ;;  %v5701_v9 = vld [vmem:[%s6592_s15 + $0x8b4] ss:$8 sps:$4 sm:$0xff]  }
  0x78   : > { %3609 = vmatpush1.bf16.msra.mxu1 %v5620_v11  ;;  %v5699_v11 = vld [vmem:[%s6592_s15 + $0x8b0] ss:$8 sps:$4 sm:$0xff]  }
  0x79   : > { %3896 = vmatpush1.bf16.msra.mxu0 %v5621_v12  ;;  %3610 = vmatprep.subr.bf16.mxu1 %v5622_v13  ;;  %v5704_v12 = vld [vmem:[%s6592_s15 + $0x1c4] ss:$8 sps:$4 sm:$0xff]  }
  0x7a   : > { %3897 = vmatprep.subr.bf16.mxu0 %v5624_v14  ;;  %v5707_v13 = vld [vmem:[%s6592_s15 + $0x8c4] ss:$8 sps:$4 sm:$0xff]   ;;  %v5702_v14 = vld [vmem:[%s6592_s15 + $0x1c0] ss:$8 sps:$4 sm:$0xff]  }
  0x7c   : > { %3611 = vmatpush1.bf16.msra.mxu1 %v5626_v16  ;;  %v5705_v16 = vld [vmem:[%s6592_s15 + $0x8c0] ss:$8 sps:$4 sm:$0xff]  }
  0x7d   : > { %3898 = vmatpush1.bf16.msra.mxu0 %v5627_v17  ;;  %3621 = vmatprep.subr.bf16.mxu1 %v5631_v18  ;;  %v5710_v17 = vld [vmem:[%s6592_s15 + $0x1d4] ss:$8 sps:$4 sm:$0xff]  }
  0x7e   : > { %3908 = vmatprep.subr.bf16.mxu0 %v5635_v19  ;;  %v5713_v18 = vld [vmem:[%s6592_s15 + $0x8d4] ss:$8 sps:$4 sm:$0xff]   ;;  %v5708_v19 = vld [vmem:[%s6592_s15 + $0x1d0] ss:$8 sps:$4 sm:$0xff]  }
  0x7f   : > { %3613 = vmatmul.mubr.bf16.vlgmr.msra.gmra.mrb[0].mxu1 %v464_v21  ;;  %v5716_v21 = vld [vmem:[%s6592_s15 + $0x1e4] ss:$8 sps:$4 sm:$0xff]  }
  0x80   : > { %3900 = vmatmul.mubr.bf16.vlgmr.msra.gmra.mrb[0].mxu0 %v478_v22  ;;  %3622 = vmatpush1.bf16.msra.mxu1 %v5629_v23  ;;  %v5719_v22 = vld [vmem:[%s6592_s15 + $0x8e4] ss:$8 sps:$4 sm:$0xff]   ;;  %v364_v23 = vcombine.high %v6730_v51, %v6730_v51  ;;  %v5741_v51 = vld [vmem:[%s6592_s15 + $0x920] ss:$8 sps:$4 sm:$0xff]  }
  0x81   : > { %3909 = vmatpush1.bf16.msra.mxu0 %v5633_v24  ;;  %3623 = vmatprep.subr.bf16.mxu1 %v5638_v25  ;;  %v5714_v24 = vld [vmem:[%s6592_s15 + $0x1e0] ss:$8 sps:$4 sm:$0xff]  }
  0x82   : > { %3910 = vmatprep.subr.bf16.mxu0 %v5641_v26  ;;  %3653 = vmatprep.mubr.bf16.mxu1 %v467_v27  ;;  %v5717_v25 = vld [vmem:[%s6592_s15 + $0x8e0] ss:$8 sps:$4 sm:$0xff]   ;;  %v5722_v26 = vld [vmem:[%s6592_s15 + $0x1f4] ss:$8 sps:$4 sm:$0xff]  }
  0x83   : > { %3940 = vmatprep.mubr.bf16.mxu0 %v481_v60  ;;  %v5725_v27 = vld [vmem:[%s6592_s15 + $0x8f4] ss:$8 sps:$4 sm:$0xff]  }
  0x84   : > { %3624 = vmatpush1.bf16.msra.mxu1 %v5636_v28  ;;  %v6776_v28 = vrot.slane %v364_v23, %v6659_v50  ;;  %v5758_v60 = vld [vmem:[%s6592_s15 + $0x254] ss:$8 sps:$4 sm:$0xff]   ;;  %v5792_v23 = vld [vmem:[%s6592_s15 + $0x2b0] ss:$8 sps:$4 sm:$0xff]  }
  0x85   : > { %3911 = vmatpush1.bf16.msra.mxu0 %v5639_v29  ;;  %3625 = vmatprep.subr.bf16.mxu1 %v5644_v30  ;;  %v5720_v29 = vld [vmem:[%s6592_s15 + $0x1f0] ss:$8 sps:$4 sm:$0xff]  }
  0x86   : > { %3912 = vmatprep.subr.bf16.mxu0 %v5647_v31  ;;  %v5723_v30 = vld [vmem:[%s6592_s15 + $0x8f0] ss:$8 sps:$4 sm:$0xff]   ;;  %v5728_v31 = vld [vmem:[%s6592_s15 + $0x204] ss:$8 sps:$4 sm:$0xff]  }
  0x88   : > { %3626 = vmatpush1.bf16.msra.mxu1 %v5642_v32  ;;  %v5731_v32 = vld [vmem:[%s6592_s15 + $0x904] ss:$8 sps:$4 sm:$0xff]  }
  0x89   : > { %3913 = vmatpush1.bf16.msra.mxu0 %v5645_v33  ;;  %3627 = vmatprep.subr.bf16.mxu1 %v5650_v34  ;;  %v380_v33 = vcombine.high %v6776_v28, %v6776_v28  ;;  %v5726_v34 = vld [vmem:[%s6592_s15 + $0x200] ss:$8 sps:$4 sm:$0xff]  }
  0x8a   : > { %3914 = vmatprep.subr.bf16.mxu0 %v5653_v35  ;;  %v5729_v35 = vld [vmem:[%s6592_s15 + $0x900] ss:$8 sps:$4 sm:$0xff]  }
  0x8c   : > { %3628 = vmatpush1.bf16.msra.mxu1 %v5648_v36  ;;  %v466_v36 = vpack.c.bf16 %v6692_v15, %v6692_v15 }
  0x8d   : > { %3915 = vmatpush1.bf16.msra.mxu0 %v5651_v37  ;;  %3629 = vmatprep.subr.bf16.mxu1 %v5656_v38  ;;  %v480_v37 = vpack.c.bf16 %v6736_v54, %v6736_v54  ;;  %v5734_v38 = vld [vmem:[%s6592_s15 + $0x214] ss:$8 sps:$4 sm:$0xff]   ;;  %v5744_v54 = vld [vmem:[%s6592_s15 + $0x230] ss:$8 sps:$4 sm:$0xff]  }
  0x8e   : > { %3916 = vmatprep.subr.bf16.mxu0 %v5659_v39  ;;  %v5737_v39 = vld [vmem:[%s6592_s15 + $0x914] ss:$8 sps:$4 sm:$0xff]  }
  0x90   : > { %3630 = vmatpush1.bf16.msra.mxu1 %v5654_v40  ;;  %v6795_v40 = vld [vmem:[%s7400_s0 + $0x8] sm:$0xff] }
  0x91   : > { %3917 = vmatpush1.bf16.msra.mxu0 %v5657_v41  ;;  %3631 = vmatprep.subr.bf16.mxu1 %v5662_v42  ;;  %v6799_v15 = vrot.slane %v6795_v40, %v6659_v50  ;;  %v483_v41 = vpack.c.bf16 %v380_v33, %v380_v33  ;;  %v5732_v42 = vld [vmem:[%s6592_s15 + $0x210] ss:$8 sps:$4 sm:$0xff]  }
  0x92   : > { %3918 = vmatprep.subr.bf16.mxu0 %v5665_v43  ;;  %v5735_v43 = vld [vmem:[%s6592_s15 + $0x910] ss:$8 sps:$4 sm:$0xff]  }
  0x93   : > { %v5807_v33 = vld [vmem:[%s6592_s15 + $0x9d0] ss:$8 sps:$4 sm:$0xff]  }
  0x94   : > { %3632 = vmatpush1.bf16.msra.mxu1 %v5660_v45  ;;  %v5740_v45 = vld [vmem:[%s6592_s15 + $0x224] ss:$8 sps:$4 sm:$0xff]  }
  0x95   : > { %3919 = vmatpush1.bf16.msra.mxu0 %v5663_v46  ;;  %3633 = vmatprep.subr.bf16.mxu1 %v5668_v47  ;;  %v328_v46 = vcombine.high %v6799_v15, %v6799_v15  ;;  %v5743_v47 = vld [vmem:[%s6592_s15 + $0x924] ss:$8 sps:$4 sm:$0xff]  }
  0x96   : > { %3920 = vmatprep.subr.bf16.mxu0 %v5671_v48 }
  0x97   : > { %v469_v48 = vpack.c.bf16 %v328_v46, %v328_v46  ;;  %v5819_v46 = vld [vmem:[%s6592_s15 + $0x9f0] ss:$8 sps:$4 sm:$0xff]  }
  0x98   : > { %3634 = vmatpush1.bf16.msra.mxu1 %v5666_v49  ;;  %v5738_v49 = vld [vmem:[%s6592_s15 + $0x220] ss:$8 sps:$4 sm:$0xff]  }
  0x99   : > { %3921 = vmatpush1.bf16.msra.mxu0 %v5669_v52  ;;  %3635 = vmatprep.subr.bf16.mxu1 %v5674_v53  ;;  %v5746_v52 = vld [vmem:[%s6592_s15 + $0x234] ss:$8 sps:$4 sm:$0xff]  }
  0x9a   : > { %3922 = vmatprep.subr.bf16.mxu0 %v5677_v55  ;;  %v5749_v53 = vld [vmem:[%s6592_s15 + $0x934] ss:$8 sps:$4 sm:$0xff]   ;;  %v5747_v55 = vld [vmem:[%s6592_s15 + $0x930] ss:$8 sps:$4 sm:$0xff]  }
  0x9c   : > { %3636 = vmatpush1.bf16.msra.mxu1 %v5672_v57  ;;  %v5755_v57 = vld [vmem:[%s6592_s15 + $0x944] ss:$8 sps:$4 sm:$0xff]  }
  0x9d   : > { %3923 = vmatpush1.bf16.msra.mxu0 %v5675_v58  ;;  %3637 = vmatprep.subr.bf16.mxu1 %v5680_v59  ;;  %v5750_v58 = vld [vmem:[%s6592_s15 + $0x240] ss:$8 sps:$4 sm:$0xff]  }
  0x9e   : > { %3924 = vmatprep.subr.bf16.mxu0 %v5683_v61  ;;  %v5753_v59 = vld [vmem:[%s6592_s15 + $0x940] ss:$8 sps:$4 sm:$0xff]   ;;  %v5761_v61 = vld [vmem:[%s6592_s15 + $0x954] ss:$8 sps:$4 sm:$0xff]  }
  0xa0   : > { %3638 = vmatpush1.bf16.msra.mxu1 %v5678_v62  ;;  %v5756_v62 = vld [vmem:[%s6592_s15 + $0x250] ss:$8 sps:$4 sm:$0xff]  }
  0xa1   : > { %3925 = vmatpush1.bf16.msra.mxu0 %v5681_v63  ;;  %3639 = vmatprep.subr.bf16.mxu1 %v5686_v0  ;;  %v5759_v63 = vld [vmem:[%s6592_s15 + $0x950] ss:$8 sps:$4 sm:$0xff]   ;;  %v5764_v0 = vld [vmem:[%s6592_s15 + $0x264] ss:$8 sps:$4 sm:$0xff]  }
  0xa2   : > { %3926 = vmatprep.subr.bf16.mxu0 %v5689_v1  ;;  %v5767_v1 = vld [vmem:[%s6592_s15 + $0x964] ss:$8 sps:$4 sm:$0xff]  }
  0xa4   : > { %3640 = vmatpush1.bf16.msra.mxu1 %v5684_v2  ;;  %v5762_v2 = vld [vmem:[%s6592_s15 + $0x260] ss:$8 sps:$4 sm:$0xff]  }
  0xa5   : > { %3927 = vmatpush1.bf16.msra.mxu0 %v5687_v3  ;;  %3641 = vmatprep.subr.bf16.mxu1 %v5692_v4  ;;  %v5765_v3 = vld [vmem:[%s6592_s15 + $0x960] ss:$8 sps:$4 sm:$0xff]   ;;  %v5770_v4 = vld [vmem:[%s6592_s15 + $0x274] ss:$8 sps:$4 sm:$0xff]  }
  0xa6   : > { %3928 = vmatprep.subr.bf16.mxu0 %v5695_v5  ;;  %v5773_v5 = vld [vmem:[%s6592_s15 + $0x974] ss:$8 sps:$4 sm:$0xff]  }
  0xa8   : > { %3642 = vmatpush1.bf16.msra.mxu1 %v5690_v6  ;;  %v5768_v6 = vld [vmem:[%s6592_s15 + $0x270] ss:$8 sps:$4 sm:$0xff]  }
  0xa9   : > { %3929 = vmatpush1.bf16.msra.mxu0 %v5693_v7  ;;  %3643 = vmatprep.subr.bf16.mxu1 %v5698_v8  ;;  %v5771_v7 = vld [vmem:[%s6592_s15 + $0x970] ss:$8 sps:$4 sm:$0xff]   ;;  %v5776_v8 = vld [vmem:[%s6592_s15 + $0x284] ss:$8 sps:$4 sm:$0xff]  }
  0xaa   : > { %3930 = vmatprep.subr.bf16.mxu0 %v5701_v9  ;;  %v5779_v9 = vld [vmem:[%s6592_s15 + $0x984] ss:$8 sps:$4 sm:$0xff]  }
  0xac   : > { %3644 = vmatpush1.bf16.msra.mxu1 %v5696_v10  ;;  %v5774_v10 = vld [vmem:[%s6592_s15 + $0x280] ss:$8 sps:$4 sm:$0xff]  }
  0xad   : > { %3931 = vmatpush1.bf16.msra.mxu0 %v5699_v11  ;;  %3645 = vmatprep.subr.bf16.mxu1 %v5704_v12  ;;  %v5777_v11 = vld [vmem:[%s6592_s15 + $0x980] ss:$8 sps:$4 sm:$0xff]   ;;  %v5782_v12 = vld [vmem:[%s6592_s15 + $0x294] ss:$8 sps:$4 sm:$0xff]  }
  0xae   : > { %3932 = vmatprep.subr.bf16.mxu0 %v5707_v13  ;;  %v5785_v13 = vld [vmem:[%s6592_s15 + $0x994] ss:$8 sps:$4 sm:$0xff]  }
  0xb0   : > { %3646 = vmatpush1.bf16.msra.mxu1 %v5702_v14  ;;  %v5780_v14 = vld [vmem:[%s6592_s15 + $0x290] ss:$8 sps:$4 sm:$0xff]  }
  0xb1   : > { %3933 = vmatpush1.bf16.msra.mxu0 %v5705_v16  ;;  %3647 = vmatprep.subr.bf16.mxu1 %v5710_v17  ;;  %v5783_v16 = vld [vmem:[%s6592_s15 + $0x990] ss:$8 sps:$4 sm:$0xff]   ;;  %v5788_v17 = vld [vmem:[%s6592_s15 + $0x2a4] ss:$8 sps:$4 sm:$0xff]  }
  0xb2   : > { %3934 = vmatprep.subr.bf16.mxu0 %v5713_v18  ;;  %v5791_v18 = vld [vmem:[%s6592_s15 + $0x9a4] ss:$8 sps:$4 sm:$0xff]  }
  0xb4   : > { %3648 = vmatpush1.bf16.msra.mxu1 %v5708_v19  ;;  %v5786_v19 = vld [vmem:[%s6592_s15 + $0x2a0] ss:$8 sps:$4 sm:$0xff]  }
  0xb5   : > { %3935 = vmatpush1.bf16.msra.mxu0 %v5711_v20  ;;  %3649 = vmatprep.subr.bf16.mxu1 %v5716_v21  ;;  %v5789_v20 = vld [vmem:[%s6592_s15 + $0x9a0] ss:$8 sps:$4 sm:$0xff]   ;;  %v5794_v21 = vld [vmem:[%s6592_s15 + $0x2b4] ss:$8 sps:$4 sm:$0xff]  }
  0xb6   : > { %3936 = vmatprep.subr.bf16.mxu0 %v5719_v22  ;;  %v5797_v22 = vld [vmem:[%s6592_s15 + $0x9b4] ss:$8 sps:$4 sm:$0xff]  }
  0xb8   : > { %3650 = vmatpush1.bf16.msra.mxu1 %v5714_v24  ;;  %v5795_v24 = vld [vmem:[%s6592_s15 + $0x9b0] ss:$8 sps:$4 sm:$0xff]  }
  0xb9   : > { %3937 = vmatpush1.bf16.msra.mxu0 %v5717_v25  ;;  %3651 = vmatprep.subr.bf16.mxu1 %v5722_v26  ;;  %v5800_v25 = vld [vmem:[%s6592_s15 + $0x2c4] ss:$8 sps:$4 sm:$0xff]  }
  0xba   : > { %3938 = vmatprep.subr.bf16.mxu0 %v5725_v27  ;;  %v5803_v26 = vld [vmem:[%s6592_s15 + $0x9c4] ss:$8 sps:$4 sm:$0xff]   ;;  %v5798_v27 = vld [vmem:[%s6592_s15 + $0x2c0] ss:$8 sps:$4 sm:$0xff]  }
  0xbc   : > { %3652 = vmatpush1.bf16.msra.mxu1 %v5720_v29  ;;  %v5801_v29 = vld [vmem:[%s6592_s15 + $0x9c0] ss:$8 sps:$4 sm:$0xff]  }
  0xbd   : > { %3939 = vmatpush1.bf16.msra.mxu0 %v5723_v30  ;;  %3662 = vmatprep.subr.bf16.mxu1 %v5728_v31  ;;  %v5806_v30 = vld [vmem:[%s6592_s15 + $0x2d4] ss:$8 sps:$4 sm:$0xff]  }
  0xbe   : > { %3949 = vmatprep.subr.bf16.mxu0 %v5731_v32  ;;  %v5809_v31 = vld [vmem:[%s6592_s15 + $0x9d4] ss:$8 sps:$4 sm:$0xff]   ;;  %v5804_v32 = vld [vmem:[%s6592_s15 + $0x2d0] ss:$8 sps:$4 sm:$0xff]  }
  0xbf   : > { %3654 = vmatmul.mubr.bf16.vlgmr.msra.gmra.mrb[0].mxu1 %v466_v36  ;;  %v5810_v36 = vld [vmem:[%s6592_s15 + $0x2e0] ss:$8 sps:$4 sm:$0xff]  }
  0xc0   : > { %3941 = vmatmul.mubr.bf16.vlgmr.msra.gmra.mrb[0].mxu0 %v480_v37  ;;  %3663 = vmatpush1.bf16.msra.mxu1 %v5726_v34  ;;  %v5812_v34 = vld [vmem:[%s6592_s15 + $0x2e4] ss:$8 sps:$4 sm:$0xff]   ;;  %v313_v37 = vcombine.high %v6795_v40, %v6795_v40 }
  0xc1   : > { %3950 = vmatpush1.bf16.msra.mxu0 %v5729_v35  ;;  %3664 = vmatprep.subr.bf16.mxu1 %v5734_v38  ;;  %v5815_v35 = vld [vmem:[%s6592_s15 + $0x9e4] ss:$8 sps:$4 sm:$0xff]  }
  0xc2   : > { %3951 = vmatprep.subr.bf16.mxu0 %v5737_v39  ;;  %3981 = vmatprep.mubr.bf16.mxu0 %v483_v41  ;;  %v6861_v38 = vld [vmem:[%s7400_s0 + $0x28] sm:$0xff]  ;;  %v5818_v41 = vld [vmem:[%s6592_s15 + $0x2f4] ss:$8 sps:$4 sm:$0xff]  }
  0xc3   : > { %3694 = vmatprep.mubr.bf16.mxu1 %v469_v48  ;;  %v5813_v39 = vld [vmem:[%s6592_s15 + $0x9e0] ss:$8 sps:$4 sm:$0xff]   ;;  %v6871_v40 = vrot.slane %v6861_v38, %v6659_v50  ;;  %v5828_v48 = vld [vmem:[%s6592_s15 + $0xa04] ss:$8 sps:$4 sm:$0xff]  }
  0xc4   : > { %3665 = vmatpush1.bf16.msra.mxu1 %v5732_v42  ;;  %v5821_v42 = vld [vmem:[%s6592_s15 + $0x9f4] ss:$8 sps:$4 sm:$0xff]  }
  0xc5   : > { %3952 = vmatpush1.bf16.msra.mxu0 %v5735_v43  ;;  %3666 = vmatprep.subr.bf16.mxu1 %v5740_v45  ;;  %v6867_v43 = vrot.slane %v313_v37, %v6659_v50  ;;  %v5816_v45 = vld [vmem:[%s6592_s15 + $0x2f0] ss:$8 sps:$4 sm:$0xff]  }
  0xc6   : > { %3953 = vmatprep.subr.bf16.mxu0 %v5743_v47  ;;  %v5824_v47 = vld [vmem:[%s6592_s15 + $0x304] ss:$8 sps:$4 sm:$0xff]   ;;  %v5892_v37 = vld [vmem:[%s6592_s15 + $0xab0] ss:$8 sps:$4 sm:$0xff]  }
  0xc8   : > { %3667 = vmatpush1.bf16.msra.mxu1 %v5738_v49  ;;  %v329_v49 = vcombine.high %v6867_v43, %v6867_v43 }
  0xc9   : > { %3954 = vmatpush1.bf16.msra.mxu0 %v5741_v51  ;;  %3668 = vmatprep.subr.bf16.mxu1 %v5746_v52  ;;  %v396_v51 = vcombine.high %v6871_v40, %v6871_v40  ;;  %v5822_v52 = vld [vmem:[%s6592_s15 + $0x300] ss:$8 sps:$4 sm:$0xff]  }
  0xca   : > { %3955 = vmatprep.subr.bf16.mxu0 %v5749_v53  ;;  %v468_v53 = vpack.c.bf16 %v6799_v15, %v6799_v15  ;;  %v5829_v15 = vld [vmem:[%s6592_s15 + $0x310] ss:$8 sps:$4 sm:$0xff]  }
  0xcc   : > { %3669 = vmatpush1.bf16.msra.mxu1 %v5744_v54  ;;  %v482_v54 = vpack.c.bf16 %v6776_v28, %v6776_v28  ;;  %v5832_v28 = vld [vmem:[%s6592_s15 + $0xa10] ss:$8 sps:$4 sm:$0xff]  }
  0xcd   : > { %3956 = vmatpush1.bf16.msra.mxu0 %v5747_v55  ;;  %3670 = vmatprep.subr.bf16.mxu1 %v5752_v56  ;;  %v5826_v55 = vld [vmem:[%s6592_s15 + $0xa00] ss:$8 sps:$4 sm:$0xff]   ;;  %v5831_v56 = vld [vmem:[%s6592_s15 + $0x314] ss:$8 sps:$4 sm:$0xff]  }
  0xce   : > { %3957 = vmatprep.subr.bf16.mxu0 %v5755_v57  ;;  %v5834_v57 = vld [vmem:[%s6592_s15 + $0xa14] ss:$8 sps:$4 sm:$0xff]  }
  0xd0   : > { %3671 = vmatpush1.bf16.msra.mxu1 %v5750_v58  ;;  %v471_v58 = vpack.c.bf16 %v329_v49, %v329_v49  ;;  %v5904_v49 = vld [vmem:[%s6592_s15 + $0xad0] ss:$8 sps:$4 sm:$0xff]  }
  0xd1   : > { %3958 = vmatpush1.bf16.msra.mxu0 %v5753_v59  ;;  %3672 = vmatprep.subr.bf16.mxu1 %v5758_v60  ;;  %v485_v59 = vpack.c.bf16 %v396_v51, %v396_v51  ;;  %v5837_v60 = vld [vmem:[%s6592_s15 + $0x324] ss:$8 sps:$4 sm:$0xff]  }
  0xd2   : > { %3959 = vmatprep.subr.bf16.mxu0 %v5761_v61  ;;  %v5840_v61 = vld [vmem:[%s6592_s15 + $0xa24] ss:$8 sps:$4 sm:$0xff]  }
  0xd3   : > { %v5909_v51 = vld [vmem:[%s6592_s15 + $0x3e4] ss:$8 sps:$4 sm:$0xff]  }
  0xd4   : > { %3673 = vmatpush1.bf16.msra.mxu1 %v5756_v62  ;;  %v5835_v62 = vld [vmem:[%s6592_s15 + $0x320] ss:$8 sps:$4 sm:$0xff]  }
  0xd5   : > { %3960 = vmatpush1.bf16.msra.mxu0 %v5759_v63  ;;  %3674 = vmatprep.subr.bf16.mxu1 %v5764_v0  ;;  %v5838_v63 = vld [vmem:[%s6592_s15 + $0xa20] ss:$8 sps:$4 sm:$0xff]   ;;  %v5843_v0 = vld [vmem:[%s6592_s15 + $0x334] ss:$8 sps:$4 sm:$0xff]  }
  0xd6   : > { %3961 = vmatprep.subr.bf16.mxu0 %v5767_v1  ;;  %v5846_v1 = vld [vmem:[%s6592_s15 + $0xa34] ss:$8 sps:$4 sm:$0xff]  }
  0xd8   : > { %3675 = vmatpush1.bf16.msra.mxu1 %v5762_v2  ;;  %v5841_v2 = vld [vmem:[%s6592_s15 + $0x330] ss:$8 sps:$4 sm:$0xff]  }
  0xd9   : > { %3962 = vmatpush1.bf16.msra.mxu0 %v5765_v3  ;;  %3676 = vmatprep.subr.bf16.mxu1 %v5770_v4  ;;  %v5844_v3 = vld [vmem:[%s6592_s15 + $0xa30] ss:$8 sps:$4 sm:$0xff]   ;;  %v5849_v4 = vld [vmem:[%s6592_s15 + $0x344] ss:$8 sps:$4 sm:$0xff]  }
  0xda   : > { %3963 = vmatprep.subr.bf16.mxu0 %v5773_v5  ;;  %v5852_v5 = vld [vmem:[%s6592_s15 + $0xa44] ss:$8 sps:$4 sm:$0xff]  }
  0xdc   : > { %3677 = vmatpush1.bf16.msra.mxu1 %v5768_v6  ;;  %v5847_v6 = vld [vmem:[%s6592_s15 + $0x340] ss:$8 sps:$4 sm:$0xff]  }
  0xdd   : > { %3964 = vmatpush1.bf16.msra.mxu0 %v5771_v7  ;;  %3678 = vmatprep.subr.bf16.mxu1 %v5776_v8  ;;  %v5850_v7 = vld [vmem:[%s6592_s15 + $0xa40] ss:$8 sps:$4 sm:$0xff]   ;;  %v5855_v8 = vld [vmem:[%s6592_s15 + $0x354] ss:$8 sps:$4 sm:$0xff]  }
  0xde   : > { %3965 = vmatprep.subr.bf16.mxu0 %v5779_v9  ;;  %v5858_v9 = vld [vmem:[%s6592_s15 + $0xa54] ss:$8 sps:$4 sm:$0xff]  }
  0xe0   : > { %3679 = vmatpush1.bf16.msra.mxu1 %v5774_v10  ;;  %v5853_v10 = vld [vmem:[%s6592_s15 + $0x350] ss:$8 sps:$4 sm:$0xff]  }
  0xe1   : > { %3966 = vmatpush1.bf16.msra.mxu0 %v5777_v11  ;;  %3680 = vmatprep.subr.bf16.mxu1 %v5782_v12  ;;  %v5856_v11 = vld [vmem:[%s6592_s15 + $0xa50] ss:$8 sps:$4 sm:$0xff]   ;;  %v5861_v12 = vld [vmem:[%s6592_s15 + $0x364] ss:$8 sps:$4 sm:$0xff]  }
  0xe2   : > { %3967 = vmatprep.subr.bf16.mxu0 %v5785_v13  ;;  %v5864_v13 = vld [vmem:[%s6592_s15 + $0xa64] ss:$8 sps:$4 sm:$0xff]  }
  0xe4   : > { %3681 = vmatpush1.bf16.msra.mxu1 %v5780_v14  ;;  %v5859_v14 = vld [vmem:[%s6592_s15 + $0x360] ss:$8 sps:$4 sm:$0xff]  }
  0xe5   : > { %3968 = vmatpush1.bf16.msra.mxu0 %v5783_v16  ;;  %3682 = vmatprep.subr.bf16.mxu1 %v5788_v17  ;;  %v5862_v16 = vld [vmem:[%s6592_s15 + $0xa60] ss:$8 sps:$4 sm:$0xff]   ;;  %v5867_v17 = vld [vmem:[%s6592_s15 + $0x374] ss:$8 sps:$4 sm:$0xff]  }
  0xe6   : > { %3969 = vmatprep.subr.bf16.mxu0 %v5791_v18  ;;  %v5870_v18 = vld [vmem:[%s6592_s15 + $0xa74] ss:$8 sps:$4 sm:$0xff]  }
  0xe8   : > { %3683 = vmatpush1.bf16.msra.mxu1 %v5786_v19  ;;  %v5865_v19 = vld [vmem:[%s6592_s15 + $0x370] ss:$8 sps:$4 sm:$0xff]  }
  0xe9   : > { %3970 = vmatpush1.bf16.msra.mxu0 %v5789_v20  ;;  %3684 = vmatprep.subr.bf16.mxu1 %v5794_v21  ;;  %v5868_v20 = vld [vmem:[%s6592_s15 + $0xa70] ss:$8 sps:$4 sm:$0xff]   ;;  %v5873_v21 = vld [vmem:[%s6592_s15 + $0x384] ss:$8 sps:$4 sm:$0xff]  }
  0xea   : > { %3971 = vmatprep.subr.bf16.mxu0 %v5797_v22  ;;  %v5876_v22 = vld [vmem:[%s6592_s15 + $0xa84] ss:$8 sps:$4 sm:$0xff]  }
  0xec   : > { %3685 = vmatpush1.bf16.msra.mxu1 %v5792_v23  ;;  %v5871_v23 = vld [vmem:[%s6592_s15 + $0x380] ss:$8 sps:$4 sm:$0xff]  }
  0xed   : > { %3972 = vmatpush1.bf16.msra.mxu0 %v5795_v24  ;;  %3686 = vmatprep.subr.bf16.mxu1 %v5800_v25  ;;  %v5874_v24 = vld [vmem:[%s6592_s15 + $0xa80] ss:$8 sps:$4 sm:$0xff]   ;;  %v5879_v25 = vld [vmem:[%s6592_s15 + $0x394] ss:$8 sps:$4 sm:$0xff]  }
  0xee   : > { %3973 = vmatprep.subr.bf16.mxu0 %v5803_v26  ;;  %v5882_v26 = vld [vmem:[%s6592_s15 + $0xa94] ss:$8 sps:$4 sm:$0xff]  }
  0xf0   : > { %3687 = vmatpush1.bf16.msra.mxu1 %v5798_v27  ;;  %v5877_v27 = vld [vmem:[%s6592_s15 + $0x390] ss:$8 sps:$4 sm:$0xff]  }
  0xf1   : > { %3974 = vmatpush1.bf16.msra.mxu0 %v5801_v29  ;;  %3688 = vmatprep.subr.bf16.mxu1 %v5806_v30  ;;  %v5880_v29 = vld [vmem:[%s6592_s15 + $0xa90] ss:$8 sps:$4 sm:$0xff]   ;;  %v5885_v30 = vld [vmem:[%s6592_s15 + $0x3a4] ss:$8 sps:$4 sm:$0xff]  }
  0xf2   : > { %3975 = vmatprep.subr.bf16.mxu0 %v5809_v31  ;;  %v5888_v31 = vld [vmem:[%s6592_s15 + $0xaa4] ss:$8 sps:$4 sm:$0xff]  }
  0xf4   : > { %3689 = vmatpush1.bf16.msra.mxu1 %v5804_v32  ;;  %v5883_v32 = vld [vmem:[%s6592_s15 + $0x3a0] ss:$8 sps:$4 sm:$0xff]  }
  0xf5   : > { %3976 = vmatpush1.bf16.msra.mxu0 %v5807_v33  ;;  %3690 = vmatprep.subr.bf16.mxu1 %v5812_v34  ;;  %v5886_v33 = vld [vmem:[%s6592_s15 + $0xaa0] ss:$8 sps:$4 sm:$0xff]   ;;  %v5891_v34 = vld [vmem:[%s6592_s15 + $0x3b4] ss:$8 sps:$4 sm:$0xff]  }
  0xf6   : > { %3977 = vmatprep.subr.bf16.mxu0 %v5815_v35  ;;  %v5894_v35 = vld [vmem:[%s6592_s15 + $0xab4] ss:$8 sps:$4 sm:$0xff]  }
  0xf8   : > { %3691 = vmatpush1.bf16.msra.mxu1 %v5810_v36  ;;  %v5889_v36 = vld [vmem:[%s6592_s15 + $0x3b0] ss:$8 sps:$4 sm:$0xff]  }
  0xf9   : > { %3978 = vmatpush1.bf16.msra.mxu0 %v5813_v39  ;;  %3692 = vmatprep.subr.bf16.mxu1 %v5818_v41  ;;  %v5897_v39 = vld [vmem:[%s6592_s15 + $0x3c4] ss:$8 sps:$4 sm:$0xff]  }
  0xfa   : > { %3979 = vmatprep.subr.bf16.mxu0 %v5821_v42  ;;  %v5900_v41 = vld [vmem:[%s6592_s15 + $0xac4] ss:$8 sps:$4 sm:$0xff]   ;;  %v5895_v42 = vld [vmem:[%s6592_s15 + $0x3c0] ss:$8 sps:$4 sm:$0xff]  }
  0xfc   : > { %3693 = vmatpush1.bf16.msra.mxu1 %v5816_v45  ;;  %v5898_v45 = vld [vmem:[%s6592_s15 + $0xac0] ss:$8 sps:$4 sm:$0xff]  }
  0xfd   : > { %3980 = vmatpush1.bf16.msra.mxu0 %v5819_v46  ;;  %3703 = vmatprep.subr.bf16.mxu1 %v5824_v47  ;;  %v5903_v46 = vld [vmem:[%s6592_s15 + $0x3d4] ss:$8 sps:$4 sm:$0xff]  }
  0xfe   : > { %3990 = vmatprep.subr.bf16.mxu0 %v5828_v48  ;;  %v5906_v47 = vld [vmem:[%s6592_s15 + $0xad4] ss:$8 sps:$4 sm:$0xff]   ;;  %v5901_v48 = vld [vmem:[%s6592_s15 + $0x3d0] ss:$8 sps:$4 sm:$0xff]  }
  0xff   : > { %3695 = vmatmul.mubr.bf16.vlgmr.msra.gmra.mrb[0].mxu1 %v468_v53  ;;  %v381_v53 = vcombine.high %v6861_v38, %v6861_v38 }
 0x100   : > { %3982 = vmatmul.mubr.bf16.vlgmr.msra.gmra.mrb[0].mxu0 %v482_v54  ;;  %3704 = vmatpush1.bf16.msra.mxu1 %v5822_v52  ;;  %v5912_v52 = vld [vmem:[%s6592_s15 + $0xae4] ss:$8 sps:$4 sm:$0xff]  }
 0x101   : > { %3991 = vmatpush1.bf16.msra.mxu0 %v5826_v55  ;;  %3705 = vmatprep.subr.bf16.mxu1 %v5831_v56  ;;  %v6946_v54 = vld [vmem:[%s7400_s0 + $0x10] sm:$0xff]  ;;  %v6957_v38 = vrot.slane %v381_v53, %v6659_v50  ;;  %v5986_v53 = vld [vmem:[%s6592_s15 + $0x4b0] ss:$8 sps:$4 sm:$0xff]  }
 0x102   : > { %3992 = vmatprep.subr.bf16.mxu0 %v5834_v57  ;;  %3735 = vmatprep.mubr.bf16.mxu1 %v471_v58  ;;  %v5907_v55 = vld [vmem:[%s6592_s15 + $0x3e0] ss:$8 sps:$4 sm:$0xff]   ;;  %v5915_v57 = vld [vmem:[%s6592_s15 + $0x3f4] ss:$8 sps:$4 sm:$0xff]  }
 0x103   : > { %4022 = vmatprep.mubr.bf16.mxu0 %v485_v59  ;;  %v5910_v56 = vld [vmem:[%s6592_s15 + $0xae0] ss:$8 sps:$4 sm:$0xff]   ;;  %v5918_v58 = vld [vmem:[%s6592_s15 + $0xaf4] ss:$8 sps:$4 sm:$0xff]   ;;  %v6954_v59 = vrot.slane %v6946_v54, %v6659_v50 }
 0x104   : > { %3706 = vmatpush1.bf16.msra.mxu1 %v5829_v15  ;;  %v5913_v15 = vld [vmem:[%s6592_s15 + $0x3f0] ss:$8 sps:$4 sm:$0xff]  }
 0x105   : > { %3993 = vmatpush1.bf16.msra.mxu0 %v5832_v28  ;;  %3707 = vmatprep.subr.bf16.mxu1 %v5837_v60  ;;  %v5916_v28 = vld [vmem:[%s6592_s15 + $0xaf0] ss:$8 sps:$4 sm:$0xff]   ;;  %v5922_v60 = vld [vmem:[%s6592_s15 + $0x404] ss:$8 sps:$4 sm:$0xff]  }
 0x106   : > { %3994 = vmatprep.subr.bf16.mxu0 %v5840_v61  ;;  %v5925_v61 = vld [vmem:[%s6592_s15 + $0xb04] ss:$8 sps:$4 sm:$0xff]  }
 0x108   : > { %3708 = vmatpush1.bf16.msra.mxu1 %v5835_v62  ;;  %v345_v62 = vcombine.high %v6954_v59, %v6954_v59 }
 0x109   : > { %3995 = vmatpush1.bf16.msra.mxu0 %v5838_v63  ;;  %3709 = vmatprep.subr.bf16.mxu1 %v5843_v0  ;;  %v397_v63 = vcombine.high %v6957_v38, %v6957_v38  ;;  %v470_v0 = vpack.c.bf16 %v6867_v43, %v6867_v43  ;;  %v5926_v43 = vld [vmem:[%s6592_s15 + $0x410] ss:$8 sps:$4 sm:$0xff]  }
 0x10a   : > { %3996 = vmatprep.subr.bf16.mxu0 %v5846_v1  ;;  %v484_v1 = vpack.c.bf16 %v6871_v40, %v6871_v40  ;;  %v5929_v40 = vld [vmem:[%s6592_s15 + $0xb10] ss:$8 sps:$4 sm:$0xff]  }
 0x10c   : > { %3710 = vmatpush1.bf16.msra.mxu1 %v5841_v2  ;;  %v5920_v2 = vld [vmem:[%s6592_s15 + $0x400] ss:$8 sps:$4 sm:$0xff]  }
 0x10d   : > { %3997 = vmatpush1.bf16.msra.mxu0 %v5844_v3  ;;  %3711 = vmatprep.subr.bf16.mxu1 %v5849_v4  ;;  %v5923_v3 = vld [vmem:[%s6592_s15 + $0xb00] ss:$8 sps:$4 sm:$0xff]   ;;  %v5928_v4 = vld [vmem:[%s6592_s15 + $0x414] ss:$8 sps:$4 sm:$0xff]  }
 0x10e   : > { %3998 = vmatprep.subr.bf16.mxu0 %v5852_v5  ;;  %v5931_v5 = vld [vmem:[%s6592_s15 + $0xb14] ss:$8 sps:$4 sm:$0xff]  }
 0x110   : > { %3712 = vmatpush1.bf16.msra.mxu1 %v5847_v6  ;;  %v473_v6 = vpack.c.bf16 %v345_v62, %v345_v62  ;;  %v6001_v62 = vld [vmem:[%s6592_s15 + $0xbd0] ss:$8 sps:$4 sm:$0xff]  }
 0x111   : > { %3999 = vmatpush1.bf16.msra.mxu0 %v5850_v7  ;;  %3713 = vmatprep.subr.bf16.mxu1 %v5855_v8  ;;  %v487_v7 = vpack.c.bf16 %v397_v63, %v397_v63  ;;  %v5934_v8 = vld [vmem:[%s6592_s15 + $0x424] ss:$8 sps:$4 sm:$0xff]  }
 0x112   : > { %4000 = vmatprep.subr.bf16.mxu0 %v5858_v9  ;;  %v5937_v9 = vld [vmem:[%s6592_s15 + $0xb24] ss:$8 sps:$4 sm:$0xff]  }
 0x113   : > { %v6006_v63 = vld [vmem:[%s6592_s15 + $0x4e4] ss:$8 sps:$4 sm:$0xff]  }
 0x114   : > { %3714 = vmatpush1.bf16.msra.mxu1 %v5853_v10  ;;  %v5932_v10 = vld [vmem:[%s6592_s15 + $0x420] ss:$8 sps:$4 sm:$0xff]  }
 0x115   : > { %4001 = vmatpush1.bf16.msra.mxu0 %v5856_v11  ;;  %3715 = vmatprep.subr.bf16.mxu1 %v5861_v12  ;;  %v5935_v11 = vld [vmem:[%s6592_s15 + $0xb20] ss:$8 sps:$4 sm:$0xff]   ;;  %v5940_v12 = vld [vmem:[%s6592_s15 + $0x434] ss:$8 sps:$4 sm:$0xff]  }
 0x116   : > { %4002 = vmatprep.subr.bf16.mxu0 %v5864_v13  ;;  %v5943_v13 = vld [vmem:[%s6592_s15 + $0xb34] ss:$8 sps:$4 sm:$0xff]  }
 0x118   : > { %3716 = vmatpush1.bf16.msra.mxu1 %v5859_v14  ;;  %v5938_v14 = vld [vmem:[%s6592_s15 + $0x430] ss:$8 sps:$4 sm:$0xff]  }
 0x119   : > { %4003 = vmatpush1.bf16.msra.mxu0 %v5862_v16  ;;  %3717 = vmatprep.subr.bf16.mxu1 %v5867_v17  ;;  %v5941_v16 = vld [vmem:[%s6592_s15 + $0xb30] ss:$8 sps:$4 sm:$0xff]   ;;  %v5946_v17 = vld [vmem:[%s6592_s15 + $0x444] ss:$8 sps:$4 sm:$0xff]  }
 0x11a   : > { %4004 = vmatprep.subr.bf16.mxu0 %v5870_v18  ;;  %v5949_v18 = vld [vmem:[%s6592_s15 + $0xb44] ss:$8 sps:$4 sm:$0xff]  }
 0x11c   : > { %3718 = vmatpush1.bf16.msra.mxu1 %v5865_v19  ;;  %v5944_v19 = vld [vmem:[%s6592_s15 + $0x440] ss:$8 sps:$4 sm:$0xff]  }
 0x11d   : > { %4005 = vmatpush1.bf16.msra.mxu0 %v5868_v20  ;;  %3719 = vmatprep.subr.bf16.mxu1 %v5873_v21  ;;  %v5947_v20 = vld [vmem:[%s6592_s15 + $0xb40] ss:$8 sps:$4 sm:$0xff]   ;;  %v5952_v21 = vld [vmem:[%s6592_s15 + $0x454] ss:$8 sps:$4 sm:$0xff]  }
 0x11e   : > { %4006 = vmatprep.subr.bf16.mxu0 %v5876_v22  ;;  %v5955_v22 = vld [vmem:[%s6592_s15 + $0xb54] ss:$8 sps:$4 sm:$0xff]  }
 0x120   : > { %3720 = vmatpush1.bf16.msra.mxu1 %v5871_v23  ;;  %v5950_v23 = vld [vmem:[%s6592_s15 + $0x450] ss:$8 sps:$4 sm:$0xff]  }
 0x121   : > { %4007 = vmatpush1.bf16.msra.mxu0 %v5874_v24  ;;  %3721 = vmatprep.subr.bf16.mxu1 %v5879_v25  ;;  %v5953_v24 = vld [vmem:[%s6592_s15 + $0xb50] ss:$8 sps:$4 sm:$0xff]   ;;  %v5958_v25 = vld [vmem:[%s6592_s15 + $0x464] ss:$8 sps:$4 sm:$0xff]  }
 0x122   : > { %4008 = vmatprep.subr.bf16.mxu0 %v5882_v26  ;;  %v5961_v26 = vld [vmem:[%s6592_s15 + $0xb64] ss:$8 sps:$4 sm:$0xff]  }
 0x124   : > { %3722 = vmatpush1.bf16.msra.mxu1 %v5877_v27  ;;  %v5956_v27 = vld [vmem:[%s6592_s15 + $0x460] ss:$8 sps:$4 sm:$0xff]  }
 0x125   : > { %4009 = vmatpush1.bf16.msra.mxu0 %v5880_v29  ;;  %3723 = vmatprep.subr.bf16.mxu1 %v5885_v30  ;;  %v5959_v29 = vld [vmem:[%s6592_s15 + $0xb60] ss:$8 sps:$4 sm:$0xff]   ;;  %v5964_v30 = vld [vmem:[%s6592_s15 + $0x474] ss:$8 sps:$4 sm:$0xff]  }
 0x126   : > { %4010 = vmatprep.subr.bf16.mxu0 %v5888_v31  ;;  %v5967_v31 = vld [vmem:[%s6592_s15 + $0xb74] ss:$8 sps:$4 sm:$0xff]  }
 0x128   : > { %3724 = vmatpush1.bf16.msra.mxu1 %v5883_v32  ;;  %v5962_v32 = vld [vmem:[%s6592_s15 + $0x470] ss:$8 sps:$4 sm:$0xff]  }
 0x129   : > { %4011 = vmatpush1.bf16.msra.mxu0 %v5886_v33  ;;  %3725 = vmatprep.subr.bf16.mxu1 %v5891_v34  ;;  %v5965_v33 = vld [vmem:[%s6592_s15 + $0xb70] ss:$8 sps:$4 sm:$0xff]   ;;  %v5970_v34 = vld [vmem:[%s6592_s15 + $0x484] ss:$8 sps:$4 sm:$0xff]  }
 0x12a   : > { %4012 = vmatprep.subr.bf16.mxu0 %v5894_v35  ;;  %v5973_v35 = vld [vmem:[%s6592_s15 + $0xb84] ss:$8 sps:$4 sm:$0xff]  }
 0x12c   : > { %3726 = vmatpush1.bf16.msra.mxu1 %v5889_v36  ;;  %v5968_v36 = vld [vmem:[%s6592_s15 + $0x480] ss:$8 sps:$4 sm:$0xff]  }
 0x12d   : > { %4013 = vmatpush1.bf16.msra.mxu0 %v5892_v37  ;;  %3727 = vmatprep.subr.bf16.mxu1 %v5897_v39  ;;  %v5971_v37 = vld [vmem:[%s6592_s15 + $0xb80] ss:$8 sps:$4 sm:$0xff]   ;;  %v5976_v39 = vld [vmem:[%s6592_s15 + $0x494] ss:$8 sps:$4 sm:$0xff]  }
 0x12e   : > { %4014 = vmatprep.subr.bf16.mxu0 %v5900_v41  ;;  %v5979_v41 = vld [vmem:[%s6592_s15 + $0xb94] ss:$8 sps:$4 sm:$0xff]  }
 0x130   : > { %3728 = vmatpush1.bf16.msra.mxu1 %v5895_v42  ;;  %v5974_v42 = vld [vmem:[%s6592_s15 + $0x490] ss:$8 sps:$4 sm:$0xff]  }
 0x131   : > { %4015 = vmatpush1.bf16.msra.mxu0 %v5898_v45  ;;  %3729 = vmatprep.subr.bf16.mxu1 %v5903_v46  ;;  %v5977_v45 = vld [vmem:[%s6592_s15 + $0xb90] ss:$8 sps:$4 sm:$0xff]   ;;  %v5982_v46 = vld [vmem:[%s6592_s15 + $0x4a4] ss:$8 sps:$4 sm:$0xff]  }
 0x132   : > { %4016 = vmatprep.subr.bf16.mxu0 %v5906_v47  ;;  %v5985_v47 = vld [vmem:[%s6592_s15 + $0xba4] ss:$8 sps:$4 sm:$0xff]  }
 0x134   : > { %3730 = vmatpush1.bf16.msra.mxu1 %v5901_v48  ;;  %v5980_v48 = vld [vmem:[%s6592_s15 + $0x4a0] ss:$8 sps:$4 sm:$0xff]  }
 0x135   : > { %4017 = vmatpush1.bf16.msra.mxu0 %v5904_v49  ;;  %3731 = vmatprep.subr.bf16.mxu1 %v5909_v51  ;;  %v5983_v49 = vld [vmem:[%s6592_s15 + $0xba0] ss:$8 sps:$4 sm:$0xff]   ;;  %v5988_v51 = vld [vmem:[%s6592_s15 + $0x4b4] ss:$8 sps:$4 sm:$0xff]  }
 0x136   : > { %4018 = vmatprep.subr.bf16.mxu0 %v5912_v52  ;;  %v5991_v52 = vld [vmem:[%s6592_s15 + $0xbb4] ss:$8 sps:$4 sm:$0xff]  }
 0x138   : > { %3732 = vmatpush1.bf16.msra.mxu1 %v5907_v55  ;;  %v5989_v55 = vld [vmem:[%s6592_s15 + $0xbb0] ss:$8 sps:$4 sm:$0xff]  }
 0x139   : > { %4019 = vmatpush1.bf16.msra.mxu0 %v5910_v56  ;;  %3733 = vmatprep.subr.bf16.mxu1 %v5915_v57  ;;  %v5994_v56 = vld [vmem:[%s6592_s15 + $0x4c4] ss:$8 sps:$4 sm:$0xff]  }
 0x13a   : > { %4020 = vmatprep.subr.bf16.mxu0 %v5918_v58  ;;  %v5997_v57 = vld [vmem:[%s6592_s15 + $0xbc4] ss:$8 sps:$4 sm:$0xff]   ;;  %v5992_v58 = vld [vmem:[%s6592_s15 + $0x4c0] ss:$8 sps:$4 sm:$0xff]  }
 0x13c   : > { %3734 = vmatpush1.bf16.msra.mxu1 %v5913_v15  ;;  %v5995_v15 = vld [vmem:[%s6592_s15 + $0xbc0] ss:$8 sps:$4 sm:$0xff]  }
 0x13d   : > { %4021 = vmatpush1.bf16.msra.mxu0 %v5916_v28  ;;  %3744 = vmatprep.subr.bf16.mxu1 %v5922_v60  ;;  %v6000_v28 = vld [vmem:[%s6592_s15 + $0x4d4] ss:$8 sps:$4 sm:$0xff]  }
 0x13e   : > { %4031 = vmatprep.subr.bf16.mxu0 %v5925_v61  ;;  %v6003_v60 = vld [vmem:[%s6592_s15 + $0xbd4] ss:$8 sps:$4 sm:$0xff]   ;;  %v5998_v61 = vld [vmem:[%s6592_s15 + $0x4d0] ss:$8 sps:$4 sm:$0xff]  }
 0x13f   : > { %3736 = vmatmul.mubr.bf16.vlgmr.msra.gmra.mrb[0].mxu1 %v470_v0  ;;  %v6009_v0 = vld [vmem:[%s6592_s15 + $0xbe4] ss:$8 sps:$4 sm:$0xff]  }
 0x140   : > { %4023 = vmatmul.mubr.bf16.vlgmr.msra.gmra.mrb[0].mxu0 %v484_v1  ;;  %3745 = vmatpush1.bf16.msra.mxu1 %v5920_v2  ;;  %v7030_v1 = vld [vmem:[%s7400_s0 + $0x30] sm:$0xff]  ;;  %v330_v2 = vcombine.high %v6946_v54, %v6946_v54  ;;  %v6010_v54 = vld [vmem:[%s6592_s15 + $0x4f0] ss:$8 sps:$4 sm:$0xff]  }
 0x141   : > { %4032 = vmatpush1.bf16.msra.mxu0 %v5923_v3  ;;  %3746 = vmatprep.subr.bf16.mxu1 %v5928_v4  ;;  %v6004_v3 = vld [vmem:[%s6592_s15 + $0x4e0] ss:$8 sps:$4 sm:$0xff]  }
 0x142   : > { %4033 = vmatprep.subr.bf16.mxu0 %v5931_v5  ;;  %3776 = vmatprep.mubr.bf16.mxu1 %v473_v6  ;;  %v6007_v4 = vld [vmem:[%s6592_s15 + $0xbe0] ss:$8 sps:$4 sm:$0xff]   ;;  %v6012_v5 = vld [vmem:[%s6592_s15 + $0x4f4] ss:$8 sps:$4 sm:$0xff]  }
 0x143   : > { %4063 = vmatprep.mubr.bf16.mxu0 %v487_v7  ;;  %v6015_v6 = vld [vmem:[%s6592_s15 + $0xbf4] ss:$8 sps:$4 sm:$0xff]   ;;  %v7039_v7 = vrot.slane %v330_v2, %v6659_v50  ;;  %v6083_v2 = vld [vmem:[%s6592_s15 + $0x5b0] ss:$8 sps:$4 sm:$0xff]  }
 0x144   : > { %3747 = vmatpush1.bf16.msra.mxu1 %v5926_v43  ;;  %v7043_v43 = vrot.slane %v7030_v1, %v6659_v50 }
 0x145   : > { %4034 = vmatpush1.bf16.msra.mxu0 %v5929_v40  ;;  %3748 = vmatprep.subr.bf16.mxu1 %v5934_v8  ;;  %v6013_v40 = vld [vmem:[%s6592_s15 + $0xbf0] ss:$8 sps:$4 sm:$0xff]   ;;  %v6018_v8 = vld [vmem:[%s6592_s15 + $0x504] ss:$8 sps:$4 sm:$0xff]  }
 0x146   : > { %4035 = vmatprep.subr.bf16.mxu0 %v5937_v9  ;;  %v6022_v9 = vld [vmem:[%s6592_s15 + $0xc04] ss:$8 sps:$4 sm:$0xff]  }
 0x148   : > { %3749 = vmatpush1.bf16.msra.mxu1 %v5932_v10  ;;  %v6016_v10 = vld [vmem:[%s6592_s15 + $0x500] ss:$8 sps:$4 sm:$0xff]  }
 0x149   : > { %4036 = vmatpush1.bf16.msra.mxu0 %v5935_v11  ;;  %3750 = vmatprep.subr.bf16.mxu1 %v5940_v12  ;;  %v6020_v11 = vld [vmem:[%s6592_s15 + $0xc00] ss:$8 sps:$4 sm:$0xff]   ;;  %v346_v12 = vcombine.high %v7039_v7, %v7039_v7 }
 0x14a   : > { %4037 = vmatprep.subr.bf16.mxu0 %v5943_v13  ;;  %v413_v13 = vcombine.high %v7043_v43, %v7043_v43 }
 0x14c   : > { %3751 = vmatpush1.bf16.msra.mxu1 %v5938_v14  ;;  %v472_v14 = vpack.c.bf16 %v6954_v59, %v6954_v59  ;;  %v6031_v59 = vld [vmem:[%s6592_s15 + $0x524] ss:$8 sps:$4 sm:$0xff]  }
 0x14d   : > { %4038 = vmatpush1.bf16.msra.mxu0 %v5941_v16  ;;  %3752 = vmatprep.subr.bf16.mxu1 %v5946_v17  ;;  %v486_v16 = vpack.c.bf16 %v6957_v38, %v6957_v38  ;;  %v6025_v17 = vld [vmem:[%s6592_s15 + $0x514] ss:$8 sps:$4 sm:$0xff]   ;;  %v6034_v38 = vld [vmem:[%s6592_s15 + $0xc24] ss:$8 sps:$4 sm:$0xff]  }
 0x14e   : > { %4039 = vmatprep.subr.bf16.mxu0 %v5949_v18  ;;  %v6028_v18 = vld [vmem:[%s6592_s15 + $0xc14] ss:$8 sps:$4 sm:$0xff]  }
 0x150   : > { %3753 = vmatpush1.bf16.msra.mxu1 %v5944_v19  ;;  %v6023_v19 = vld [vmem:[%s6592_s15 + $0x510] ss:$8 sps:$4 sm:$0xff]  }
 0x151   : > { %4040 = vmatpush1.bf16.msra.mxu0 %v5947_v20  ;;  %3754 = vmatprep.subr.bf16.mxu1 %v5952_v21  ;;  %v6026_v20 = vld [vmem:[%s6592_s15 + $0xc10] ss:$8 sps:$4 sm:$0xff]   ;;  %v475_v21 = vpack.c.bf16 %v346_v12, %v346_v12  ;;  %v6106_v12 = vld [vmem:[%s6592_s15 + $0xce4] ss:$8 sps:$4 sm:$0xff]  }
 0x152   : > { %4041 = vmatprep.subr.bf16.mxu0 %v5955_v22  ;;  %v489_v22 = vpack.c.bf16 %v413_v13, %v413_v13  ;;  %v398_v13 = vcombine.high %v7030_v1, %v7030_v1  ;;  %v6107_v1 = vld [vmem:[%s6592_s15 + $0x5f0] ss:$8 sps:$4 sm:$0xff]  }
 0x154   : > { %3755 = vmatpush1.bf16.msra.mxu1 %v5950_v23  ;;  %v6029_v23 = vld [vmem:[%s6592_s15 + $0x520] ss:$8 sps:$4 sm:$0xff]  }
 0x155   : > { %4042 = vmatpush1.bf16.msra.mxu0 %v5953_v24  ;;  %3756 = vmatprep.subr.bf16.mxu1 %v5958_v25  ;;  %v6032_v24 = vld [vmem:[%s6592_s15 + $0xc20] ss:$8 sps:$4 sm:$0xff]   ;;  %v6037_v25 = vld [vmem:[%s6592_s15 + $0x534] ss:$8 sps:$4 sm:$0xff]  }
 0x156   : > { %4043 = vmatprep.subr.bf16.mxu0 %v5961_v26  ;;  %v6040_v26 = vld [vmem:[%s6592_s15 + $0xc34] ss:$8 sps:$4 sm:$0xff]  }
 0x158   : > { %3757 = vmatpush1.bf16.msra.mxu1 %v5956_v27  ;;  %v6035_v27 = vld [vmem:[%s6592_s15 + $0x530] ss:$8 sps:$4 sm:$0xff]  }
 0x159   : > { %4044 = vmatpush1.bf16.msra.mxu0 %v5959_v29  ;;  %3758 = vmatprep.subr.bf16.mxu1 %v5964_v30  ;;  %v6038_v29 = vld [vmem:[%s6592_s15 + $0xc30] ss:$8 sps:$4 sm:$0xff]   ;;  %v6043_v30 = vld [vmem:[%s6592_s15 + $0x544] ss:$8 sps:$4 sm:$0xff]  }
 0x15a   : > { %4045 = vmatprep.subr.bf16.mxu0 %v5967_v31  ;;  %v6046_v31 = vld [vmem:[%s6592_s15 + $0xc44] ss:$8 sps:$4 sm:$0xff]  }
 0x15c   : > { %3759 = vmatpush1.bf16.msra.mxu1 %v5962_v32  ;;  %v6041_v32 = vld [vmem:[%s6592_s15 + $0x540] ss:$8 sps:$4 sm:$0xff]  }
 0x15d   : > { %4046 = vmatpush1.bf16.msra.mxu0 %v5965_v33  ;;  %3760 = vmatprep.subr.bf16.mxu1 %v5970_v34  ;;  %v6044_v33 = vld [vmem:[%s6592_s15 + $0xc40] ss:$8 sps:$4 sm:$0xff]   ;;  %v6049_v34 = vld [vmem:[%s6592_s15 + $0x554] ss:$8 sps:$4 sm:$0xff]  }
 0x15e   : > { %4047 = vmatprep.subr.bf16.mxu0 %v5973_v35  ;;  %v6052_v35 = vld [vmem:[%s6592_s15 + $0xc54] ss:$8 sps:$4 sm:$0xff]  }
 0x160   : > { %3761 = vmatpush1.bf16.msra.mxu1 %v5968_v36  ;;  %v6047_v36 = vld [vmem:[%s6592_s15 + $0x550] ss:$8 sps:$4 sm:$0xff]  }
 0x161   : > { %4048 = vmatpush1.bf16.msra.mxu0 %v5971_v37  ;;  %3762 = vmatprep.subr.bf16.mxu1 %v5976_v39  ;;  %v6050_v37 = vld [vmem:[%s6592_s15 + $0xc50] ss:$8 sps:$4 sm:$0xff]   ;;  %v6055_v39 = vld [vmem:[%s6592_s15 + $0x564] ss:$8 sps:$4 sm:$0xff]  }
 0x162   : > { %4049 = vmatprep.subr.bf16.mxu0 %v5979_v41  ;;  %v6058_v41 = vld [vmem:[%s6592_s15 + $0xc64] ss:$8 sps:$4 sm:$0xff]  }
 0x164   : > { %3763 = vmatpush1.bf16.msra.mxu1 %v5974_v42  ;;  %v6053_v42 = vld [vmem:[%s6592_s15 + $0x560] ss:$8 sps:$4 sm:$0xff]  }
 0x165   : > { %4050 = vmatpush1.bf16.msra.mxu0 %v5977_v45  ;;  %3764 = vmatprep.subr.bf16.mxu1 %v5982_v46  ;;  %v6056_v45 = vld [vmem:[%s6592_s15 + $0xc60] ss:$8 sps:$4 sm:$0xff]   ;;  %v6061_v46 = vld [vmem:[%s6592_s15 + $0x574] ss:$8 sps:$4 sm:$0xff]  }
 0x166   : > { %4051 = vmatprep.subr.bf16.mxu0 %v5985_v47  ;;  %v6064_v47 = vld [vmem:[%s6592_s15 + $0xc74] ss:$8 sps:$4 sm:$0xff]  }
 0x168   : > { %3765 = vmatpush1.bf16.msra.mxu1 %v5980_v48  ;;  %v6059_v48 = vld [vmem:[%s6592_s15 + $0x570] ss:$8 sps:$4 sm:$0xff]  }
 0x169   : > { %4052 = vmatpush1.bf16.msra.mxu0 %v5983_v49  ;;  %3766 = vmatprep.subr.bf16.mxu1 %v5988_v51  ;;  %v6062_v49 = vld [vmem:[%s6592_s15 + $0xc70] ss:$8 sps:$4 sm:$0xff]   ;;  %v6067_v51 = vld [vmem:[%s6592_s15 + $0x584] ss:$8 sps:$4 sm:$0xff]  }
 0x16a   : > { %4053 = vmatprep.subr.bf16.mxu0 %v5991_v52  ;;  %v6070_v52 = vld [vmem:[%s6592_s15 + $0xc84] ss:$8 sps:$4 sm:$0xff]  }
 0x16c   : > { %3767 = vmatpush1.bf16.msra.mxu1 %v5986_v53  ;;  %v6065_v53 = vld [vmem:[%s6592_s15 + $0x580] ss:$8 sps:$4 sm:$0xff]  }
 0x16d   : > { %4054 = vmatpush1.bf16.msra.mxu0 %v5989_v55  ;;  %3768 = vmatprep.subr.bf16.mxu1 %v5994_v56  ;;  %v6068_v55 = vld [vmem:[%s6592_s15 + $0xc80] ss:$8 sps:$4 sm:$0xff]   ;;  %v6073_v56 = vld [vmem:[%s6592_s15 + $0x594] ss:$8 sps:$4 sm:$0xff]  }
 0x16e   : > { %4055 = vmatprep.subr.bf16.mxu0 %v5997_v57  ;;  %v6076_v57 = vld [vmem:[%s6592_s15 + $0xc94] ss:$8 sps:$4 sm:$0xff]  }
 0x170   : > { %3769 = vmatpush1.bf16.msra.mxu1 %v5992_v58  ;;  %v6071_v58 = vld [vmem:[%s6592_s15 + $0x590] ss:$8 sps:$4 sm:$0xff]  }
 0x171   : > { %4056 = vmatpush1.bf16.msra.mxu0 %v5995_v15  ;;  %3770 = vmatprep.subr.bf16.mxu1 %v6000_v28  ;;  %v6074_v15 = vld [vmem:[%s6592_s15 + $0xc90] ss:$8 sps:$4 sm:$0xff]   ;;  %v6079_v28 = vld [vmem:[%s6592_s15 + $0x5a4] ss:$8 sps:$4 sm:$0xff]  }
 0x172   : > { %4057 = vmatprep.subr.bf16.mxu0 %v6003_v60  ;;  %v6082_v60 = vld [vmem:[%s6592_s15 + $0xca4] ss:$8 sps:$4 sm:$0xff]  }
 0x174   : > { %3771 = vmatpush1.bf16.msra.mxu1 %v5998_v61  ;;  %v6077_v61 = vld [vmem:[%s6592_s15 + $0x5a0] ss:$8 sps:$4 sm:$0xff]  }
 0x175   : > { %4058 = vmatpush1.bf16.msra.mxu0 %v6001_v62  ;;  %3772 = vmatprep.subr.bf16.mxu1 %v6006_v63  ;;  %v6080_v62 = vld [vmem:[%s6592_s15 + $0xca0] ss:$8 sps:$4 sm:$0xff]   ;;  %v6085_v63 = vld [vmem:[%s6592_s15 + $0x5b4] ss:$8 sps:$4 sm:$0xff]  }
 0x176   : > { %4059 = vmatprep.subr.bf16.mxu0 %v6009_v0  ;;  %v6088_v0 = vld [vmem:[%s6592_s15 + $0xcb4] ss:$8 sps:$4 sm:$0xff]  }
 0x178   : > { %3773 = vmatpush1.bf16.msra.mxu1 %v6004_v3  ;;  %v6086_v3 = vld [vmem:[%s6592_s15 + $0xcb0] ss:$8 sps:$4 sm:$0xff]  }
 0x179   : > { %4060 = vmatpush1.bf16.msra.mxu0 %v6007_v4  ;;  %3774 = vmatprep.subr.bf16.mxu1 %v6012_v5  ;;  %v6091_v4 = vld [vmem:[%s6592_s15 + $0x5c4] ss:$8 sps:$4 sm:$0xff]  }
 0x17a   : > { %4061 = vmatprep.subr.bf16.mxu0 %v6015_v6  ;;  %v6094_v5 = vld [vmem:[%s6592_s15 + $0xcc4] ss:$8 sps:$4 sm:$0xff]   ;;  %v6089_v6 = vld [vmem:[%s6592_s15 + $0x5c0] ss:$8 sps:$4 sm:$0xff]  }
 0x17c   : > { %3775 = vmatpush1.bf16.msra.mxu1 %v6010_v54  ;;  %v6092_v54 = vld [vmem:[%s6592_s15 + $0xcc0] ss:$8 sps:$4 sm:$0xff]  }
 0x17d   : > { %4062 = vmatpush1.bf16.msra.mxu0 %v6013_v40  ;;  %3785 = vmatprep.subr.bf16.mxu1 %v6018_v8  ;;  %v6097_v40 = vld [vmem:[%s6592_s15 + $0x5d4] ss:$8 sps:$4 sm:$0xff]  }
 0x17e   : > { %4072 = vmatprep.subr.bf16.mxu0 %v6022_v9  ;;  %v6100_v8 = vld [vmem:[%s6592_s15 + $0xcd4] ss:$8 sps:$4 sm:$0xff]   ;;  %v6095_v9 = vld [vmem:[%s6592_s15 + $0x5d0] ss:$8 sps:$4 sm:$0xff]  }
 0x17f   : > { %3777 = vmatmul.mubr.bf16.vlgmr.msra.gmra.mrb[0].mxu1 %v472_v14  ;;  %v6101_v14 = vld [vmem:[%s6592_s15 + $0x5e0] ss:$8 sps:$4 sm:$0xff]  }
 0x180   : > { %4064 = vmatmul.mubr.bf16.vlgmr.msra.gmra.mrb[0].mxu0 %v486_v16  ;;  %3786 = vmatpush1.bf16.msra.mxu1 %v6016_v10  ;;  %v6098_v10 = vld [vmem:[%s6592_s15 + $0xcd0] ss:$8 sps:$4 sm:$0xff]   ;;  %v6104_v16 = vld [vmem:[%s6592_s15 + $0xce0] ss:$8 sps:$4 sm:$0xff]  }
 0x181   : > { %4073 = vmatpush1.bf16.msra.mxu0 %v6020_v11  ;;  %3787 = vmatprep.subr.bf16.mxu1 %v6025_v17  ;;  %v6103_v11 = vld [vmem:[%s6592_s15 + $0x5e4] ss:$8 sps:$4 sm:$0xff]   ;;  %v6109_v17 = vld [vmem:[%s6592_s15 + $0x5f4] ss:$8 sps:$4 sm:$0xff]  }
 0x182   : > { %4074 = vmatprep.subr.bf16.mxu0 %v6028_v18  ;;  %3817 = vmatprep.mubr.bf16.mxu1 %v475_v21  ;;  %v6112_v18 = vld [vmem:[%s6592_s15 + $0xcf4] ss:$8 sps:$4 sm:$0xff]   ;;  %v6110_v21 = vld [vmem:[%s6592_s15 + $0xcf0] ss:$8 sps:$4 sm:$0xff]  }
 0x183   : > { %4104 = vmatprep.mubr.bf16.mxu0 %v489_v22  ;;  %v6116_v22 = vld [vmem:[%s6592_s15 + $0x604] ss:$8 sps:$4 sm:$0xff]  }
 0x184   : > { %3788 = vmatpush1.bf16.msra.mxu1 %v6023_v19  ;;  %v7122_v19 = vld.sshfl [vmem:[%s7400_s0 + $0x18] sm:$0xff pattern:$0x76325410] }
 0x185   : > { %4075 = vmatpush1.bf16.msra.mxu0 %v6026_v20  ;;  %3789 = vmatprep.subr.bf16.mxu1 %v6031_v59  ;;  %v7125_v20 = vrot.slane %v398_v13, %v6659_v50  ;;  %v6119_v59 = vld [vmem:[%s6592_s15 + $0xd04] ss:$8 sps:$4 sm:$0xff]   ;;  %v6183_v13 = vld [vmem:[%s6592_s15 + $0xdb0] ss:$8 sps:$4 sm:$0xff]  }
 0x186   : > { %4076 = vmatprep.subr.bf16.mxu0 %v6034_v38  ;;  %v362_v38 = vcombine.high %v7122_v19, %v7122_v19 }
 0x188   : > { %3790 = vmatpush1.bf16.msra.mxu1 %v6029_v23  ;;  %v414_v23 = vcombine.high %v7125_v20, %v7125_v20 }
 0x189   : > { %4077 = vmatpush1.bf16.msra.mxu0 %v6032_v24  ;;  %3791 = vmatprep.subr.bf16.mxu1 %v6037_v25  ;;  %v474_v24 = vpack.c.bf16 %v7039_v7, %v7039_v7  ;;  %v488_v25 = vpack.c.bf16 %v7043_v43, %v7043_v43  ;;  %v6120_v7 = vld [vmem:[%s6592_s15 + $0x610] ss:$8 sps:$4 sm:$0xff]  }
 0x18a   : > { %4078 = vmatprep.subr.bf16.mxu0 %v6040_v26  ;;  %v6114_v26 = vld [vmem:[%s6592_s15 + $0x600] ss:$8 sps:$4 sm:$0xff]   ;;  %v6123_v43 = vld [vmem:[%s6592_s15 + $0xd10] ss:$8 sps:$4 sm:$0xff]  }
 0x18c   : > { %3792 = vmatpush1.bf16.msra.mxu1 %v6035_v27  ;;  %v6117_v27 = vld [vmem:[%s6592_s15 + $0xd00] ss:$8 sps:$4 sm:$0xff]  }
 0x18d   : > { %4079 = vmatpush1.bf16.msra.mxu0 %v6038_v29  ;;  %3793 = vmatprep.subr.bf16.mxu1 %v6043_v30  ;;  %v6122_v29 = vld [vmem:[%s6592_s15 + $0x614] ss:$8 sps:$4 sm:$0xff]  }
 0x18e   : > { %4080 = vmatprep.subr.bf16.mxu0 %v6046_v31  ;;  %v6125_v30 = vld [vmem:[%s6592_s15 + $0xd14] ss:$8 sps:$4 sm:$0xff]   ;;  %v477_v31 = vpack.c.bf16 %v362_v38, %v362_v38  ;;  %v6200_v38 = vld [vmem:[%s6592_s15 + $0x6e4] ss:$8 sps:$4 sm:$0xff]  }
 0x190   : > { %3794 = vmatpush1.bf16.msra.mxu1 %v6041_v32  ;;  %v491_v32 = vpack.c.bf16 %v414_v23, %v414_v23  ;;  %v6203_v23 = vld [vmem:[%s6592_s15 + $0xde4] ss:$8 sps:$4 sm:$0xff]  }
 0x191   : > { %4081 = vmatpush1.bf16.msra.mxu0 %v6044_v33  ;;  %3795 = vmatprep.subr.bf16.mxu1 %v6049_v34  ;;  %v6128_v33 = vld [vmem:[%s6592_s15 + $0x624] ss:$8 sps:$4 sm:$0xff]  }
 0x192   : > { %4082 = vmatprep.subr.bf16.mxu0 %v6052_v35  ;;  %v6131_v34 = vld [vmem:[%s6592_s15 + $0xd24] ss:$8 sps:$4 sm:$0xff]   ;;  %v6126_v35 = vld [vmem:[%s6592_s15 + $0x620] ss:$8 sps:$4 sm:$0xff]  }
 0x194   : > { %3796 = vmatpush1.bf16.msra.mxu1 %v6047_v36  ;;  %v6129_v36 = vld [vmem:[%s6592_s15 + $0xd20] ss:$8 sps:$4 sm:$0xff]  }
 0x195   : > { %4083 = vmatpush1.bf16.msra.mxu0 %v6050_v37  ;;  %3797 = vmatprep.subr.bf16.mxu1 %v6055_v39  ;;  %v6134_v37 = vld [vmem:[%s6592_s15 + $0x634] ss:$8 sps:$4 sm:$0xff]  }
 0x196   : > { %4084 = vmatprep.subr.bf16.mxu0 %v6058_v41  ;;  %v6137_v39 = vld [vmem:[%s6592_s15 + $0xd34] ss:$8 sps:$4 sm:$0xff]   ;;  %v6132_v41 = vld [vmem:[%s6592_s15 + $0x630] ss:$8 sps:$4 sm:$0xff]  }
 0x198   : > { %3798 = vmatpush1.bf16.msra.mxu1 %v6053_v42  ;;  %v6135_v42 = vld [vmem:[%s6592_s15 + $0xd30] ss:$8 sps:$4 sm:$0xff]  }
 0x199   : > { %4085 = vmatpush1.bf16.msra.mxu0 %v6056_v45  ;;  %3799 = vmatprep.subr.bf16.mxu1 %v6061_v46  ;;  %v6140_v45 = vld [vmem:[%s6592_s15 + $0x644] ss:$8 sps:$4 sm:$0xff]  }
 0x19a   : > { %4086 = vmatprep.subr.bf16.mxu0 %v6064_v47  ;;  %v6143_v46 = vld [vmem:[%s6592_s15 + $0xd44] ss:$8 sps:$4 sm:$0xff]   ;;  %v6138_v47 = vld [vmem:[%s6592_s15 + $0x640] ss:$8 sps:$4 sm:$0xff]  }
 0x19c   : > { %3800 = vmatpush1.bf16.msra.mxu1 %v6059_v48  ;;  %v6141_v48 = vld [vmem:[%s6592_s15 + $0xd40] ss:$8 sps:$4 sm:$0xff]  }
 0x19d   : > { %4087 = vmatpush1.bf16.msra.mxu0 %v6062_v49  ;;  %3801 = vmatprep.subr.bf16.mxu1 %v6067_v51  ;;  %v6146_v49 = vld [vmem:[%s6592_s15 + $0x654] ss:$8 sps:$4 sm:$0xff]  }
 0x19e   : > { %4088 = vmatprep.subr.bf16.mxu0 %v6070_v52  ;;  %v6149_v51 = vld [vmem:[%s6592_s15 + $0xd54] ss:$8 sps:$4 sm:$0xff]   ;;  %v6144_v52 = vld [vmem:[%s6592_s15 + $0x650] ss:$8 sps:$4 sm:$0xff]  }
 0x1a0   : > { %3802 = vmatpush1.bf16.msra.mxu1 %v6065_v53  ;;  %v6147_v53 = vld [vmem:[%s6592_s15 + $0xd50] ss:$8 sps:$4 sm:$0xff]  }
 0x1a1   : > { %4089 = vmatpush1.bf16.msra.mxu0 %v6068_v55  ;;  %3803 = vmatprep.subr.bf16.mxu1 %v6073_v56  ;;  %v6152_v55 = vld [vmem:[%s6592_s15 + $0x664] ss:$8 sps:$4 sm:$0xff]  }
 0x1a2   : > { %4090 = vmatprep.subr.bf16.mxu0 %v6076_v57  ;;  %v6155_v56 = vld [vmem:[%s6592_s15 + $0xd64] ss:$8 sps:$4 sm:$0xff]   ;;  %v6150_v57 = vld [vmem:[%s6592_s15 + $0x660] ss:$8 sps:$4 sm:$0xff]  }
 0x1a4   : > { %3804 = vmatpush1.bf16.msra.mxu1 %v6071_v58  ;;  %v6153_v58 = vld [vmem:[%s6592_s15 + $0xd60] ss:$8 sps:$4 sm:$0xff]  }
 0x1a5   : > { %4091 = vmatpush1.bf16.msra.mxu0 %v6074_v15  ;;  %3805 = vmatprep.subr.bf16.mxu1 %v6079_v28  ;;  %v6158_v15 = vld [vmem:[%s6592_s15 + $0x674] ss:$8 sps:$4 sm:$0xff]  }
 0x1a6   : > { %4092 = vmatprep.subr.bf16.mxu0 %v6082_v60  ;;  %v6161_v28 = vld [vmem:[%s6592_s15 + $0xd74] ss:$8 sps:$4 sm:$0xff]   ;;  %v6156_v60 = vld [vmem:[%s6592_s15 + $0x670] ss:$8 sps:$4 sm:$0xff]  }
 0x1a8   : > { %3806 = vmatpush1.bf16.msra.mxu1 %v6077_v61  ;;  %v6159_v61 = vld [vmem:[%s6592_s15 + $0xd70] ss:$8 sps:$4 sm:$0xff]  }
 0x1a9   : > { %4093 = vmatpush1.bf16.msra.mxu0 %v6080_v62  ;;  %3807 = vmatprep.subr.bf16.mxu1 %v6085_v63  ;;  %v6164_v62 = vld [vmem:[%s6592_s15 + $0x684] ss:$8 sps:$4 sm:$0xff]  }
 0x1aa   : > { %4094 = vmatprep.subr.bf16.mxu0 %v6088_v0  ;;  %v6167_v63 = vld [vmem:[%s6592_s15 + $0xd84] ss:$8 sps:$4 sm:$0xff]   ;;  %v6162_v0 = vld [vmem:[%s6592_s15 + $0x680] ss:$8 sps:$4 sm:$0xff]  }
 0x1ac   : > { %3808 = vmatpush1.bf16.msra.mxu1 %v6083_v2  ;;  %v6165_v2 = vld [vmem:[%s6592_s15 + $0xd80] ss:$8 sps:$4 sm:$0xff]  }
 0x1ad   : > { %4095 = vmatpush1.bf16.msra.mxu0 %v6086_v3  ;;  %3809 = vmatprep.subr.bf16.mxu1 %v6091_v4  ;;  %v6170_v3 = vld [vmem:[%s6592_s15 + $0x694] ss:$8 sps:$4 sm:$0xff]  }
 0x1ae   : > { %4096 = vmatprep.subr.bf16.mxu0 %v6094_v5  ;;  %v6173_v4 = vld [vmem:[%s6592_s15 + $0xd94] ss:$8 sps:$4 sm:$0xff]   ;;  %v6168_v5 = vld [vmem:[%s6592_s15 + $0x690] ss:$8 sps:$4 sm:$0xff]  }
 0x1b0   : > { %3810 = vmatpush1.bf16.msra.mxu1 %v6089_v6  ;;  %v6171_v6 = vld [vmem:[%s6592_s15 + $0xd90] ss:$8 sps:$4 sm:$0xff]  }
 0x1b1   : > { %4097 = vmatpush1.bf16.msra.mxu0 %v6092_v54  ;;  %3811 = vmatprep.subr.bf16.mxu1 %v6097_v40  ;;  %v6176_v54 = vld [vmem:[%s6592_s15 + $0x6a4] ss:$8 sps:$4 sm:$0xff]  }
 0x1b2   : > { %4098 = vmatprep.subr.bf16.mxu0 %v6100_v8  ;;  %v6179_v40 = vld [vmem:[%s6592_s15 + $0xda4] ss:$8 sps:$4 sm:$0xff]   ;;  %v6174_v8 = vld [vmem:[%s6592_s15 + $0x6a0] ss:$8 sps:$4 sm:$0xff]  }
 0x1b4   : > { %3812 = vmatpush1.bf16.msra.mxu1 %v6095_v9  ;;  %v6177_v9 = vld [vmem:[%s6592_s15 + $0xda0] ss:$8 sps:$4 sm:$0xff]  }
 0x1b5   : > { %4099 = vmatpush1.bf16.msra.mxu0 %v6098_v10  ;;  %3813 = vmatprep.subr.bf16.mxu1 %v6103_v11  ;;  %v6182_v10 = vld [vmem:[%s6592_s15 + $0x6b4] ss:$8 sps:$4 sm:$0xff]  }
 0x1b6   : > { %4100 = vmatprep.subr.bf16.mxu0 %v6106_v12  ;;  %v6185_v11 = vld [vmem:[%s6592_s15 + $0xdb4] ss:$8 sps:$4 sm:$0xff]   ;;  %v6180_v12 = vld [vmem:[%s6592_s15 + $0x6b0] ss:$8 sps:$4 sm:$0xff]  }
 0x1b8   : > { %3814 = vmatpush1.bf16.msra.mxu1 %v6101_v14  ;;  %v6188_v14 = vld [vmem:[%s6592_s15 + $0x6c4] ss:$8 sps:$4 sm:$0xff]  }
 0x1b9   : > { %4101 = vmatpush1.bf16.msra.mxu0 %v6104_v16  ;;  %3815 = vmatprep.subr.bf16.mxu1 %v6109_v17  ;;  %v6191_v16 = vld [vmem:[%s6592_s15 + $0xdc4] ss:$8 sps:$4 sm:$0xff]   ;;  %v6186_v17 = vld [vmem:[%s6592_s15 + $0x6c0] ss:$8 sps:$4 sm:$0xff]  }
 0x1ba   : > { %4102 = vmatprep.subr.bf16.mxu0 %v6112_v18  ;;  %v6189_v18 = vld [vmem:[%s6592_s15 + $0xdc0] ss:$8 sps:$4 sm:$0xff]  }
 0x1bc   : > { %3816 = vmatpush1.bf16.msra.mxu1 %v6107_v1  ;;  %v6194_v1 = vld [vmem:[%s6592_s15 + $0x6d4] ss:$8 sps:$4 sm:$0xff]  }
 0x1bd   : > { %4103 = vmatpush1.bf16.msra.mxu0 %v6110_v21  ;;  %3826 = vmatprep.subr.bf16.mxu1 %v6116_v22  ;;  %v6197_v21 = vld [vmem:[%s6592_s15 + $0xdd4] ss:$8 sps:$4 sm:$0xff]   ;;  %v6192_v22 = vld [vmem:[%s6592_s15 + $0x6d0] ss:$8 sps:$4 sm:$0xff]  }
 0x1be   : > { %4113 = vmatprep.subr.bf16.mxu0 %v6119_v59  ;;  %v6195_v59 = vld [vmem:[%s6592_s15 + $0xdd0] ss:$8 sps:$4 sm:$0xff]  }
 0x1bf   : > { %3818 = vmatmul.mubr.bf16.vlgmr.msra.gmra.mrb[0].mxu1 %v474_v24  ;;  %v7198_v24 = vld [vmem:[%s7400_s0 + $0x38] sm:$0xff] }
 0x1c0   : > { %4105 = vmatmul.mubr.bf16.vlgmr.msra.gmra.mrb[0].mxu0 %v488_v25  ;;  %3827 = vmatpush1.bf16.msra.mxu1 %v6114_v26  ;;  %v6198_v25 = vld [vmem:[%s6592_s15 + $0x6e0] ss:$8 sps:$4 sm:$0xff]  }
 0x1c1   : > { %4114 = vmatpush1.bf16.msra.mxu0 %v6117_v27  ;;  %3828 = vmatprep.subr.bf16.mxu1 %v6122_v29  ;;  %v6201_v26 = vld [vmem:[%s6592_s15 + $0xde0] ss:$8 sps:$4 sm:$0xff]   ;;  %v7204_v27 = vrot.slane %v7198_v24, %v6659_v50  ;;  %v6206_v29 = vld [vmem:[%s6592_s15 + $0x6f4] ss:$8 sps:$4 sm:$0xff]  }
 0x1c2   : > { %4115 = vmatprep.subr.bf16.mxu0 %v6125_v30  ;;  %3858 = vmatprep.mubr.bf16.mxu1 %v477_v31  ;;  %v6209_v30 = vld [vmem:[%s6592_s15 + $0xdf4] ss:$8 sps:$4 sm:$0xff]   ;;  %v6204_v31 = vld [vmem:[%s6592_s15 + $0x6f0] ss:$8 sps:$4 sm:$0xff]  }
 0x1c3   : > { %4145 = vmatprep.mubr.bf16.mxu0 %v491_v32  ;;  %v6207_v32 = vld [vmem:[%s6592_s15 + $0xdf0] ss:$8 sps:$4 sm:$0xff]  }
 0x1c4   : > { %3829 = vmatpush1.bf16.msra.mxu1 %v6120_v7  ;;  %v430_v7 = vcombine.high %v7204_v27, %v7204_v27 }
 0x1c5   : > { %4116 = vmatpush1.bf16.msra.mxu0 %v6123_v43  ;;  %3830 = vmatprep.subr.bf16.mxu1 %v6128_v33  ;;  %v6213_v43 = vld [vmem:[%s6592_s15 + $0xe04] ss:$8 sps:$4 sm:$0xff]   ;;  %v476_v33 = vpack.c.bf16 %v7122_v19, %v7122_v19 }
 0x1c6   : > { %4117 = vmatprep.subr.bf16.mxu0 %v6131_v34  ;;  %v490_v34 = vpack.c.bf16 %v7125_v20, %v7125_v20  ;;  %v6219_v19 = vld [vmem:[%s6592_s15 + $0xe24] ss:$8 sps:$4 sm:$0xff]   ;;  %v6217_v20 = vld [vmem:[%s6592_s15 + $0xe20] ss:$8 sps:$4 sm:$0xff]  }
 0x1c8   : > { %3831 = vmatpush1.bf16.msra.mxu1 %v6126_v35  ;;  %v6211_v35 = vld [vmem:[%s6592_s15 + $0xe00] ss:$8 sps:$4 sm:$0xff]  }
 0x1c9   : > { %4118 = vmatpush1.bf16.msra.mxu0 %v6129_v36  ;;  %3832 = vmatprep.subr.bf16.mxu1 %v6134_v37  ;;  %v493_v36 = vpack.c.bf16 %v430_v7, %v430_v7  ;;  %v6216_v37 = vld [vmem:[%s6592_s15 + $0xe14] ss:$8 sps:$4 sm:$0xff]  }
 0x1ca   : > { %4119 = vmatprep.subr.bf16.mxu0 %v6137_v39  ;;  %v6214_v39 = vld [vmem:[%s6592_s15 + $0xe10] ss:$8 sps:$4 sm:$0xff]   ;;  %v6316_v7 = vld [vmem:[%s6609_s27 + $0x44] ss:$16 sps:$4 sm:$0xff]  }
 0x1cc   : > { %3833 = vmatpush1.bf16.msra.mxu1 %v6132_v41  ;;  %v6222_v41 = vld [vmem:[%s6592_s15 + $0xe34] ss:$8 sps:$4 sm:$0xff]  }
 0x1cd   : > { %4120 = vmatpush1.bf16.msra.mxu0 %v6135_v42  ;;  %3834 = vmatprep.subr.bf16.mxu1 %v6140_v45  ;;  %v6220_v42 = vld [vmem:[%s6592_s15 + $0xe30] ss:$8 sps:$4 sm:$0xff]   ;;  %v6225_v45 = vld [vmem:[%s6592_s15 + $0xe44] ss:$8 sps:$4 sm:$0xff]  }
 0x1ce   : > { %4121 = vmatprep.subr.bf16.mxu0 %v6143_v46  ;;  %v6223_v46 = vld [vmem:[%s6592_s15 + $0xe40] ss:$8 sps:$4 sm:$0xff]  }
 0x1d0   : > { %3835 = vmatpush1.bf16.msra.mxu1 %v6138_v47  ;;  %v6228_v47 = vld [vmem:[%s6592_s15 + $0xe54] ss:$8 sps:$4 sm:$0xff]  }
 0x1d1   : > { %4122 = vmatpush1.bf16.msra.mxu0 %v6141_v48  ;;  %3836 = vmatprep.subr.bf16.mxu1 %v6146_v49  ;;  %v6226_v48 = vld [vmem:[%s6592_s15 + $0xe50] ss:$8 sps:$4 sm:$0xff]   ;;  %v6231_v49 = vld [vmem:[%s6592_s15 + $0xe64] ss:$8 sps:$4 sm:$0xff]  }
 0x1d2   : > { %4123 = vmatprep.subr.bf16.mxu0 %v6149_v51  ;;  %v6229_v51 = vld [vmem:[%s6592_s15 + $0xe60] ss:$8 sps:$4 sm:$0xff]  }
 0x1d4   : > { %3837 = vmatpush1.bf16.msra.mxu1 %v6144_v52  ;;  %v6234_v52 = vld [vmem:[%s6592_s15 + $0xe74] ss:$8 sps:$4 sm:$0xff]  }
 0x1d5   : > { %4124 = vmatpush1.bf16.msra.mxu0 %v6147_v53  ;;  %3838 = vmatprep.subr.bf16.mxu1 %v6152_v55  ;;  %v6232_v53 = vld [vmem:[%s6592_s15 + $0xe70] ss:$8 sps:$4 sm:$0xff]   ;;  %v6237_v55 = vld [vmem:[%s6592_s15 + $0xe84] ss:$8 sps:$4 sm:$0xff]  }
 0x1d6   : > { %4125 = vmatprep.subr.bf16.mxu0 %v6155_v56  ;;  %v6235_v56 = vld [vmem:[%s6592_s15 + $0xe80] ss:$8 sps:$4 sm:$0xff]  }
 0x1d8   : > { %3839 = vmatpush1.bf16.msra.mxu1 %v6150_v57  ;;  %v6240_v57 = vld [vmem:[%s6592_s15 + $0xe94] ss:$8 sps:$4 sm:$0xff]  }
 0x1d9   : > { %4126 = vmatpush1.bf16.msra.mxu0 %v6153_v58  ;;  %3840 = vmatprep.subr.bf16.mxu1 %v6158_v15  ;;  %v6238_v58 = vld [vmem:[%s6592_s15 + $0xe90] ss:$8 sps:$4 sm:$0xff]   ;;  %v6243_v15 = vld [vmem:[%s6592_s15 + $0xea4] ss:$8 sps:$4 sm:$0xff]  }
 0x1da   : > { %4127 = vmatprep.subr.bf16.mxu0 %v6161_v28  ;;  %v6241_v28 = vld [vmem:[%s6592_s15 + $0xea0] ss:$8 sps:$4 sm:$0xff]  }
 0x1dc   : > { %3841 = vmatpush1.bf16.msra.mxu1 %v6156_v60  ;;  %v6246_v60 = vld [vmem:[%s6592_s15 + $0xeb4] ss:$8 sps:$4 sm:$0xff]  }
 0x1dd   : > { %4128 = vmatpush1.bf16.msra.mxu0 %v6159_v61  ;;  %3842 = vmatprep.subr.bf16.mxu1 %v6164_v62  ;;  %v6244_v61 = vld [vmem:[%s6592_s15 + $0xeb0] ss:$8 sps:$4 sm:$0xff]   ;;  %v6249_v62 = vld [vmem:[%s6592_s15 + $0xec4] ss:$8 sps:$4 sm:$0xff]  }
 0x1de   : > { %4129 = vmatprep.subr.bf16.mxu0 %v6167_v63  ;;  %v6247_v63 = vld [vmem:[%s6592_s15 + $0xec0] ss:$8 sps:$4 sm:$0xff]  }
 0x1e0   : > { %3843 = vmatpush1.bf16.msra.mxu1 %v6162_v0  ;;  %v6252_v0 = vld [vmem:[%s6592_s15 + $0xed4] ss:$8 sps:$4 sm:$0xff]  }
 0x1e1   : > { %4130 = vmatpush1.bf16.msra.mxu0 %v6165_v2  ;;  %3844 = vmatprep.subr.bf16.mxu1 %v6170_v3  ;;  %v6250_v2 = vld [vmem:[%s6592_s15 + $0xed0] ss:$8 sps:$4 sm:$0xff]   ;;  %v415_v3 = vcombine.high %v7198_v24, %v7198_v24  ;;  %v6277_v24 = vld [vmem:[%s6592_s15 + $0xf60] ss:$8 sps:$4 sm:$0xff]  }
 0x1e2   : > { %4131 = vmatprep.subr.bf16.mxu0 %v6173_v4  ;;  %v6255_v4 = vld [vmem:[%s6592_s15 + $0xee4] ss:$8 sps:$4 sm:$0xff]  }
 0x1e4   : > { %3845 = vmatpush1.bf16.msra.mxu1 %v6168_v5  ;;  %v6253_v5 = vld [vmem:[%s6592_s15 + $0xee0] ss:$8 sps:$4 sm:$0xff]  }
 0x1e5   : > { %4132 = vmatpush1.bf16.msra.mxu0 %v6171_v6  ;;  %3846 = vmatprep.subr.bf16.mxu1 %v6176_v54  ;;  %v7249_v6 = vrot.slane %v415_v3, %v6659_v50  ;;  %v6258_v54 = vld [vmem:[%s6592_s15 + $0xef4] ss:$8 sps:$4 sm:$0xff]  }
 0x1e6   : > { %4133 = vmatprep.subr.bf16.mxu0 %v6179_v40  ;;  %v6256_v40 = vld [vmem:[%s6592_s15 + $0xef0] ss:$8 sps:$4 sm:$0xff]  }
 0x1e7   : > { %v494_v3 = vpack.c.bf16 %v7249_v6, %v7249_v6 }
 0x1e8   : > { %3847 = vmatpush1.bf16.msra.mxu1 %v6174_v8  ;;  %v431_v8 = vcombine.high %v7249_v6, %v7249_v6  ;;  %v6347_v6 = vld [vmem:[%s6609_s27 + $0x1a0] ss:$16 sps:$4 sm:$0xff]  }
 0x1e9   : > { %4134 = vmatpush1.bf16.msra.mxu0 %v6177_v9  ;;  %3848 = vmatprep.subr.bf16.mxu1 %v6182_v10  ;;  %v6261_v9 = vld [vmem:[%s6592_s15 + $0xf04] ss:$8 sps:$4 sm:$0xff]   ;;  %v492_v10 = vpack.c.bf16 %v7204_v27, %v7204_v27 }
 0x1ea   : > { %4135 = vmatprep.subr.bf16.mxu0 %v6185_v11  ;;  %v6259_v11 = vld [vmem:[%s6592_s15 + $0xf00] ss:$8 sps:$4 sm:$0xff]   ;;  %v6310_v27 = vld [vmem:[%s6609_s27 + $0x4] ss:$16 sps:$4 sm:$0xff]  }
 0x1ec   : > { %3849 = vmatpush1.bf16.msra.mxu1 %v6180_v12  ;;  %v495_v12 = vpack.c.bf16 %v431_v8, %v431_v8  ;;  %v6344_v8 = vld [vmem:[%s6609_s27 + $0x180] ss:$16 sps:$4 sm:$0xff]  }
 0x1ed   : > { %4136 = vmatpush1.bf16.msra.mxu0 %v6183_v13  ;;  %3850 = vmatprep.subr.bf16.mxu1 %v6188_v14  ;;  %v6264_v13 = vld [vmem:[%s6592_s15 + $0xf14] ss:$8 sps:$4 sm:$0xff]   ;;  %v6262_v14 = vld [vmem:[%s6592_s15 + $0xf10] ss:$8 sps:$4 sm:$0xff]  }
 0x1ee   : > { %4137 = vmatprep.subr.bf16.mxu0 %v6191_v16  ;;  %v6267_v16 = vld [vmem:[%s6592_s15 + $0xf24] ss:$8 sps:$4 sm:$0xff]  }
 0x1f0   : > { %3851 = vmatpush1.bf16.msra.mxu1 %v6186_v17  ;;  %v6265_v17 = vld [vmem:[%s6592_s15 + $0xf20] ss:$8 sps:$4 sm:$0xff]  }
 0x1f1   : > { %4138 = vmatpush1.bf16.msra.mxu0 %v6189_v18  ;;  %3852 = vmatprep.subr.bf16.mxu1 %v6194_v1  ;;  %v6270_v18 = vld [vmem:[%s6592_s15 + $0xf34] ss:$8 sps:$4 sm:$0xff]   ;;  %v6268_v1 = vld [vmem:[%s6592_s15 + $0xf30] ss:$8 sps:$4 sm:$0xff]  }
 0x1f2   : > { %4139 = vmatprep.subr.bf16.mxu0 %v6197_v21  ;;  %v6273_v21 = vld [vmem:[%s6592_s15 + $0xf44] ss:$8 sps:$4 sm:$0xff]  }
 0x1f4   : > { %3853 = vmatpush1.bf16.msra.mxu1 %v6192_v22  ;;  %v6271_v22 = vld [vmem:[%s6592_s15 + $0xf40] ss:$8 sps:$4 sm:$0xff]  }
 0x1f5   : > { %4140 = vmatpush1.bf16.msra.mxu0 %v6195_v59  ;;  %3854 = vmatprep.subr.bf16.mxu1 %v6200_v38  ;;  %v6276_v59 = vld [vmem:[%s6592_s15 + $0xf54] ss:$8 sps:$4 sm:$0xff]   ;;  %v6274_v38 = vld [vmem:[%s6592_s15 + $0xf50] ss:$8 sps:$4 sm:$0xff]  }
 0x1f6   : > { %4141 = vmatprep.subr.bf16.mxu0 %v6203_v23  ;;  %v6279_v23 = vld [vmem:[%s6592_s15 + $0xf64] ss:$8 sps:$4 sm:$0xff]  }
 0x1f8   : > { %3855 = vmatpush1.bf16.msra.mxu1 %v6198_v25  ;;  %v6282_v25 = vld [vmem:[%s6592_s15 + $0xf74] ss:$8 sps:$4 sm:$0xff]  }
 0x1f9   : > { %4142 = vmatpush1.bf16.msra.mxu0 %v6201_v26  ;;  %3856 = vmatprep.subr.bf16.mxu1 %v6206_v29  ;;  %v6308_v26 = vld [vmem:[%s6609_s27] ss:$16 sps:$4 sm:$0xff]   ;;  %v6313_v29 = vld [vmem:[%s6609_s27 + $0x24] ss:$16 sps:$4 sm:$0xff]  }
 0x1fa   : > { %4143 = vmatprep.subr.bf16.mxu0 %v6209_v30  ;;  %v6280_v30 = vld [vmem:[%s6592_s15 + $0xf70] ss:$8 sps:$4 sm:$0xff]  }
 0x1fc   : > { %3857 = vmatpush1.bf16.msra.mxu1 %v6204_v31  ;;  %v6311_v31 = vld [vmem:[%s6609_s27 + $0x20] ss:$16 sps:$4 sm:$0xff]  }
 0x1fd   : > { %4144 = vmatpush1.bf16.msra.mxu0 %v6207_v32  ;;  %4625 = vmatprep.subr.bf16.mxu1 %v6310_v27  ;;  %v6285_v32 = vld [vmem:[%s6592_s15 + $0xf84] ss:$8 sps:$4 sm:$0xff]  }
 0x1fe   : > { %4154 = vmatprep.subr.bf16.mxu0 %v6213_v43  ;;  %v6283_v43 = vld [vmem:[%s6592_s15 + $0xf80] ss:$8 sps:$4 sm:$0xff]  }
 0x1ff   : > { %3859 = vmatmul.mubr.bf16.vlgmr.msra.gmra.mrb[0].mxu1 %v476_v33  ;;  %v6314_v33 = vld [vmem:[%s6609_s27 + $0x40] ss:$16 sps:$4 sm:$0xff]  }
 0x200   : > { %4146 = vmatmul.mubr.bf16.vlgmr.msra.gmra.mrb[0].mxu0 %v490_v34  ;;  %4626 = vmatpush1.bf16.msra.mxu1 %v6308_v26  ;;  %v6288_v34 = vld [vmem:[%s6592_s15 + $0xf94] ss:$8 sps:$4 sm:$0xff]  }
 0x201   : > { %4155 = vmatpush1.bf16.msra.mxu0 %v6211_v35  ;;  %4186 = vmatprep.mubr.bf16.mxu0 %v493_v36  ;;  %v6319_v35 = vld [vmem:[%s6609_s27 + $0x64] ss:$16 sps:$4 sm:$0xff]   ;;  %v6286_v36 = vld [vmem:[%s6592_s15 + $0xf90] ss:$8 sps:$4 sm:$0xff]  }
 0x202   : > { %4156 = vmatprep.subr.bf16.mxu0 %v6216_v37  ;;  %4627 = vmatprep.subr.bf16.mxu1 %v6313_v29  ;;  %v6317_v37 = vld [vmem:[%s6609_s27 + $0x60] ss:$16 sps:$4 sm:$0xff]  }
 0x204   : > { %4628 = vmatpush1.bf16.msra.mxu1 %v6311_v31 }
 0x205   : > { %4157 = vmatpush1.bf16.msra.mxu0 %v6214_v39  ;;  %4629 = vmatprep.subr.bf16.mxu1 %v6316_v7  ;;  %v6291_v39 = vld [vmem:[%s6592_s15 + $0xfa4] ss:$8 sps:$4 sm:$0xff]  }
 0x206   : > { %4158 = vmatprep.subr.bf16.mxu0 %v6219_v19  ;;  %v6322_v19 = vld [vmem:[%s6609_s27 + $0x84] ss:$16 sps:$4 sm:$0xff]  }
 0x208   : > { %4630 = vmatpush1.bf16.msra.mxu1 %v6314_v33 }
 0x209   : > { %4159 = vmatpush1.bf16.msra.mxu0 %v6217_v20  ;;  %4631 = vmatprep.subr.bf16.mxu1 %v6319_v35  ;;  %v6289_v20 = vld [vmem:[%s6592_s15 + $0xfa0] ss:$8 sps:$4 sm:$0xff]  }
 0x20a   : > { %4160 = vmatprep.subr.bf16.mxu0 %v6222_v41  ;;  %v6320_v41 = vld [vmem:[%s6609_s27 + $0x80] ss:$16 sps:$4 sm:$0xff]  }
 0x20c   : > { %4632 = vmatpush1.bf16.msra.mxu1 %v6317_v37  ;;  %v6359_v37 = vld [vmem:[%s6609_s27 + $0x28] ss:$16 sps:$4 sm:$0xff]  }
 0x20d   : > { %4161 = vmatpush1.bf16.msra.mxu0 %v6220_v42  ;;  %v6294_v42 = vld [vmem:[%s6592_s15 + $0xfb4] ss:$8 sps:$4 sm:$0xff]   ;;  %4633 = vmatprep.subr.bf16.mxu1 %v6322_v19  ;;  %v6362_v19 = vld [vmem:[%s6609_s27 + $0x48] ss:$16 sps:$4 sm:$0xff]  }
 0x20e   : > { %4162 = vmatprep.subr.bf16.mxu0 %v6225_v45  ;;  %v6325_v45 = vld [vmem:[%s6609_s27 + $0xa4] ss:$16 sps:$4 sm:$0xff]  }
 0x210   : > { %4634 = vmatpush1.bf16.msra.mxu1 %v6320_v41  ;;  %v6365_v41 = vld [vmem:[%s6609_s27 + $0x68] ss:$16 sps:$4 sm:$0xff]  }
 0x211   : > { %4163 = vmatpush1.bf16.msra.mxu0 %v6223_v46  ;;  %v6292_v46 = vld [vmem:[%s6592_s15 + $0xfb0] ss:$8 sps:$4 sm:$0xff]   ;;  %4635 = vmatprep.subr.bf16.mxu1 %v6325_v45 }
 0x212   : > { %4164 = vmatprep.subr.bf16.mxu0 %v6228_v47  ;;  %v6323_v47 = vld [vmem:[%s6609_s27 + $0xa0] ss:$16 sps:$4 sm:$0xff]   ;;  %v6368_v45 = vld [vmem:[%s6609_s27 + $0x88] ss:$16 sps:$4 sm:$0xff]  }
 0x214   : > { %4636 = vmatpush1.bf16.msra.mxu1 %v6323_v47  ;;  %v6371_v47 = vld [vmem:[%s6609_s27 + $0xa8] ss:$16 sps:$4 sm:$0xff]  }
 0x215   : > { %4165 = vmatpush1.bf16.msra.mxu0 %v6226_v48  ;;  %v6297_v48 = vld [vmem:[%s6592_s15 + $0xfc4] ss:$8 sps:$4 sm:$0xff]  }
 0x216   : > { %4166 = vmatprep.subr.bf16.mxu0 %v6231_v49  ;;  %v6328_v49 = vld [vmem:[%s6609_s27 + $0xc4] ss:$16 sps:$4 sm:$0xff]  }
 0x217   : > { %4637 = vmatprep.subr.bf16.mxu1 %v6328_v49  ;;  %v6374_v49 = vld [vmem:[%s6609_s27 + $0xc8] ss:$16 sps:$4 sm:$0xff]  }
 0x219   : > { %4167 = vmatpush1.bf16.msra.mxu0 %v6229_v51  ;;  %v6295_v51 = vld [vmem:[%s6592_s15 + $0xfc0] ss:$8 sps:$4 sm:$0xff]  }
 0x21a   : > { %4168 = vmatprep.subr.bf16.mxu0 %v6234_v52  ;;  %v6326_v52 = vld [vmem:[%s6609_s27 + $0xc0] ss:$16 sps:$4 sm:$0xff]  }
 0x21b   : > { %4638 = vmatpush1.bf16.msra.mxu1 %v6326_v52  ;;  %v6377_v52 = vld [vmem:[%s6609_s27 + $0xe8] ss:$16 sps:$4 sm:$0xff]  }
 0x21d   : > { %4169 = vmatpush1.bf16.msra.mxu0 %v6232_v53  ;;  %v6300_v53 = vld [vmem:[%s6592_s15 + $0xfd4] ss:$8 sps:$4 sm:$0xff]  }
 0x21e   : > { %4170 = vmatprep.subr.bf16.mxu0 %v6237_v55  ;;  %v6331_v55 = vld [vmem:[%s6609_s27 + $0xe4] ss:$16 sps:$4 sm:$0xff]  }
 0x21f   : > { %4639 = vmatprep.subr.bf16.mxu1 %v6331_v55  ;;  %v6380_v55 = vld [vmem:[%s6609_s27 + $0x108] ss:$16 sps:$4 sm:$0xff]  }
 0x221   : > { %4171 = vmatpush1.bf16.msra.mxu0 %v6235_v56  ;;  %v6298_v56 = vld [vmem:[%s6592_s15 + $0xfd0] ss:$8 sps:$4 sm:$0xff]  }
 0x222   : > { %4172 = vmatprep.subr.bf16.mxu0 %v6240_v57  ;;  %v6329_v57 = vld [vmem:[%s6609_s27 + $0xe0] ss:$16 sps:$4 sm:$0xff]  }
 0x223   : > { %4640 = vmatpush1.bf16.msra.mxu1 %v6329_v57  ;;  %v6383_v57 = vld [vmem:[%s6609_s27 + $0x128] ss:$16 sps:$4 sm:$0xff]  }
 0x225   : > { %4173 = vmatpush1.bf16.msra.mxu0 %v6238_v58  ;;  %v6303_v58 = vld [vmem:[%s6592_s15 + $0xfe4] ss:$8 sps:$4 sm:$0xff]  }
 0x226   : > { %4174 = vmatprep.subr.bf16.mxu0 %v6243_v15  ;;  %v6334_v15 = vld [vmem:[%s6609_s27 + $0x104] ss:$16 sps:$4 sm:$0xff]  }
 0x227   : > { %4641 = vmatprep.subr.bf16.mxu1 %v6334_v15  ;;  %v6386_v15 = vld [vmem:[%s6609_s27 + $0x148] ss:$16 sps:$4 sm:$0xff]  }
 0x229   : > { %4175 = vmatpush1.bf16.msra.mxu0 %v6241_v28  ;;  %v6301_v28 = vld [vmem:[%s6592_s15 + $0xfe0] ss:$8 sps:$4 sm:$0xff]  }
 0x22a   : > { %4176 = vmatprep.subr.bf16.mxu0 %v6246_v60  ;;  %v6332_v60 = vld [vmem:[%s6609_s27 + $0x100] ss:$16 sps:$4 sm:$0xff]  }
 0x22b   : > { %4642 = vmatpush1.bf16.msra.mxu1 %v6332_v60  ;;  %v6389_v60 = vld [vmem:[%s6609_s27 + $0x168] ss:$16 sps:$4 sm:$0xff]  }
 0x22d   : > { %4177 = vmatpush1.bf16.msra.mxu0 %v6244_v61  ;;  %v6306_v61 = vld [vmem:[%s6592_s15 + $0xff4] ss:$8 sps:$4 sm:$0xff]  }
 0x22e   : > { %4178 = vmatprep.subr.bf16.mxu0 %v6249_v62  ;;  %v6337_v62 = vld [vmem:[%s6609_s27 + $0x124] ss:$16 sps:$4 sm:$0xff]  }
 0x22f   : > { %4643 = vmatprep.subr.bf16.mxu1 %v6337_v62  ;;  %v6392_v62 = vld [vmem:[%s6609_s27 + $0x188] ss:$16 sps:$4 sm:$0xff]  }
 0x231   : > { %4179 = vmatpush1.bf16.msra.mxu0 %v6247_v63  ;;  %v6304_v63 = vld [vmem:[%s6592_s15 + $0xff0] ss:$8 sps:$4 sm:$0xff]  }
 0x232   : > { %4180 = vmatprep.subr.bf16.mxu0 %v6252_v0  ;;  %v6335_v0 = vld [vmem:[%s6609_s27 + $0x120] ss:$16 sps:$4 sm:$0xff]  }
 0x233   : > { %4644 = vmatpush1.bf16.msra.mxu1 %v6335_v0  ;;  %v6395_v0 = vld [vmem:[%s6609_s27 + $0x1a8] ss:$16 sps:$4 sm:$0xff]  }
 0x235   : > { %4181 = vmatpush1.bf16.msra.mxu0 %v6250_v2  ;;  %v6340_v2 = vld [vmem:[%s6609_s27 + $0x144] ss:$16 sps:$4 sm:$0xff]  }
 0x236   : > { %4182 = vmatprep.subr.bf16.mxu0 %v6255_v4  ;;  %v6338_v4 = vld [vmem:[%s6609_s27 + $0x140] ss:$16 sps:$4 sm:$0xff]   ;;  %4645 = vmatprep.subr.bf16.mxu1 %v6340_v2  ;;  %v6400_v2 = vld [vmem:[%s6609_s27 + $0x1cc] ss:$16 sps:$4 sm:$0xff]  }
 0x237   : > { %4646 = vmatpush1.bf16.msra.mxu1 %v6338_v4  ;;  %v6403_v4 = vld [vmem:[%s6609_s27 + $0x1ec] ss:$16 sps:$4 sm:$0xff]  }
 0x239   : > { %4183 = vmatpush1.bf16.msra.mxu0 %v6253_v5  ;;  %v6343_v5 = vld [vmem:[%s6609_s27 + $0x164] ss:$16 sps:$4 sm:$0xff]  }
 0x23a   : > { %4184 = vmatprep.subr.bf16.mxu0 %v6258_v54  ;;  %v6341_v54 = vld [vmem:[%s6609_s27 + $0x160] ss:$16 sps:$4 sm:$0xff]   ;;  %4647 = vmatprep.subr.bf16.mxu1 %v6343_v5  ;;  %v6401_v5 = vld [vmem:[%s6609_s27 + $0x1e8] ss:$16 sps:$4 sm:$0xff]  }
 0x23b   : > { %4648 = vmatpush1.bf16.msra.mxu1 %v6341_v54 }
 0x23d   : > { %4185 = vmatpush1.bf16.msra.mxu0 %v6256_v40  ;;  %v6346_v40 = vld [vmem:[%s6609_s27 + $0x184] ss:$16 sps:$4 sm:$0xff]  }
 0x23e   : > { %4195 = vmatprep.subr.bf16.mxu0 %v6261_v9  ;;  %4649 = vmatprep.subr.bf16.mxu1 %v6346_v40  ;;  %v6349_v9 = vld [vmem:[%s6609_s27 + $0x1a4] ss:$16 sps:$4 sm:$0xff]  }
 0x23f   : > { %4650 = vmatpush1.bf16.msra.mxu1 %v6344_v8 }
 0x240   : > { %4187 = vmatmul.mubr.bf16.vlgmr.msra.gmra.mrb[0].mxu0 %v492_v10  ;;  %4651 = vmatprep.subr.bf16.mxu1 %v6349_v9  ;;  %v6352_v10 = vld [vmem:[%s6609_s27 + $0x1c4] ss:$16 sps:$4 sm:$0xff]  }
 0x241   : > { %4196 = vmatpush1.bf16.msra.mxu0 %v6259_v11  ;;  %4227 = vmatprep.mubr.bf16.mxu0 %v495_v12  ;;  %v6350_v11 = vld [vmem:[%s6609_s27 + $0x1c0] ss:$16 sps:$4 sm:$0xff]  }
 0x242   : > { %4197 = vmatprep.subr.bf16.mxu0 %v6264_v13 }
 0x243   : > { %4652 = vmatpush1.bf16.msra.mxu1 %v6347_v6 }
 0x244   : > { %4653 = vmatprep.subr.bf16.mxu1 %v6352_v10 }
 0x245   : > { %4198 = vmatpush1.bf16.msra.mxu0 %v6262_v14 }
 0x246   : > { %4199 = vmatprep.subr.bf16.mxu0 %v6267_v16  ;;  %v6355_v16 = vld [vmem:[%s6609_s27 + $0x1e4] ss:$16 sps:$4 sm:$0xff]  }
 0x247   : > { %4654 = vmatpush1.bf16.msra.mxu1 %v6350_v11 }
 0x248   : > { %4655 = vmatprep.subr.bf16.mxu1 %v6355_v16 }
 0x249   : > { %4200 = vmatpush1.bf16.msra.mxu0 %v6265_v17 }
 0x24a   : > { %4201 = vmatprep.subr.bf16.mxu0 %v6270_v18  ;;  %v6353_v18 = vld [vmem:[%s6609_s27 + $0x1e0] ss:$16 sps:$4 sm:$0xff]  }
 0x24b   : > { %4656 = vmatpush1.bf16.msra.mxu1 %v6353_v18  ;;  %v4238_v18 = vld [vmem:[#allocation2] sm:$0xff] }
 0x24d   : > { %4202 = vmatpush1.bf16.msra.mxu0 %v6268_v1  ;;  %v6358_v1 = vld [vmem:[%s6609_s27 + $0xc] ss:$16 sps:$4 sm:$0xff]  }
 0x24e   : > { %4203 = vmatprep.subr.bf16.mxu0 %v6273_v21  ;;  %4666 = vmatprep.subr.bf16.mxu1 %v6358_v1  ;;  %v1012_v21 = vsub.s32 0, %v6651_v44 }
 0x251   : > { %4204 = vmatpush1.bf16.msra.mxu0 %v6271_v22  ;;  %v1008_v22 = vld [vmem:[%s266_s12] sm:$0x3] }
 0x252   : > { %4205 = vmatprep.subr.bf16.mxu0 %v6276_v59  ;;  %v1016_v59 = vsub.s32 1, %v6651_v44 }
 0x255   : > { %4206 = vmatpush1.bf16.msra.mxu0 %v6274_v38  ;;  %v1013_v38 = vrot.slane %v1008_v22, %v1012_v21 }
 0x256   : > { %4207 = vmatprep.subr.bf16.mxu0 %v6279_v23  ;;  %v1017_v23 = vrot.slane %v1008_v22, %v1016_v59 }
 0x259   : > { %4208 = vmatpush1.bf16.msra.mxu0 %v6277_v24 }
 0x25a   : > { %4209 = vmatprep.subr.bf16.mxu0 %v6282_v25 }
 0x25d   : > { %4210 = vmatpush1.bf16.msra.mxu0 %v6280_v30 }
 0x25e   : > { %4211 = vmatprep.subr.bf16.mxu0 %v6285_v32 }
 0x261   : > { %4212 = vmatpush1.bf16.msra.mxu0 %v6283_v43 }
 0x262   : > { %4213 = vmatprep.subr.bf16.mxu0 %v6288_v34  ;;  %v6356_v34 = vld [vmem:[%s6609_s27 + $0x8] ss:$16 sps:$4 sm:$0xff]  }
 0x265   : > { %4214 = vmatpush1.bf16.msra.mxu0 %v6286_v36  ;;  %v6361_v36 = vld [vmem:[%s6609_s27 + $0x2c] ss:$16 sps:$4 sm:$0xff]  }
 0x266   : > { %4215 = vmatprep.subr.bf16.mxu0 %v6291_v39  ;;  %v6364_v39 = vld [vmem:[%s6609_s27 + $0x4c] ss:$16 sps:$4 sm:$0xff]  }
 0x269   : > { %4216 = vmatpush1.bf16.msra.mxu0 %v6289_v20  ;;  %v6367_v20 = vld [vmem:[%s6609_s27 + $0x6c] ss:$16 sps:$4 sm:$0xff]  }
 0x26a   : > { %4217 = vmatprep.subr.bf16.mxu0 %v6294_v42  ;;  %v6370_v42 = vld [vmem:[%s6609_s27 + $0x8c] ss:$16 sps:$4 sm:$0xff]  }
 0x26d   : > { %4218 = vmatpush1.bf16.msra.mxu0 %v6292_v46  ;;  %v6373_v46 = vld [vmem:[%s6609_s27 + $0xac] ss:$16 sps:$4 sm:$0xff]  }
 0x26e   : > { %4219 = vmatprep.subr.bf16.mxu0 %v6297_v48  ;;  %v6376_v48 = vld [vmem:[%s6609_s27 + $0xcc] ss:$16 sps:$4 sm:$0xff]  }
 0x271   : > { %4220 = vmatpush1.bf16.msra.mxu0 %v6295_v51  ;;  %v6379_v51 = vld [vmem:[%s6609_s27 + $0xec] ss:$16 sps:$4 sm:$0xff]  }
 0x272   : > { %4221 = vmatprep.subr.bf16.mxu0 %v6300_v53  ;;  %v6382_v53 = vld [vmem:[%s6609_s27 + $0x10c] ss:$16 sps:$4 sm:$0xff]  }
 0x275   : > { %4222 = vmatpush1.bf16.msra.mxu0 %v6298_v56  ;;  %v6385_v56 = vld [vmem:[%s6609_s27 + $0x12c] ss:$16 sps:$4 sm:$0xff]  }
 0x276   : > { %4223 = vmatprep.subr.bf16.mxu0 %v6303_v58  ;;  %v6388_v58 = vld [vmem:[%s6609_s27 + $0x14c] ss:$16 sps:$4 sm:$0xff]  }
 0x279   : > { %4224 = vmatpush1.bf16.msra.mxu0 %v6301_v28  ;;  %v6391_v28 = vld [vmem:[%s6609_s27 + $0x16c] ss:$16 sps:$4 sm:$0xff]  }
 0x27a   : > { %4225 = vmatprep.subr.bf16.mxu0 %v6306_v61  ;;  %v6394_v61 = vld [vmem:[%s6609_s27 + $0x18c] ss:$16 sps:$4 sm:$0xff]  }
 0x27d   : > { %4226 = vmatpush1.bf16.msra.mxu0 %v6304_v63  ;;  %v6397_v63 = vld [vmem:[%s6609_s27 + $0x1ac] ss:$16 sps:$4 sm:$0xff]  }
 0x280   : > { %4228 = vmatmul.mubr.bf16.vlgmr.msra.gmra.mrb[0].mxu0 %v494_v3  ;;  %v6398_v3 = vld [vmem:[%s6609_s27 + $0x1c8] ss:$16 sps:$4 sm:$0xff]  }
 0x2d2   : > { %v3860_v12 = vpop.f32.mrb[0].mxu1 }
 0x2d3   : > { %v3862_v13 = vpop.f32.mrb[1].mxu1  ;;  %v5428_v24 = vadd.f32 %v3860_v12, %v1013_v38  ;;  %v4736_v38 = vld [vmem:[%s7404_s4] sm:$0xf] (!%p5423_p4) }
 0x2d4   : > { %v3864_v14 = vpop.f32.mrb[2].mxu1  ;;  %v5430_v25 = vadd.f32 %v3862_v13, %v1017_v23  ;;  %v4748_v23 = vsub.s32 (!%p5423_p4), 2, %v6651_v44 }
 0x2d5   : > { %v3865_v17 = vpop.f32.mrb[3].mxu1 }
 0x353   : > { %v4229_v26 = vpop.f32.mrb[0].mxu0 }
 0x354   : > { %v5429_v27 = vadd.f32 %v5428_v24, %v4229_v26  ;;  %v4231_v29 = vpop.f32.mrb[1].mxu0  ;;  %v4752_v24 = vsub.s32 (!%p5423_p4), 3, %v6651_v44  ;;  %v4745_v26 = vrot.slane (!%p5423_p4), %v4736_v38, %v1016_v59 }
 0x355   : > { %v5431_v30 = vadd.f32 %v5430_v25, %v4231_v29  ;;  %v4233_v31 = vpop.f32.mrb[2].mxu0  ;;  %v4741_v25 = vrot.slane (!%p5423_p4), %v4736_v38, %v1012_v21 }
 0x356   : > { %v4236_v32 = vmax.f32 %v5429_v27, 0.0  ;;  %v4234_v7 = vpop.f32.mrb[3].mxu0  ;;  %v4749_v27 = vrot.slane (!%p5423_p4), %v4736_v38, %v4748_v23  ;;  %v4753_v29 = vrot.slane (!%p5423_p4), %v4736_v38, %v4752_v24 }
 0x357   : > { %v4237_v43 = vmax.f32 %v5431_v30, 0.0  ;;  %v4754_v30 = vcombine.low (!%p5423_p4), %v4741_v25, %v4745_v26 }
 0x358   : > { %v7336_v35 = vpack.c.bf16 %v4236_v32, %v4236_v32  ;;  %v4755_v31 = vcombine.low (!%p5423_p4), %v4749_v27, %v4753_v29 }
 0x359   : > { %v4240_v33 = vpack.c.bf16 %v4237_v43, %v4237_v43  ;;  %v4762_v32 = vrot.slane (!%p5423_p4), %v4754_v30, %v6659_v50 }
 0x35a   : > { %v4769_v7 = vrot.slane (!%p5423_p4), %v4755_v31, %v6659_v50 }
 0x35b   : > { %4657 = vmatprep.mubr.bf16.mxu1 %v4240_v33 }
 0x35c   : > { %4658 = vmatmul.mubr.bf16.vlgmr.msra.gmra.mrb[4].mxu1 %v7336_v35 }
 0x35d   : > { %4667 = vmatpush1.bf16.msra.mxu1 %v6356_v34  ;;  %4698 = vmatprep.mubr.bf16.mxu1 %v4240_v33  ;;  %v4770_v33 = vcombine.low (!%p5423_p4), %v4762_v32, %v4769_v7 }
 0x35e   : > { %4668 = vmatprep.subr.bf16.mxu1 %v6361_v36 }
 0x361   : > { %4669 = vmatpush1.bf16.msra.mxu1 %v6359_v37 }
 0x362   : > { %4670 = vmatprep.subr.bf16.mxu1 %v6364_v39 }
 0x365   : > { %4671 = vmatpush1.bf16.msra.mxu1 %v6362_v19 }
 0x366   : > { %4672 = vmatprep.subr.bf16.mxu1 %v6367_v20 }
 0x369   : > { %4673 = vmatpush1.bf16.msra.mxu1 %v6365_v41 }
 0x36a   : > { %4674 = vmatprep.subr.bf16.mxu1 %v6370_v42 }
 0x36d   : > { %4675 = vmatpush1.bf16.msra.mxu1 %v6368_v45 }
 0x36e   : > { %4676 = vmatprep.subr.bf16.mxu1 %v6373_v46 }
 0x371   : > { %4677 = vmatpush1.bf16.msra.mxu1 %v6371_v47 }
 0x372   : > { %4678 = vmatprep.subr.bf16.mxu1 %v6376_v48 }
 0x375   : > { %4679 = vmatpush1.bf16.msra.mxu1 %v6374_v49 }
 0x376   : > { %4680 = vmatprep.subr.bf16.mxu1 %v6379_v51 }
 0x379   : > { %4681 = vmatpush1.bf16.msra.mxu1 %v6377_v52 }
 0x37a   : > { %4682 = vmatprep.subr.bf16.mxu1 %v6382_v53 }
 0x37d   : > { %4683 = vmatpush1.bf16.msra.mxu1 %v6380_v55 }
 0x37e   : > { %4684 = vmatprep.subr.bf16.mxu1 %v6385_v56 }
 0x381   : > { %4685 = vmatpush1.bf16.msra.mxu1 %v6383_v57 }
 0x382   : > { %4686 = vmatprep.subr.bf16.mxu1 %v6388_v58 }
 0x385   : > { %4687 = vmatpush1.bf16.msra.mxu1 %v6386_v15 }
 0x386   : > { %4688 = vmatprep.subr.bf16.mxu1 %v6391_v28 }
 0x389   : > { %4689 = vmatpush1.bf16.msra.mxu1 %v6389_v60 }
 0x38a   : > { %4690 = vmatprep.subr.bf16.mxu1 %v6394_v61 }
 0x38d   : > { %4691 = vmatpush1.bf16.msra.mxu1 %v6392_v62 }
 0x38e   : > { %4692 = vmatprep.subr.bf16.mxu1 %v6397_v63 }
 0x391   : > { %4693 = vmatpush1.bf16.msra.mxu1 %v6395_v0 }
 0x392   : > { %4694 = vmatprep.subr.bf16.mxu1 %v6400_v2 }
 0x395   : > { %4695 = vmatpush1.bf16.msra.mxu1 %v6398_v3 }
 0x396   : > { %4696 = vmatprep.subr.bf16.mxu1 %v6403_v4 }
 0x399   : > { %4697 = vmatpush1.bf16.msra.mxu1 %v6401_v5 }
 0x39c   : > { %4699 = vmatmul.mubr.bf16.vlgmr.msra.gmra.mrb[8].mxu1 %v7336_v35 }
 0x42f   : > { %v4659_v54 = vpop.f32.mrb[4].mxu1 }
 0x430   : > { %v4661_v40 = vpop.f32.mrb[5].mxu1 }
 0x431   : > { %v4711_v8 = vcombine.low %v4659_v54, %v4661_v40  ;;  %v4663_v9 = vpop.f32.mrb[6].mxu1 }
 0x432   : > { %v4664_v6 = vpop.f32.mrb[7].mxu1 }
 0x433   : > { %v4719_v16 = vrot.slane %v4711_v8, %v6659_v50 }
 0x46f   : > { %v4700_v10 = vpop.f32.mrb[8].mxu1 }
 0x470   : > { %v4702_v11 = vpop.f32.mrb[9].mxu1 }
 0x471   : > { %v4712_v12 = vcombine.low %v4700_v10, %v4702_v11  ;;  %v4704_v13 = vpop.f32.mrb[10].mxu1 }
 0x472   : > { %v4705_v14 = vpop.f32.mrb[11].mxu1 }
 0x473   : > { %v4726_v17 = vrot.slane %v4712_v12, %v6659_v50  ;;  %4734 = sbr.rel (%p5423_p4) target bundleno = 1156 (0x484), region = 52 }
 0x475   : > { %v4727_v1 = vcombine.low %v4719_v16, %v4726_v17 }
 0x477   : > { %v4729_v22 = vadd.f32 %v4727_v1, %v4238_v18 }
 0x479   : > { %4730 = vst [vmem:[#allocation2] sm:$0xff] %v4729_v22 }
 0x480   : > { %v4735_v43 = vld [vmem:[#allocation2] sm:$0xff] }
 0x481   : > { %v4772_v34 = vadd.f32 %v4770_v33, %v4735_v43 }
 0x483   : > { %4773 = vst [vmem:[%s7405_s5] sm:$0xff] %v4772_v34 }
 0x484 PF: > { %p15_p5 = scmp.ge.s32.totalorder %s6530_s23, 10   ;;  %s7408_s18 = smov %s6462_s19 }
 0x485   : > { %s7409_s19 = smov %s6466_s20  ;;  %s7410_s20 = smov %s6540_s26 }
 0x486   : > { %s7411_s21 = smov %s6530_s23  ;;  %17 = sbr.rel (!%p15_p5) target bundleno = 3 (0x3), region = 90 }
 0x48d   :  { %4785 = vsyncpa [#allocation4], 1 }
 0x48e   :  { %4787 = vsyncpa [#allocation4 + $0x1], 1 }

// kernel: paper_cnn_forward.2
= control target key start
LH: loop header
LB: loop body
LE: loop exit
PB: predicated region body
PF: predicated region fallthrough
CT: control target
= control target key end

     0   :  { %s9320_s24 = smov 0   ;;  %s12207_s0 = inlined_call_operand.vmem [shape: f32[2,2,16,16,3], index: 0, kind: input, shape index: {}]   ;;  %s12208_s1 = inlined_call_operand.vmem [shape: f32[2,1152,32], index: 1, kind: input, shape index: {}]   ;;  %s12209_s2 = inlined_call_operand.vmem [shape: f32[2,1,32], index: 2, kind: input, shape index: {}]   ;;  %s12210_s3 = inlined_call_operand.vmem [shape: f32[2,1152,64], index: 3, kind: input, shape index: {}]   ;;  %s12211_s4 = inlined_call_operand.vmem [shape: f32[2,1,64], index: 4, kind: input, shape index: {}]   ;;  %s12212_s5 = inlined_call_operand.vmem [shape: bf16[2,64,2048], index: 5, kind: input, shape index: {}]   ;;  %s12213_s6 = inlined_call_operand.vmem [shape: f32[2,1,2048], index: 6, kind: input, shape index: {}]   ;;  %s12214_s7 = inlined_call_operand.vmem [shape: f32[2,4096], index: 7, kind: output, shape index: {}]  }
   0x1 LB: > { %s9326_s25 = sadd.s32 4294967295, %s9274_s24   ;;  %p7400_p0 = scmp.ge.s32.totalorder %s9274_s24, 1  ;;  %s9274_s24 = sphi %s9320_s24, %s17_s24  }
   0x2   : > { %p292_p1 = scmp.lt.s32.totalorder %s9274_s24, 3 }
   0x4   : > { %p293_p2 = pnand %p7400_p0, %p292_p1 }
   0x6   : > { %296 = sbr.rel (%p293_p2) target bundleno = 2679 (0xa77), region = 48 }
   0xd   : > { %p349_p3 = scmp.lt.s32.totalorder %s9326_s25, 1  ;;  %v12215_v0 = vmov 0.0|0.0   ;;  %v9277_v1 = vmov 0.0   ;;  %vm559_vm0 = vcmask 23552   ;;  %vm3450_vm1 = vcmask 261120  }
   0xe   : > { %7904 = vmatprep.subr.bf16.mxu0 %v12215_v0  ;;  %386 = vst [vmem:[#allocation2] sm:$0xff] %v9277_v1  ;;  %387 = vst [vmem:[#allocation2 + $0x8] sm:$0xff] %v9277_v1  ;;  %vm6232_vm2 = vcmask 523264   ;;  %vm6528_vm3 = vcmask 1041409  }
   0xf   : > { %388 = vst [vmem:[#allocation2 + $0x10] sm:$0x3] %v9277_v1  ;;  %389 = vst [vmem:[#allocation2 + $0x18] sm:$0xff] %v9277_v1  ;;  %s9551_s26 = scalar_select %p349_p3, %s9326_s25, 1 }
  0x10   : > { %390 = vst [vmem:[#allocation2 + $0x20] sm:$0xff] %v9277_v1  ;;  %391 = vst [vmem:[#allocation2 + $0x28] sm:$0x3] %v9277_v1 }
  0x11   : > { %392 = vst [vmem:[#allocation2 + $0x30] sm:$0xff] %v9277_v1  ;;  %393 = vst [vmem:[#allocation2 + $0x38] sm:$0xff] %v9277_v1  ;;  %s9248_s27 = smul.u32 1152, %s9551_s26  ;;  %s7486_s28 = sshll.u32 %s9551_s26, 9 }
  0x12   : > { %394 = vst [vmem:[#allocation2 + $0x40] sm:$0x3] %v9277_v1  ;;  %395 = vst [vmem:[#allocation2 + $0x48] sm:$0xff] %v9277_v1  ;;  %s9560_s8 = scalar_lea.vmem %s12207_s0, %s7486_s28  ;;  %s10774_s17 = scalar_lea.vmem %s12209_s2, %s9551_s26 }
  0x13   : > { %396 = vst [vmem:[#allocation2 + $0x50] sm:$0xff] %v9277_v1  ;;  %397 = vst [vmem:[#allocation2 + $0x58] sm:$0x3] %v9277_v1  ;;  %s9567_s11 = scalar_lea.vmem %s12208_s1, %s9248_s27  ;;  %v494_v2 = vld [vmem:[%s9560_s8] sm:$0xff]  ;;  %v495_v3 = vld [vmem:[%s9560_s8 + $0x8] sm:$0xff]  ;;  %s10544_s14 = scalar_lea.vmem %s12210_s3, %s9248_s27 }
  0x14   : > { %398 = vst [vmem:[#allocation2 + $0x60] sm:$0xff] %v9277_v1  ;;  %399 = vst [vmem:[#allocation2 + $0x68] sm:$0xff] %v9277_v1  ;;  %v496_v4 = vld [vmem:[%s9560_s8 + $0x10] sm:$0xff]  ;;  %v1201_v5 = vld [vmem:[%s9567_s11] sm:$0xff]  ;;  %s11808_s20 = scalar_lea.vmem %s12212_s5, %s7486_s28  ;;  %s11843_s23 = scalar_lea.vmem %s12211_s4, %s9551_s26 }
  0x15   : > { %400 = vst [vmem:[#allocation2 + $0x70] sm:$0x3] %v9277_v1  ;;  %401 = vst [vmem:[#allocation2 + $0x78] sm:$0xff] %v9277_v1  ;;  %v1202_v6 = vld [vmem:[%s9567_s11 + $0x8] sm:$0xff]  ;;  %v1203_v7 = vld [vmem:[%s9567_s11 + $0x10] sm:$0xff]  ;;  %s7407_s27 = sshll.u32 %s9551_s26, 4 }
  0x16   : > { %402 = vst [vmem:[#allocation2 + $0x80] sm:$0xff] %v9277_v1  ;;  %403 = vst [vmem:[#allocation2 + $0x88] sm:$0x3] %v9277_v1  ;;  %v7905_v8 = vpack.c.bf16 %v1202_v6, %v1201_v5  ;;  %v1204_v9 = vld [vmem:[%s9567_s11 + $0x18] sm:$0xff]  ;;  %v1205_v11 = vld [vmem:[%s9567_s11 + $0x20] sm:$0xff]  ;;  %s378_s30 = scalar_lea.vmem %s12213_s6, %s7407_s27  ;;  %s7408_s26 = sshll.u32 %s9326_s25, 4 }
  0x17   : > { %404 = vst [vmem:[#allocation2 + $0x90] sm:$0xff] %v9277_v1  ;;  %405 = vst [vmem:[#allocation2 + $0x98] sm:$0xff] %v9277_v1  ;;  %v7908_v10 = vpack.c.bf16 %v1204_v9, %v1203_v7  ;;  %v1206_v12 = vld [vmem:[%s9567_s11 + $0x28] sm:$0xff]  ;;  %v1207_v14 = vld [vmem:[%s9567_s11 + $0x30] sm:$0xff]  ;;  %p380_p4 = scmp.lt.s32.totalorder %s7408_s26, 31 }
  0x18   : > { %406 = vst [vmem:[#allocation2 + $0xa0] sm:$0x3] %v9277_v1  ;;  %407 = vst [vmem:[#allocation2 + $0xa8] sm:$0xff] %v9277_v1  ;;  %7906 = vmatpush1.bf16.msra.mxu0 %v7905_v8  ;;  %v7911_v13 = vpack.c.bf16 %v1206_v12, %v1205_v11  ;;  %v1208_v15 = vld [vmem:[%s9567_s11 + $0x38] sm:$0xff]  ;;  %v688_v16 = vld [vmem:[#allocation2 + $0x1] sm:$0xff] }
  0x19   : > { %408 = vst [vmem:[#allocation2 + $0xb0] sm:$0xff] %v9277_v1  ;;  %409 = vst [vmem:[#allocation2 + $0xb8] sm:$0x3] %v9277_v1  ;;  %7907 = vmatprep.subr.bf16.mxu0 %v12215_v0  ;;  %v7914_v17 = vpack.c.bf16 %v1208_v15, %v1207_v14  ;;  %1416 = vmatprep.mubr.f32.mxu0 %v688_v16  ;;  %v1209_v18 = vld [vmem:[%s9567_s11 + $0x40] sm:$0xff]  ;;  %v1210_v19 = vld [vmem:[%s9567_s11 + $0x48] sm:$0xff]  ;;  %s12451_s26 = smov (!%p380_p4, %s7408_s26), 31 }
  0x1a   : > { %410 = vst [vmem:[#allocation2 + $0xc0] sm:$0xff] %v9277_v1  ;;  %411 = vst [vmem:[#allocation2 + $0xc8] sm:$0xff] %v9277_v1  ;;  %v497_v20 = vld [vmem:[%s9560_s8 + $0x18] sm:$0xff]  ;;  %v7917_v21 = vpack.c.bf16 %v1210_v19, %v1209_v18  ;;  %v498_v22 = vld [vmem:[%s9560_s8 + $0x20] sm:$0xff]  ;;  %s7409_s25 = sshll.u32 %s12451_s26, 1 }
  0x1b   : > { %412 = vst [vmem:[#allocation2 + $0xd0] sm:$0x3] %v9277_v1  ;;  %413 = vst [vmem:[#allocation2 + $0xd8] sm:$0xff] %v9277_v1  ;;  %v499_v23 = vld [vmem:[%s9560_s8 + $0x28] sm:$0xff]  ;;  %v500_v24 = vld [vmem:[%s9560_s8 + $0x30] sm:$0xff]  ;;  %s12190_s10 = scalar_lea.vmem %s12214_s7, %s7409_s25 }
  0x1c   : > { %414 = vst [vmem:[#allocation2 + $0xe0] sm:$0xff] %v9277_v1  ;;  %415 = vst [vmem:[#allocation2 + $0xe8] sm:$0x3] %v9277_v1  ;;  %7909 = vmatpush1.bf16.msra.mxu0 %v7908_v10  ;;  %v1211_v25 = vld [vmem:[%s9567_s11 + $0x50] sm:$0xff]  ;;  %v1212_v26 = vld [vmem:[%s9567_s11 + $0x58] sm:$0xff] }
  0x1d   : > { %416 = vst [vmem:[#allocation2 + $0xf0] sm:$0xff] %v9277_v1  ;;  %417 = vst [vmem:[#allocation2 + $0xf8] sm:$0xff] %v9277_v1  ;;  %7910 = vmatprep.subr.bf16.mxu0 %v12215_v0  ;;  %v501_v27 = vld [vmem:[%s9560_s8 + $0x38] sm:$0xff]  ;;  %v502_v28 = vld [vmem:[%s9560_s8 + $0x40] sm:$0xff]  ;;  %v7920_v32 = vpack.c.bf16 %v1212_v26, %v1211_v25 }
  0x1e   : > { %418 = vst [vmem:[#allocation2 + $0x100] sm:$0x3] %v9277_v1  ;;  %419 = vst [vmem:[#allocation2 + $0x108] sm:$0xff] %v9277_v1  ;;  %v503_v29 = vld [vmem:[%s9560_s8 + $0x48] sm:$0xff]  ;;  %v504_v30 = vld [vmem:[%s9560_s8 + $0x50] sm:$0xff] }
  0x1f   : > { %420 = vst [vmem:[#allocation2 + $0x110] sm:$0xff] %v9277_v1  ;;  %421 = vst [vmem:[#allocation2 + $0x118] sm:$0x3] %v9277_v1  ;;  %v505_v31 = vld [vmem:[%s9560_s8 + $0x58] sm:$0xff]  ;;  %v506_v33 = vld [vmem:[%s9560_s8 + $0x60] sm:$0xff] }
  0x20   : > { %422 = vst [vmem:[#allocation2 + $0x120] sm:$0xff] %v9277_v1  ;;  %423 = vst [vmem:[#allocation2 + $0x128] sm:$0xff] %v9277_v1  ;;  %7912 = vmatpush1.bf16.msra.mxu0 %v7911_v13  ;;  %v507_v34 = vld [vmem:[%s9560_s8 + $0x68] sm:$0xff]  ;;  %v508_v35 = vld [vmem:[%s9560_s8 + $0x70] sm:$0xff] }
  0x21   : > { %424 = vst [vmem:[#allocation2 + $0x130] sm:$0x3] %v9277_v1  ;;  %425 = vst [vmem:[#allocation2 + $0x138] sm:$0xff] %v9277_v1  ;;  %7913 = vmatprep.subr.bf16.mxu0 %v12215_v0  ;;  %v1213_v36 = vld [vmem:[%s9567_s11 + $0x60] sm:$0xff]  ;;  %v1214_v37 = vld [vmem:[%s9567_s11 + $0x68] sm:$0xff] }
  0x22   : > { %426 = vst [vmem:[#allocation2 + $0x140] sm:$0xff] %v9277_v1  ;;  %427 = vst [vmem:[#allocation2 + $0x148] sm:$0x3] %v9277_v1  ;;  %v509_v38 = vld [vmem:[%s9560_s8 + $0x78] sm:$0xff]  ;;  %v510_v39 = vld [vmem:[%s9560_s8 + $0x80] sm:$0xff]  ;;  %v7923_v42 = vpack.c.bf16 %v1214_v37, %v1213_v36 }
  0x23   : > { %428 = vst [vmem:[#allocation2 + $0x150] sm:$0xff] %v9277_v1  ;;  %429 = vst [vmem:[#allocation2 + $0x158] sm:$0xff] %v9277_v1  ;;  %v511_v40 = vld [vmem:[%s9560_s8 + $0x88] sm:$0xff]  ;;  %v512_v41 = vld [vmem:[%s9560_s8 + $0x90] sm:$0xff] }
  0x24   : > { %430 = vst [vmem:[#allocation2 + $0x160] sm:$0x3] %v9277_v1  ;;  %431 = vst [vmem:[#allocation2 + $0x168] sm:$0xff] %v9277_v1  ;;  %7915 = vmatpush1.bf16.msra.mxu0 %v7914_v17  ;;  %v1215_v43 = vld [vmem:[%s9567_s11 + $0x70] sm:$0xff]  ;;  %v1216_v44 = vld [vmem:[%s9567_s11 + $0x78] sm:$0xff] }
  0x25   : > { %432 = vst [vmem:[#allocation2 + $0x170] sm:$0xff] %v9277_v1  ;;  %433 = vst [vmem:[#allocation2 + $0x178] sm:$0x3] %v9277_v1  ;;  %7916 = vmatprep.subr.bf16.mxu0 %v12215_v0  ;;  %v7926_v45 = vpack.c.bf16 %v1216_v44, %v1215_v43  ;;  %v1217_v46 = vld [vmem:[%s9567_s11 + $0x80] sm:$0xff]  ;;  %v1218_v47 = vld [vmem:[%s9567_s11 + $0x88] sm:$0xff] }
  0x26   : > { %434 = vst [vmem:[#allocation2 + $0x180] sm:$0xff] %v9277_v1  ;;  %435 = vst [vmem:[#allocation2 + $0x188] sm:$0xff] %v9277_v1  ;;  %v7929_v48 = vpack.c.bf16 %v1218_v47, %v1217_v46  ;;  %v1219_v49 = vld [vmem:[%s9567_s11 + $0x90] sm:$0xff]  ;;  %v1220_v50 = vld [vmem:[%s9567_s11 + $0x98] sm:$0xff] }
  0x27   : > { %436 = vst [vmem:[#allocation2 + $0x190] sm:$0x3] %v9277_v1  ;;  %437 = vst [vmem:[#allocation2 + $0x198] sm:$0xff] %v9277_v1  ;;  %v513_v51 = vld [vmem:[%s9560_s8 + $0x98] sm:$0xff]  ;;  %v514_v52 = vld [vmem:[%s9560_s8 + $0xa0] sm:$0xff]  ;;  %v7932_v55 = vpack.c.bf16 %v1220_v50, %v1219_v49 }
  0x28   : > { %438 = vst [vmem:[#allocation2 + $0x1a0] sm:$0xff] %v9277_v1  ;;  %439 = vst [vmem:[#allocation2 + $0x1a8] sm:$0x3] %v9277_v1  ;;  %7918 = vmatpush1.bf16.msra.mxu0 %v7917_v21  ;;  %v515_v53 = vld [vmem:[%s9560_s8 + $0xa8] sm:$0xff]  ;;  %v516_v54 = vld [vmem:[%s9560_s8 + $0xb0] sm:$0xff] }
  0x29   : > { %440 = vst [vmem:[#allocation2 + $0x1b0] sm:$0xff] %v9277_v1  ;;  %441 = vst [vmem:[#allocation2 + $0x1b8] sm:$0xff] %v9277_v1  ;;  %7919 = vmatprep.subr.bf16.mxu0 %v12215_v0  ;;  %v517_v56 = vld [vmem:[%s9560_s8 + $0xb8] sm:$0xff]  ;;  %v518_v57 = vld [vmem:[%s9560_s8 + $0xc0] sm:$0xff] }
  0x2a   : > { %442 = vst [vmem:[#allocation2 + $0x1c0] sm:$0x3] %v9277_v1  ;;  %443 = vst [vmem:[#allocation2 + $0x1c8] sm:$0xff] %v9277_v1  ;;  %v1221_v58 = vld [vmem:[%s9567_s11 + $0xa0] sm:$0xff]  ;;  %v1222_v59 = vld [vmem:[%s9567_s11 + $0xa8] sm:$0xff] }
  0x2b   : > { %444 = vst [vmem:[#allocation2 + $0x1d0] sm:$0xff] %v9277_v1  ;;  %445 = vst [vmem:[#allocation2 + $0x1d8] sm:$0x3] %v9277_v1  ;;  %v519_v60 = vld [vmem:[%s9560_s8 + $0xc8] sm:$0xff]  ;;  %v7935_v61 = vpack.c.bf16 %v1222_v59, %v1221_v58  ;;  %v1223_v62 = vld [vmem:[%s9567_s11 + $0xb0] sm:$0xff] }
  0x2c   : > { %446 = vst [vmem:[#allocation2 + $0x1e0] sm:$0xff] %v9277_v1  ;;  %447 = vst [vmem:[#allocation2 + $0x1e8] sm:$0xff] %v9277_v1  ;;  %7921 = vmatpush1.bf16.msra.mxu0 %v7920_v32  ;;  %v1224_v63 = vld [vmem:[%s9567_s11 + $0xb8] sm:$0xff]  ;;  %v1226_v5 = vld [vmem:[%s9567_s11 + $0xc8] sm:$0xff] }
  0x2d   : > { %448 = vst [vmem:[#allocation2 + $0x1f0] sm:$0x3] %v9277_v1  ;;  %449 = vst [vmem:[#allocation2 + $0x1f8] sm:$0xff] %v9277_v1  ;;  %7922 = vmatprep.subr.bf16.mxu0 %v12215_v0  ;;  %v521_v6 = vld [vmem:[%s9560_s8 + $0xd8] sm:$0xff]  ;;  %v1227_v8 = vld [vmem:[%s9567_s11 + $0xd0] sm:$0xff] }
  0x2e   : > { %450 = vst [vmem:[#allocation2 + $0x200] sm:$0xff] %v9277_v1  ;;  %451 = vst [vmem:[#allocation2 + $0x208] sm:$0x3] %v9277_v1  ;;  %v1228_v9 = vld [vmem:[%s9567_s11 + $0xd8] sm:$0xff]  ;;  %v522_v10 = vld [vmem:[%s9560_s8 + $0xe0] sm:$0xff] }
  0x2f   : > { %452 = vst [vmem:[#allocation2 + $0x210] sm:$0xff] %v9277_v1  ;;  %453 = vst [vmem:[#allocation2 + $0x218] sm:$0xff] %v9277_v1  ;;  %v7944_v11 = vpack.c.bf16 %v1228_v9, %v1227_v8  ;;  %v1229_v12 = vld [vmem:[%s9567_s11 + $0xe0] sm:$0xff]  ;;  %v1230_v13 = vld [vmem:[%s9567_s11 + $0xe8] sm:$0xff] }
  0x30   : > { %454 = vst [vmem:[#allocation2 + $0x220] sm:$0x3] %v9277_v1  ;;  %455 = vst [vmem:[#allocation2 + $0x228] sm:$0xff] %v9277_v1  ;;  %7924 = vmatpush1.bf16.msra.mxu0 %v7923_v42  ;;  %v523_v14 = vld [vmem:[%s9560_s8 + $0xe8] sm:$0xff]  ;;  %v7947_v15 = vpack.c.bf16 %v1230_v13, %v1229_v12  ;;  %v1231_v16 = vld [vmem:[%s9567_s11 + $0xf0] sm:$0xff] }
  0x31   : > { %456 = vst [vmem:[#allocation2 + $0x230] sm:$0xff] %v9277_v1  ;;  %457 = vst [vmem:[#allocation2 + $0x238] sm:$0x3] %v9277_v1  ;;  %7925 = vmatprep.subr.bf16.mxu0 %v12215_v0  ;;  %v1232_v17 = vld [vmem:[%s9567_s11 + $0xf8] sm:$0xff]  ;;  %v1233_v19 = vld [vmem:[%s9567_s11 + $0x100] sm:$0xff] }
  0x32   : > { %458 = vst [vmem:[#allocation2 + $0x240] sm:$0xff] %v9277_v1  ;;  %459 = vst [vmem:[#allocation2 + $0x248] sm:$0xff] %v9277_v1  ;;  %v7950_v18 = vpack.c.bf16 %v1232_v17, %v1231_v16  ;;  %v526_v25 = vld [vmem:[%s9560_s8 + $0x100] sm:$0xff]  ;;  %v528_v36 = vld [vmem:[%s9560_s8 + $0x110] sm:$0xff] }
  0x33   : > { %460 = vst [vmem:[#allocation2 + $0x250] sm:$0x3] %v9277_v1  ;;  %461 = vst [vmem:[#allocation2 + $0x258] sm:$0xff] %v9277_v1  ;;  %v1244_v46 = vld [vmem:[%s9567_s11 + $0x158] sm:$0xff]  ;;  %v530_v47 = vld [vmem:[%s9560_s8 + $0x120] sm:$0xff] }
  0x34   : > { %462 = vst [vmem:[#allocation2 + $0x260] sm:$0xff] %v9277_v1  ;;  %463 = vst [vmem:[#allocation2 + $0x268] sm:$0x3] %v9277_v1  ;;  %7927 = vmatpush1.bf16.msra.mxu0 %v7926_v45  ;;  %v1243_v45 = vld [vmem:[%s9567_s11 + $0x150] sm:$0xff]  ;;  %v1248_v58 = vld [vmem:[%s9567_s11 + $0x178] sm:$0xff] }
  0x35   : > { %464 = vst [vmem:[#allocation2 + $0x270] sm:$0xff] %v9277_v1  ;;  %465 = vst [vmem:[#allocation2 + $0x278] sm:$0xff] %v9277_v1  ;;  %7928 = vmatprep.subr.bf16.mxu0 %v12215_v0  ;;  %v7968_v50 = vpack.c.bf16 %v1244_v46, %v1243_v45  ;;  %v532_v59 = vld [vmem:[%s9560_s8 + $0x130] sm:$0xff]  ;;  %v1252_v8 = vld [vmem:[%s9567_s11 + $0x198] sm:$0xff] }
  0x36   : > { %466 = vst [vmem:[#allocation2 + $0x280] sm:$0x3] %v9277_v1  ;;  %467 = vst [vmem:[#allocation2 + $0x288] sm:$0xff] %v9277_v1  ;;  %v534_v9 = vld [vmem:[%s9560_s8 + $0x140] sm:$0xff] }
  0x37   : > { %468 = vst [vmem:[#allocation2 + $0x290] sm:$0xff] %v9277_v1  ;;  %469 = vst [vmem:[#allocation2 + $0x298] sm:$0x3] %v9277_v1  ;;  %v1253_v13 = vld [vmem:[%s9567_s11 + $0x1a0] sm:$0xff] }
  0x38   : > { %470 = vst [vmem:[#allocation2 + $0x2a0] sm:$0xff] %v9277_v1  ;;  %471 = vst [vmem:[#allocation2 + $0x2a8] sm:$0xff] %v9277_v1  ;;  %7930 = vmatpush1.bf16.msra.mxu0 %v7929_v48 }
  0x39   : > { %472 = vst [vmem:[#allocation2 + $0x2b0] sm:$0x3] %v9277_v1  ;;  %473 = vst [vmem:[#allocation2 + $0x2b8] sm:$0xff] %v9277_v1  ;;  %7931 = vmatprep.subr.bf16.mxu0 %v12215_v0 }
  0x3a   : > { %474 = vst [vmem:[#allocation2 + $0x2c0] sm:$0xff] %v9277_v1  ;;  %475 = vst [vmem:[#allocation2 + $0x2c8] sm:$0x3] %v9277_v1 }
  0x3b   : > { %476 = vst [vmem:[#allocation2 + $0x2d0] sm:$0xff] %v9277_v1  ;;  %477 = vst [vmem:[#allocation2 + $0x2d8] sm:$0xff] %v9277_v1 }
  0x3c   : > { %478 = vst [vmem:[#allocation2 + $0x2e0] sm:$0x3] %v9277_v1  ;;  %479 = vst [vmem:[#allocation2 + $0x2e8] sm:$0xff] %v9277_v1  ;;  %7933 = vmatpush1.bf16.msra.mxu0 %v7932_v55 }
  0x3d   : > { %480 = vst [vmem:[#allocation2 + $0x2f0] sm:$0xff] %v9277_v1  ;;  %481 = vst [vmem:[#allocation2 + $0x2f8] sm:$0x3] %v9277_v1  ;;  %7934 = vmatprep.subr.bf16.mxu0 %v12215_v0 }
  0x3e   : > { %482 = vst [vmem:[#allocation2 + $0x300] sm:$0xff] %v9277_v1  ;;  %483 = vst [vmem:[#allocation2 + $0x308] sm:$0xff] %v9277_v1 }
  0x3f   : > { %484 = vst [vmem:[#allocation2 + $0x310] sm:$0x3] %v9277_v1  ;;  %485 = vst [vmem:[#allocation2 + $0x318] sm:$0xff] %v9277_v1 }
  0x40   : > { %486 = vst [vmem:[#allocation2 + $0x320] sm:$0xff] %v9277_v1  ;;  %487 = vst [vmem:[#allocation2 + $0x328] sm:$0x3] %v9277_v1  ;;  %7936 = vmatpush1.bf16.msra.mxu0 %v7935_v61 }
  0x41   : > { %488 = vst [vmem:[#allocation2 + $0x330] sm:$0xff] %v9277_v1  ;;  %489 = vst [vmem:[#allocation2 + $0x338] sm:$0xff] %v9277_v1  ;;  %7937 = vmatprep.subr.bf16.mxu0 %v12215_v0 }
  0x42   : > { %490 = vst [vmem:[#allocation2 + $0x340] sm:$0x3] %v9277_v1  ;;  %491 = vst [vmem:[#allocation2 + $0x348] sm:$0xff] %v9277_v1 }
  0x43   : > { %492 = vst [vmem:[#allocation2 + $0x350] sm:$0xff] %v9277_v1  ;;  %493 = vst [vmem:[#allocation2 + $0x358] sm:$0x3] %v9277_v1 }
  0x44   : > { %3341 = vst [vmem:[#allocation3] sm:$0xff] %v9277_v1  ;;  %3342 = vst [vmem:[#allocation3 + $0x8] sm:$0xff] %v9277_v1 }
  0x45   : > { %3343 = vst [vmem:[#allocation3 + $0x10] sm:$0x3] %v9277_v1  ;;  %3344 = vst [vmem:[#allocation3 + $0x18] sm:$0xff] %v9277_v1 }
  0x46   : > { %3345 = vst [vmem:[#allocation3 + $0x20] sm:$0xff] %v9277_v1  ;;  %3346 = vst [vmem:[#allocation3 + $0x28] sm:$0x3] %v9277_v1 }
  0x47   : > { %3347 = vst [vmem:[#allocation3 + $0x30] sm:$0xff] %v9277_v1  ;;  %3348 = vst [vmem:[#allocation3 + $0x38] sm:$0xff] %v9277_v1 }
  0x48   : > { %3349 = vst [vmem:[#allocation3 + $0x40] sm:$0x3] %v9277_v1  ;;  %3350 = vst [vmem:[#allocation3 + $0x48] sm:$0xff] %v9277_v1 }
  0x49   : > { %3351 = vst [vmem:[#allocation3 + $0x50] sm:$0xff] %v9277_v1  ;;  %3352 = vst [vmem:[#allocation3 + $0x58] sm:$0x3] %v9277_v1 }
  0x4a   : > { %3353 = vst [vmem:[#allocation3 + $0x60] sm:$0xff] %v9277_v1  ;;  %3354 = vst [vmem:[#allocation3 + $0x68] sm:$0xff] %v9277_v1 }
  0x4b   : > { %3355 = vst [vmem:[#allocation3 + $0x70] sm:$0x3] %v9277_v1  ;;  %3356 = vst [vmem:[#allocation3 + $0x78] sm:$0xff] %v9277_v1 }
  0x4c   : > { %3357 = vst [vmem:[#allocation3 + $0x80] sm:$0xff] %v9277_v1  ;;  %3358 = vst [vmem:[#allocation3 + $0x88] sm:$0x3] %v9277_v1 }
  0x4d   : > { %3359 = vst [vmem:[#allocation3 + $0x90] sm:$0xff] %v9277_v1  ;;  %3360 = vst [vmem:[#allocation3 + $0x98] sm:$0xff] %v9277_v1 }
  0x4e   : > { %3361 = vst [vmem:[#allocation3 + $0xa0] sm:$0x3] %v9277_v1  ;;  %3362 = vst [vmem:[#allocation3 + $0xa8] sm:$0xff] %v9277_v1 }
  0x4f   : > { %3363 = vst [vmem:[#allocation3 + $0xb0] sm:$0xff] %v9277_v1  ;;  %3364 = vst [vmem:[#allocation3 + $0xb8] sm:$0x3] %v9277_v1 }
  0x50   : > { %3365 = vst [vmem:[#allocation3 + $0xc0] sm:$0xff] %v9277_v1  ;;  %3366 = vst [vmem:[#allocation3 + $0xc8] sm:$0xff] %v9277_v1 }
  0x51   : > { %3367 = vst [vmem:[#allocation3 + $0xd0] sm:$0x3] %v9277_v1  ;;  %3368 = vst [vmem:[#allocation3 + $0xd8] sm:$0xff] %v9277_v1 }
  0x52   : > { %3369 = vst [vmem:[#allocation3 + $0xe0] sm:$0xff] %v9277_v1  ;;  %3370 = vst [vmem:[#allocation3 + $0xe8] sm:$0x3] %v9277_v1 }
  0x53   : > { %3371 = vst [vmem:[#allocation3 + $0xf0] sm:$0xff] %v9277_v1  ;;  %3372 = vst [vmem:[#allocation3 + $0xf8] sm:$0xff] %v9277_v1 }
  0x54   : > { %3373 = vst [vmem:[#allocation3 + $0x100] sm:$0x3] %v9277_v1  ;;  %3374 = vst [vmem:[#allocation3 + $0x108] sm:$0xff] %v9277_v1 }
  0x55   : > { %3375 = vst [vmem:[#allocation3 + $0x110] sm:$0xff] %v9277_v1  ;;  %3376 = vst [vmem:[#allocation3 + $0x118] sm:$0x3] %v9277_v1 }
  0x56   : > { %3377 = vst [vmem:[#allocation3 + $0x120] sm:$0xff] %v9277_v1  ;;  %3378 = vst [vmem:[#allocation3 + $0x128] sm:$0xff] %v9277_v1 }
  0x57   : > { %3379 = vst [vmem:[#allocation3 + $0x130] sm:$0x3] %v9277_v1  ;;  %3380 = vst [vmem:[#allocation3 + $0x138] sm:$0xff] %v9277_v1 }
  0x58   : > { %3381 = vst [vmem:[#allocation3 + $0x140] sm:$0xff] %v9277_v1  ;;  %3382 = vst [vmem:[#allocation3 + $0x148] sm:$0x3] %v9277_v1 }
  0x59   : > { %3383 = vst [vmem:[#allocation3 + $0x150] sm:$0xff] %v9277_v1  ;;  %3384 = vst [vmem:[#allocation3 + $0x158] sm:$0xff] %v9277_v1 }
  0x5a   : > { %3385 = vst [vmem:[#allocation3 + $0x160] sm:$0x3] %v9277_v1  ;;  %3386 = vst [vmem:[#allocation3 + $0x168] sm:$0xff] %v9277_v1 }
  0x5b   : > { %3387 = vst [vmem:[#allocation3 + $0x170] sm:$0xff] %v9277_v1  ;;  %3388 = vst [vmem:[#allocation3 + $0x178] sm:$0x3] %v9277_v1 }
  0x5c   : > { %3389 = vst [vmem:[#allocation3 + $0x180] sm:$0xff] %v9277_v1  ;;  %3390 = vst [vmem:[#allocation3 + $0x188] sm:$0xff] %v9277_v1 }
  0x5d   : > { %3391 = vst [vmem:[#allocation3 + $0x190] sm:$0x3] %v9277_v1  ;;  %3392 = vst [vmem:[#allocation3 + $0x198] sm:$0xff] %v9277_v1 }
  0x5e   : > { %3393 = vst [vmem:[#allocation3 + $0x1a0] sm:$0xff] %v9277_v1  ;;  %3394 = vst [vmem:[#allocation3 + $0x1a8] sm:$0x3] %v9277_v1 }
  0x5f   : > { %3395 = vst [vmem:[#allocation3 + $0x1b0] sm:$0xff] %v9277_v1  ;;  %3396 = vst [vmem:[#allocation3 + $0x1b8] sm:$0xff] %v9277_v1 }
  0x60   : > { %3397 = vst [vmem:[#allocation3 + $0x1c0] sm:$0x3] %v9277_v1  ;;  %3398 = vst [vmem:[#allocation3 + $0x1c8] sm:$0xff] %v9277_v1 }
  0x61   : > { %3399 = vst [vmem:[#allocation3 + $0x1d0] sm:$0xff] %v9277_v1  ;;  %3400 = vst [vmem:[#allocation3 + $0x1d8] sm:$0x3] %v9277_v1 }
  0x62   : > { %3401 = vst [vmem:[#allocation3 + $0x1e0] sm:$0xff] %v9277_v1  ;;  %3402 = vst [vmem:[#allocation3 + $0x1e8] sm:$0xff] %v9277_v1 }
  0x63   : > { %3403 = vst [vmem:[#allocation3 + $0x1f0] sm:$0x3] %v9277_v1  ;;  %3404 = vst [vmem:[#allocation3 + $0x1f8] sm:$0xff] %v9277_v1 }
  0x64   : > { %3405 = vst [vmem:[#allocation3 + $0x200] sm:$0xff] %v9277_v1  ;;  %3406 = vst [vmem:[#allocation3 + $0x208] sm:$0x3] %v9277_v1 }
  0x65   : > { %3407 = vst [vmem:[#allocation3 + $0x210] sm:$0xff] %v9277_v1  ;;  %3408 = vst [vmem:[#allocation3 + $0x218] sm:$0xff] %v9277_v1 }
  0x66   : > { %3409 = vst [vmem:[#allocation3 + $0x220] sm:$0x3] %v9277_v1  ;;  %3410 = vst [vmem:[#allocation3 + $0x228] sm:$0xff] %v9277_v1 }
  0x67   : > { %3411 = vst [vmem:[#allocation3 + $0x230] sm:$0xff] %v9277_v1  ;;  %3412 = vst [vmem:[#allocation3 + $0x238] sm:$0x3] %v9277_v1 }
  0x68   : > { %3413 = vst [vmem:[#allocation3 + $0x240] sm:$0xff] %v9277_v1  ;;  %3414 = vst [vmem:[#allocation3 + $0x248] sm:$0xff] %v9277_v1 }
  0x69   : > { %3415 = vst [vmem:[#allocation3 + $0x250] sm:$0x3] %v9277_v1  ;;  %3416 = vst [vmem:[#allocation3 + $0x258] sm:$0xff] %v9277_v1 }
  0x6a   : > { %3417 = vst [vmem:[#allocation3 + $0x260] sm:$0xff] %v9277_v1  ;;  %3418 = vst [vmem:[#allocation3 + $0x268] sm:$0x3] %v9277_v1 }
  0x6b   : > { %3419 = vst [vmem:[#allocation3 + $0x270] sm:$0xff] %v9277_v1  ;;  %3420 = vst [vmem:[#allocation3 + $0x278] sm:$0xff] %v9277_v1 }
  0x6c   : > { %3421 = vst [vmem:[#allocation3 + $0x280] sm:$0x3] %v9277_v1  ;;  %3422 = vst [vmem:[#allocation3 + $0x288] sm:$0xff] %v9277_v1 }
  0x6d   : > { %3423 = vst [vmem:[#allocation3 + $0x290] sm:$0xff] %v9277_v1  ;;  %3424 = vst [vmem:[#allocation3 + $0x298] sm:$0x3] %v9277_v1 }
  0x6e   : > { %3425 = vst [vmem:[#allocation3 + $0x2a0] sm:$0xff] %v9277_v1  ;;  %3426 = vst [vmem:[#allocation3 + $0x2a8] sm:$0xff] %v9277_v1 }
  0x6f   : > { %3427 = vst [vmem:[#allocation3 + $0x2b0] sm:$0x3] %v9277_v1  ;;  %3428 = vst [vmem:[#allocation3 + $0x2b8] sm:$0xff] %v9277_v1 }
  0x70   : > { %3429 = vst [vmem:[#allocation3 + $0x2c0] sm:$0xff] %v9277_v1  ;;  %3430 = vst [vmem:[#allocation3 + $0x2c8] sm:$0x3] %v9277_v1 }
  0x71   : > { %3431 = vst [vmem:[#allocation3 + $0x2d0] sm:$0xff] %v9277_v1  ;;  %3432 = vst [vmem:[#allocation3 + $0x2d8] sm:$0xff] %v9277_v1 }
  0x72   : > { %3433 = vst [vmem:[#allocation3 + $0x2e0] sm:$0x3] %v9277_v1  ;;  %3434 = vst [vmem:[#allocation3 + $0x2e8] sm:$0xff] %v9277_v1 }
  0x73   : > { %3435 = vst [vmem:[#allocation3 + $0x2f0] sm:$0xff] %v9277_v1  ;;  %3436 = vst [vmem:[#allocation3 + $0x2f8] sm:$0x3] %v9277_v1 }
  0x74   : > { %3437 = vst [vmem:[#allocation3 + $0x300] sm:$0xff] %v9277_v1  ;;  %3438 = vst [vmem:[#allocation3 + $0x308] sm:$0xff] %v9277_v1 }
  0x75   : > { %3439 = vst [vmem:[#allocation3 + $0x310] sm:$0x3] %v9277_v1  ;;  %3440 = vst [vmem:[#allocation3 + $0x318] sm:$0xff] %v9277_v1 }
  0x76   : > { %3441 = vst [vmem:[#allocation3 + $0x320] sm:$0xff] %v9277_v1  ;;  %3442 = vst [vmem:[#allocation3 + $0x328] sm:$0x3] %v9277_v1 }
  0x77   : > { %3443 = vst [vmem:[#allocation3 + $0x330] sm:$0xff] %v9277_v1  ;;  %3444 = vst [vmem:[#allocation3 + $0x338] sm:$0xff] %v9277_v1 }
  0x78   : > { %3445 = vst [vmem:[#allocation3 + $0x340] sm:$0x3] %v9277_v1  ;;  %3446 = vst [vmem:[#allocation3 + $0x348] sm:$0xff] %v9277_v1 }
  0x79   : > { %3447 = vst [vmem:[#allocation3 + $0x350] sm:$0xff] %v9277_v1  ;;  %3448 = vst [vmem:[#allocation3 + $0x358] sm:$0x3] %v9277_v1 }
  0x7a   : > { %560 = vst.msk [vmem:[#allocation2 + $0x19] sm:$0xff] %vm559_vm0, %v494_v2  ;;  %561 = vst.msk [vmem:[#allocation2 + $0x21] sm:$0xff] %vm559_vm0, %v495_v3  ;;  %v520_v2 = vld [vmem:[%s9560_s8 + $0xd0] sm:$0xff]  ;;  %v7938_v3 = vpack.c.bf16 %v1224_v63, %v1223_v62  ;;  %v1249_v63 = vld [vmem:[%s9567_s11 + $0x180] sm:$0xff] }
  0x7b   : > { %562 = vst.msk [vmem:[#allocation2 + $0x31] sm:$0xff] %vm559_vm0, %v496_v4  ;;  %563 = vst.msk [vmem:[#allocation2 + $0x39] sm:$0xff] %vm559_vm0, %v497_v20  ;;  %v1225_v4 = vld [vmem:[%s9567_s11 + $0xc0] sm:$0xff]  ;;  %v1234_v20 = vld [vmem:[%s9567_s11 + $0x108] sm:$0xff] }
  0x7c   : > { %564 = vst.msk [vmem:[#allocation2 + $0x49] sm:$0xff] %vm559_vm0, %v498_v22  ;;  %565 = vst.msk [vmem:[#allocation2 + $0x51] sm:$0xff] %vm559_vm0, %v499_v23  ;;  %7939 = vmatpush1.bf16.msra.mxu0 %v7938_v3  ;;  %v7941_v7 = vpack.c.bf16 %v1226_v5, %v1225_v4  ;;  %v7953_v21 = vpack.c.bf16 %v1234_v20, %v1233_v19  ;;  %v689_v22 = vld [vmem:[#allocation2 + $0x9] sm:$0xff]  ;;  %v533_v3 = vld [vmem:[%s9560_s8 + $0x138] sm:$0xff] }
  0x7d   : > { %566 = vst.msk [vmem:[#allocation2 + $0x61] sm:$0xff] %vm559_vm0, %v500_v24  ;;  %567 = vst.msk [vmem:[#allocation2 + $0x69] sm:$0xff] %vm559_vm0, %v501_v27  ;;  %7940 = vmatprep.subr.bf16.mxu0 %v12215_v0  ;;  %v1235_v23 = vld [vmem:[%s9567_s11 + $0x110] sm:$0xff]  ;;  %v1236_v24 = vld [vmem:[%s9567_s11 + $0x118] sm:$0xff] }
  0x7e   : > { %568 = vst.msk [vmem:[#allocation2 + $0x79] sm:$0xff] %vm559_vm0, %v502_v28  ;;  %569 = vst.msk [vmem:[#allocation2 + $0x81] sm:$0xff] %vm559_vm0, %v503_v29  ;;  %v7956_v27 = vpack.c.bf16 %v1236_v24, %v1235_v23  ;;  %v1237_v28 = vld [vmem:[%s9567_s11 + $0x120] sm:$0xff]  ;;  %v1238_v29 = vld [vmem:[%s9567_s11 + $0x128] sm:$0xff] }
  0x7f   : > { %570 = vst.msk [vmem:[#allocation2 + $0x91] sm:$0xff] %vm559_vm0, %v504_v30  ;;  %571 = vst.msk [vmem:[#allocation2 + $0x99] sm:$0xff] %vm559_vm0, %v505_v31  ;;  %v527_v30 = vld [vmem:[%s9560_s8 + $0x108] sm:$0xff]  ;;  %v536_v19 = vld [vmem:[%s9560_s8 + $0x150] sm:$0xff] }
  0x80   : > { %572 = vst.msk [vmem:[#allocation2 + $0xa9] sm:$0xff] %vm559_vm0, %v506_v33  ;;  %573 = vst.msk [vmem:[#allocation2 + $0xb1] sm:$0xff] %vm559_vm0, %v507_v34  ;;  %7942 = vmatpush1.bf16.msra.mxu0 %v7941_v7  ;;  %v7959_v33 = vpack.c.bf16 %v1238_v29, %v1237_v28  ;;  %v1239_v34 = vld [vmem:[%s9567_s11 + $0x130] sm:$0xff] }
  0x81   : > { %574 = vst.msk [vmem:[#allocation2 + $0xc1] sm:$0xff] %vm559_vm0, %v508_v35  ;;  %575 = vst.msk [vmem:[#allocation2 + $0xc9] sm:$0xff] %vm559_vm0, %v509_v38  ;;  %7943 = vmatprep.subr.bf16.mxu0 %v12215_v0  ;;  %v690_v26 = vld [vmem:[#allocation2 + $0x19] sm:$0xff]  ;;  %v691_v32 = vld [vmem:[#allocation2 + $0x21] sm:$0xff] }
  0x82   : > { %576 = vst.msk [vmem:[#allocation2 + $0xd9] sm:$0xff] %vm559_vm0, %v510_v39  ;;  %577 = vst.msk [vmem:[#allocation2 + $0xe1] sm:$0xff] %vm559_vm0, %v511_v40  ;;  %v9690_v31 = vld [vmem:[#allocation2 + $0x18] sm:$0xff]  ;;  %v1241_v39 = vld [vmem:[%s9567_s11 + $0x140] sm:$0xff] }
  0x83   : > { %578 = vst.msk [vmem:[#allocation2 + $0xf1] sm:$0xff] %vm559_vm0, %v512_v41  ;;  %579 = vst.msk [vmem:[#allocation2 + $0xf9] sm:$0xff] %vm559_vm0, %v513_v51  ;;  %v1240_v35 = vld [vmem:[%s9567_s11 + $0x138] sm:$0xff]  ;;  %v1242_v40 = vld [vmem:[%s9567_s11 + $0x148] sm:$0xff] }
  0x84   : > { %580 = vst.msk [vmem:[#allocation2 + $0x109] sm:$0xff] %vm559_vm0, %v514_v52  ;;  %581 = vst.msk [vmem:[#allocation2 + $0x111] sm:$0xff] %vm559_vm0, %v515_v53  ;;  %7945 = vmatpush1.bf16.msra.mxu0 %v7944_v11  ;;  %v692_v37 = vld [vmem:[#allocation2 + $0x31] sm:$0xff]  ;;  %v7962_v38 = vpack.c.bf16 %v1240_v35, %v1239_v34  ;;  %v693_v43 = vld [vmem:[#allocation2 + $0x39] sm:$0xff]  ;;  %v7965_v44 = vpack.c.bf16 %v1242_v40, %v1241_v39 }
  0x85   : > { %582 = vst.msk [vmem:[#allocation2 + $0x121] sm:$0xff] %vm559_vm0, %v516_v54  ;;  %583 = vst.msk [vmem:[#allocation2 + $0x129] sm:$0xff] %vm559_vm0, %v517_v56  ;;  %7946 = vmatprep.subr.bf16.mxu0 %v12215_v0  ;;  %v529_v41 = vld [vmem:[%s9560_s8 + $0x118] sm:$0xff]  ;;  %v9706_v42 = vld [vmem:[#allocation2 + $0x30] sm:$0xff] }
  0x86   : > { %584 = vst.msk [vmem:[#allocation2 + $0x139] sm:$0xff] %vm559_vm0, %v518_v57  ;;  %585 = vst.msk [vmem:[#allocation2 + $0x141] sm:$0xff] %vm559_vm0, %v519_v60  ;;  %v9714_v48 = vld [vmem:[#allocation2 + $0x38] sm:$0xff]  ;;  %v694_v49 = vld [vmem:[#allocation2 + $0x49] sm:$0xff] }
  0x87   : > { %586 = vst.msk [vmem:[#allocation2 + $0x151] sm:$0xff] %vm559_vm0, %v520_v2  ;;  %587 = vst.msk [vmem:[#allocation2 + $0x159] sm:$0xff] %vm559_vm0, %v521_v6  ;;  %v1245_v51 = vld [vmem:[%s9567_s11 + $0x160] sm:$0xff]  ;;  %v1246_v52 = vld [vmem:[%s9567_s11 + $0x168] sm:$0xff] }
  0x88   : > { %588 = vst.msk [vmem:[#allocation2 + $0x169] sm:$0xff] %vm559_vm0, %v522_v10  ;;  %589 = vst.msk [vmem:[#allocation2 + $0x171] sm:$0xff] %vm559_vm0, %v523_v14  ;;  %7948 = vmatpush1.bf16.msra.mxu0 %v7947_v15  ;;  %v531_v53 = vld [vmem:[%s9560_s8 + $0x128] sm:$0xff]  ;;  %v695_v55 = vld [vmem:[#allocation2 + $0x51] sm:$0xff]  ;;  %v7971_v56 = vpack.c.bf16 %v1246_v52, %v1245_v51 }
  0x89   : > { %7949 = vmatprep.subr.bf16.mxu0 %v12215_v0  ;;  %592 = vst.msk [vmem:[#allocation2 + $0x1c9] sm:$0xff] %vm559_vm0, %v526_v25  ;;  %593 = vst.msk [vmem:[#allocation2 + $0x1d1] sm:$0xff] %vm559_vm0, %v527_v30  ;;  %v9722_v54 = vld [vmem:[#allocation2 + $0x48] sm:$0xff]  ;;  %v1247_v57 = vld [vmem:[%s9567_s11 + $0x170] sm:$0xff] }
  0x8a   : > { %594 = vst.msk [vmem:[#allocation2 + $0x1e1] sm:$0xff] %vm559_vm0, %v528_v36  ;;  %595 = vst.msk [vmem:[#allocation2 + $0x1e9] sm:$0xff] %vm559_vm0, %v529_v41  ;;  %v9730_v60 = vld [vmem:[#allocation2 + $0x50] sm:$0xff]  ;;  %v696_v61 = vld [vmem:[#allocation2 + $0x61] sm:$0xff]  ;;  %v7974_v62 = vpack.c.bf16 %v1248_v58, %v1247_v57 }
  0x8b   : > { %596 = vst.msk [vmem:[#allocation2 + $0x1f9] sm:$0xff] %vm559_vm0, %v530_v47  ;;  %597 = vst.msk [vmem:[#allocation2 + $0x201] sm:$0xff] %vm559_vm0, %v531_v53  ;;  %v1250_v2 = vld [vmem:[%s9567_s11 + $0x188] sm:$0xff]  ;;  %v9738_v4 = vld [vmem:[#allocation2 + $0x60] sm:$0xff] }
  0x8c   : > { %7951 = vmatpush1.bf16.msra.mxu0 %v7950_v18  ;;  %598 = vst.msk [vmem:[#allocation2 + $0x211] sm:$0xff] %vm559_vm0, %v532_v59  ;;  %599 = vst.msk [vmem:[#allocation2 + $0x219] sm:$0xff] %vm559_vm0, %v533_v3  ;;  %v697_v5 = vld [vmem:[#allocation2 + $0x69] sm:$0xff]  ;;  %v7977_v6 = vpack.c.bf16 %v1250_v2, %v1249_v63  ;;  %v698_v11 = vld [vmem:[#allocation2 + $0x79] sm:$0xff] }
  0x8d   : > { %7952 = vmatprep.subr.bf16.mxu0 %v12215_v0  ;;  %v1251_v7 = vld [vmem:[%s9567_s11 + $0x190] sm:$0xff]  ;;  %600 = vst.msk [vmem:[#allocation2 + $0x229] sm:$0xff] %vm559_vm0, %v534_v9  ;;  %v9746_v10 = vld [vmem:[#allocation2 + $0x68] sm:$0xff]  ;;  %v9754_v16 = vld [vmem:[#allocation2 + $0x78] sm:$0xff] }
  0x8e   : > { %v7980_v12 = vpack.c.bf16 %v1252_v8, %v1251_v7  ;;  %v1254_v14 = vld [vmem:[%s9567_s11 + $0x1a8] sm:$0xff]  ;;  %602 = vst.msk [vmem:[#allocation2 + $0x241] sm:$0xff] %vm559_vm0, %v536_v19  ;;  %v9760_v20 = vld [vmem:[#allocation2 + $0x80] sm:$0xff]  ;;  %v9766_v23 = vld [vmem:[#allocation2 + $0x90] sm:$0xff] }
  0x8f   : > { %1417 = vmatmul.mubr.f32.vlgmr.msra.gmra.mrb[0].mxu0 %v9277_v1  ;;  %v535_v15 = vld [vmem:[%s9560_s8 + $0x148] sm:$0xff]  ;;  %v7983_v17 = vpack.c.bf16 %v1254_v14, %v1253_v13  ;;  %v701_v24 = vld [vmem:[#allocation2 + $0x99] sm:$0xff]  ;;  %v703_v34 = vld [vmem:[#allocation2 + $0xb1] sm:$0xff] }
  0x90   : > { %7954 = vmatpush1.bf16.msra.mxu0 %v7953_v21  ;;  %1421 = vmatprep.mubr.f32.mxu0 %v689_v22  ;;  %601 = vst.msk [vmem:[#allocation2 + $0x231] sm:$0xff] %vm559_vm0, %v535_v15  ;;  %v699_v18 = vld [vmem:[#allocation2 + $0x81] sm:$0xff]  ;;  %v700_v21 = vld [vmem:[#allocation2 + $0x91] sm:$0xff]  ;;  %v702_v30 = vld [vmem:[#allocation2 + $0xa9] sm:$0xff] }
  0x91   : > { %7955 = vmatprep.subr.bf16.mxu0 %v12215_v0  ;;  %v537_v22 = vld [vmem:[%s9560_s8 + $0x158] sm:$0xff]  ;;  %v538_v25 = vld [vmem:[%s9560_s8 + $0x160] sm:$0xff]  ;;  %v540_v35 = vld [vmem:[%s9560_s8 + $0x170] sm:$0xff] }
  0x92   : > { %603 = vst.msk [vmem:[#allocation2 + $0x249] sm:$0xff] %vm559_vm0, %v537_v22  ;;  %604 = vst.msk [vmem:[#allocation2 + $0x259] sm:$0xff] %vm559_vm0, %v538_v25  ;;  %v9773_v28 = vld [vmem:[#allocation2 + $0x98] sm:$0xff]  ;;  %v9784_v36 = vld [vmem:[#allocation2 + $0xb0] sm:$0xff] }
  0x93   : > { %1422 = vmatmul.mubr.f32.gmra.mrb[2].mxu0 %v9277_v1  ;;  %v9698_v1 = vld [vmem:[#allocation2 + $0x20] sm:$0xff]  ;;  %606 = vst.msk [vmem:[#allocation2 + $0x271] sm:$0xff] %vm559_vm0, %v540_v35  ;;  %v705_v40 = vld [vmem:[#allocation2 + $0xc9] sm:$0xff]  ;;  %v9819_v63 = vld [vmem:[#allocation2 + $0xf8] sm:$0xff] }
  0x94   : > { %1426 = vmatprep.mubr.f32.mxu0 %v690_v26  ;;  %7957 = vmatpush1.bf16.msra.mxu0 %v7956_v27  ;;  %v1255_v26 = vld [vmem:[%s9567_s11 + $0x1b0] sm:$0xff]  ;;  %v1256_v27 = vld [vmem:[%s9567_s11 + $0x1b8] sm:$0xff]  ;;  %v9789_v39 = vld [vmem:[#allocation2 + $0xc0] sm:$0xff] }
  0x95   : > { %7958 = vmatprep.subr.bf16.mxu0 %v12215_v0  ;;  %v7986_v29 = vpack.c.bf16 %v1256_v27, %v1255_v26  ;;  %v542_v41 = vld [vmem:[%s9560_s8 + $0x180] sm:$0xff]  ;;  %v9796_v45 = vld [vmem:[#allocation2 + $0xc8] sm:$0xff]  ;;  %v544_v52 = vld [vmem:[%s9560_s8 + $0x190] sm:$0xff] }
  0x96   : > { %608 = vst.msk [vmem:[#allocation2 + $0x289] sm:$0xff] %vm559_vm0, %v542_v41  ;;  %v706_v47 = vld [vmem:[#allocation2 + $0xd9] sm:$0xff]  ;;  %v707_v51 = vld [vmem:[#allocation2 + $0xe1] sm:$0xff]  ;;  %610 = vst.msk [vmem:[#allocation2 + $0x2a1] sm:$0xff] %vm559_vm0, %v544_v52 }
  0x97   : > { %1427 = vmatmul.mubr.f32.gmra.mrb[4].mxu0 %v9690_v31  ;;  %v9807_v53 = vld [vmem:[#allocation2 + $0xe0] sm:$0xff]  ;;  %v9812_v57 = vld [vmem:[#allocation2 + $0xf0] sm:$0xff]  ;;  %v9842_v19 = vld [vmem:[#allocation2 + $0x128] sm:$0xff] }
  0x98   : > { %1431 = vmatprep.mubr.f32.mxu0 %v691_v32  ;;  %7960 = vmatpush1.bf16.msra.mxu0 %v7959_v33  ;;  %v539_v32 = vld [vmem:[%s9560_s8 + $0x168] sm:$0xff]  ;;  %v709_v58 = vld [vmem:[#allocation2 + $0xf9] sm:$0xff]  ;;  %v711_v7 = vld [vmem:[#allocation2 + $0x111] sm:$0xff] }
  0x99   : > { %7961 = vmatprep.subr.bf16.mxu0 %v12215_v0  ;;  %605 = vst.msk [vmem:[#allocation2 + $0x261] sm:$0xff] %vm559_vm0, %v539_v32  ;;  %v9779_v33 = vld [vmem:[#allocation2 + $0xa8] sm:$0xff]  ;;  %v546_v59 = vld [vmem:[%s9560_s8 + $0x1a0] sm:$0xff]  ;;  %v548_v8 = vld [vmem:[%s9560_s8 + $0x1b0] sm:$0xff] }
  0x9a   : > { %612 = vst.msk [vmem:[#allocation2 + $0x2b9] sm:$0xff] %vm559_vm0, %v546_v59  ;;  %v710_v3 = vld [vmem:[#allocation2 + $0x109] sm:$0xff]  ;;  %614 = vst.msk [vmem:[#allocation2 + $0x2d1] sm:$0xff] %vm559_vm0, %v548_v8  ;;  %v9835_v13 = vld [vmem:[#allocation2 + $0x120] sm:$0xff] }
  0x9b   : > { %1432 = vmatmul.mubr.f32.gmra.mrb[6].mxu0 %v9698_v1  ;;  %v9830_v9 = vld [vmem:[#allocation2 + $0x110] sm:$0xff]  ;;  %v550_v15 = vld [vmem:[%s9560_s8 + $0x1c0] sm:$0xff]  ;;  %v9848_v25 = vld [vmem:[#allocation2 + $0x138] sm:$0xff] }
  0x9c   : > { %1436 = vmatprep.mubr.f32.mxu0 %v692_v37  ;;  %7963 = vmatpush1.bf16.msra.mxu0 %v7962_v38  ;;  %v704_v37 = vld [vmem:[#allocation2 + $0xc1] sm:$0xff]  ;;  %v541_v38 = vld [vmem:[%s9560_s8 + $0x178] sm:$0xff]  ;;  %v713_v14 = vld [vmem:[#allocation2 + $0x129] sm:$0xff]  ;;  %616 = vst.msk [vmem:[#allocation2 + $0x2e9] sm:$0xff] %vm559_vm0, %v550_v15 }
  0x9d   : > { %7964 = vmatprep.subr.bf16.mxu0 %v12215_v0  ;;  %607 = vst.msk [vmem:[#allocation2 + $0x279] sm:$0xff] %vm559_vm0, %v541_v38  ;;  %v714_v22 = vld [vmem:[#allocation2 + $0x139] sm:$0xff]  ;;  %v715_v26 = vld [vmem:[#allocation2 + $0x141] sm:$0xff]  ;;  %v552_v27 = vld [vmem:[%s9560_s8 + $0x1d0] sm:$0xff] }
  0x9e   : > { %618 = vst.msk [vmem:[#allocation2 + $0x301] sm:$0xff] %vm559_vm0, %v552_v27  ;;  %v553_v32 = vld [vmem:[%s9560_s8 + $0x1d8] sm:$0xff]  ;;  %v1263_v38 = vld [vmem:[%s9567_s11 + $0x1f0] sm:$0xff]  ;;  %v9877_v59 = vld [vmem:[#allocation2 + $0x1c8] sm:$0xff] }
  0x9f   : > { %1437 = vmatmul.mubr.f32.gmra.mrb[8].mxu0 %v9706_v42  ;;  %619 = vst.msk [vmem:[#allocation2 + $0x309] sm:$0xff] %vm559_vm0, %v553_v32  ;;  %v717_v35 = vld [vmem:[#allocation2 + $0x159] sm:$0xff]  ;;  %v720_v52 = vld [vmem:[#allocation2 + $0x1b1] sm:$0xff] }
  0xa0   : > { %1441 = vmatprep.mubr.f32.mxu0 %v693_v43  ;;  %7966 = vmatpush1.bf16.msra.mxu0 %v7965_v44  ;;  %v1257_v43 = vld [vmem:[%s9567_s11 + $0x1c0] sm:$0xff]  ;;  %v1258_v44 = vld [vmem:[%s9567_s11 + $0x1c8] sm:$0xff]  ;;  %v9865_v41 = vld [vmem:[#allocation2 + $0x158] sm:$0xff] }
  0xa1   : > { %7967 = vmatprep.subr.bf16.mxu0 %v12215_v0  ;;  %v7989_v46 = vpack.c.bf16 %v1258_v44, %v1257_v43  ;;  %v718_v44 = vld [vmem:[#allocation2 + $0x169] sm:$0xff]  ;;  %v726_v8 = vld [vmem:[#allocation2 + $0x1f9] sm:$0xff]  ;;  %v728_v15 = vld [vmem:[#allocation2 + $0x211] sm:$0xff] }
  0xa2   : > { %v9904_v27 = vld [vmem:[#allocation2 + $0x230] sm:$0xff]  ;;  %v9907_v32 = vld [vmem:[#allocation2 + $0x240] sm:$0xff] }
  0xa3   : > { %1442 = vmatmul.mubr.f32.gmra.mrb[10].mxu0 %v9714_v48 }
  0xa4   : > { %1446 = vmatprep.mubr.f32.mxu0 %v694_v49  ;;  %7969 = vmatpush1.bf16.msra.mxu0 %v7968_v50  ;;  %v543_v49 = vld [vmem:[%s9560_s8 + $0x188] sm:$0xff]  ;;  %v9802_v50 = vld [vmem:[#allocation2 + $0xd8] sm:$0xff] }
  0xa5   : > { %7970 = vmatprep.subr.bf16.mxu0 %v12215_v0  ;;  %609 = vst.msk [vmem:[#allocation2 + $0x291] sm:$0xff] %vm559_vm0, %v543_v49  ;;  %v719_v49 = vld [vmem:[#allocation2 + $0x171] sm:$0xff] }
  0xa7   : > { %1447 = vmatmul.mubr.f32.gmra.mrb[12].mxu0 %v9722_v54 }
  0xa8   : > { %1451 = vmatprep.mubr.f32.mxu0 %v695_v55  ;;  %7972 = vmatpush1.bf16.msra.mxu0 %v7971_v56  ;;  %v708_v55 = vld [vmem:[#allocation2 + $0xf1] sm:$0xff] }
  0xa9   : > { %7973 = vmatprep.subr.bf16.mxu0 %v12215_v0  ;;  %v545_v56 = vld [vmem:[%s9560_s8 + $0x198] sm:$0xff] }
  0xaa   : > { %611 = vst.msk [vmem:[#allocation2 + $0x2a9] sm:$0xff] %vm559_vm0, %v545_v56  ;;  %v9261_v56 = vld [vmem:[#allocation2] sm:$0xff] }
  0xab   : > { %1452 = vmatmul.mubr.f32.gmra.mrb[14].mxu0 %v9730_v60 }
  0xac   : > { %1456 = vmatprep.mubr.f32.mxu0 %v696_v61  ;;  %7975 = vmatpush1.bf16.msra.mxu0 %v7974_v62  ;;  %v1259_v61 = vld [vmem:[%s9567_s11 + $0x1d0] sm:$0xff]  ;;  %v1260_v62 = vld [vmem:[%s9567_s11 + $0x1d8] sm:$0xff] }
  0xad   : > { %7976 = vmatprep.subr.bf16.mxu0 %v12215_v0  ;;  %v7992_v2 = vpack.c.bf16 %v1260_v62, %v1259_v61  ;;  %v723_v61 = vld [vmem:[#allocation2 + $0x1d1] sm:$0xff] }
  0xae   : > { %v9880_v62 = vld [vmem:[#allocation2 + $0x1d0] sm:$0xff] }
  0xaf   : > { %1457 = vmatmul.mubr.f32.gmra.mrb[16].mxu0 %v9738_v4 }
  0xb0   : > { %1461 = vmatprep.mubr.f32.mxu0 %v697_v5  ;;  %7978 = vmatpush1.bf16.msra.mxu0 %v7977_v6  ;;  %v547_v5 = vld [vmem:[%s9560_s8 + $0x1a8] sm:$0xff] }
  0xb1   : > { %7979 = vmatprep.subr.bf16.mxu0 %v12215_v0  ;;  %613 = vst.msk [vmem:[#allocation2 + $0x2c1] sm:$0xff] %vm559_vm0, %v547_v5  ;;  %v9825_v6 = vld [vmem:[#allocation2 + $0x108] sm:$0xff] }
  0xb2   : > { %v725_v5 = vld [vmem:[#allocation2 + $0x1e9] sm:$0xff] }
  0xb3   : > { %1462 = vmatmul.mubr.f32.gmra.mrb[18].mxu0 %v9746_v10 }
  0xb4   : > { %1466 = vmatprep.mubr.f32.mxu0 %v698_v11  ;;  %7981 = vmatpush1.bf16.msra.mxu0 %v7980_v12  ;;  %v712_v11 = vld [vmem:[#allocation2 + $0x121] sm:$0xff]  ;;  %v549_v12 = vld [vmem:[%s9560_s8 + $0x1b8] sm:$0xff] }
  0xb5   : > { %7982 = vmatprep.subr.bf16.mxu0 %v12215_v0  ;;  %615 = vst.msk [vmem:[#allocation2 + $0x2d9] sm:$0xff] %vm559_vm0, %v549_v12  ;;  %v727_v12 = vld [vmem:[#allocation2 + $0x201] sm:$0xff] }
  0xb7   : > { %1467 = vmatmul.mubr.f32.gmra.mrb[20].mxu0 %v9754_v16 }
  0xb8   : > { %1471 = vmatprep.mubr.f32.mxu0 %v699_v18  ;;  %7984 = vmatpush1.bf16.msra.mxu0 %v7983_v17  ;;  %v1261_v17 = vld [vmem:[%s9567_s11 + $0x1e0] sm:$0xff]  ;;  %v1262_v18 = vld [vmem:[%s9567_s11 + $0x1e8] sm:$0xff] }
  0xb9   : > { %7985 = vmatprep.subr.bf16.mxu0 %v12215_v0 }
  0xbb   : > { %1472 = vmatmul.mubr.f32.gmra.mrb[22].mxu0 %v9760_v20 }
  0xbc   : > { %1476 = vmatprep.mubr.f32.mxu0 %v700_v21  ;;  %7987 = vmatpush1.bf16.msra.mxu0 %v7986_v29  ;;  %v7995_v21 = vpack.c.bf16 %v1262_v18, %v1261_v17  ;;  %v9853_v29 = vld [vmem:[#allocation2 + $0x140] sm:$0xff]  ;;  %v9895_v17 = vld [vmem:[#allocation2 + $0x210] sm:$0xff] }
  0xbd   : > { %7988 = vmatprep.subr.bf16.mxu0 %v12215_v0  ;;  %v729_v18 = vld [vmem:[#allocation2 + $0x219] sm:$0xff] }
  0xbf   : > { %1477 = vmatmul.mubr.f32.gmra.mrb[24].mxu0 %v9766_v23 }
  0xc0   : > { %1481 = vmatprep.mubr.f32.mxu0 %v701_v24  ;;  %7990 = vmatpush1.bf16.msra.mxu0 %v7989_v46  ;;  %v551_v24 = vld [vmem:[%s9560_s8 + $0x1c8] sm:$0xff] }
  0xc1   : > { %7991 = vmatprep.subr.bf16.mxu0 %v12215_v0  ;;  %617 = vst.msk [vmem:[#allocation2 + $0x2f1] sm:$0xff] %vm559_vm0, %v551_v24  ;;  %v555_v46 = vld [vmem:[%s9560_s8 + $0x1e8] sm:$0xff] }
  0xc2   : > { %621 = vst.msk [vmem:[#allocation2 + $0x321] sm:$0xff] %vm559_vm0, %v555_v46  ;;  %v9901_v24 = vld [vmem:[#allocation2 + $0x228] sm:$0xff]  ;;  %v736_v46 = vld [vmem:[#allocation2 + $0x271] sm:$0xff] }
  0xc3   : > { %1482 = vmatmul.mubr.f32.gmra.mrb[26].mxu0 %v9773_v28 }
  0xc4   : > { %1486 = vmatprep.mubr.f32.mxu0 %v702_v30  ;;  %7993 = vmatpush1.bf16.msra.mxu0 %v7992_v2  ;;  %v716_v30 = vld [vmem:[#allocation2 + $0x151] sm:$0xff]  ;;  %v724_v2 = vld [vmem:[#allocation2 + $0x1e1] sm:$0xff] }
  0xc5   : > { %7994 = vmatprep.subr.bf16.mxu0 %v12215_v0 }
  0xc7   : > { %1487 = vmatmul.mubr.f32.gmra.mrb[28].mxu0 %v9779_v33 }
  0xc8   : > { %1491 = vmatprep.mubr.f32.mxu0 %v703_v34  ;;  %7996 = vmatpush1.bf16.msra.mxu0 %v7995_v21  ;;  %v9858_v34 = vld [vmem:[#allocation2 + $0x150] sm:$0xff]  ;;  %v9898_v21 = vld [vmem:[#allocation2 + $0x218] sm:$0xff] }
  0xc9   : > { %7997 = vmatprep.subr.bf16.mxu0 %v12215_v0 }
  0xcb   : > { %1492 = vmatmul.mubr.f32.gmra.mrb[30].mxu0 %v9784_v36 }
  0xcc   : > { %1496 = vmatprep.mubr.f32.mxu0 %v704_v37  ;;  %v554_v37 = vld [vmem:[%s9560_s8 + $0x1e0] sm:$0xff] }
  0xcd   : > { %620 = vst.msk [vmem:[#allocation2 + $0x319] sm:$0xff] %vm559_vm0, %v554_v37  ;;  %v9910_v37 = vld [vmem:[#allocation2 + $0x248] sm:$0xff] }
  0xcf   : > { %1497 = vmatmul.mubr.f32.gmra.mrb[32].mxu0 %v9789_v39 }
  0xd0   : > { %1501 = vmatprep.mubr.f32.mxu0 %v705_v40  ;;  %v1264_v40 = vld [vmem:[%s9567_s11 + $0x1f8] sm:$0xff] }
  0xd1   : > { %v7998_v43 = vpack.c.bf16 %v1264_v40, %v1263_v38  ;;  %v734_v38 = vld [vmem:[#allocation2 + $0x259] sm:$0xff] }
  0xd2   : > { %v9913_v40 = vld [vmem:[#allocation2 + $0x258] sm:$0xff] }
  0xd3   : > { %1502 = vmatmul.mubr.f32.gmra.mrb[34].mxu0 %v9796_v45 }
  0xd4   : > { %1506 = vmatprep.mubr.f32.mxu0 %v706_v47  ;;  %7999 = vmatpush1.bf16.msra.mxu0 %v7998_v43  ;;  %v9871_v47 = vld [vmem:[#allocation2 + $0x168] sm:$0xff] }
  0xd5   : > { %8000 = vmatprep.subr.bf16.mxu0 %v12215_v0  ;;  %v735_v43 = vld [vmem:[#allocation2 + $0x261] sm:$0xff] }
  0xd6   : > { %v751_v0 = vld [vmem:[#allocation2 + $0x321] sm:$0xff] }
  0xd7   : > { %1507 = vmatmul.mubr.f32.gmra.mrb[36].mxu0 %v9802_v50 }
  0xd8   : > { %1511 = vmatprep.mubr.f32.mxu0 %v707_v51  ;;  %v9874_v51 = vld [vmem:[#allocation2 + $0x170] sm:$0xff] }
  0xdb   : > { %1512 = vmatmul.mubr.f32.gmra.mrb[38].mxu0 %v9807_v53 }
  0xdc   : > { %1516 = vmatprep.mubr.f32.mxu0 %v708_v55  ;;  %v721_v55 = vld [vmem:[#allocation2 + $0x1b9] sm:$0xff] }
  0xdf   : > { %1517 = vmatmul.mubr.f32.gmra.mrb[40].mxu0 %v9812_v57 }
  0xe0   : > { %1521 = vmatprep.mubr.f32.mxu0 %v709_v58  ;;  %v722_v58 = vld [vmem:[#allocation2 + $0x1c9] sm:$0xff] }
  0xe3   : > { %1522 = vmatmul.mubr.f32.gmra.mrb[42].mxu0 %v9819_v63 }
  0xe4   : > { %1526 = vmatprep.mubr.f32.mxu0 %v710_v3  ;;  %v9883_v3 = vld [vmem:[#allocation2 + $0x1e0] sm:$0xff] }
  0xe7   : > { %1527 = vmatmul.mubr.f32.gmra.mrb[44].mxu0 %v9825_v6 }
  0xe8   : > { %1531 = vmatprep.mubr.f32.mxu0 %v711_v7  ;;  %v9886_v7 = vld [vmem:[#allocation2 + $0x1e8] sm:$0xff] }
  0xeb   : > { %1532 = vmatmul.mubr.f32.gmra.mrb[46].mxu0 %v9830_v9 }
  0xec   : > { %1536 = vmatprep.mubr.f32.mxu0 %v712_v11  ;;  %v9889_v11 = vld [vmem:[#allocation2 + $0x1f8] sm:$0xff] }
  0xef   : > { %1537 = vmatmul.mubr.f32.gmra.mrb[48].mxu0 %v9835_v13 }
  0xf0   : > { %1541 = vmatprep.mubr.f32.mxu0 %v713_v14  ;;  %v9892_v14 = vld [vmem:[#allocation2 + $0x200] sm:$0xff] }
  0xf3   : > { %1542 = vmatmul.mubr.f32.gmra.mrb[50].mxu0 %v9842_v19 }
  0xf4   : > { %1546 = vmatprep.mubr.f32.mxu0 %v714_v22  ;;  %v730_v22 = vld [vmem:[#allocation2 + $0x229] sm:$0xff] }
  0xf7   : > { %1547 = vmatmul.mubr.f32.gmra.mrb[52].mxu0 %v9848_v25 }
  0xf8   : > { %1551 = vmatprep.mubr.f32.mxu0 %v715_v26  ;;  %v731_v26 = vld [vmem:[#allocation2 + $0x231] sm:$0xff] }
  0xfb   : > { %1552 = vmatmul.mubr.f32.gmra.mrb[54].mxu0 %v9853_v29 }
  0xfc   : > { %1556 = vmatprep.mubr.f32.mxu0 %v716_v30  ;;  %v732_v30 = vld [vmem:[#allocation2 + $0x241] sm:$0xff] }
  0xff   : > { %1557 = vmatmul.mubr.f32.gmra.mrb[56].mxu0 %v9858_v34 }
 0x100   : > { %1561 = vmatprep.mubr.f32.mxu0 %v717_v35  ;;  %v733_v35 = vld [vmem:[#allocation2 + $0x249] sm:$0xff] }
 0x103   : > { %1562 = vmatmul.mubr.f32.gmra.mrb[58].mxu0 %v9865_v41 }
 0x104   : > { %1566 = vmatprep.mubr.f32.mxu0 %v718_v44  ;;  %v9916_v44 = vld [vmem:[#allocation2 + $0x260] sm:$0xff] }
 0x107   : > { %1567 = vmatmul.mubr.f32.gmra.mrb[60].mxu0 %v9871_v47 }
 0x108   : > { %1571 = vmatprep.mubr.f32.mxu0 %v719_v49  ;;  %v9919_v49 = vld [vmem:[#allocation2 + $0x270] sm:$0xff] }
 0x10b   : > { %1572 = vmatmul.mubr.f32.gmra.mrb[62].mxu0 %v9874_v51 }
 0x10c   : > { %1576 = vmatprep.mubr.f32.mxu0 %v720_v52  ;;  %v737_v52 = vld [vmem:[#allocation2 + $0x279] sm:$0xff] }
 0x10f   : > { %1577 = vmatmul.mubr.f32.gmra.mrb[64].mxu0 %v9261_v56 }
 0x110   : > { %1581 = vmatprep.mubr.f32.mxu0 %v721_v55  ;;  %v9922_v55 = vld [vmem:[#allocation2 + $0x278] sm:$0xff] }
 0x113   : > { %1582 = vmatmul.mubr.f32.gmra.mrb[66].mxu0 %v9261_v56  ;;  %v738_v56 = vld [vmem:[#allocation2 + $0x289] sm:$0xff] }
 0x114   : > { %1586 = vmatprep.mubr.f32.mxu0 %v722_v58  ;;  %v9925_v58 = vld [vmem:[#allocation2 + $0x288] sm:$0xff] }
 0x117   : > { %1587 = vmatmul.mubr.f32.gmra.mrb[68].mxu0 %v9877_v59 }
 0x118   : > { %1591 = vmatprep.mubr.f32.mxu0 %v723_v61  ;;  %v739_v61 = vld [vmem:[#allocation2 + $0x291] sm:$0xff] }
 0x11b   : > { %1592 = vmatmul.mubr.f32.gmra.mrb[70].mxu0 %v9880_v62 }
 0x11c   : > { %1596 = vmatprep.mubr.f32.mxu0 %v724_v2  ;;  %v9928_v2 = vld [vmem:[#allocation2 + $0x290] sm:$0xff] }
 0x11f   : > { %1597 = vmatmul.mubr.f32.gmra.mrb[72].mxu0 %v9883_v3 }
 0x120   : > { %1601 = vmatprep.mubr.f32.mxu0 %v725_v5  ;;  %v740_v5 = vld [vmem:[#allocation2 + $0x2a1] sm:$0xff] }
 0x123   : > { %1602 = vmatmul.mubr.f32.gmra.mrb[74].mxu0 %v9886_v7 }
 0x124   : > { %1606 = vmatprep.mubr.f32.mxu0 %v726_v8  ;;  %v9931_v8 = vld [vmem:[#allocation2 + $0x2a0] sm:$0xff] }
 0x127   : > { %1607 = vmatmul.mubr.f32.gmra.mrb[76].mxu0 %v9889_v11 }
 0x128   : > { %1611 = vmatprep.mubr.f32.mxu0 %v727_v12  ;;  %v741_v12 = vld [vmem:[#allocation2 + $0x2a9] sm:$0xff] }
 0x12b   : > { %1612 = vmatmul.mubr.f32.gmra.mrb[78].mxu0 %v9892_v14 }
 0x12c   : > { %1616 = vmatprep.mubr.f32.mxu0 %v728_v15  ;;  %v9934_v15 = vld [vmem:[#allocation2 + $0x2a8] sm:$0xff] }
 0x12f   : > { %1617 = vmatmul.mubr.f32.gmra.mrb[80].mxu0 %v9895_v17 }
 0x130   : > { %1621 = vmatprep.mubr.f32.mxu0 %v729_v18  ;;  %v742_v18 = vld [vmem:[#allocation2 + $0x2b9] sm:$0xff] }
 0x133   : > { %1622 = vmatmul.mubr.f32.gmra.mrb[82].mxu0 %v9898_v21 }
 0x134   : > { %1626 = vmatprep.mubr.f32.mxu0 %v730_v22  ;;  %v9937_v22 = vld [vmem:[#allocation2 + $0x2b8] sm:$0xff] }
 0x137   : > { %1627 = vmatmul.mubr.f32.gmra.mrb[84].mxu0 %v9901_v24 }
 0x138   : > { %1631 = vmatprep.mubr.f32.mxu0 %v731_v26  ;;  %v743_v26 = vld [vmem:[#allocation2 + $0x2c1] sm:$0xff] }
 0x13b   : > { %1632 = vmatmul.mubr.f32.gmra.mrb[86].mxu0 %v9904_v27 }
 0x13c   : > { %1636 = vmatprep.mubr.f32.mxu0 %v732_v30  ;;  %v9940_v30 = vld [vmem:[#allocation2 + $0x2c0] sm:$0xff] }
 0x13f   : > { %1637 = vmatmul.mubr.f32.gmra.mrb[88].mxu0 %v9907_v32 }
 0x140   : > { %1641 = vmatprep.mubr.f32.mxu0 %v733_v35  ;;  %v744_v35 = vld [vmem:[#allocation2 + $0x2d1] sm:$0xff] }
 0x143   : > { %1642 = vmatmul.mubr.f32.gmra.mrb[90].mxu0 %v9910_v37 }
 0x144   : > { %1646 = vmatprep.mubr.f32.mxu0 %v734_v38  ;;  %v9943_v38 = vld [vmem:[#allocation2 + $0x2d0] sm:$0xff] }
 0x145   : > { %12253 = vst [vmem:[#allocation4_spill] sm:$0xff] %v9943_v38 }
 0x147   : > { %1647 = vmatmul.mubr.f32.gmra.mrb[92].mxu0 %v9913_v40 }
 0x148   : > { %1651 = vmatprep.mubr.f32.mxu0 %v735_v43  ;;  %v745_v43 = vld [vmem:[#allocation2 + $0x2d9] sm:$0xff] }
 0x14b   : > { %1652 = vmatmul.mubr.f32.gmra.mrb[94].mxu0 %v9916_v44 }
 0x14c   : > { %1656 = vmatprep.mubr.f32.mxu0 %v736_v46  ;;  %v9946_v46 = vld [vmem:[#allocation2 + $0x2d8] sm:$0xff] }
 0x14d   : > { %12254 = vst [vmem:[#allocation5_spill] sm:$0xff] %v9946_v46 }
 0x14f   : > { %1657 = vmatmul.mubr.f32.gmra.mrb[96].mxu0 %v9919_v49 }
 0x150   : > { %1661 = vmatprep.mubr.f32.mxu0 %v737_v52  ;;  %v746_v52 = vld [vmem:[#allocation2 + $0x2e9] sm:$0xff] }
 0x153   : > { %1662 = vmatmul.mubr.f32.gmra.mrb[98].mxu0 %v9922_v55 }
 0x154   : > { %1666 = vmatprep.mubr.f32.mxu0 %v738_v56  ;;  %v9949_v56 = vld [vmem:[#allocation2 + $0x2e8] sm:$0xff] }
 0x155   : > { %12255 = vst [vmem:[#allocation6_spill] sm:$0xff] %v9949_v56 }
 0x157   : > { %1667 = vmatmul.mubr.f32.gmra.mrb[100].mxu0 %v9925_v58 }
 0x158   : > { %1671 = vmatprep.mubr.f32.mxu0 %v739_v61  ;;  %v747_v61 = vld [vmem:[#allocation2 + $0x2f1] sm:$0xff] }
 0x15b   : > { %1672 = vmatmul.mubr.f32.gmra.mrb[102].mxu0 %v9928_v2 }
 0x15c   : > { %1676 = vmatprep.mubr.f32.mxu0 %v740_v5  ;;  %v9952_v5 = vld [vmem:[#allocation2 + $0x2f0] sm:$0xff] }
 0x15d   : > { %12256 = vst [vmem:[#allocation7_spill] sm:$0xff] %v9952_v5 }
 0x15f   : > { %1677 = vmatmul.mubr.f32.gmra.mrb[104].mxu0 %v9931_v8 }
 0x160   : > { %1681 = vmatprep.mubr.f32.mxu0 %v741_v12  ;;  %v748_v12 = vld [vmem:[#allocation2 + $0x301] sm:$0xff] }
 0x163   : > { %1682 = vmatmul.mubr.f32.gmra.mrb[106].mxu0 %v9934_v15 }
 0x164   : > { %1686 = vmatprep.mubr.f32.mxu0 %v742_v18  ;;  %v9955_v18 = vld [vmem:[#allocation2 + $0x300] sm:$0xff] }
 0x165   : > { %12257 = vst [vmem:[#allocation8_spill] sm:$0xff] %v9955_v18 }
 0x167   : > { %1687 = vmatmul.mubr.f32.gmra.mrb[108].mxu0 %v9937_v22 }
 0x168   : > { %1691 = vmatprep.mubr.f32.mxu0 %v743_v26  ;;  %v749_v26 = vld [vmem:[#allocation2 + $0x309] sm:$0xff] }
 0x16b   : > { %1692 = vmatmul.mubr.f32.gmra.mrb[110].mxu0 %v9940_v30 }
 0x16c   : > { %1696 = vmatprep.mubr.f32.mxu0 %v744_v35  ;;  %v524_v35 = vld [vmem:[%s9560_s8 + $0xf0] sm:$0xff] }
 0x16d   : > { %590 = vst.msk [vmem:[#allocation2 + $0x181] sm:$0xff] %vm559_vm0, %v524_v35  ;;  %v9968_v35 = vld [vmem:[#allocation2 + $0x320] sm:$0xff] }
 0x16f   : > { %1697 = vmatmul.mubr.f32.gmra.mrb[112].mxu0 %v9943_v38  ;;  %v1270_v38 = vld [vmem:[%s9567_s11 + $0x228] sm:$0xff] }
 0x170   : > { %1701 = vmatprep.mubr.f32.mxu0 %v745_v43  ;;  %v9960_v43 = vld [vmem:[#allocation2 + $0x308] sm:$0xff] }
 0x171   : > { %12258 = vst [vmem:[#allocation9_spill] sm:$0xff] %v9960_v43 }
 0x173   : > { %1702 = vmatmul.mubr.f32.gmra.mrb[114].mxu0 %v9946_v46  ;;  %v1269_v46 = vld [vmem:[%s9567_s11 + $0x220] sm:$0xff] }
 0x174   : > { %1706 = vmatprep.mubr.f32.mxu0 %v746_v52  ;;  %v750_v52 = vld [vmem:[#allocation2 + $0x319] sm:$0xff] }
 0x177   : > { %1707 = vmatmul.mubr.f32.gmra.mrb[116].mxu0 %v9949_v56  ;;  %v12260_v56 = vmov 0.0|0.0  }
 0x178   : > { %1711 = vmatprep.mubr.f32.mxu0 %v747_v61  ;;  %v525_v61 = vld [vmem:[%s9560_s8 + $0xf8] sm:$0xff] }
 0x179   : > { %591 = vst.msk [vmem:[#allocation2 + $0x189] sm:$0xff] %vm559_vm0, %v525_v61  ;;  %v752_v61 = vld [vmem:[#allocation2 + $0x2] sm:$0xff] }
 0x17b   : > { %1712 = vmatmul.mubr.f32.gmra.mrb[118].mxu0 %v9952_v5 }
 0x17c   : > { %1716 = vmatprep.mubr.f32.mxu0 %v748_v12  ;;  %v9965_v12 = vld [vmem:[#allocation2 + $0x318] sm:$0xff] }
 0x17d   : > { %12259 = vst [vmem:[#allocation10_spill] sm:$0xff] %v9965_v12 }
 0x17f   : > { %1717 = vmatmul.mubr.f32.gmra.mrb[120].mxu0 %v9955_v18  ;;  %v1266_v18 = vld [vmem:[%s9567_s11 + $0x208] sm:$0xff] }
 0x180   : > { %1721 = vmatprep.mubr.f32.mxu0 %v749_v26  ;;  %v1265_v26 = vld [vmem:[%s9567_s11 + $0x200] sm:$0xff] }
 0x181   : > { %v8001_v5 = vpack.c.bf16 %v1266_v18, %v1265_v26  ;;  %v8007_v18 = vpack.c.bf16 %v1270_v38, %v1269_v46  ;;  %v9995_v38 = vld [vmem:[#allocation2 + $0x32] sm:$0xff] }
 0x183   : > { %1722 = vmatmul.mubr.f32.gmra.mrb[122].mxu0 %v9960_v43  ;;  %v1267_v43 = vld [vmem:[%s9567_s11 + $0x210] sm:$0xff] }
 0x184   : > { %1726 = vmatprep.mubr.f32.mxu0 %v750_v52  ;;  %v1268_v52 = vld [vmem:[%s9567_s11 + $0x218] sm:$0xff] }
 0x187   : > { %1727 = vmatmul.mubr.f32.gmra.mrb[124].mxu0 %v9965_v12  ;;  %v8004_v12 = vpack.c.bf16 %v1268_v52, %v1267_v43  ;;  %v9988_v43 = vld [vmem:[#allocation2 + $0x22] sm:$0xff]  ;;  %v10002_v52 = vld [vmem:[#allocation2 + $0x3a] sm:$0xff] }
 0x188   : > { %1731 = vmatprep.mubr.f32.mxu0 %v751_v0  ;;  %v753_v0 = vld [vmem:[#allocation2 + $0xa] sm:$0xff] }
 0x18b   : > { %1732 = vmatmul.mubr.f32.gmra.mrb[126].mxu0 %v9968_v35 }
 0x18c   : > { %1801 = vmatprep.mubr.f32.mxu0 %v9690_v31  ;;  %v9981_v31 = vld [vmem:[#allocation2 + $0x1a] sm:$0xff] }
 0x18f   : > { %1802 = vmatmul.mubr.f32.vlgmr.msra.gmra.mrb[0].mxu0 %v752_v61  ;;  %v1276_v61 = vld [vmem:[%s9567_s11 + $0x258] sm:$0xff] }
 0x190   : > { %8002 = vmatpush1.bf16.msra.mxu0 %v8001_v5  ;;  %1806 = vmatprep.mubr.f32.mxu0 %v9698_v1  ;;  %v1271_v5 = vld [vmem:[%s9567_s11 + $0x230] sm:$0xff]  ;;  %v1272_v1 = vld [vmem:[%s9567_s11 + $0x238] sm:$0xff] }
 0x191   : > { %8003 = vmatprep.subr.bf16.mxu0 %v12260_v56  ;;  %v8010_v26 = vpack.c.bf16 %v1272_v1, %v1271_v5  ;;  %v10009_v5 = vld [vmem:[#allocation2 + $0x4a] sm:$0xff] }
 0x193   : > { %1807 = vmatmul.mubr.f32.gmra.mrb[2].mxu0 %v753_v0 }
 0x194   : > { %1811 = vmatprep.mubr.f32.mxu0 %v9706_v42  ;;  %8005 = vmatpush1.bf16.msra.mxu0 %v8004_v12  ;;  %v1273_v42 = vld [vmem:[%s9567_s11 + $0x240] sm:$0xff]  ;;  %v1274_v12 = vld [vmem:[%s9567_s11 + $0x248] sm:$0xff] }
 0x195   : > { %8006 = vmatprep.subr.bf16.mxu0 %v12260_v56  ;;  %v8013_v46 = vpack.c.bf16 %v1274_v12, %v1273_v42  ;;  %v10016_v42 = vld [vmem:[#allocation2 + $0x52] sm:$0xff] }
 0x197   : > { %1812 = vmatmul.mubr.f32.gmra.mrb[4].mxu0 %v9981_v31 }
 0x198   : > { %1816 = vmatprep.mubr.f32.mxu0 %v9714_v48  ;;  %8008 = vmatpush1.bf16.msra.mxu0 %v8007_v18  ;;  %v1275_v48 = vld [vmem:[%s9567_s11 + $0x250] sm:$0xff]  ;;  %v1278_v18 = vld [vmem:[%s9567_s11 + $0x268] sm:$0xff] }
 0x199   : > { %8009 = vmatprep.subr.bf16.mxu0 %v12260_v56  ;;  %v8016_v0 = vpack.c.bf16 %v1276_v61, %v1275_v48  ;;  %v10023_v48 = vld [vmem:[#allocation2 + $0x62] sm:$0xff] }
 0x19b   : > { %1817 = vmatmul.mubr.f32.gmra.mrb[6].mxu0 %v9988_v43 }
 0x19c   : > { %1821 = vmatprep.mubr.f32.mxu0 %v9722_v54  ;;  %8011 = vmatpush1.bf16.msra.mxu0 %v8010_v26  ;;  %v1277_v54 = vld [vmem:[%s9567_s11 + $0x260] sm:$0xff]  ;;  %v1280_v26 = vld [vmem:[%s9567_s11 + $0x278] sm:$0xff] }
 0x19d   : > { %8012 = vmatprep.subr.bf16.mxu0 %v12260_v56  ;;  %v8019_v1 = vpack.c.bf16 %v1278_v18, %v1277_v54  ;;  %v10030_v54 = vld [vmem:[#allocation2 + $0x6a] sm:$0xff] }
 0x19f   : > { %1822 = vmatmul.mubr.f32.gmra.mrb[8].mxu0 %v9995_v38 }
 0x1a0   : > { %1826 = vmatprep.mubr.f32.mxu0 %v9730_v60  ;;  %8014 = vmatpush1.bf16.msra.mxu0 %v8013_v46  ;;  %v1279_v60 = vld [vmem:[%s9567_s11 + $0x270] sm:$0xff]  ;;  %v1282_v46 = vld [vmem:[%s9567_s11 + $0x288] sm:$0xff] }
 0x1a1   : > { %8015 = vmatprep.subr.bf16.mxu0 %v12260_v56  ;;  %v8022_v12 = vpack.c.bf16 %v1280_v26, %v1279_v60  ;;  %v10037_v60 = vld [vmem:[#allocation2 + $0x7a] sm:$0xff] }
 0x1a3   : > { %1827 = vmatmul.mubr.f32.gmra.mrb[10].mxu0 %v10002_v52 }
 0x1a4   : > { %1831 = vmatprep.mubr.f32.mxu0 %v9738_v4  ;;  %8017 = vmatpush1.bf16.msra.mxu0 %v8016_v0  ;;  %v1281_v4 = vld [vmem:[%s9567_s11 + $0x280] sm:$0xff]  ;;  %v1284_v0 = vld [vmem:[%s9567_s11 + $0x298] sm:$0xff] }
 0x1a5   : > { %8018 = vmatprep.subr.bf16.mxu0 %v12260_v56  ;;  %v8025_v61 = vpack.c.bf16 %v1282_v46, %v1281_v4  ;;  %v1288_v4 = vld [vmem:[%s9567_s11 + $0x2b8] sm:$0xff] }
 0x1a7   : > { %1832 = vmatmul.mubr.f32.gmra.mrb[12].mxu0 %v10009_v5 }
 0x1a8   : > { %1836 = vmatprep.mubr.f32.mxu0 %v9746_v10  ;;  %8020 = vmatpush1.bf16.msra.mxu0 %v8019_v1  ;;  %v1283_v10 = vld [vmem:[%s9567_s11 + $0x290] sm:$0xff]  ;;  %v1285_v1 = vld [vmem:[%s9567_s11 + $0x2a0] sm:$0xff] }
 0x1a9   : > { %8021 = vmatprep.subr.bf16.mxu0 %v12260_v56  ;;  %v8028_v18 = vpack.c.bf16 %v1284_v0, %v1283_v10  ;;  %v1289_v10 = vld [vmem:[%s9567_s11 + $0x2c0] sm:$0xff]  ;;  %v1290_v0 = vld [vmem:[%s9567_s11 + $0x2c8] sm:$0xff] }
 0x1ab   : > { %1837 = vmatmul.mubr.f32.gmra.mrb[14].mxu0 %v10016_v42 }
 0x1ac   : > { %1841 = vmatprep.mubr.f32.mxu0 %v9754_v16  ;;  %8023 = vmatpush1.bf16.msra.mxu0 %v8022_v12  ;;  %v1286_v16 = vld [vmem:[%s9567_s11 + $0x2a8] sm:$0xff]  ;;  %v1287_v12 = vld [vmem:[%s9567_s11 + $0x2b0] sm:$0xff] }
 0x1ad   : > { %8024 = vmatprep.subr.bf16.mxu0 %v12260_v56  ;;  %v8031_v26 = vpack.c.bf16 %v1286_v16, %v1285_v1  ;;  %v8034_v46 = vpack.c.bf16 %v1288_v4, %v1287_v12  ;;  %v1291_v1 = vld [vmem:[%s9567_s11 + $0x2d0] sm:$0xff]  ;;  %v1292_v16 = vld [vmem:[%s9567_s11 + $0x2d8] sm:$0xff]  ;;  %v1293_v12 = vld [vmem:[%s9567_s11 + $0x2e0] sm:$0xff] }
 0x1ae   : > { %v1294_v4 = vld [vmem:[%s9567_s11 + $0x2e8] sm:$0xff] }
 0x1af   : > { %1842 = vmatmul.mubr.f32.gmra.mrb[16].mxu0 %v10023_v48 }
 0x1b0   : > { %1846 = vmatprep.mubr.f32.mxu0 %v9760_v20  ;;  %8026 = vmatpush1.bf16.msra.mxu0 %v8025_v61  ;;  %v10042_v20 = vld [vmem:[#allocation2 + $0x82] sm:$0xff]  ;;  %v10062_v61 = vld [vmem:[#allocation2 + $0xb2] sm:$0xff] }
 0x1b1   : > { %8027 = vmatprep.subr.bf16.mxu0 %v12260_v56 }
 0x1b3   : > { %1847 = vmatmul.mubr.f32.gmra.mrb[18].mxu0 %v10030_v54 }
 0x1b4   : > { %1851 = vmatprep.mubr.f32.mxu0 %v9766_v23  ;;  %8029 = vmatpush1.bf16.msra.mxu0 %v8028_v18  ;;  %v10047_v23 = vld [vmem:[#allocation2 + $0x92] sm:$0xff]  ;;  %v8037_v18 = vpack.c.bf16 %v1290_v0, %v1289_v10 }
 0x1b5   : > { %8030 = vmatprep.subr.bf16.mxu0 %v12260_v56  ;;  %v556_v10 = vld [vmem:[%s9560_s8 + $0x1f0] sm:$0xff]  ;;  %v1296_v0 = vld [vmem:[%s9567_s11 + $0x2f8] sm:$0xff] }
 0x1b6   : > { %622 = vst.msk [vmem:[#allocation2 + $0x331] sm:$0xff] %vm559_vm0, %v556_v10  ;;  %v10150_v10 = vld [vmem:[#allocation2 + $0x1d2] sm:$0xff] }
 0x1b7   : > { %1852 = vmatmul.mubr.f32.gmra.mrb[20].mxu0 %v10037_v60 }
 0x1b8   : > { %1856 = vmatprep.mubr.f32.mxu0 %v9773_v28  ;;  %8032 = vmatpush1.bf16.msra.mxu0 %v8031_v26  ;;  %v10053_v28 = vld [vmem:[#allocation2 + $0x9a] sm:$0xff]  ;;  %v8040_v26 = vpack.c.bf16 %v1292_v16, %v1291_v1 }
 0x1b9   : > { %8033 = vmatprep.subr.bf16.mxu0 %v12260_v56  ;;  %v846_v1 = vld [vmem:[#allocation2 + $0x180] sm:$0xff]  ;;  %v557_v16 = vld [vmem:[%s9560_s8 + $0x1f8] sm:$0xff] }
 0x1ba   : > { %623 = vst.msk [vmem:[#allocation2 + $0x339] sm:$0xff] %vm559_vm0, %v557_v16  ;;  %v12267_v16 = vld [vmem:[#allocation8_spill] sm:$0xff] }
 0x1bb   : > { %1857 = vmatmul.mubr.f32.gmra.mrb[22].mxu0 %v10042_v20 }
 0x1bc   : > { %1861 = vmatprep.mubr.f32.mxu0 %v9779_v33  ;;  %8035 = vmatpush1.bf16.msra.mxu0 %v8034_v46  ;;  %v10058_v33 = vld [vmem:[#allocation2 + $0xaa] sm:$0xff]  ;;  %v8043_v46 = vpack.c.bf16 %v1294_v4, %v1293_v12  ;;  %v784_v12 = vld [vmem:[#allocation2 + $0x1b2] sm:$0xff]  ;;  %v785_v4 = vld [vmem:[#allocation2 + $0x1ba] sm:$0xff] }
 0x1bd   : > { %8036 = vmatprep.subr.bf16.mxu0 %v12260_v56 }
 0x1bf   : > { %1862 = vmatmul.mubr.f32.gmra.mrb[24].mxu0 %v10047_v23 }
 0x1c0   : > { %1866 = vmatprep.mubr.f32.mxu0 %v9784_v36  ;;  %v10066_v36 = vld [vmem:[#allocation2 + $0xc2] sm:$0xff]  ;;  %8038 = vmatpush1.bf16.msra.mxu0 %v8037_v18  ;;  %v10131_v18 = vld [vmem:[#allocation2 + $0x15a] sm:$0xff] }
 0x1c1   : > { %8039 = vmatprep.subr.bf16.mxu0 %v12260_v56 }
 0x1c3   : > { %1867 = vmatmul.mubr.f32.gmra.mrb[26].mxu0 %v10053_v28 }
 0x1c4   : > { %1871 = vmatprep.mubr.f32.mxu0 %v9789_v39  ;;  %v10072_v39 = vld [vmem:[#allocation2 + $0xca] sm:$0xff]  ;;  %8041 = vmatpush1.bf16.msra.mxu0 %v8040_v26 }
 0x1c5   : > { %8042 = vmatprep.subr.bf16.mxu0 %v12260_v56  ;;  %v847_v26 = vld [vmem:[#allocation2 + $0x188] sm:$0xff] }
 0x1c7   : > { %1872 = vmatmul.mubr.f32.gmra.mrb[28].mxu0 %v10058_v33 }
 0x1c8   : > { %1876 = vmatprep.mubr.f32.mxu0 %v9796_v45  ;;  %v10077_v45 = vld [vmem:[#allocation2 + $0xda] sm:$0xff]  ;;  %8044 = vmatpush1.bf16.msra.mxu0 %v8043_v46  ;;  %v10146_v46 = vld [vmem:[#allocation2 + $0x1ca] sm:$0xff] }
 0x1c9   : > { %8045 = vmatprep.subr.bf16.mxu0 %v12260_v56 }
 0x1cb   : > { %1877 = vmatmul.mubr.f32.gmra.mrb[30].mxu0 %v10062_v61 }
 0x1cc   : > { %1881 = vmatprep.mubr.f32.mxu0 %v9802_v50  ;;  %v10081_v50 = vld [vmem:[#allocation2 + $0xe2] sm:$0xff] }
 0x1cf   : > { %1882 = vmatmul.mubr.f32.gmra.mrb[32].mxu0 %v10066_v36 }
 0x1d0   : > { %1886 = vmatprep.mubr.f32.mxu0 %v9807_v53  ;;  %v10085_v53 = vld [vmem:[#allocation2 + $0xf2] sm:$0xff] }
 0x1d3   : > { %1887 = vmatmul.mubr.f32.gmra.mrb[34].mxu0 %v10072_v39 }
 0x1d4   : > { %1891 = vmatprep.mubr.f32.mxu0 %v9812_v57  ;;  %v10091_v57 = vld [vmem:[#allocation2 + $0xfa] sm:$0xff] }
 0x1d7   : > { %1892 = vmatmul.mubr.f32.gmra.mrb[36].mxu0 %v10077_v45 }
 0x1d8   : > { %1896 = vmatprep.mubr.f32.mxu0 %v9819_v63  ;;  %v10096_v63 = vld [vmem:[#allocation2 + $0x10a] sm:$0xff] }
 0x1db   : > { %1897 = vmatmul.mubr.f32.gmra.mrb[38].mxu0 %v10081_v50 }
 0x1dc   : > { %1901 = vmatprep.mubr.f32.mxu0 %v9825_v6  ;;  %v10100_v6 = vld [vmem:[#allocation2 + $0x112] sm:$0xff] }
 0x1df   : > { %1902 = vmatmul.mubr.f32.gmra.mrb[40].mxu0 %v10085_v53 }
 0x1e0   : > { %1906 = vmatprep.mubr.f32.mxu0 %v9830_v9  ;;  %v10104_v9 = vld [vmem:[#allocation2 + $0x122] sm:$0xff] }
 0x1e3   : > { %1907 = vmatmul.mubr.f32.gmra.mrb[42].mxu0 %v10091_v57 }
 0x1e4   : > { %1911 = vmatprep.mubr.f32.mxu0 %v9835_v13  ;;  %v10110_v13 = vld [vmem:[#allocation2 + $0x12a] sm:$0xff] }
 0x1e7   : > { %1912 = vmatmul.mubr.f32.gmra.mrb[44].mxu0 %v10096_v63 }
 0x1e8   : > { %1916 = vmatprep.mubr.f32.mxu0 %v9842_v19  ;;  %v10115_v19 = vld [vmem:[#allocation2 + $0x13a] sm:$0xff] }
 0x1eb   : > { %1917 = vmatmul.mubr.f32.gmra.mrb[46].mxu0 %v10100_v6 }
 0x1ec   : > { %1921 = vmatprep.mubr.f32.mxu0 %v9848_v25  ;;  %v10119_v25 = vld [vmem:[#allocation2 + $0x142] sm:$0xff] }
 0x1ef   : > { %1922 = vmatmul.mubr.f32.gmra.mrb[48].mxu0 %v10104_v9 }
 0x1f0   : > { %1926 = vmatprep.mubr.f32.mxu0 %v9853_v29  ;;  %v10123_v29 = vld [vmem:[#allocation2 + $0x152] sm:$0xff] }
 0x1f3   : > { %1927 = vmatmul.mubr.f32.gmra.mrb[50].mxu0 %v10110_v13 }
 0x1f4   : > { %1931 = vmatprep.mubr.f32.mxu0 %v9858_v34  ;;  %v1295_v34 = vld [vmem:[%s9567_s11 + $0x2f0] sm:$0xff] }
 0x1f7   : > { %1932 = vmatmul.mubr.f32.gmra.mrb[52].mxu0 %v10115_v19 }
 0x1f8   : > { %1936 = vmatprep.mubr.f32.mxu0 %v9865_v41  ;;  %v8046_v41 = vpack.c.bf16 %v1296_v0, %v1295_v34  ;;  %v10226_v34 = vld [vmem:[#allocation2 + $0x2ba] sm:$0xff]  ;;  %v10230_v0 = vld [vmem:[#allocation2 + $0x2c2] sm:$0xff] }
 0x1fa   : > { %8047 = vmatpush1.bf16.msra.mxu0 %v8046_v41  ;;  %v10234_v41 = vld [vmem:[#allocation2 + $0x2d2] sm:$0xff] }
 0x1fb   : > { %1937 = vmatmul.mubr.f32.gmra.mrb[54].mxu0 %v10119_v25  ;;  %8048 = vmatprep.subr.bf16.mxu0 %v12260_v56 }
 0x1fc   : > { %1941 = vmatprep.mubr.f32.mxu0 %v9871_v47  ;;  %v10137_v47 = vld [vmem:[#allocation2 + $0x16a] sm:$0xff] }
 0x1ff   : > { %1942 = vmatmul.mubr.f32.gmra.mrb[56].mxu0 %v10123_v29 }
 0x200   : > { %1946 = vmatprep.mubr.f32.mxu0 %v9874_v51  ;;  %v10140_v51 = vld [vmem:[#allocation2 + $0x172] sm:$0xff] }
 0x203   : > { %1947 = vmatmul.mubr.f32.gmra.mrb[58].mxu0 %v10131_v18 }
 0x204   : > { %1951 = vmatprep.mubr.f32.mxu0 %v846_v1  ;;  %v10238_v1 = vld [vmem:[#allocation2 + $0x2da] sm:$0xff] }
 0x207   : > { %1952 = vmatmul.mubr.f32.gmra.mrb[60].mxu0 %v10137_v47 }
 0x208   : > { %1956 = vmatprep.mubr.f32.mxu0 %v847_v26  ;;  %v10242_v26 = vld [vmem:[#allocation2 + $0x2ea] sm:$0xff] }
 0x20b   : > { %1957 = vmatmul.mubr.f32.gmra.mrb[62].mxu0 %v10140_v51 }
 0x20c   : > { %1961 = vmatprep.mubr.f32.mxu0 %v9877_v59  ;;  %v10154_v59 = vld [vmem:[#allocation2 + $0x1e2] sm:$0xff] }
 0x20f   : > { %1962 = vmatmul.mubr.f32.gmra.mrb[64].mxu0 %v784_v12  ;;  %v12269_v12 = vld [vmem:[#allocation9_spill] sm:$0xff] }
 0x210   : > { %1966 = vmatprep.mubr.f32.mxu0 %v9880_v62  ;;  %v10158_v62 = vld [vmem:[#allocation2 + $0x1ea] sm:$0xff] }
 0x213   : > { %1967 = vmatmul.mubr.f32.gmra.mrb[66].mxu0 %v785_v4  ;;  %v10246_v4 = vld [vmem:[#allocation2 + $0x2f2] sm:$0xff] }
 0x214   : > { %1971 = vmatprep.mubr.f32.mxu0 %v9883_v3  ;;  %v10162_v3 = vld [vmem:[#allocation2 + $0x1fa] sm:$0xff] }
 0x217   : > { %1972 = vmatmul.mubr.f32.gmra.mrb[68].mxu0 %v10146_v46 }
 0x218   : > { %1976 = vmatprep.mubr.f32.mxu0 %v9886_v7  ;;  %v10166_v7 = vld [vmem:[#allocation2 + $0x202] sm:$0xff] }
 0x21b   : > { %1977 = vmatmul.mubr.f32.gmra.mrb[70].mxu0 %v10150_v10 }
 0x21c   : > { %1981 = vmatprep.mubr.f32.mxu0 %v9889_v11  ;;  %v10170_v11 = vld [vmem:[#allocation2 + $0x212] sm:$0xff] }
 0x21f   : > { %1982 = vmatmul.mubr.f32.gmra.mrb[72].mxu0 %v10154_v59 }
 0x220   : > { %1986 = vmatprep.mubr.f32.mxu0 %v9892_v14  ;;  %v10174_v14 = vld [vmem:[#allocation2 + $0x21a] sm:$0xff] }
 0x223   : > { %1987 = vmatmul.mubr.f32.gmra.mrb[74].mxu0 %v10158_v62 }
 0x224   : > { %1991 = vmatprep.mubr.f32.mxu0 %v9895_v17  ;;  %v10178_v17 = vld [vmem:[#allocation2 + $0x22a] sm:$0xff] }
 0x227   : > { %1992 = vmatmul.mubr.f32.gmra.mrb[76].mxu0 %v10162_v3 }
 0x228   : > { %1996 = vmatprep.mubr.f32.mxu0 %v9898_v21  ;;  %v10182_v21 = vld [vmem:[#allocation2 + $0x232] sm:$0xff] }
 0x22b   : > { %1997 = vmatmul.mubr.f32.gmra.mrb[78].mxu0 %v10166_v7 }
 0x22c   : > { %2001 = vmatprep.mubr.f32.mxu0 %v9901_v24  ;;  %v10186_v24 = vld [vmem:[#allocation2 + $0x242] sm:$0xff] }
 0x22f   : > { %2002 = vmatmul.mubr.f32.gmra.mrb[80].mxu0 %v10170_v11 }
 0x230   : > { %2006 = vmatprep.mubr.f32.mxu0 %v9904_v27  ;;  %v10190_v27 = vld [vmem:[#allocation2 + $0x24a] sm:$0xff] }
 0x233   : > { %2007 = vmatmul.mubr.f32.gmra.mrb[82].mxu0 %v10174_v14 }
 0x234   : > { %2011 = vmatprep.mubr.f32.mxu0 %v9907_v32  ;;  %v10194_v32 = vld [vmem:[#allocation2 + $0x25a] sm:$0xff] }
 0x237   : > { %2012 = vmatmul.mubr.f32.gmra.mrb[84].mxu0 %v10178_v17 }
 0x238   : > { %2016 = vmatprep.mubr.f32.mxu0 %v9910_v37  ;;  %v10198_v37 = vld [vmem:[#allocation2 + $0x262] sm:$0xff] }
 0x23b   : > { %2017 = vmatmul.mubr.f32.gmra.mrb[86].mxu0 %v10182_v21 }
 0x23c   : > { %2021 = vmatprep.mubr.f32.mxu0 %v9913_v40  ;;  %v10202_v40 = vld [vmem:[#allocation2 + $0x272] sm:$0xff] }
 0x23f   : > { %2022 = vmatmul.mubr.f32.gmra.mrb[88].mxu0 %v10186_v24 }
 0x240   : > { %2026 = vmatprep.mubr.f32.mxu0 %v9916_v44  ;;  %v10206_v44 = vld [vmem:[#allocation2 + $0x27a] sm:$0xff] }
 0x243   : > { %2027 = vmatmul.mubr.f32.gmra.mrb[90].mxu0 %v10190_v27 }
 0x244   : > { %2031 = vmatprep.mubr.f32.mxu0 %v9919_v49  ;;  %v10210_v49 = vld [vmem:[#allocation2 + $0x28a] sm:$0xff] }
 0x247   : > { %2032 = vmatmul.mubr.f32.gmra.mrb[92].mxu0 %v10194_v32 }
 0x248   : > { %2036 = vmatprep.mubr.f32.mxu0 %v9922_v55  ;;  %v10214_v55 = vld [vmem:[#allocation2 + $0x292] sm:$0xff] }
 0x24b   : > { %2037 = vmatmul.mubr.f32.gmra.mrb[94].mxu0 %v10198_v37 }
 0x24c   : > { %2041 = vmatprep.mubr.f32.mxu0 %v9925_v58  ;;  %v10218_v58 = vld [vmem:[#allocation2 + $0x2a2] sm:$0xff] }
 0x24f   : > { %2042 = vmatmul.mubr.f32.gmra.mrb[96].mxu0 %v10202_v40 }
 0x250   : > { %2046 = vmatprep.mubr.f32.mxu0 %v9928_v2  ;;  %v10222_v2 = vld [vmem:[#allocation2 + $0x2aa] sm:$0xff] }
 0x253   : > { %2047 = vmatmul.mubr.f32.gmra.mrb[98].mxu0 %v10206_v44 }
 0x254   : > { %2051 = vmatprep.mubr.f32.mxu0 %v9931_v8  ;;  %v12261_v8 = vld [vmem:[#allocation4_spill] sm:$0xff] }
 0x255   : > { %12264 = vst [vmem:[#allocation4_spill] sm:$0xff] %v10234_v41 }
 0x257   : > { %2052 = vmatmul.mubr.f32.gmra.mrb[100].mxu0 %v10210_v49 }
 0x258   : > { %2056 = vmatprep.mubr.f32.mxu0 %v9934_v15  ;;  %v12262_v15 = vld [vmem:[#allocation5_spill] sm:$0xff] }
 0x259   : > { %12266 = vst [vmem:[#allocation5_spill] sm:$0xff] %v10238_v1 }
 0x25b   : > { %2057 = vmatmul.mubr.f32.gmra.mrb[102].mxu0 %v10214_v55 }
 0x25c   : > { %2061 = vmatprep.mubr.f32.mxu0 %v9937_v22  ;;  %v12263_v22 = vld [vmem:[#allocation6_spill] sm:$0xff] }
 0x25d   : > { %12268 = vst [vmem:[#allocation6_spill] sm:$0xff] %v10242_v26 }
 0x25f   : > { %2062 = vmatmul.mubr.f32.gmra.mrb[104].mxu0 %v10218_v58 }
 0x260   : > { %2066 = vmatprep.mubr.f32.mxu0 %v9940_v30  ;;  %v12265_v30 = vld [vmem:[#allocation7_spill] sm:$0xff] }
 0x261   : > { %12270 = vst [vmem:[#allocation7_spill] sm:$0xff] %v10246_v4 }
 0x263   : > { %2067 = vmatmul.mubr.f32.gmra.mrb[106].mxu0 %v10222_v2 }
 0x264   : > { %2071 = vmatprep.mubr.f32.mxu0 %v12261_v8  ;;  %v12271_v8 = vld [vmem:[#allocation10_spill] sm:$0xff] }
 0x267   : > { %2072 = vmatmul.mubr.f32.gmra.mrb[108].mxu0 %v10226_v34 }
 0x268   : > { %2076 = vmatprep.mubr.f32.mxu0 %v12262_v15  ;;  %v10250_v15 = vld [vmem:[#allocation2 + $0x302] sm:$0xff] }
 0x269   : > { %12272 = vst [vmem:[#allocation8_spill] sm:$0xff] %v10250_v15 }
 0x26b   : > { %2077 = vmatmul.mubr.f32.gmra.mrb[110].mxu0 %v10230_v0 }
 0x26c   : > { %2081 = vmatprep.mubr.f32.mxu0 %v12263_v22  ;;  %v10254_v22 = vld [vmem:[#allocation2 + $0x30a] sm:$0xff] }
 0x26d   : > { %12273 = vst [vmem:[#allocation9_spill] sm:$0xff] %v10254_v22 }
 0x26f   : > { %2082 = vmatmul.mubr.f32.gmra.mrb[112].mxu0 %v10234_v41  ;;  %v1302_v41 = vld [vmem:[%s9567_s11 + $0x328] sm:$0xff] }
 0x270   : > { %2086 = vmatprep.mubr.f32.mxu0 %v12265_v30  ;;  %v878_v30 = vld [vmem:[#allocation2 + $0x330] sm:$0xff] }
 0x273   : > { %2087 = vmatmul.mubr.f32.gmra.mrb[114].mxu0 %v10238_v1  ;;  %v1301_v1 = vld [vmem:[%s9567_s11 + $0x320] sm:$0xff] }
 0x274   : > { %2091 = vmatprep.mubr.f32.mxu0 %v12267_v16  ;;  %v10257_v16 = vld [vmem:[#allocation2 + $0x31a] sm:$0xff] }
 0x275   : > { %12274 = vst [vmem:[#allocation10_spill] sm:$0xff] %v10257_v16 }
 0x277   : > { %2092 = vmatmul.mubr.f32.gmra.mrb[116].mxu0 %v10242_v26 }
 0x278   : > { %2096 = vmatprep.mubr.f32.mxu0 %v12269_v12  ;;  %v879_v12 = vld [vmem:[#allocation2 + $0x338] sm:$0xff] }
 0x27b   : > { %2097 = vmatmul.mubr.f32.gmra.mrb[118].mxu0 %v10246_v4  ;;  %v880_v4 = vld [vmem:[#allocation2 + $0x19] sm:$0xff] }
 0x27c   : > { %2101 = vmatprep.mubr.f32.mxu0 %v12271_v8  ;;  %v10260_v8 = vld [vmem:[#allocation2 + $0x322] sm:$0xff] }
 0x27f   : > { %2102 = vmatmul.mubr.f32.gmra.mrb[120].mxu0 %v10250_v15  ;;  %v1297_v15 = vld [vmem:[%s9567_s11 + $0x300] sm:$0xff] }
 0x280   : > { %2106 = vmatprep.mubr.f32.mxu0 %v9968_v35  ;;  %v1298_v35 = vld [vmem:[%s9567_s11 + $0x308] sm:$0xff] }
 0x281   : > { %v8049_v26 = vpack.c.bf16 %v1298_v35, %v1297_v15  ;;  %v8055_v15 = vpack.c.bf16 %v1302_v41, %v1301_v1  ;;  %v10287_v41 = vld [vmem:[#allocation2 + $0x49] sm:$0xff]  ;;  %v1308_v35 = vld [vmem:[%s9567_s11 + $0x358] sm:$0xff] }
 0x283   : > { %2107 = vmatmul.mubr.f32.gmra.mrb[122].mxu0 %v10254_v22  ;;  %v1299_v22 = vld [vmem:[%s9567_s11 + $0x310] sm:$0xff] }
 0x284   : > { %2111 = vmatprep.mubr.f32.mxu0 %v878_v30  ;;  %v1300_v30 = vld [vmem:[%s9567_s11 + $0x318] sm:$0xff] }
 0x287   : > { %2112 = vmatmul.mubr.f32.gmra.mrb[124].mxu0 %v10257_v16  ;;  %v8052_v16 = vpack.c.bf16 %v1300_v30, %v1299_v22  ;;  %v10294_v30 = vld [vmem:[#allocation2 + $0x51] sm:$0xff] }
 0x288   : > { %2116 = vmatprep.mubr.f32.mxu0 %v879_v12  ;;  %v881_v12 = vld [vmem:[#allocation2 + $0x21] sm:$0xff] }
 0x28b   : > { %2117 = vmatmul.mubr.f32.gmra.mrb[126].mxu0 %v10260_v8 }
 0x28c   : > { %2186 = vmatprep.mubr.f32.mxu0 %v9981_v31  ;;  %v10273_v31 = vld [vmem:[#allocation2 + $0x31] sm:$0xff] }
 0x28f   : > { %2187 = vmatmul.mubr.f32.vlgmr.msra.gmra.mrb[0].mxu0 %v880_v4  ;;  %v10280_v4 = vld [vmem:[#allocation2 + $0x39] sm:$0xff] }
 0x290   : > { %8050 = vmatpush1.bf16.msra.mxu0 %v8049_v26  ;;  %2191 = vmatprep.mubr.f32.mxu0 %v9988_v43  ;;  %v1303_v26 = vld [vmem:[%s9567_s11 + $0x330] sm:$0xff]  ;;  %v1304_v43 = vld [vmem:[%s9567_s11 + $0x338] sm:$0xff] }
 0x291   : > { %8051 = vmatprep.subr.bf16.mxu0 %v12260_v56  ;;  %v8058_v22 = vpack.c.bf16 %v1304_v43, %v1303_v26  ;;  %v10301_v26 = vld [vmem:[#allocation2 + $0x61] sm:$0xff] }
 0x293   : > { %2192 = vmatmul.mubr.f32.gmra.mrb[2].mxu0 %v881_v12 }
 0x294   : > { %2196 = vmatprep.mubr.f32.mxu0 %v9995_v38  ;;  %8053 = vmatpush1.bf16.msra.mxu0 %v8052_v16  ;;  %v1305_v38 = vld [vmem:[%s9567_s11 + $0x340] sm:$0xff]  ;;  %v1306_v16 = vld [vmem:[%s9567_s11 + $0x348] sm:$0xff] }
 0x295   : > { %8054 = vmatprep.subr.bf16.mxu0 %v12260_v56  ;;  %v8061_v1 = vpack.c.bf16 %v1306_v16, %v1305_v38  ;;  %v10308_v38 = vld [vmem:[#allocation2 + $0x69] sm:$0xff] }
 0x297   : > { %2197 = vmatmul.mubr.f32.gmra.mrb[4].mxu0 %v10273_v31 }
 0x298   : > { %2201 = vmatprep.mubr.f32.mxu0 %v10002_v52  ;;  %8056 = vmatpush1.bf16.msra.mxu0 %v8055_v15  ;;  %v1307_v52 = vld [vmem:[%s9567_s11 + $0x350] sm:$0xff]  ;;  %v1310_v15 = vld [vmem:[%s9567_s11 + $0x368] sm:$0xff] }
 0x299   : > { %8057 = vmatprep.subr.bf16.mxu0 %v12260_v56  ;;  %v8064_v12 = vpack.c.bf16 %v1308_v35, %v1307_v52  ;;  %v10315_v52 = vld [vmem:[#allocation2 + $0x79] sm:$0xff] }
 0x29b   : > { %2202 = vmatmul.mubr.f32.gmra.mrb[6].mxu0 %v10280_v4 }
 0x29c   : > { %2206 = vmatprep.mubr.f32.mxu0 %v10009_v5  ;;  %8059 = vmatpush1.bf16.msra.mxu0 %v8058_v22  ;;  %v1309_v5 = vld [vmem:[%s9567_s11 + $0x360] sm:$0xff]  ;;  %v1312_v22 = vld [vmem:[%s9567_s11 + $0x378] sm:$0xff] }
 0x29d   : > { %8060 = vmatprep.subr.bf16.mxu0 %v12260_v56  ;;  %v8067_v43 = vpack.c.bf16 %v1310_v15, %v1309_v5  ;;  %v10322_v5 = vld [vmem:[#allocation2 + $0x81] sm:$0xff] }
 0x29f   : > { %2207 = vmatmul.mubr.f32.gmra.mrb[8].mxu0 %v10287_v41 }
 0x2a0   : > { %2211 = vmatprep.mubr.f32.mxu0 %v10016_v42  ;;  %8062 = vmatpush1.bf16.msra.mxu0 %v8061_v1  ;;  %v1311_v42 = vld [vmem:[%s9567_s11 + $0x370] sm:$0xff]  ;;  %v1314_v1 = vld [vmem:[%s9567_s11 + $0x388] sm:$0xff] }
 0x2a1   : > { %8063 = vmatprep.subr.bf16.mxu0 %v12260_v56  ;;  %v8070_v16 = vpack.c.bf16 %v1312_v22, %v1311_v42  ;;  %v10329_v42 = vld [vmem:[#allocation2 + $0x91] sm:$0xff] }
 0x2a3   : > { %2212 = vmatmul.mubr.f32.gmra.mrb[10].mxu0 %v10294_v30 }
 0x2a4   : > { %2216 = vmatprep.mubr.f32.mxu0 %v10023_v48  ;;  %8065 = vmatpush1.bf16.msra.mxu0 %v8064_v12  ;;  %v1313_v48 = vld [vmem:[%s9567_s11 + $0x380] sm:$0xff]  ;;  %v1316_v12 = vld [vmem:[%s9567_s11 + $0x398] sm:$0xff] }
 0x2a5   : > { %8066 = vmatprep.subr.bf16.mxu0 %v12260_v56  ;;  %v8073_v35 = vpack.c.bf16 %v1314_v1, %v1313_v48  ;;  %v1320_v48 = vld [vmem:[%s9567_s11 + $0x3b8] sm:$0xff] }
 0x2a7   : > { %2217 = vmatmul.mubr.f32.gmra.mrb[12].mxu0 %v10301_v26 }
 0x2a8   : > { %2221 = vmatprep.mubr.f32.mxu0 %v10030_v54  ;;  %8068 = vmatpush1.bf16.msra.mxu0 %v8067_v43  ;;  %v1315_v54 = vld [vmem:[%s9567_s11 + $0x390] sm:$0xff]  ;;  %v1317_v43 = vld [vmem:[%s9567_s11 + $0x3a0] sm:$0xff] }
 0x2a9   : > { %8069 = vmatprep.subr.bf16.mxu0 %v12260_v56  ;;  %v8076_v15 = vpack.c.bf16 %v1316_v12, %v1315_v54  ;;  %v1321_v54 = vld [vmem:[%s9567_s11 + $0x3c0] sm:$0xff]  ;;  %v1322_v12 = vld [vmem:[%s9567_s11 + $0x3c8] sm:$0xff] }
 0x2ab   : > { %2222 = vmatmul.mubr.f32.gmra.mrb[14].mxu0 %v10308_v38 }
 0x2ac   : > { %2226 = vmatprep.mubr.f32.mxu0 %v10037_v60  ;;  %8071 = vmatpush1.bf16.msra.mxu0 %v8070_v16  ;;  %v1318_v60 = vld [vmem:[%s9567_s11 + $0x3a8] sm:$0xff]  ;;  %v1319_v16 = vld [vmem:[%s9567_s11 + $0x3b0] sm:$0xff] }
 0x2ad   : > { %8072 = vmatprep.subr.bf16.mxu0 %v12260_v56  ;;  %v8079_v22 = vpack.c.bf16 %v1318_v60, %v1317_v43  ;;  %v8082_v1 = vpack.c.bf16 %v1320_v48, %v1319_v16  ;;  %v1323_v43 = vld [vmem:[%s9567_s11 + $0x3d0] sm:$0xff]  ;;  %v1324_v60 = vld [vmem:[%s9567_s11 + $0x3d8] sm:$0xff]  ;;  %v1329_v16 = vld [vmem:[%s9567_s11 + $0x400] sm:$0xff] }
 0x2ae   : > { %v1330_v48 = vld [vmem:[%s9567_s11 + $0x408] sm:$0xff] }
 0x2af   : > { %2227 = vmatmul.mubr.f32.gmra.mrb[16].mxu0 %v10315_v52 }
 0x2b0   : > { %2231 = vmatprep.mubr.f32.mxu0 %v10042_v20  ;;  %8074 = vmatpush1.bf16.msra.mxu0 %v8073_v35  ;;  %v10334_v20 = vld [vmem:[#allocation2 + $0x99] sm:$0xff]  ;;  %v10354_v35 = vld [vmem:[#allocation2 + $0xc9] sm:$0xff] }
 0x2b1   : > { %8075 = vmatprep.subr.bf16.mxu0 %v12260_v56 }
 0x2b3   : > { %2232 = vmatmul.mubr.f32.gmra.mrb[18].mxu0 %v10322_v5 }
 0x2b4   : > { %2236 = vmatprep.mubr.f32.mxu0 %v10047_v23  ;;  %8077 = vmatpush1.bf16.msra.mxu0 %v8076_v15  ;;  %v10339_v23 = vld [vmem:[#allocation2 + $0xa9] sm:$0xff]  ;;  %v8085_v15 = vpack.c.bf16 %v1322_v12, %v1321_v54 }
 0x2b5   : > { %8078 = vmatprep.subr.bf16.mxu0 %v12260_v56  ;;  %v1326_v54 = vld [vmem:[%s9567_s11 + $0x3e8] sm:$0xff] }
 0x2b7   : > { %2237 = vmatmul.mubr.f32.gmra.mrb[20].mxu0 %v10329_v42 }
 0x2b8   : > { %2241 = vmatprep.mubr.f32.mxu0 %v10053_v28  ;;  %8080 = vmatpush1.bf16.msra.mxu0 %v8079_v22  ;;  %v10345_v28 = vld [vmem:[#allocation2 + $0xb1] sm:$0xff]  ;;  %v8088_v22 = vpack.c.bf16 %v1324_v60, %v1323_v43 }
 0x2b9   : > { %8081 = vmatprep.subr.bf16.mxu0 %v12260_v56  ;;  %v10410_v60 = vld [vmem:[#allocation2 + $0x151] sm:$0xff] }
 0x2bb   : > { %2242 = vmatmul.mubr.f32.gmra.mrb[22].mxu0 %v10334_v20 }
 0x2bc   : > { %2246 = vmatprep.mubr.f32.mxu0 %v10058_v33  ;;  %8083 = vmatpush1.bf16.msra.mxu0 %v8082_v1  ;;  %v10350_v33 = vld [vmem:[#allocation2 + $0xc1] sm:$0xff]  ;;  %v8096_v1 = vpack.c.bf16 %v1330_v48, %v1329_v16  ;;  %v10417_v48 = vld [vmem:[#allocation2 + $0x159] sm:$0xff] }
 0x2bd   : > { %8084 = vmatprep.subr.bf16.mxu0 %v12260_v56 }
 0x2be   : > { %8097 = vmatprep.subr.bf16.mxu1 %v8096_v1 }
 0x2bf   : > { %2247 = vmatmul.mubr.f32.gmra.mrb[24].mxu0 %v10339_v23  ;;  %8099 = vmatpush3.bf16.msra.mxu1 %v8096_v1  ;;  %v1336_v1 = vld [vmem:[%s9567_s11 + $0x438] sm:$0xff] }
 0x2c0   : > { %2251 = vmatprep.mubr.f32.mxu0 %v10062_v61  ;;  %v10358_v61 = vld [vmem:[#allocation2 + $0xd9] sm:$0xff]  ;;  %8086 = vmatpush1.bf16.msra.mxu0 %v8085_v15  ;;  %v1331_v15 = vld [vmem:[%s9567_s11 + $0x410] sm:$0xff] }
 0x2c1   : > { %8087 = vmatprep.subr.bf16.mxu0 %v12260_v56 }
 0x2c3   : > { %2252 = vmatmul.mubr.f32.gmra.mrb[26].mxu0 %v10345_v28 }
 0x2c4   : > { %2256 = vmatprep.mubr.f32.mxu0 %v10066_v36  ;;  %v10364_v36 = vld [vmem:[#allocation2 + $0xe1] sm:$0xff]  ;;  %8089 = vmatpush1.bf16.msra.mxu0 %v8088_v22 }
 0x2c5   : > { %8090 = vmatprep.subr.bf16.mxu0 %v12260_v56  ;;  %v1333_v22 = vld [vmem:[%s9567_s11 + $0x420] sm:$0xff] }
 0x2c7   : > { %2257 = vmatmul.mubr.f32.gmra.mrb[28].mxu0 %v10350_v33 }
 0x2c8   : > { %2261 = vmatprep.mubr.f32.mxu0 %v10072_v39  ;;  %v10369_v39 = vld [vmem:[#allocation2 + $0xf1] sm:$0xff] }
 0x2cb   : > { %2262 = vmatmul.mubr.f32.gmra.mrb[30].mxu0 %v10354_v35 }
 0x2cc   : > { %2266 = vmatprep.mubr.f32.mxu0 %v10077_v45  ;;  %v10373_v45 = vld [vmem:[#allocation2 + $0xf9] sm:$0xff] }
 0x2cf   : > { %2267 = vmatmul.mubr.f32.gmra.mrb[32].mxu0 %v10358_v61 }
 0x2d0   : > { %2271 = vmatprep.mubr.f32.mxu0 %v10081_v50  ;;  %v10377_v50 = vld [vmem:[#allocation2 + $0x109] sm:$0xff] }
 0x2d3   : > { %2272 = vmatmul.mubr.f32.gmra.mrb[34].mxu0 %v10364_v36 }
 0x2d4   : > { %2276 = vmatprep.mubr.f32.mxu0 %v10085_v53  ;;  %v10383_v53 = vld [vmem:[#allocation2 + $0x111] sm:$0xff] }
 0x2d7   : > { %2277 = vmatmul.mubr.f32.gmra.mrb[36].mxu0 %v10369_v39 }
 0x2d8   : > { %2281 = vmatprep.mubr.f32.mxu0 %v10091_v57  ;;  %v10388_v57 = vld [vmem:[#allocation2 + $0x121] sm:$0xff] }
 0x2db   : > { %2282 = vmatmul.mubr.f32.gmra.mrb[38].mxu0 %v10373_v45 }
 0x2dc   : > { %2286 = vmatprep.mubr.f32.mxu0 %v10096_v63  ;;  %v10392_v63 = vld [vmem:[#allocation2 + $0x129] sm:$0xff] }
 0x2df   : > { %2287 = vmatmul.mubr.f32.gmra.mrb[40].mxu0 %v10377_v50 }
 0x2e0   : > { %2291 = vmatprep.mubr.f32.mxu0 %v10100_v6  ;;  %v10396_v6 = vld [vmem:[#allocation2 + $0x139] sm:$0xff] }
 0x2e3   : > { %2292 = vmatmul.mubr.f32.gmra.mrb[42].mxu0 %v10383_v53 }
 0x2e4   : > { %2296 = vmatprep.mubr.f32.mxu0 %v10104_v9  ;;  %v1325_v9 = vld [vmem:[%s9567_s11 + $0x3e0] sm:$0xff] }
 0x2e5   : > { %v8091_v12 = vpack.c.bf16 %v1326_v54, %v1325_v9  ;;  %v10423_v54 = vld [vmem:[#allocation2 + $0x169] sm:$0xff] }
 0x2e7   : > { %2297 = vmatmul.mubr.f32.gmra.mrb[44].mxu0 %v10388_v57 }
 0x2e8   : > { %2301 = vmatprep.mubr.f32.mxu0 %v10110_v13  ;;  %v10404_v13 = vld [vmem:[#allocation2 + $0x141] sm:$0xff]  ;;  %8092 = vmatpush1.bf16.msra.mxu0 %v8091_v12 }
 0x2e9   : > { %8093 = vmatprep.subr.bf16.mxu0 %v12260_v56  ;;  %v1337_v12 = vld [vmem:[%s9567_s11 + $0x440] sm:$0xff] }
 0x2eb   : > { %2302 = vmatmul.mubr.f32.gmra.mrb[46].mxu0 %v10392_v63 }
 0x2ec   : > { %2306 = vmatprep.mubr.f32.mxu0 %v10115_v19  ;;  %v1332_v19 = vld [vmem:[%s9567_s11 + $0x418] sm:$0xff] }
 0x2ed   : > { %v8100_v43 = vpack.c.bf16 %v1332_v19, %v1331_v15  ;;  %v1338_v15 = vld [vmem:[%s9567_s11 + $0x448] sm:$0xff]  ;;  %v1327_v19 = vld [vmem:[%s9567_s11 + $0x3f0] sm:$0xff] }
 0x2ef   : > { %2307 = vmatmul.mubr.f32.gmra.mrb[48].mxu0 %v10396_v6  ;;  %8101 = vmatprep.subr.bf16.mxu1 %v8100_v43 }
 0x2f0   : > { %2311 = vmatprep.mubr.f32.mxu0 %v10119_v25  ;;  %8103 = vmatpush3.bf16.msra.mxu1 %v8100_v43  ;;  %v1334_v25 = vld [vmem:[%s9567_s11 + $0x428] sm:$0xff]  ;;  %v1328_v43 = vld [vmem:[%s9567_s11 + $0x3f8] sm:$0xff] }
 0x2f1   : > { %v8104_v16 = vpack.c.bf16 %v1334_v25, %v1333_v22  ;;  %v10431_v22 = vld [vmem:[#allocation2 + $0x171] sm:$0xff]  ;;  %v8094_v25 = vpack.c.bf16 %v1328_v43, %v1327_v19  ;;  %v10447_v19 = vld [vmem:[#allocation2 + $0x189] sm:$0xff] }
 0x2f2   : > { %v1343_v43 = vld [vmem:[%s9567_s11 + $0x470] sm:$0xff] }
 0x2f3   : > { %2312 = vmatmul.mubr.f32.gmra.mrb[50].mxu0 %v10404_v13  ;;  %8105 = vmatprep.subr.bf16.mxu1 %v8104_v16 }
 0x2f4   : > { %2316 = vmatprep.mubr.f32.mxu0 %v10123_v29  ;;  %8107 = vmatpush3.bf16.msra.mxu1 %v8104_v16  ;;  %v1335_v29 = vld [vmem:[%s9567_s11 + $0x430] sm:$0xff]  ;;  %v1340_v16 = vld [vmem:[%s9567_s11 + $0x458] sm:$0xff] }
 0x2f5   : > { %v8108_v9 = vpack.c.bf16 %v1336_v1, %v1335_v29  ;;  %v10435_v29 = vld [vmem:[#allocation2 + $0x182] sm:$0xff]  ;;  %8095 = vmatpush1.bf16.msra.mxu0 %v8094_v25  ;;  %v1344_v25 = vld [vmem:[%s9567_s11 + $0x478] sm:$0xff] }
 0x2f7   : > { %2317 = vmatmul.mubr.f32.gmra.mrb[52].mxu0 %v10410_v60  ;;  %8109 = vmatprep.subr.bf16.mxu1 %v8108_v9 }
 0x2f8   : > { %2321 = vmatprep.mubr.f32.mxu0 %v10131_v18  ;;  %8111 = vmatpush3.bf16.msra.mxu1 %v8108_v9  ;;  %v8112_v18 = vpack.c.bf16 %v1338_v15, %v1337_v12  ;;  %v10439_v9 = vld [vmem:[#allocation2 + $0x181] sm:$0xff]  ;;  %v10443_v15 = vld [vmem:[#allocation2 + $0x18a] sm:$0xff] }
 0x2f9   : > { %v1342_v12 = vld [vmem:[%s9567_s11 + $0x468] sm:$0xff] }
 0x2fa   : > { %8113 = vmatprep.subr.bf16.mxu1 %v8112_v18 }
 0x2fb   : > { %2322 = vmatmul.mubr.f32.gmra.mrb[54].mxu0 %v10417_v48 }
 0x2fc   : > { %2326 = vmatprep.mubr.f32.mxu0 %v10137_v47  ;;  %8115 = vmatpush3.bf16.msra.mxu1 %v8112_v18  ;;  %v1339_v47 = vld [vmem:[%s9567_s11 + $0x450] sm:$0xff] }
 0x2fd   : > { %v8116_v1 = vpack.c.bf16 %v1340_v16, %v1339_v47  ;;  %v8124_v47 = vpack.c.bf16 %v1344_v25, %v1343_v43  ;;  %v912_v16 = vld [vmem:[#allocation2 + $0x1c9] sm:$0xff] }
 0x2fe   : > { %v1139_v43 = vld [vmem:[#allocation2 + $0x4a] sm:$0xff] }
 0x2ff   : > { %2327 = vmatmul.mubr.f32.gmra.mrb[56].mxu0 %v10423_v54  ;;  %8117 = vmatprep.subr.bf16.mxu1 %v8116_v1  ;;  %v10460_v25 = vld [vmem:[#allocation2 + $0x1e9] sm:$0xff] }
 0x300   : > { %2331 = vmatprep.mubr.f32.mxu0 %v10140_v51  ;;  %8119 = vmatpush3.bf16.msra.mxu1 %v8116_v1  ;;  %v1341_v51 = vld [vmem:[%s9567_s11 + $0x460] sm:$0xff]  ;;  %v1137_v1 = vld [vmem:[#allocation2 + $0x32] sm:$0xff] }
 0x301   : > { %v8120_v18 = vpack.c.bf16 %v1342_v12, %v1341_v51  ;;  %7680 = vmatprep.mubr.f32.mxu1 %v1137_v1  ;;  %v1138_v51 = vld [vmem:[#allocation2 + $0x3a] sm:$0xff]  ;;  %v913_v12 = vld [vmem:[#allocation2 + $0x1d1] sm:$0xff] }
 0x302   : > { %v1143_v1 = vld [vmem:[#allocation2 + $0x7a] sm:$0xff] }
 0x303   : > { %2332 = vmatmul.mubr.f32.gmra.mrb[58].mxu0 %v10431_v22  ;;  %8121 = vmatprep.subr.bf16.mxu1 %v8120_v18 }
 0x304   : > { %2336 = vmatprep.mubr.f32.mxu0 %v10435_v29  ;;  %8123 = vmatpush3.bf16.msra.mxu1 %v8120_v18  ;;  %v10456_v18 = vld [vmem:[#allocation2 + $0x1e1] sm:$0xff] }
 0x305   : > { %8125 = vmatprep.subr.bf16.mxu1 %v8124_v47 }
 0x307   : > { %2337 = vmatmul.mubr.f32.gmra.mrb[60].mxu0 %v10439_v9 }
 0x308   : > { %2341 = vmatprep.mubr.f32.mxu0 %v10443_v15  ;;  %8127 = vmatpush3.bf16.msra.mxu1 %v8124_v47  ;;  %v1141_v47 = vld [vmem:[#allocation2 + $0x62] sm:$0xff] }
 0x309   : > { %8128 = vmatprep.subr.bf16.mxu1 %v12260_v56 }
 0x30b   : > { %2342 = vmatmul.mubr.f32.gmra.mrb[62].mxu0 %v10447_v19  ;;  %7681 = vmatmul.mubr.f32.vlgmr.msra.gmra.mrb[0].mxu1 %v1138_v51  ;;  %v10476_v51 = vld [vmem:[#allocation2 + $0x219] sm:$0xff] }
 0x30c   : > { %2346 = vmatprep.mubr.f32.mxu0 %v10146_v46  ;;  %7683 = vmatprep.mubr.f32.mxu1 %v1139_v43  ;;  %v1140_v46 = vld [vmem:[#allocation2 + $0x52] sm:$0xff] }
 0x30d   : > { %v10484_v43 = vld [vmem:[#allocation2 + $0x231] sm:$0xff] }
 0x30f   : > { %2347 = vmatmul.mubr.f32.gmra.mrb[64].mxu0 %v912_v16  ;;  %7684 = vmatmul.mubr.f32.gmra.mrb[2].mxu1 %v1140_v46  ;;  %v10468_v16 = vld [vmem:[#allocation2 + $0x201] sm:$0xff]  ;;  %v1147_v46 = vld [vmem:[#allocation2 + $0xaa] sm:$0xff] }
 0x310   : > { %2351 = vmatprep.mubr.f32.mxu0 %v10150_v10  ;;  %v10464_v10 = vld [vmem:[#allocation2 + $0x1f9] sm:$0xff]  ;;  %7686 = vmatprep.mubr.f32.mxu1 %v1141_v47  ;;  %v10492_v47 = vld [vmem:[#allocation2 + $0x249] sm:$0xff] }
 0x313   : > { %2352 = vmatmul.mubr.f32.gmra.mrb[66].mxu0 %v913_v12  ;;  %v1145_v12 = vld [vmem:[#allocation2 + $0x92] sm:$0xff] }
 0x314   : > { %2356 = vmatprep.mubr.f32.mxu0 %v10154_v59  ;;  %v1142_v59 = vld [vmem:[#allocation2 + $0x6a] sm:$0xff] }
 0x315   : > { %7687 = vmatmul.mubr.f32.gmra.mrb[4].mxu1 %v1142_v59  ;;  %v1149_v59 = vld [vmem:[#allocation2 + $0xc2] sm:$0xff] }
 0x316   : > { %7689 = vmatprep.mubr.f32.mxu1 %v1143_v1  ;;  %v10500_v1 = vld [vmem:[#allocation2 + $0x261] sm:$0xff] }
 0x317   : > { %2357 = vmatmul.mubr.f32.gmra.mrb[68].mxu0 %v10456_v18 }
 0x318   : > { %2361 = vmatprep.mubr.f32.mxu0 %v10158_v62  ;;  %v10472_v62 = vld [vmem:[#allocation2 + $0x211] sm:$0xff] }
 0x31b   : > { %2362 = vmatmul.mubr.f32.gmra.mrb[70].mxu0 %v10460_v25 }
 0x31c   : > { %2366 = vmatprep.mubr.f32.mxu0 %v10162_v3  ;;  %v1144_v3 = vld [vmem:[#allocation2 + $0x82] sm:$0xff] }
 0x31d   : > { %7690 = vmatmul.mubr.f32.gmra.mrb[6].mxu1 %v1144_v3  ;;  %v1151_v3 = vld [vmem:[#allocation2 + $0xda] sm:$0xff] }
 0x31e   : > { %7692 = vmatprep.mubr.f32.mxu1 %v1145_v12  ;;  %v10508_v12 = vld [vmem:[#allocation2 + $0x279] sm:$0xff] }
 0x31f   : > { %2367 = vmatmul.mubr.f32.gmra.mrb[72].mxu0 %v10464_v10 }
 0x320   : > { %2371 = vmatprep.mubr.f32.mxu0 %v10166_v7  ;;  %v10480_v7 = vld [vmem:[#allocation2 + $0x229] sm:$0xff] }
 0x323   : > { %2372 = vmatmul.mubr.f32.gmra.mrb[74].mxu0 %v10468_v16 }
 0x324   : > { %2376 = vmatprep.mubr.f32.mxu0 %v10170_v11  ;;  %v1146_v11 = vld [vmem:[#allocation2 + $0x9a] sm:$0xff] }
 0x325   : > { %7693 = vmatmul.mubr.f32.gmra.mrb[8].mxu1 %v1146_v11  ;;  %v1153_v11 = vld [vmem:[#allocation2 + $0xf2] sm:$0xff] }
 0x326   : > { %7695 = vmatprep.mubr.f32.mxu1 %v1147_v46  ;;  %v10516_v46 = vld [vmem:[#allocation2 + $0x291] sm:$0xff] }
 0x327   : > { %2377 = vmatmul.mubr.f32.gmra.mrb[76].mxu0 %v10472_v62 }
 0x328   : > { %2381 = vmatprep.mubr.f32.mxu0 %v10174_v14  ;;  %v10488_v14 = vld [vmem:[#allocation2 + $0x241] sm:$0xff] }
 0x32b   : > { %2382 = vmatmul.mubr.f32.gmra.mrb[78].mxu0 %v10476_v51 }
 0x32c   : > { %2386 = vmatprep.mubr.f32.mxu0 %v10178_v17  ;;  %v1148_v17 = vld [vmem:[#allocation2 + $0xb2] sm:$0xff] }
 0x32d   : > { %7696 = vmatmul.mubr.f32.gmra.mrb[10].mxu1 %v1148_v17  ;;  %v1155_v17 = vld [vmem:[#allocation2 + $0x10a] sm:$0xff] }
 0x32e   : > { %7698 = vmatprep.mubr.f32.mxu1 %v1149_v59  ;;  %v10524_v59 = vld [vmem:[#allocation2 + $0x2a9] sm:$0xff] }
 0x32f   : > { %2387 = vmatmul.mubr.f32.gmra.mrb[80].mxu0 %v10480_v7 }
 0x330   : > { %2391 = vmatprep.mubr.f32.mxu0 %v10182_v21  ;;  %v10496_v21 = vld [vmem:[#allocation2 + $0x259] sm:$0xff] }
 0x333   : > { %2392 = vmatmul.mubr.f32.gmra.mrb[82].mxu0 %v10484_v43 }
 0x334   : > { %2396 = vmatprep.mubr.f32.mxu0 %v10186_v24  ;;  %v1150_v24 = vld [vmem:[#allocation2 + $0xca] sm:$0xff] }
 0x335   : > { %7699 = vmatmul.mubr.f32.gmra.mrb[12].mxu1 %v1150_v24  ;;  %v1158_v24 = vld [vmem:[#allocation2 + $0x12a] sm:$0xff] }
 0x336   : > { %7701 = vmatprep.mubr.f32.mxu1 %v1151_v3  ;;  %v10532_v3 = vld [vmem:[#allocation2 + $0x2c1] sm:$0xff] }
 0x337   : > { %2397 = vmatmul.mubr.f32.gmra.mrb[84].mxu0 %v10488_v14  ;;  %12276 = vst [vmem:[#allocation12_spill] sm:$0xff] %v10532_v3 }
 0x338   : > { %2401 = vmatprep.mubr.f32.mxu0 %v10190_v27  ;;  %v10504_v27 = vld [vmem:[#allocation2 + $0x271] sm:$0xff] }
 0x33b   : > { %2402 = vmatmul.mubr.f32.gmra.mrb[86].mxu0 %v10492_v47 }
 0x33c   : > { %2406 = vmatprep.mubr.f32.mxu0 %v10194_v32  ;;  %v1152_v32 = vld [vmem:[#allocation2 + $0xe2] sm:$0xff] }
 0x33d   : > { %7702 = vmatmul.mubr.f32.gmra.mrb[14].mxu1 %v1152_v32  ;;  %v10536_v32 = vld [vmem:[#allocation2 + $0x2d1] sm:$0xff] }
 0x33e   : > { %7704 = vmatprep.mubr.f32.mxu1 %v1153_v11  ;;  %v1160_v11 = vld [vmem:[#allocation2 + $0x142] sm:$0xff] }
 0x33f   : > { %2407 = vmatmul.mubr.f32.gmra.mrb[88].mxu0 %v10496_v21 }
 0x340   : > { %2411 = vmatprep.mubr.f32.mxu0 %v10198_v37  ;;  %v10512_v37 = vld [vmem:[#allocation2 + $0x289] sm:$0xff] }
 0x343   : > { %2412 = vmatmul.mubr.f32.gmra.mrb[90].mxu0 %v10500_v1 }
 0x344   : > { %2416 = vmatprep.mubr.f32.mxu0 %v10202_v40  ;;  %v1154_v40 = vld [vmem:[#allocation2 + $0xfa] sm:$0xff] }
 0x345   : > { %7705 = vmatmul.mubr.f32.gmra.mrb[16].mxu1 %v1154_v40  ;;  %v10547_v40 = vld [vmem:[#allocation2 + $0x2d9] sm:$0xff] }
 0x346   : > { %7707 = vmatprep.mubr.f32.mxu1 %v1155_v17  ;;  %v4092_v17 = vld [vmem:[%s10544_s14] sm:$0xff] }
 0x347   : > { %2417 = vmatmul.mubr.f32.gmra.mrb[92].mxu0 %v10504_v27 }
 0x348   : > { %2421 = vmatprep.mubr.f32.mxu0 %v10206_v44  ;;  %v10520_v44 = vld [vmem:[#allocation2 + $0x2a1] sm:$0xff] }
 0x34b   : > { %2422 = vmatmul.mubr.f32.gmra.mrb[94].mxu0 %v10508_v12 }
 0x34c   : > { %2426 = vmatprep.mubr.f32.mxu0 %v10210_v49  ;;  %v1156_v49 = vld [vmem:[#allocation2 + $0x112] sm:$0xff] }
 0x34d   : > { %7708 = vmatmul.mubr.f32.gmra.mrb[18].mxu1 %v1156_v49  ;;  %v4093_v49 = vld [vmem:[%s10544_s14 + $0x8] sm:$0xff] }
 0x34f   : > { %2427 = vmatmul.mubr.f32.gmra.mrb[96].mxu0 %v10512_v37 }
 0x350   : > { %2431 = vmatprep.mubr.f32.mxu0 %v10214_v55  ;;  %v10528_v55 = vld [vmem:[#allocation2 + $0x2b9] sm:$0xff] }
 0x351   : > { %12275 = vst [vmem:[#allocation11_spill] sm:$0xff] %v10528_v55 }
 0x353   : > { %2432 = vmatmul.mubr.f32.gmra.mrb[98].mxu0 %v10516_v46 }
 0x354   : > { %2436 = vmatprep.mubr.f32.mxu0 %v10218_v58  ;;  %v1157_v58 = vld [vmem:[#allocation2 + $0x122] sm:$0xff] }
 0x355   : > { %7710 = vmatprep.mubr.f32.mxu1 %v1157_v58  ;;  %v12281_v58 = vld [vmem:[#allocation6_spill] sm:$0xff] }
 0x356   : > { %7711 = vmatmul.mubr.f32.gmra.mrb[20].mxu1 %v1158_v24  ;;  %v936_v24 = vld [vmem:[#allocation2 + $0x2e9] sm:$0xff] }
 0x357   : > { %2437 = vmatmul.mubr.f32.gmra.mrb[100].mxu0 %v10520_v44 }
 0x358   : > { %2441 = vmatprep.mubr.f32.mxu0 %v10222_v2  ;;  %v12277_v2 = vld [vmem:[#allocation4_spill] sm:$0xff] }
 0x359   : > { %12278 = vst [vmem:[#allocation4_spill] sm:$0xff] %v10536_v32 }
 0x35b   : > { %2442 = vmatmul.mubr.f32.gmra.mrb[102].mxu0 %v10524_v59 }
 0x35c   : > { %2446 = vmatprep.mubr.f32.mxu0 %v10226_v34  ;;  %v1159_v34 = vld [vmem:[#allocation2 + $0x13a] sm:$0xff] }
 0x35d   : > { %7713 = vmatprep.mubr.f32.mxu1 %v1159_v34  ;;  %v1161_v34 = vld [vmem:[#allocation2 + $0x152] sm:$0xff] }
 0x35e   : > { %7714 = vmatmul.mubr.f32.gmra.mrb[22].mxu1 %v1160_v11  ;;  %v1162_v11 = vld [vmem:[#allocation2 + $0x15a] sm:$0xff] }
 0x35f   : > { %2447 = vmatmul.mubr.f32.gmra.mrb[104].mxu0 %v10528_v55  ;;  %7716 = vmatprep.mubr.f32.mxu1 %v1161_v34  ;;  %v12283_v55 = vld [vmem:[#allocation8_spill] sm:$0xff] }
 0x360   : > { %2451 = vmatprep.mubr.f32.mxu0 %v10230_v0  ;;  %v12279_v0 = vld [vmem:[#allocation5_spill] sm:$0xff]  ;;  %v4096_v34 = vld [vmem:[%s10544_s14 + $0x20] sm:$0xff] }
 0x361   : > { %12280 = vst [vmem:[#allocation5_spill] sm:$0xff] %v10547_v40 }
 0x362   : > { %7717 = vmatmul.mubr.f32.gmra.mrb[24].mxu1 %v1162_v11 }
 0x363   : > { %2452 = vmatmul.mubr.f32.gmra.mrb[106].mxu0 %v10532_v3  ;;  %v4095_v3 = vld [vmem:[%s10544_s14 + $0x18] sm:$0xff] }
 0x364   : > { %2456 = vmatprep.mubr.f32.mxu0 %v12277_v2  ;;  %v8129_v2 = vpack.c.bf16 %v4093_v49, %v4092_v17  ;;  %v1163_v49 = vld [vmem:[#allocation2 + $0x16a] sm:$0xff] }
 0x365   : > { %7719 = vmatprep.mubr.f32.mxu1 %v1163_v49 }
 0x366   : > { %8130 = vmatpush1.bf16.msra.mxu1 %v8129_v2  ;;  %v1164_v2 = vld [vmem:[#allocation2 + $0x172] sm:$0xff] }
 0x367   : > { %2457 = vmatmul.mubr.f32.gmra.mrb[108].mxu0 %v10536_v32  ;;  %v12282_v32 = vld [vmem:[#allocation7_spill] sm:$0xff]  ;;  %8131 = vmatprep.subr.bf16.mxu1 %v12260_v56 }
 0x368   : > { %2461 = vmatprep.mubr.f32.mxu0 %v12279_v0  ;;  %v937_v0 = vld [vmem:[#allocation2 + $0x2f1] sm:$0xff]  ;;  %7720 = vmatmul.mubr.f32.gmra.mrb[26].mxu1 %v1164_v2  ;;  %v10572_v2 = vld [vmem:[#allocation2 + $0x33a] sm:$0xff] }
 0x369   : > { %7722 = vmatprep.mubr.f32.mxu1 %v10435_v29  ;;  %v4098_v29 = vld [vmem:[%s10544_s14 + $0x30] sm:$0xff] }
 0x36b   : > { %2462 = vmatmul.mubr.f32.gmra.mrb[110].mxu0 %v10547_v40  ;;  %v4094_v40 = vld [vmem:[%s10544_s14 + $0x10] sm:$0xff] }
 0x36c   : > { %2466 = vmatprep.mubr.f32.mxu0 %v12281_v58  ;;  %v938_v58 = vld [vmem:[#allocation2 + $0x301] sm:$0xff]  ;;  %v8132_v17 = vpack.c.bf16 %v4095_v3, %v4094_v40  ;;  %7723 = vmatmul.mubr.f32.gmra.mrb[28].mxu1 %v10443_v15  ;;  %v12285_v3 = vld [vmem:[#allocation10_spill] sm:$0xff]  ;;  %v940_v40 = vld [vmem:[#allocation2 + $0x319] sm:$0xff] }
 0x36d   : > { %v942_v15 = vld [vmem:[#allocation2 + $0x331] sm:$0xff] }
 0x36e   : > { %8133 = vmatpush1.bf16.msra.mxu1 %v8132_v17  ;;  %v4099_v17 = vld [vmem:[%s10544_s14 + $0x38] sm:$0xff] }
 0x36f   : > { %2467 = vmatmul.mubr.f32.gmra.mrb[112].mxu0 %v936_v24  ;;  %v12284_v24 = vld [vmem:[#allocation9_spill] sm:$0xff]  ;;  %8134 = vmatprep.subr.bf16.mxu1 %v12260_v56  ;;  %v8138_v49 = vpack.c.bf16 %v4099_v17, %v4098_v29  ;;  %v1010_v29 = vld [vmem:[#allocation2 + $0x38] sm:$0xff]  ;;  %v4102_v17 = vld [vmem:[%s10544_s14 + $0x50] sm:$0xff] }
 0x370   : > { %2471 = vmatprep.mubr.f32.mxu0 %v12282_v32  ;;  %v939_v32 = vld [vmem:[#allocation2 + $0x309] sm:$0xff] }
 0x373   : > { %2472 = vmatmul.mubr.f32.gmra.mrb[114].mxu0 %v937_v0  ;;  %v941_v0 = vld [vmem:[#allocation2 + $0x321] sm:$0xff] }
 0x374   : > { %2476 = vmatprep.mubr.f32.mxu0 %v12283_v55  ;;  %v4097_v55 = vld [vmem:[%s10544_s14 + $0x28] sm:$0xff] }
 0x375   : > { %v8135_v11 = vpack.c.bf16 %v4097_v55, %v4096_v34  ;;  %v4100_v34 = vld [vmem:[%s10544_s14 + $0x40] sm:$0xff]  ;;  %v4101_v55 = vld [vmem:[%s10544_s14 + $0x48] sm:$0xff] }
 0x377   : > { %2477 = vmatmul.mubr.f32.gmra.mrb[116].mxu0 %v938_v58  ;;  %8136 = vmatpush1.bf16.msra.mxu1 %v8135_v11  ;;  %v10567_v58 = vld [vmem:[#allocation2 + $0x332] sm:$0xff]  ;;  %v1169_v11 = vld [vmem:[#allocation2 + $0x1e2] sm:$0xff] }
 0x378   : > { %2481 = vmatprep.mubr.f32.mxu0 %v12284_v24  ;;  %8137 = vmatprep.subr.bf16.mxu1 %v12260_v56  ;;  %v1167_v24 = vld [vmem:[#allocation2 + $0x19a] sm:$0xff] }
 0x379   : > { %7725 = vmatprep.mubr.f32.mxu1 %v1167_v24  ;;  %v1171_v24 = vld [vmem:[#allocation2 + $0x1fa] sm:$0xff] }
 0x37b   : > { %2482 = vmatmul.mubr.f32.gmra.mrb[118].mxu0 %v939_v32  ;;  %8139 = vmatpush1.bf16.msra.mxu1 %v8138_v49  ;;  %v1168_v32 = vld [vmem:[#allocation2 + $0x1a2] sm:$0xff] }
 0x37c   : > { %2486 = vmatprep.mubr.f32.mxu0 %v12285_v3  ;;  %7726 = vmatmul.mubr.f32.gmra.mrb[30].mxu1 %v1168_v32  ;;  %v1009_v3 = vld [vmem:[#allocation2 + $0x30] sm:$0xff]  ;;  %v1172_v32 = vld [vmem:[#allocation2 + $0x202] sm:$0xff] }
 0x37d   : > { %8140 = vmatprep.subr.bf16.mxu1 %v12260_v56  ;;  %7728 = vmatprep.mubr.f32.mxu1 %v1169_v11  ;;  %v4106_v11 = vld [vmem:[%s10544_s14 + $0x70] sm:$0xff] }
 0x37f   : > { %2487 = vmatmul.mubr.f32.gmra.mrb[120].mxu0 %v940_v40  ;;  %v8141_v40 = vpack.c.bf16 %v4101_v55, %v4100_v34  ;;  %v4105_v34 = vld [vmem:[%s10544_s14 + $0x68] sm:$0xff] }
 0x380   : > { %2491 = vmatprep.mubr.f32.mxu0 %v10260_v8  ;;  %v943_v8 = vld [vmem:[#allocation2 + $0x339] sm:$0xff] }
 0x381   : > { %8142 = vmatpush1.bf16.msra.mxu1 %v8141_v40  ;;  %v1174_v40 = vld [vmem:[#allocation2 + $0x21a] sm:$0xff] }
 0x382   : > { %8143 = vmatprep.subr.bf16.mxu1 %v12260_v56 }
 0x383   : > { %2492 = vmatmul.mubr.f32.gmra.mrb[122].mxu0 %v941_v0  ;;  %v1170_v0 = vld [vmem:[#allocation2 + $0x1ea] sm:$0xff] }
 0x384   : > { %2496 = vmatprep.mubr.f32.mxu0 %v10567_v58  ;;  %7729 = vmatmul.mubr.f32.gmra.mrb[32].mxu1 %v1170_v0  ;;  %v4107_v0 = vld [vmem:[%s10544_s14 + $0x78] sm:$0xff] }
 0x385   : > { %7731 = vmatprep.mubr.f32.mxu1 %v1171_v24 }
 0x387   : > { %2497 = vmatmul.mubr.f32.gmra.mrb[124].mxu0 %v942_v15  ;;  %v4103_v15 = vld [vmem:[%s10544_s14 + $0x58] sm:$0xff] }
 0x388   : > { %2501 = vmatprep.mubr.f32.mxu0 %v10572_v2  ;;  %v8144_v49 = vpack.c.bf16 %v4103_v15, %v4102_v17  ;;  %7732 = vmatmul.mubr.f32.gmra.mrb[34].mxu1 %v1172_v32  ;;  %v1175_v17 = vld [vmem:[#allocation2 + $0x22a] sm:$0xff]  ;;  %v1176_v15 = vld [vmem:[#allocation2 + $0x232] sm:$0xff]  ;;  %v1177_v32 = vld [vmem:[#allocation2 + $0x242] sm:$0xff] }
 0x38a   : > { %8145 = vmatpush1.bf16.msra.mxu1 %v8144_v49  ;;  %v4109_v49 = vld [vmem:[%s10544_s14 + $0x88] sm:$0xff] }
 0x38b   : > { %2502 = vmatmul.mubr.f32.gmra.mrb[126].mxu0 %v943_v8  ;;  %8146 = vmatprep.subr.bf16.mxu1 %v12260_v56  ;;  %v4104_v8 = vld [vmem:[%s10544_s14 + $0x60] sm:$0xff] }
 0x38c   : > { %2571 = vmatprep.mubr.f32.mxu0 %v10273_v31  ;;  %v1011_v31 = vld [vmem:[#allocation2 + $0x48] sm:$0xff]  ;;  %v8147_v55 = vpack.c.bf16 %v4105_v34, %v4104_v8  ;;  %v4110_v8 = vld [vmem:[%s10544_s14 + $0x90] sm:$0xff]  ;;  %v4111_v34 = vld [vmem:[%s10544_s14 + $0x98] sm:$0xff] }
 0x38e   : > { %8148 = vmatpush1.bf16.msra.mxu1 %v8147_v55  ;;  %v1179_v55 = vld [vmem:[#allocation2 + $0x25a] sm:$0xff] }
 0x38f   : > { %2572 = vmatmul.mubr.f32.vlgmr.msra.gmra.mrb[0].mxu0 %v1009_v3  ;;  %v1173_v3 = vld [vmem:[#allocation2 + $0x212] sm:$0xff]  ;;  %8149 = vmatprep.subr.bf16.mxu1 %v12260_v56 }
 0x390   : > { %2576 = vmatprep.mubr.f32.mxu0 %v10280_v4  ;;  %v1012_v4 = vld [vmem:[#allocation2 + $0x50] sm:$0xff]  ;;  %7734 = vmatprep.mubr.f32.mxu1 %v1173_v3  ;;  %v1180_v3 = vld [vmem:[#allocation2 + $0x262] sm:$0xff] }
 0x391   : > { %7735 = vmatmul.mubr.f32.gmra.mrb[36].mxu1 %v1174_v40  ;;  %v4112_v40 = vld [vmem:[%s10544_s14 + $0xa0] sm:$0xff] }
 0x392   : > { %7737 = vmatprep.mubr.f32.mxu1 %v1175_v17  ;;  %v4115_v17 = vld [vmem:[%s10544_s14 + $0xb8] sm:$0xff] }
 0x393   : > { %2577 = vmatmul.mubr.f32.gmra.mrb[2].mxu0 %v1010_v29  ;;  %v8150_v29 = vpack.c.bf16 %v4107_v0, %v4106_v11  ;;  %v1181_v0 = vld [vmem:[#allocation2 + $0x272] sm:$0xff] }
 0x394   : > { %2581 = vmatprep.mubr.f32.mxu0 %v10287_v41  ;;  %v1013_v41 = vld [vmem:[#allocation2 + $0x60] sm:$0xff] }
 0x395   : > { %8151 = vmatpush1.bf16.msra.mxu1 %v8150_v29  ;;  %v4114_v29 = vld [vmem:[%s10544_s14 + $0xb0] sm:$0xff] }
 0x396   : > { %7738 = vmatmul.mubr.f32.gmra.mrb[38].mxu1 %v1176_v15  ;;  %8152 = vmatprep.subr.bf16.mxu1 %v12260_v56  ;;  %v1183_v15 = vld [vmem:[#allocation2 + $0x28a] sm:$0xff] }
 0x397   : > { %2582 = vmatmul.mubr.f32.gmra.mrb[4].mxu0 %v1011_v31  ;;  %v4108_v31 = vld [vmem:[%s10544_s14 + $0x80] sm:$0xff]  ;;  %7740 = vmatprep.mubr.f32.mxu1 %v1177_v32 }
 0x398   : > { %2586 = vmatprep.mubr.f32.mxu0 %v10294_v30  ;;  %v1014_v30 = vld [vmem:[#allocation2 + $0x68] sm:$0xff]  ;;  %v8153_v24 = vpack.c.bf16 %v4109_v49, %v4108_v31  ;;  %v1184_v31 = vld [vmem:[#allocation2 + $0x292] sm:$0xff]  ;;  %v1187_v32 = vld [vmem:[#allocation2 + $0x2ba] sm:$0xff] }
 0x399   : > { %v1185_v49 = vld [vmem:[#allocation2 + $0x2a2] sm:$0xff] }
 0x39a   : > { %8154 = vmatpush1.bf16.msra.mxu1 %v8153_v24  ;;  %v4117_v24 = vld [vmem:[%s10544_s14 + $0xc8] sm:$0xff] }
 0x39b   : > { %2587 = vmatmul.mubr.f32.gmra.mrb[6].mxu0 %v1012_v4  ;;  %v1178_v4 = vld [vmem:[#allocation2 + $0x24a] sm:$0xff]  ;;  %8155 = vmatprep.subr.bf16.mxu1 %v12260_v56 }
 0x39c   : > { %2591 = vmatprep.mubr.f32.mxu0 %v10301_v26  ;;  %v1015_v26 = vld [vmem:[#allocation2 + $0x78] sm:$0xff]  ;;  %7741 = vmatmul.mubr.f32.gmra.mrb[40].mxu1 %v1178_v4  ;;  %v1025_v4 = vld [vmem:[#allocation2 + $0xf0] sm:$0xff] }
 0x39d   : > { %7743 = vmatprep.mubr.f32.mxu1 %v1179_v55  ;;  %v1191_v55 = vld [vmem:[#allocation2 + $0x2ea] sm:$0xff] }
 0x39f   : > { %2592 = vmatmul.mubr.f32.gmra.mrb[8].mxu0 %v1013_v41  ;;  %v8156_v41 = vpack.c.bf16 %v4111_v34, %v4110_v8  ;;  %v1188_v8 = vld [vmem:[#allocation2 + $0x2c2] sm:$0xff]  ;;  %v1026_v34 = vld [vmem:[#allocation2 + $0xf8] sm:$0xff] }
 0x3a0   : > { %2596 = vmatprep.mubr.f32.mxu0 %v10308_v38  ;;  %v1016_v38 = vld [vmem:[#allocation2 + $0x80] sm:$0xff]  ;;  %7744 = vmatmul.mubr.f32.gmra.mrb[42].mxu1 %v1180_v3  ;;  %v1027_v3 = vld [vmem:[#allocation2 + $0x108] sm:$0xff] }
 0x3a1   : > { %8157 = vmatpush1.bf16.msra.mxu1 %v8156_v41  ;;  %7746 = vmatprep.mubr.f32.mxu1 %v1181_v0  ;;  %v4119_v41 = vld [vmem:[%s10544_s14 + $0xd8] sm:$0xff] }
 0x3a2   : > { %8158 = vmatprep.subr.bf16.mxu1 %v12260_v56  ;;  %v1195_v0 = vld [vmem:[#allocation2 + $0x31a] sm:$0xff] }
 0x3a3   : > { %2597 = vmatmul.mubr.f32.gmra.mrb[10].mxu0 %v1014_v30  ;;  %v4113_v30 = vld [vmem:[%s10544_s14 + $0xa8] sm:$0xff] }
 0x3a4   : > { %2601 = vmatprep.mubr.f32.mxu0 %v10315_v52  ;;  %v1017_v52 = vld [vmem:[#allocation2 + $0x90] sm:$0xff]  ;;  %v8159_v11 = vpack.c.bf16 %v4113_v30, %v4112_v40 }
 0x3a5   : > { %v1192_v40 = vld [vmem:[#allocation2 + $0x2f2] sm:$0xff] }
 0x3a6   : > { %8160 = vmatpush1.bf16.msra.mxu1 %v8159_v11  ;;  %v1028_v30 = vld [vmem:[#allocation2 + $0x110] sm:$0xff]  ;;  %v4121_v11 = vld [vmem:[%s10544_s14 + $0xe8] sm:$0xff] }
 0x3a7   : > { %2602 = vmatmul.mubr.f32.gmra.mrb[12].mxu0 %v1015_v26  ;;  %v1182_v26 = vld [vmem:[#allocation2 + $0x27a] sm:$0xff]  ;;  %8161 = vmatprep.subr.bf16.mxu1 %v12260_v56 }
 0x3a8   : > { %2606 = vmatprep.mubr.f32.mxu0 %v10322_v5  ;;  %v1018_v5 = vld [vmem:[#allocation2 + $0x98] sm:$0xff]  ;;  %7747 = vmatmul.mubr.f32.gmra.mrb[44].mxu1 %v1182_v26  ;;  %v1029_v26 = vld [vmem:[#allocation2 + $0x120] sm:$0xff] }
 0x3a9   : > { %7749 = vmatprep.mubr.f32.mxu1 %v1183_v15  ;;  %v4123_v15 = vld [vmem:[%s10544_s14 + $0xf8] sm:$0xff] }
 0x3ab   : > { %2607 = vmatmul.mubr.f32.gmra.mrb[14].mxu0 %v1016_v38  ;;  %v8162_v38 = vpack.c.bf16 %v4115_v17, %v4114_v29  ;;  %v1196_v29 = vld [vmem:[#allocation2 + $0x322] sm:$0xff] }
 0x3ac   : > { %2611 = vmatprep.mubr.f32.mxu0 %v10329_v42  ;;  %v1019_v42 = vld [vmem:[#allocation2 + $0xa8] sm:$0xff]  ;;  %7750 = vmatmul.mubr.f32.gmra.mrb[46].mxu1 %v1184_v31  ;;  %v1031_v31 = vld [vmem:[#allocation2 + $0x138] sm:$0xff] }
 0x3ad   : > { %8163 = vmatpush1.bf16.msra.mxu1 %v8162_v38  ;;  %7752 = vmatprep.mubr.f32.mxu1 %v1185_v49  ;;  %v1199_v38 = vld [vmem:[#allocation2 + $0x34a] sm:$0xff]  ;;  %v1200_v49 = vld [vmem:[#allocation2 + $0x352] sm:$0xff] }
 0x3ae   : > { %8164 = vmatprep.subr.bf16.mxu1 %v12260_v56 }
 0x3af   : > { %2612 = vmatmul.mubr.f32.gmra.mrb[16].mxu0 %v1017_v52  ;;  %v1186_v52 = vld [vmem:[#allocation2 + $0x2aa] sm:$0xff] }
 0x3b0   : > { %2616 = vmatprep.mubr.f32.mxu0 %v10334_v20  ;;  %v1020_v20 = vld [vmem:[#allocation2 + $0xb0] sm:$0xff]  ;;  %7753 = vmatmul.mubr.f32.gmra.mrb[48].mxu1 %v1186_v52 }
 0x3b1   : > { %7755 = vmatprep.mubr.f32.mxu1 %v1187_v32  ;;  %v1033_v52 = vld [vmem:[#allocation2 + $0x150] sm:$0xff]  ;;  %v4220_v32 = vld [vmem:[%s10544_s14 + $0x400] sm:$0xff] }
 0x3b3   : > { %2617 = vmatmul.mubr.f32.gmra.mrb[18].mxu0 %v1018_v5 }
 0x3b4   : > { %2621 = vmatprep.mubr.f32.mxu0 %v10339_v23  ;;  %v1021_v23 = vld [vmem:[#allocation2 + $0xc0] sm:$0xff]  ;;  %7756 = vmatmul.mubr.f32.gmra.mrb[50].mxu1 %v1188_v8 }
 0x3b7   : > { %2622 = vmatmul.mubr.f32.gmra.mrb[20].mxu0 %v1019_v42  ;;  %v1190_v42 = vld [vmem:[#allocation2 + $0x2da] sm:$0xff] }
 0x3b8   : > { %2626 = vmatprep.mubr.f32.mxu0 %v10345_v28  ;;  %v1022_v28 = vld [vmem:[#allocation2 + $0xc8] sm:$0xff] }
 0x3bb   : > { %2627 = vmatmul.mubr.f32.gmra.mrb[22].mxu0 %v1020_v20 }
 0x3bc   : > { %2631 = vmatprep.mubr.f32.mxu0 %v10350_v33  ;;  %v1023_v33 = vld [vmem:[#allocation2 + $0xd8] sm:$0xff] }
 0x3bf   : > { %2632 = vmatmul.mubr.f32.gmra.mrb[24].mxu0 %v1021_v23  ;;  %v1194_v23 = vld [vmem:[#allocation2 + $0x30a] sm:$0xff] }
 0x3c0   : > { %2636 = vmatprep.mubr.f32.mxu0 %v10354_v35  ;;  %v1024_v35 = vld [vmem:[#allocation2 + $0xe0] sm:$0xff] }
 0x3c3   : > { %2637 = vmatmul.mubr.f32.gmra.mrb[26].mxu0 %v1022_v28 }
 0x3c4   : > { %2641 = vmatprep.mubr.f32.mxu0 %v10358_v61  ;;  %v4116_v61 = vld [vmem:[%s10544_s14 + $0xc0] sm:$0xff] }
 0x3c5   : > { %v8165_v5 = vpack.c.bf16 %v4117_v24, %v4116_v61  ;;  %v3580_v24 = vld [vmem:[#allocation3 + $0x9] sm:$0xff] }
 0x3c7   : > { %2642 = vmatmul.mubr.f32.gmra.mrb[28].mxu0 %v1023_v33  ;;  %8166 = vmatpush1.bf16.msra.mxu1 %v8165_v5  ;;  %v4125_v5 = vld [vmem:[%s10544_s14 + $0x108] sm:$0xff] }
 0x3c8   : > { %2646 = vmatprep.mubr.f32.mxu0 %v10364_v36  ;;  %v1189_v36 = vld [vmem:[#allocation2 + $0x2d2] sm:$0xff]  ;;  %8167 = vmatprep.subr.bf16.mxu1 %v12260_v56 }
 0x3c9   : > { %7758 = vmatprep.mubr.f32.mxu1 %v1189_v36 }
 0x3ca   : > { %7759 = vmatmul.mubr.f32.gmra.mrb[52].mxu1 %v1190_v42  ;;  %v4223_v42 = vld [vmem:[%s10544_s14 + $0x418] sm:$0xff] }
 0x3cb   : > { %2647 = vmatmul.mubr.f32.gmra.mrb[30].mxu0 %v1024_v35  ;;  %7761 = vmatprep.mubr.f32.mxu1 %v1191_v55  ;;  %v10642_v35 = vld [vmem:[#allocation2] sm:$0xff] }
 0x3cc   : > { %2651 = vmatprep.mubr.f32.mxu0 %v10369_v39  ;;  %v4118_v39 = vld [vmem:[%s10544_s14 + $0xd0] sm:$0xff] }
 0x3cd   : > { %v8168_v20 = vpack.c.bf16 %v4119_v41, %v4118_v39 }
 0x3ce   : > { %7762 = vmatmul.mubr.f32.gmra.mrb[54].mxu1 %v1192_v40 }
 0x3cf   : > { %2652 = vmatmul.mubr.f32.gmra.mrb[32].mxu0 %v1025_v4  ;;  %8169 = vmatpush1.bf16.msra.mxu1 %v8168_v20  ;;  %v4124_v4 = vld [vmem:[%s10544_s14 + $0x100] sm:$0xff]  ;;  %v4225_v20 = vld [vmem:[%s10544_s14 + $0x428] sm:$0xff] }
 0x3d0   : > { %2656 = vmatprep.mubr.f32.mxu0 %v10373_v45  ;;  %v1193_v45 = vld [vmem:[#allocation2 + $0x302] sm:$0xff]  ;;  %8170 = vmatprep.subr.bf16.mxu1 %v12260_v56  ;;  %v8177_v36 = vpack.c.bf16 %v4125_v5, %v4124_v4 }
 0x3d1   : > { %7764 = vmatprep.mubr.f32.mxu1 %v1193_v45  ;;  %v1036_v45 = vld [vmem:[#allocation2 + $0x170] sm:$0xff] }
 0x3d2   : > { %7765 = vmatmul.mubr.f32.gmra.mrb[56].mxu1 %v1194_v23  ;;  %v4227_v23 = vld [vmem:[%s10544_s14 + $0x438] sm:$0xff] }
 0x3d3   : > { %2657 = vmatmul.mubr.f32.gmra.mrb[34].mxu0 %v1026_v34  ;;  %7767 = vmatprep.mubr.f32.mxu1 %v1195_v0  ;;  %v1034_v34 = vld [vmem:[#allocation2 + $0x158] sm:$0xff]  ;;  %v1037_v0 = vld [vmem:[#allocation2 + $0x180] sm:$0xff] }
 0x3d4   : > { %2661 = vmatprep.mubr.f32.mxu0 %v10377_v50  ;;  %v4120_v50 = vld [vmem:[%s10544_s14 + $0xe0] sm:$0xff] }
 0x3d5   : > { %v8171_v28 = vpack.c.bf16 %v4121_v11, %v4120_v50 }
 0x3d6   : > { %7768 = vmatmul.mubr.f32.gmra.mrb[58].mxu1 %v1196_v29  ;;  %v4126_v29 = vld [vmem:[%s10544_s14 + $0x110] sm:$0xff] }
 0x3d7   : > { %2662 = vmatmul.mubr.f32.gmra.mrb[36].mxu0 %v1027_v3  ;;  %8172 = vmatpush1.bf16.msra.mxu1 %v8171_v28  ;;  %v1035_v3 = vld [vmem:[#allocation2 + $0x168] sm:$0xff] }
 0x3d8   : > { %2666 = vmatprep.mubr.f32.mxu0 %v10383_v53  ;;  %7770 = vmatprep.mubr.f32.mxu1 %v10567_v58  ;;  %v1030_v53 = vld [vmem:[#allocation2 + $0x128] sm:$0xff] }
 0x3d9   : > { %8173 = vmatprep.subr.bf16.mxu1 %v12260_v56  ;;  %v4229_v28 = vld [vmem:[%s10544_s14 + $0x448] sm:$0xff] }
 0x3da   : > { %7771 = vmatmul.mubr.f32.gmra.mrb[60].mxu1 %v10572_v2  ;;  %v3579_v2 = vld [vmem:[#allocation3 + $0x1] sm:$0xff] }
 0x3db   : > { %2667 = vmatmul.mubr.f32.gmra.mrb[38].mxu0 %v1028_v30  ;;  %7773 = vmatprep.mubr.f32.mxu1 %v1199_v38  ;;  %v4226_v30 = vld [vmem:[%s10544_s14 + $0x430] sm:$0xff] }
 0x3dc   : > { %2671 = vmatprep.mubr.f32.mxu0 %v10388_v57  ;;  %v4122_v57 = vld [vmem:[%s10544_s14 + $0xf0] sm:$0xff]  ;;  %v8332_v50 = vpack.c.bf16 %v4227_v23, %v4226_v30  ;;  %v4131_v23 = vld [vmem:[%s10544_s14 + $0x138] sm:$0xff] }
 0x3dd   : > { %v8174_v58 = vpack.c.bf16 %v4123_v15, %v4122_v57  ;;  %v1038_v15 = vld [vmem:[#allocation2 + $0x188] sm:$0xff]  ;;  %v4230_v38 = vld [vmem:[%s10544_s14 + $0x450] sm:$0xff] }
 0x3de   : > { %v10633_v17 = vpop.f32.mrb[0].mxu1  ;;  %7774 = vmatmul.mubr.f32.gmra.mrb[62].mxu1 %v1200_v49  ;;  %v4130_v30 = vld [vmem:[%s10544_s14 + $0x130] sm:$0xff] }
 0x3df   : > { %2672 = vmatmul.mubr.f32.gmra.mrb[40].mxu0 %v1029_v26  ;;  %v10637_v33 = vpop.f32.mrb[1].mxu1  ;;  %8175 = vmatpush1.bf16.msra.mxu1 %v8174_v58  ;;  %v4228_v26 = vld [vmem:[%s10544_s14 + $0x440] sm:$0xff] }
 0x3e0   : > { %2676 = vmatprep.mubr.f32.mxu0 %v10392_v63  ;;  %8176 = vmatprep.subr.bf16.mxu1 %v12260_v56  ;;  %v1032_v63 = vld [vmem:[#allocation2 + $0x140] sm:$0xff] }
 0x3e1   : > { %4307 = vmatprep.mubr.f32.mxu1 %v3579_v2  ;;  %v1103_v58 = vld [vmem:[#allocation2 + $0x199] sm:$0xff] }
 0x3e2   : > { %4308 = vmatmul.mubr.f32.vlgmr.msra.gmra.mrb[64].mxu1 %v10642_v35  ;;  %v4232_v2 = vld [vmem:[%s10544_s14 + $0x460] sm:$0xff] }
 0x3e3   : > { %2677 = vmatmul.mubr.f32.gmra.mrb[42].mxu0 %v1030_v53  ;;  %4312 = vmatprep.mubr.f32.mxu1 %v3580_v24  ;;  %v8336_v53 = vpack.c.bf16 %v4229_v28, %v4228_v26  ;;  %v1048_v26 = vld [vmem:[#allocation2 + $0x230] sm:$0xff]  ;;  %v1049_v28 = vld [vmem:[#allocation2 + $0x240] sm:$0xff] }
 0x3e4   : > { %2681 = vmatprep.mubr.f32.mxu0 %v10396_v6  ;;  %v10645_v6 = vpop.f32.mrb[2].mxu1  ;;  %8178 = vmatpush1.bf16.msra.mxu1 %v8177_v36  ;;  %v1041_v36 = vld [vmem:[#allocation2 + $0x1e0] sm:$0xff] }
 0x3e5   : > { %v10647_v61 = vpop.f32.mrb[3].mxu1  ;;  %8179 = vmatprep.subr.bf16.mxu1 %v12260_v56 }
 0x3e6   : > { %4313 = vmatmul.mubr.f32.gmra.mrb[66].mxu1 %v10642_v35 }
 0x3e7   : > { %2682 = vmatmul.mubr.f32.gmra.mrb[44].mxu0 %v1031_v31  ;;  %v4231_v31 = vld [vmem:[%s10544_s14 + $0x458] sm:$0xff] }
 0x3e8   : > { %2686 = vmatprep.mubr.f32.mxu0 %v10404_v13  ;;  %v4221_v13 = vld [vmem:[%s10544_s14 + $0x408] sm:$0xff]  ;;  %v10659_v41 = vpop.f32.mrb[4].mxu1 }
 0x3e9   : > { %v8320_v8 = vpack.c.bf16 %v4221_v13, %v4220_v32  ;;  %v10661_v55 = vpop.f32.mrb[5].mxu1  ;;  %v4234_v32 = vld [vmem:[%s10544_s14 + $0x470] sm:$0xff]  ;;  %v4235_v13 = vld [vmem:[%s10544_s14 + $0x478] sm:$0xff] }
 0x3ea   : > { %v8348_v4 = vpack.c.bf16 %v4235_v13, %v4234_v32  ;;  %v1057_v32 = vld [vmem:[#allocation2 + $0x2a0] sm:$0xff] }
 0x3eb   : > { %2687 = vmatmul.mubr.f32.gmra.mrb[46].mxu0 %v1032_v63  ;;  %8321 = vmatprep.subr.bf16.mxu0 %v8320_v8 }
 0x3ec   : > { %2691 = vmatprep.mubr.f32.mxu0 %v10410_v60  ;;  %v4222_v60 = vld [vmem:[%s10544_s14 + $0x410] sm:$0xff]  ;;  %8323 = vmatpush3.bf16.msra.mxu0 %v8320_v8 }
 0x3ed   : > { %v8324_v39 = vpack.c.bf16 %v4223_v42, %v4222_v60  ;;  %v4129_v60 = vld [vmem:[%s10544_s14 + $0x128] sm:$0xff] }
 0x3ef   : > { %2692 = vmatmul.mubr.f32.gmra.mrb[48].mxu0 %v1033_v52  ;;  %8325 = vmatprep.subr.bf16.mxu0 %v8324_v39  ;;  %v1104_v52 = vld [vmem:[#allocation2 + $0x1a1] sm:$0xff] }
 0x3f0   : > { %2696 = vmatprep.mubr.f32.mxu0 %v10417_v48  ;;  %v4224_v48 = vld [vmem:[%s10544_s14 + $0x420] sm:$0xff]  ;;  %8327 = vmatpush3.bf16.msra.mxu0 %v8324_v39  ;;  %v10669_v11 = vpop.f32.mrb[6].mxu1  ;;  %v1042_v39 = vld [vmem:[#allocation2 + $0x1e8] sm:$0xff] }
 0x3f1   : > { %v8328_v40 = vpack.c.bf16 %v4225_v20, %v4224_v48  ;;  %v1044_v20 = vld [vmem:[#allocation2 + $0x200] sm:$0xff] }
 0x3f3   : > { %2697 = vmatmul.mubr.f32.gmra.mrb[50].mxu0 %v1034_v34  ;;  %8329 = vmatprep.subr.bf16.mxu0 %v8328_v40  ;;  %v4128_v34 = vld [vmem:[%s10544_s14 + $0x120] sm:$0xff] }
 0x3f4   : > { %2701 = vmatprep.mubr.f32.mxu0 %v10423_v54  ;;  %8331 = vmatpush3.bf16.msra.mxu0 %v8328_v40  ;;  %v10671_v54 = vpop.f32.mrb[7].mxu1  ;;  %v8183_v42 = vpack.c.bf16 %v4129_v60, %v4128_v34  ;;  %v1045_v40 = vld [vmem:[#allocation2 + $0x210] sm:$0xff]  ;;  %v1059_v60 = vld [vmem:[#allocation2 + $0x2b8] sm:$0xff] }
 0x3f5   : > { %8333 = vmatprep.subr.bf16.mxu0 %v8332_v50 }
 0x3f7   : > { %2702 = vmatmul.mubr.f32.gmra.mrb[52].mxu0 %v1035_v3 }
 0x3f8   : > { %2706 = vmatprep.mubr.f32.mxu0 %v10431_v22  ;;  %v4127_v22 = vld [vmem:[%s10544_s14 + $0x118] sm:$0xff]  ;;  %8335 = vmatpush3.bf16.msra.mxu0 %v8332_v50  ;;  %v10682_v49 = vpop.f32.mrb[8].mxu1  ;;  %v8186_v50 = vpack.c.bf16 %v4131_v23, %v4130_v30  ;;  %v4138_v30 = vld [vmem:[%s10544_s14 + $0x170] sm:$0xff] }
 0x3f9   : > { %v8180_v57 = vpack.c.bf16 %v4127_v22, %v4126_v29  ;;  %8337 = vmatprep.subr.bf16.mxu0 %v8336_v53  ;;  %v10684_v63 = vpop.f32.mrb[9].mxu1  ;;  %v4132_v22 = vld [vmem:[%s10544_s14 + $0x140] sm:$0xff]  ;;  %v4139_v23 = vld [vmem:[%s10544_s14 + $0x178] sm:$0xff] }
 0x3fb   : > { %2707 = vmatmul.mubr.f32.gmra.mrb[54].mxu0 %v1036_v45  ;;  %8181 = vmatpush1.bf16.msra.mxu1 %v8180_v57 }
 0x3fc   : > { %2711 = vmatprep.mubr.f32.mxu0 %v10439_v9  ;;  %8339 = vmatpush3.bf16.msra.mxu0 %v8336_v53  ;;  %v8340_v9 = vpack.c.bf16 %v4231_v31, %v4230_v38  ;;  %v4133_v53 = vld [vmem:[%s10544_s14 + $0x148] sm:$0xff]  ;;  %v1052_v38 = vld [vmem:[#allocation2 + $0x260] sm:$0xff]  ;;  %v1053_v31 = vld [vmem:[#allocation2 + $0x270] sm:$0xff] }
 0x3fd   : > { %8182 = vmatprep.subr.bf16.mxu1 %v12260_v56  ;;  %v8189_v57 = vpack.c.bf16 %v4133_v53, %v4132_v22  ;;  %v1127_v22 = vld [vmem:[#allocation2 + $0x2e9] sm:$0xff] }
 0x3fe   : > { %8341 = vmatprep.subr.bf16.mxu0 %v8340_v9 }
 0x3ff   : > { %2712 = vmatmul.mubr.f32.gmra.mrb[56].mxu0 %v1037_v0  ;;  %8184 = vmatpush1.bf16.msra.mxu1 %v8183_v42 }
 0x400   : > { %2716 = vmatprep.mubr.f32.mxu0 %v10447_v19  ;;  %v4233_v19 = vld [vmem:[%s10544_s14 + $0x468] sm:$0xff]  ;;  %8343 = vmatpush3.bf16.msra.mxu0 %v8340_v9  ;;  %v10691_v5 = vpop.f32.mrb[10].mxu1  ;;  %v4134_v9 = vld [vmem:[%s10544_s14 + $0x150] sm:$0xff] }
 0x401   : > { %v8344_v24 = vpack.c.bf16 %v4233_v19, %v4232_v2  ;;  %v10694_v8 = vpop.f32.mrb[11].mxu1  ;;  %8185 = vmatprep.subr.bf16.mxu1 %v12260_v56  ;;  %v4135_v2 = vld [vmem:[%s10544_s14 + $0x158] sm:$0xff] }
 0x402   : > { %v8192_v19 = vpack.c.bf16 %v4135_v2, %v4134_v9  ;;  %v1128_v2 = vld [vmem:[#allocation2 + $0x2f1] sm:$0xff] }
 0x403   : > { %2717 = vmatmul.mubr.f32.gmra.mrb[58].mxu0 %v1038_v15  ;;  %8345 = vmatprep.subr.bf16.mxu0 %v8344_v24 }
 0x404   : > { %2721 = vmatprep.mubr.f32.mxu0 %v1103_v58  ;;  %8347 = vmatpush3.bf16.msra.mxu0 %v8344_v24  ;;  %v1056_v24 = vld [vmem:[#allocation2 + $0x290] sm:$0xff] }
 0x405   : > { %8349 = vmatprep.subr.bf16.mxu0 %v8348_v4  ;;  %8187 = vmatpush1.bf16.msra.mxu1 %v8186_v50 }
 0x406   : > { %8188 = vmatprep.subr.bf16.mxu1 %v12260_v56 }
 0x407   : > { %2722 = vmatmul.mubr.f32.gmra.mrb[60].mxu0 %v10642_v35 }
 0x408   : > { %2726 = vmatprep.mubr.f32.mxu0 %v1104_v52  ;;  %8351 = vmatpush3.bf16.msra.mxu0 %v8348_v4  ;;  %v10701_v3 = vpop.f32.mrb[12].mxu1  ;;  %v4136_v4 = vld [vmem:[%s10544_s14 + $0x160] sm:$0xff] }
 0x409   : > { %v10704_v48 = vpop.f32.mrb[13].mxu1  ;;  %8190 = vmatpush1.bf16.msra.mxu1 %v8189_v57 }
 0x40a   : > { %8191 = vmatprep.subr.bf16.mxu1 %v12260_v56 }
 0x40b   : > { %2727 = vmatmul.mubr.f32.gmra.mrb[62].mxu0 %v10642_v35 }
 0x40c   : > { %2731 = vmatprep.mubr.f32.mxu0 %v10456_v18  ;;  %v1043_v18 = vld [vmem:[#allocation2 + $0x1f8] sm:$0xff] }
 0x40d   : > { %8193 = vmatpush1.bf16.msra.mxu1 %v8192_v19 }
 0x40e   : > { %8194 = vmatprep.subr.bf16.mxu1 %v12260_v56 }
 0x40f   : > { %2732 = vmatmul.mubr.f32.gmra.mrb[64].mxu0 %v1041_v36  ;;  %v4137_v36 = vld [vmem:[%s10544_s14 + $0x168] sm:$0xff] }
 0x410   : > { %2736 = vmatprep.mubr.f32.mxu0 %v10460_v25  ;;  %v10707_v25 = vpop.f32.mrb[14].mxu1  ;;  %v8195_v34 = vpack.c.bf16 %v4137_v36, %v4136_v4  ;;  %v1129_v36 = vld [vmem:[#allocation2 + $0x301] sm:$0xff] }
 0x411   : > { %v10710_v45 = vpop.f32.mrb[15].mxu1 }
 0x412   : > { %8196 = vmatpush1.bf16.msra.mxu1 %v8195_v34 }
 0x413   : > { %2737 = vmatmul.mubr.f32.gmra.mrb[66].mxu0 %v1042_v39  ;;  %8197 = vmatprep.subr.bf16.mxu1 %v12260_v56  ;;  %v12287_v39 = vld [vmem:[#allocation12_spill] sm:$0xff] }
 0x414   : > { %2741 = vmatprep.mubr.f32.mxu0 %v10464_v10  ;;  %v1046_v10 = vld [vmem:[#allocation2 + $0x218] sm:$0xff] }
 0x417   : > { %2742 = vmatmul.mubr.f32.gmra.mrb[68].mxu0 %v1043_v18  ;;  %v1060_v18 = vld [vmem:[#allocation2 + $0x2c0] sm:$0xff] }
 0x418   : > { %2746 = vmatprep.mubr.f32.mxu0 %v10468_v16  ;;  %v10716_v16 = vpop.f32.mrb[16].mxu1 }
 0x419   : > { %v10719_v0 = vpop.f32.mrb[17].mxu1 }
 0x41b   : > { %2747 = vmatmul.mubr.f32.gmra.mrb[70].mxu0 %v1044_v20  ;;  %v1061_v20 = vld [vmem:[#allocation2 + $0x2d0] sm:$0xff] }
 0x41c   : > { %2751 = vmatprep.mubr.f32.mxu0 %v10472_v62  ;;  %v1047_v62 = vld [vmem:[#allocation2 + $0x228] sm:$0xff] }
 0x41f   : > { %2752 = vmatmul.mubr.f32.gmra.mrb[72].mxu0 %v1045_v40 }
 0x420   : > { %2756 = vmatprep.mubr.f32.mxu0 %v10476_v51  ;;  %v10722_v51 = vpop.f32.mrb[18].mxu1 }
 0x421   : > { %v10725_v29 = vpop.f32.mrb[19].mxu1 }
 0x423   : > { %2757 = vmatmul.mubr.f32.gmra.mrb[74].mxu0 %v1046_v10  ;;  %v8198_v10 = vpack.c.bf16 %v4139_v23, %v4138_v30  ;;  %v4140_v30 = vld [vmem:[%s10544_s14 + $0x180] sm:$0xff] }
 0x424   : > { %2761 = vmatprep.mubr.f32.mxu0 %v10480_v7  ;;  %v1050_v7 = vld [vmem:[#allocation2 + $0x248] sm:$0xff] }
 0x425   : > { %8199 = vmatpush1.bf16.msra.mxu1 %v8198_v10 }
 0x426   : > { %8200 = vmatprep.subr.bf16.mxu1 %v12260_v56 }
 0x427   : > { %2762 = vmatmul.mubr.f32.gmra.mrb[76].mxu0 %v1047_v62  ;;  %v10781_v62 = vld [vmem:[%s10774_s17] ss:$0 sm:$0xff] }
 0x428   : > { %2766 = vmatprep.mubr.f32.mxu0 %v10484_v43 }
 0x429   : > { %v10731_v43 = vpop.f32.mrb[20].mxu1 }
 0x42a   : > { %v10734_v15 = vpop.f32.mrb[21].mxu1 }
 0x42b   : > { %2767 = vmatmul.mubr.f32.gmra.mrb[78].mxu0 %v1048_v26  ;;  %v12289_v26 = vld [vmem:[#allocation5_spill] sm:$0xff] }
 0x42c   : > { %2771 = vmatprep.mubr.f32.mxu0 %v10488_v14  ;;  %v1051_v14 = vld [vmem:[#allocation2 + $0x258] sm:$0xff] }
 0x42f   : > { %2772 = vmatmul.mubr.f32.gmra.mrb[80].mxu0 %v1049_v28  ;;  %v1062_v28 = vld [vmem:[#allocation2 + $0x2d8] sm:$0xff] }
 0x430   : > { %2776 = vmatprep.mubr.f32.mxu0 %v10492_v47 }
 0x431   : > { %v10737_v47 = vpop.f32.mrb[22].mxu1 }
 0x432   : > { %v10740_v58 = vpop.f32.mrb[23].mxu1 }
 0x433   : > { %2777 = vmatmul.mubr.f32.gmra.mrb[82].mxu0 %v1050_v7 }
 0x434   : > { %2781 = vmatprep.mubr.f32.mxu0 %v10496_v21  ;;  %v1054_v21 = vld [vmem:[#allocation2 + $0x278] sm:$0xff] }
 0x437   : > { %2782 = vmatmul.mubr.f32.gmra.mrb[84].mxu0 %v1051_v14 }
 0x438   : > { %2786 = vmatprep.mubr.f32.mxu0 %v10500_v1  ;;  %v10746_v1 = vpop.f32.mrb[24].mxu1 }
 0x439   : > { %v10749_v52 = vpop.f32.mrb[25].mxu1 }
 0x43b   : > { %2787 = vmatmul.mubr.f32.gmra.mrb[86].mxu0 %v1052_v38  ;;  %v1063_v38 = vld [vmem:[#allocation2 + $0x2e8] sm:$0xff] }
 0x43c   : > { %2791 = vmatprep.mubr.f32.mxu0 %v10504_v27  ;;  %v1055_v27 = vld [vmem:[#allocation2 + $0x288] sm:$0xff] }
 0x43f   : > { %2792 = vmatmul.mubr.f32.gmra.mrb[88].mxu0 %v1053_v31 }
 0x440   : > { %2796 = vmatprep.mubr.f32.mxu0 %v10508_v12  ;;  %v10752_v12 = vpop.f32.mrb[26].mxu1 }
 0x441   : > { %v10755_v13 = vpop.f32.mrb[27].mxu1 }
 0x443   : > { %2797 = vmatmul.mubr.f32.gmra.mrb[90].mxu0 %v1054_v21 }
 0x444   : > { %2801 = vmatprep.mubr.f32.mxu0 %v10512_v37  ;;  %v1058_v37 = vld [vmem:[#allocation2 + $0x2a8] sm:$0xff] }
 0x447   : > { %2802 = vmatmul.mubr.f32.gmra.mrb[92].mxu0 %v1055_v27 }
 0x448   : > { %2806 = vmatprep.mubr.f32.mxu0 %v10516_v46  ;;  %v10761_v46 = vpop.f32.mrb[28].mxu1 }
 0x449   : > { %v10764_v42 = vpop.f32.mrb[29].mxu1 }
 0x44b   : > { %2807 = vmatmul.mubr.f32.gmra.mrb[94].mxu0 %v1056_v24 }
 0x44c   : > { %2811 = vmatprep.mubr.f32.mxu0 %v10520_v44  ;;  %v12286_v44 = vld [vmem:[#allocation11_spill] sm:$0xff] }
 0x44f   : > { %2812 = vmatmul.mubr.f32.gmra.mrb[96].mxu0 %v1057_v32  ;;  %v10768_v40 = vpop.f32.mrb[30].mxu1  ;;  %v1064_v32 = vld [vmem:[#allocation2 + $0x2f0] sm:$0xff] }
 0x450   : > { %2816 = vmatprep.mubr.f32.mxu0 %v10524_v59  ;;  %v12288_v59 = vld [vmem:[#allocation4_spill] sm:$0xff]  ;;  %v10778_v50 = vpop.f32.mrb[31].mxu1 }
 0x453   : > { %2817 = vmatmul.mubr.f32.gmra.mrb[98].mxu0 %v1058_v37 }
 0x454   : > { %2821 = vmatprep.mubr.f32.mxu0 %v12286_v44 }
 0x457   : > { %2822 = vmatmul.mubr.f32.gmra.mrb[100].mxu0 %v1059_v60  ;;  %v10786_v14 = vpop.f32.mrb[32].mxu1 }
 0x458   : > { %2826 = vmatprep.mubr.f32.mxu0 %v12287_v39  ;;  %v10788_v31 = vpop.f32.mrb[33].mxu1  ;;  %v1065_v39 = vld [vmem:[#allocation2 + $0x300] sm:$0xff] }
 0x45b   : > { %2827 = vmatmul.mubr.f32.gmra.mrb[102].mxu0 %v1060_v18  ;;  %v10795_v60 = vpop.f32.mrb[34].mxu1 }
 0x45c   : > { %2831 = vmatprep.mubr.f32.mxu0 %v12288_v59  ;;  %v10797_v18 = vpop.f32.mrb[35].mxu1 }
 0x45f   : > { %2832 = vmatmul.mubr.f32.gmra.mrb[104].mxu0 %v1061_v20  ;;  %v1130_v20 = vld [vmem:[#allocation2 + $0x309] sm:$0xff] }
 0x460   : > { %2836 = vmatprep.mubr.f32.mxu0 %v12289_v26 }
 0x462   : > { %v2573_v53 = vpop.f32.mrb[0].mxu0 }
 0x463   : > { %v8352_v57 = vadd.f32 %v10781_v62, %v2573_v53  ;;  %v2575_v7 = vpop.f32.mrb[1].mxu0  ;;  %2837 = vmatmul.mubr.f32.gmra.mrb[106].mxu0 %v1062_v28 }
 0x464   : > { %2841 = vmatprep.mubr.f32.mxu0 %v1127_v22  ;;  %v1066_v7 = vld [vmem:[#allocation2 + $0x308] sm:$0xff] }
 0x465   : > { %v2959_v9 = vadd.f32 %v8352_v57, %v10637_v33 }
 0x466   : > { %v2578_v19 = vpop.f32.mrb[2].mxu0 }
 0x467   : > { %v3277_v21 = vmax.f32 %v2959_v9, 0.0  ;;  %v8353_v27 = vadd.f32 %v10781_v62, %v2578_v19  ;;  %v2580_v24 = vpop.f32.mrb[3].mxu0  ;;  %2842 = vmatmul.mubr.f32.gmra.mrb[108].mxu0 %v1063_v38 }
 0x468   : > { %2846 = vmatprep.mubr.f32.mxu0 %v1128_v2 }
 0x469   : > { %3451 = vst.msk [vmem:[#allocation3 + $0x19] sm:$0xff] %vm3450_vm1, %v3277_v21  ;;  %v2964_v4 = vadd.f32 %v8353_v27, %v10633_v17  ;;  %v4141_v17 = vld [vmem:[%s10544_s14 + $0x188] sm:$0xff]  ;;  %v10808_v27 = vpop.f32.mrb[36].mxu1 }
 0x46a   : > { %v2583_v34 = vpop.f32.mrb[4].mxu0  ;;  %v8201_v10 = vpack.c.bf16 %v4141_v17, %v4140_v30  ;;  %v1068_v30 = vld [vmem:[#allocation2 + $0x320] sm:$0xff] }
 0x46b   : > { %v3278_v37 = vmax.f32 %v2964_v4, 0.0  ;;  %v8354_v33 = vadd.f32 %v10781_v62, %v2583_v34  ;;  %v2585_v44 = vpop.f32.mrb[5].mxu0  ;;  %2847 = vmatmul.mubr.f32.gmra.mrb[110].mxu0 %v1064_v32  ;;  %v1067_v4 = vld [vmem:[#allocation2 + $0x318] sm:$0xff]  ;;  %v1132_v34 = vld [vmem:[#allocation2 + $0x321] sm:$0xff] }
 0x46c   : > { %2851 = vmatprep.mubr.f32.mxu0 %v1129_v36  ;;  %8202 = vmatpush1.bf16.msra.mxu1 %v8201_v10  ;;  %v10810_v36 = vpop.f32.mrb[37].mxu1 }
 0x46d   : > { %3452 = vst.msk [vmem:[#allocation3 + $0x21] sm:$0xff] %vm3450_vm1, %v3278_v37  ;;  %v2969_v59 = vadd.f32 %v8354_v33, %v10647_v61  ;;  %v1131_v61 = vld [vmem:[#allocation2 + $0x319] sm:$0xff]  ;;  %8203 = vmatprep.subr.bf16.mxu1 %v12260_v56 }
 0x46e   : > { %v2588_v23 = vpop.f32.mrb[6].mxu0 }
 0x46f   : > { %v3279_v26 = vmax.f32 %v2969_v59, 0.0  ;;  %v8355_v28 = vadd.f32 %v10781_v62, %v2588_v23  ;;  %v2590_v22 = vpop.f32.mrb[7].mxu0  ;;  %2852 = vmatmul.mubr.f32.gmra.mrb[112].mxu0 %v1065_v39  ;;  %v1133_v23 = vld [vmem:[#allocation2 + $0x331] sm:$0xff] }
 0x470   : > { %v3581_v53 = vld [vmem:[#allocation3 + $0x19] sm:$0xff]  ;;  %2856 = vmatprep.mubr.f32.mxu0 %v1130_v20  ;;  %v10818_v22 = vpop.f32.mrb[38].mxu1 }
 0x471   : > { %v3517_v57 = vld [vmem:[#allocation3 + $0x18] sm:$0xff]  ;;  %3453 = vst.msk [vmem:[#allocation3 + $0x31] sm:$0xff] %vm3450_vm1, %v3279_v26  ;;  %v2974_v38 = vadd.f32 %v8355_v28, %v10645_v6  ;;  %4317 = vmatprep.mubr.f32.mxu1 %v3581_v53 }
 0x472   : > { %v2593_v9 = vpop.f32.mrb[8].mxu0  ;;  %4318 = vmatmul.mubr.f32.gmra.mrb[68].mxu1 %v3517_v57 }
 0x473   : > { %v3280_v2 = vmax.f32 %v2974_v38, 0.0  ;;  %v8356_v19 = vadd.f32 %v10781_v62, %v2593_v9  ;;  %v2595_v21 = vpop.f32.mrb[9].mxu0  ;;  %2857 = vmatmul.mubr.f32.gmra.mrb[114].mxu0 %v1066_v7  ;;  %v1069_v7 = vld [vmem:[#allocation2 + $0x330] sm:$0xff]  ;;  %v10820_v38 = vpop.f32.mrb[39].mxu1 }
 0x474   : > { %v3582_v24 = vld [vmem:[#allocation3 + $0x21] sm:$0xff]  ;;  %2861 = vmatprep.mubr.f32.mxu0 %v1131_v61  ;;  %v1134_v61 = vld [vmem:[#allocation2 + $0x339] sm:$0xff]  ;;  %v4142_v9 = vld [vmem:[%s10544_s14 + $0x190] sm:$0xff] }
 0x475   : > { %v3518_v32 = vld [vmem:[#allocation3 + $0x20] sm:$0xff]  ;;  %3454 = vst.msk [vmem:[#allocation3 + $0x39] sm:$0xff] %vm3450_vm1, %v3280_v2  ;;  %v2979_v6 = vadd.f32 %v8356_v19, %v10661_v55  ;;  %4322 = vmatprep.mubr.f32.mxu1 %v3582_v24  ;;  %v4143_v2 = vld [vmem:[%s10544_s14 + $0x198] sm:$0xff] }
 0x476   : > { %v2598_v37 = vpop.f32.mrb[10].mxu0  ;;  %4323 = vmatmul.mubr.f32.gmra.mrb[70].mxu1 %v3518_v32  ;;  %v8204_v21 = vpack.c.bf16 %v4143_v2, %v4142_v9 }
 0x477   : > { %v3281_v33 = vmax.f32 %v2979_v6, 0.0  ;;  %v8357_v44 = vadd.f32 %v10781_v62, %v2598_v37  ;;  %v2600_v39 = vpop.f32.mrb[11].mxu0  ;;  %2862 = vmatmul.mubr.f32.gmra.mrb[116].mxu0 %v1067_v4  ;;  %v1070_v37 = vld [vmem:[#allocation2 + $0x338] sm:$0xff] }
 0x478   : > { %v3583_v59 = vld [vmem:[#allocation3 + $0x31] sm:$0xff]  ;;  %2866 = vmatprep.mubr.f32.mxu0 %v1132_v34  ;;  %8205 = vmatpush1.bf16.msra.mxu1 %v8204_v21 }
 0x479   : > { %v3519_v20 = vld [vmem:[#allocation3 + $0x30] sm:$0xff]  ;;  %3455 = vst.msk [vmem:[#allocation3 + $0x49] sm:$0xff] %vm3450_vm1, %v3281_v33  ;;  %v2984_v17 = vadd.f32 %v8357_v44, %v10659_v41  ;;  %4327 = vmatprep.mubr.f32.mxu1 %v3583_v59  ;;  %8206 = vmatprep.subr.bf16.mxu1 %v12260_v56 }
 0x47a   : > { %v2603_v55 = vpop.f32.mrb[12].mxu0  ;;  %4328 = vmatmul.mubr.f32.gmra.mrb[72].mxu1 %v3519_v20  ;;  %v1135_v33 = vld [vmem:[#allocation2 + $0x349] sm:$0xff] }
 0x47b   : > { %v3282_v10 = vmax.f32 %v2984_v17, 0.0  ;;  %v8358_v26 = vadd.f32 %v10781_v62, %v2603_v55  ;;  %v2605_v28 = vpop.f32.mrb[13].mxu0  ;;  %2867 = vmatmul.mubr.f32.gmra.mrb[118].mxu0 %v1068_v30  ;;  %v10831_v30 = vpop.f32.mrb[40].mxu1 }
 0x47c   : > { %v3584_v53 = vld [vmem:[#allocation3 + $0x39] sm:$0xff]  ;;  %2871 = vmatprep.mubr.f32.mxu0 %v1133_v23  ;;  %v10833_v55 = vpop.f32.mrb[41].mxu1 }
 0x47d   : > { %v3520_v57 = vld [vmem:[#allocation3 + $0x38] sm:$0xff]  ;;  %3456 = vst.msk [vmem:[#allocation3 + $0x51] sm:$0xff] %vm3450_vm1, %v3282_v10  ;;  %v2989_v41 = vadd.f32 %v8358_v26, %v10671_v54  ;;  %4332 = vmatprep.mubr.f32.mxu1 %v3584_v53 }
 0x47e   : > { %v2608_v19 = vpop.f32.mrb[14].mxu0  ;;  %4333 = vmatmul.mubr.f32.gmra.mrb[74].mxu1 %v3520_v57  ;;  %v1136_v10 = vld [vmem:[#allocation2 + $0x351] sm:$0xff] }
 0x47f   : > { %v3283_v24 = vmax.f32 %v2989_v41, 0.0  ;;  %v8359_v32 = vadd.f32 %v10781_v62, %v2608_v19  ;;  %v2610_v4 = vpop.f32.mrb[15].mxu0  ;;  %2872 = vmatmul.mubr.f32.gmra.mrb[120].mxu0 %v1069_v7  ;;  %v4028_v21 = vld [vmem:[#allocation3 + $0x32] sm:$0xff] }
 0x480   : > { %v3585_v6 = vld [vmem:[#allocation3 + $0x49] sm:$0xff]  ;;  %2876 = vmatprep.mubr.f32.mxu0 %v1134_v61 }
 0x481   : > { %v3521_v34 = vld [vmem:[#allocation3 + $0x48] sm:$0xff]  ;;  %3457 = vst.msk [vmem:[#allocation3 + $0x61] sm:$0xff] %vm3450_vm1, %v3283_v24  ;;  %v2994_v54 = vadd.f32 %v8359_v32, %v10669_v11  ;;  %4337 = vmatprep.mubr.f32.mxu1 %v3585_v6  ;;  %v10843_v24 = vpop.f32.mrb[42].mxu1 }
 0x482   : > { %v2613_v44 = vpop.f32.mrb[16].mxu0  ;;  %4338 = vmatmul.mubr.f32.gmra.mrb[76].mxu1 %v3521_v34  ;;  %v10845_v6 = vpop.f32.mrb[43].mxu1  ;;  %v4144_v34 = vld [vmem:[%s10544_s14 + $0x1a0] sm:$0xff] }
 0x483   : > { %v3284_v39 = vmax.f32 %v2994_v54, 0.0  ;;  %v8360_v59 = vadd.f32 %v10781_v62, %v2613_v44  ;;  %v2615_v20 = vpop.f32.mrb[17].mxu0  ;;  %2877 = vmatmul.mubr.f32.gmra.mrb[122].mxu0 %v1070_v37  ;;  %v4145_v37 = vld [vmem:[%s10544_s14 + $0x1a8] sm:$0xff] }
 0x484   : > { %v3586_v17 = vld [vmem:[#allocation3 + $0x51] sm:$0xff]  ;;  %2881 = vmatprep.mubr.f32.mxu0 %v1135_v33  ;;  %v4029_v33 = vld [vmem:[#allocation3 + $0x3a] sm:$0xff]  ;;  %v8207_v44 = vpack.c.bf16 %v4145_v37, %v4144_v34 }
 0x485   : > { %v3522_v23 = vld [vmem:[#allocation3 + $0x50] sm:$0xff]  ;;  %3458 = vst.msk [vmem:[#allocation3 + $0x69] sm:$0xff] %vm3450_vm1, %v3284_v39  ;;  %v2999_v11 = vadd.f32 %v8360_v59, %v10684_v63  ;;  %4342 = vmatprep.mubr.f32.mxu1 %v3586_v17 }
 0x486   : > { %v2618_v26 = vpop.f32.mrb[18].mxu0  ;;  %4343 = vmatmul.mubr.f32.gmra.mrb[78].mxu1 %v3522_v23  ;;  %v4030_v20 = vld [vmem:[#allocation3 + $0x4a] sm:$0xff] }
 0x487   : > { %v3285_v28 = vmax.f32 %v2999_v11, 0.0  ;;  %v8361_v53 = vadd.f32 %v10781_v62, %v2618_v26  ;;  %v2620_v57 = vpop.f32.mrb[19].mxu0  ;;  %2882 = vmatmul.mubr.f32.gmra.mrb[124].mxu0 %v10642_v35  ;;  %8208 = vmatpush1.bf16.msra.mxu1 %v8207_v44 }
 0x488   : > { %v3587_v7 = vld [vmem:[#allocation3 + $0x61] sm:$0xff]  ;;  %2886 = vmatprep.mubr.f32.mxu0 %v1136_v10  ;;  %8209 = vmatprep.subr.bf16.mxu1 %v12260_v56  ;;  %v4031_v10 = vld [vmem:[#allocation3 + $0x52] sm:$0xff] }
 0x489   : > { %v3523_v41 = vld [vmem:[#allocation3 + $0x60] sm:$0xff]  ;;  %3459 = vst.msk [vmem:[#allocation3 + $0x79] sm:$0xff] %vm3450_vm1, %v3285_v28  ;;  %v3004_v61 = vadd.f32 %v8361_v53, %v10682_v49  ;;  %4347 = vmatprep.mubr.f32.mxu1 %v3587_v7  ;;  %v10856_v7 = vpop.f32.mrb[44].mxu1 }
 0x48a   : > { %v2623_v63 = vpop.f32.mrb[20].mxu0  ;;  %4348 = vmatmul.mubr.f32.gmra.mrb[80].mxu1 %v3523_v41 }
 0x48b   : > { %v3286_v9 = vmax.f32 %v3004_v61, 0.0  ;;  %v8362_v2 = vadd.f32 %v10781_v62, %v2623_v63  ;;  %v2625_v19 = vpop.f32.mrb[21].mxu0  ;;  %2887 = vmatmul.mubr.f32.gmra.mrb[126].mxu0 %v10642_v35  ;;  %v10858_v63 = vpop.f32.mrb[45].mxu1 }
 0x48c   : > { %7808 = vmatprep.mubr.f32.mxu0 %v4028_v21  ;;  %v3588_v32 = vld [vmem:[#allocation3 + $0x69] sm:$0xff] }
 0x48d   : > { %v3524_v4 = vld [vmem:[#allocation3 + $0x68] sm:$0xff]  ;;  %3460 = vst.msk [vmem:[#allocation3 + $0x81] sm:$0xff] %vm3450_vm1, %v3286_v9  ;;  %v3009_v49 = vadd.f32 %v8362_v2, %v10694_v8  ;;  %4352 = vmatprep.mubr.f32.mxu1 %v3588_v32 }
 0x48e   : > { %v2628_v54 = vpop.f32.mrb[22].mxu0  ;;  %4353 = vmatmul.mubr.f32.gmra.mrb[82].mxu1 %v3524_v4  ;;  %v4032_v57 = vld [vmem:[#allocation3 + $0x62] sm:$0xff]  ;;  %v4033_v2 = vld [vmem:[#allocation3 + $0x6a] sm:$0xff] }
 0x48f   : > { %v3287_v35 = vmax.f32 %v3009_v49, 0.0  ;;  %v8363_v39 = vadd.f32 %v10781_v62, %v2628_v54  ;;  %v2630_v59 = vpop.f32.mrb[23].mxu0  ;;  %7809 = vmatmul.mubr.f32.vlgmr.msra.gmra.mrb[128].mxu0 %v4029_v33  ;;  %v10865_v54 = vpop.f32.mrb[46].mxu1 }
 0x490   : > { %7811 = vmatprep.mubr.f32.mxu0 %v4030_v20  ;;  %v3589_v17 = vld [vmem:[#allocation3 + $0x79] sm:$0xff]  ;;  %v10867_v44 = vpop.f32.mrb[47].mxu1 }
 0x491   : > { %v3525_v23 = vld [vmem:[#allocation3 + $0x78] sm:$0xff]  ;;  %3461 = vst.msk [vmem:[#allocation3 + $0x91] sm:$0xff] %vm3450_vm1, %v3287_v35  ;;  %v3014_v8 = vadd.f32 %v8363_v39, %v10691_v5  ;;  %4357 = vmatprep.mubr.f32.mxu1 %v3589_v17 }
 0x492   : > { %v2633_v11 = vpop.f32.mrb[24].mxu0  ;;  %4358 = vmatmul.mubr.f32.gmra.mrb[84].mxu1 %v3525_v23 }
 0x493   : > { %v3288_v26 = vmax.f32 %v3014_v8, 0.0  ;;  %v8364_v28 = vadd.f32 %v10781_v62, %v2633_v11  ;;  %v2635_v53 = vpop.f32.mrb[25].mxu0  ;;  %7812 = vmatmul.mubr.f32.gmra.mrb[130].mxu0 %v4031_v10  ;;  %v10872_v8 = vpop.f32.mrb[48].mxu1 }
 0x494   : > { %7814 = vmatprep.mubr.f32.mxu0 %v4032_v57  ;;  %v3590_v41 = vld [vmem:[#allocation3 + $0x81] sm:$0xff] }
 0x495   : > { %v3526_v61 = vld [vmem:[#allocation3 + $0x80] sm:$0xff]  ;;  %3462 = vst.msk [vmem:[#allocation3 + $0x99] sm:$0xff] %vm3450_vm1, %v3288_v26  ;;  %v3019_v5 = vadd.f32 %v8364_v28, %v10704_v48  ;;  %4362 = vmatprep.mubr.f32.mxu1 %v3590_v41  ;;  %v10874_v26 = vpop.f32.mrb[49].mxu1 }
 0x496   : > { %v2638_v9 = vpop.f32.mrb[26].mxu0  ;;  %4363 = vmatmul.mubr.f32.gmra.mrb[86].mxu1 %v3526_v61  ;;  %v4034_v4 = vld [vmem:[#allocation3 + $0x7a] sm:$0xff]  ;;  %v4035_v33 = vld [vmem:[#allocation3 + $0x82] sm:$0xff] }
 0x497   : > { %v3289_v19 = vmax.f32 %v3019_v5, 0.0  ;;  %v8365_v21 = vadd.f32 %v10781_v62, %v2638_v9  ;;  %v2640_v32 = vpop.f32.mrb[27].mxu0  ;;  %7815 = vmatmul.mubr.f32.gmra.mrb[132].mxu0 %v4033_v2  ;;  %v4146_v5 = vld [vmem:[%s10544_s14 + $0x1b0] sm:$0xff]  ;;  %v4147_v9 = vld [vmem:[%s10544_s14 + $0x1b8] sm:$0xff]  ;;  %v10881_v2 = vpop.f32.mrb[50].mxu1 }
 0x498   : > { %7817 = vmatprep.mubr.f32.mxu0 %v4034_v4  ;;  %v3591_v49 = vld [vmem:[#allocation3 + $0x91] sm:$0xff]  ;;  %v10883_v32 = vpop.f32.mrb[51].mxu1 }
 0x499   : > { %v3527_v34 = vld [vmem:[#allocation3 + $0x90] sm:$0xff]  ;;  %3463 = vst.msk [vmem:[#allocation3 + $0xa9] sm:$0xff] %vm3450_vm1, %v3289_v19  ;;  %v3024_v37 = vadd.f32 %v8365_v21, %v10701_v3  ;;  %4367 = vmatprep.mubr.f32.mxu1 %v3591_v49  ;;  %v8210_v21 = vpack.c.bf16 %v4147_v9, %v4146_v5 }
 0x49a   : > { %v2643_v48 = vpop.f32.mrb[28].mxu0  ;;  %4368 = vmatmul.mubr.f32.gmra.mrb[88].mxu1 %v3527_v34 }
 0x49b   : > { %v3290_v35 = vmax.f32 %v3024_v37, 0.0  ;;  %v8366_v39 = vadd.f32 %v10781_v62, %v2643_v48  ;;  %v2645_v59 = vpop.f32.mrb[29].mxu0  ;;  %7818 = vmatmul.mubr.f32.gmra.mrb[134].mxu0 %v4035_v33  ;;  %8211 = vmatpush1.bf16.msra.mxu1 %v8210_v21 }
 0x49c   : > { %v3592_v20 = vld [vmem:[#allocation3 + $0x99] sm:$0xff]  ;;  %8212 = vmatprep.subr.bf16.mxu1 %v12260_v56 }
 0x49d   : > { %v4036_v17 = vld [vmem:[#allocation3 + $0x92] sm:$0xff]  ;;  %3464 = vst.msk [vmem:[#allocation3 + $0xb1] sm:$0xff] %vm3450_vm1, %v3290_v35  ;;  %v3029_v3 = vadd.f32 %v8366_v39, %v10710_v45  ;;  %4372 = vmatprep.mubr.f32.mxu1 %v3592_v20  ;;  %v4037_v10 = vld [vmem:[#allocation3 + $0x9a] sm:$0xff]  ;;  %v10888_v39 = vpop.f32.mrb[52].mxu1 }
 0x49e   : > { %v3528_v23 = vld [vmem:[#allocation3 + $0x98] sm:$0xff]  ;;  %7820 = vmatprep.mubr.f32.mxu0 %v4036_v17  ;;  %v2648_v11 = vpop.f32.mrb[30].mxu0  ;;  %v10890_v20 = vpop.f32.mrb[53].mxu1 }
 0x49f   : > { %4373 = vmatmul.mubr.f32.gmra.mrb[90].mxu1 %v3528_v23  ;;  %v3291_v28 = vmax.f32 %v3029_v3, 0.0  ;;  %v8367_v53 = vadd.f32 %v10781_v62, %v2648_v11  ;;  %v2650_v57 = vpop.f32.mrb[31].mxu0  ;;  %7821 = vmatmul.mubr.f32.gmra.mrb[136].mxu0 %v4037_v10 }
 0x4a0   : > { %v3593_v41 = vld [vmem:[#allocation3 + $0xa9] sm:$0xff] }
 0x4a1   : > { %v3529_v61 = vld [vmem:[#allocation3 + $0xa8] sm:$0xff]  ;;  %3465 = vst.msk [vmem:[#allocation3 + $0xc1] sm:$0xff] %vm3450_vm1, %v3291_v28  ;;  %v3034_v45 = vadd.f32 %v8367_v53, %v10707_v25  ;;  %4377 = vmatprep.mubr.f32.mxu1 %v3593_v41  ;;  %v10896_v28 = vpop.f32.mrb[54].mxu1 }
 0x4a2   : > { %v2653_v19 = vpop.f32.mrb[32].mxu0  ;;  %v10898_v57 = vpop.f32.mrb[55].mxu1 }
 0x4a3   : > { %4378 = vmatmul.mubr.f32.gmra.mrb[92].mxu1 %v3529_v61  ;;  %v3292_v4 = vmax.f32 %v3034_v45, 0.0  ;;  %v8368_v49 = vadd.f32 %v10781_v62, %v2653_v19  ;;  %v2655_v34 = vpop.f32.mrb[33].mxu0 }
 0x4a4   : > { %v3594_v37 = vld [vmem:[#allocation3 + $0xb1] sm:$0xff] }
 0x4a5   : > { %v4038_v48 = vld [vmem:[#allocation3 + $0xaa] sm:$0xff]  ;;  %3466 = vst.msk [vmem:[#allocation3 + $0xc9] sm:$0xff] %vm3450_vm1, %v3292_v4  ;;  %v3039_v25 = vadd.f32 %v8368_v49, %v10719_v0  ;;  %4382 = vmatprep.mubr.f32.mxu1 %v3594_v37  ;;  %v4039_v35 = vld [vmem:[#allocation3 + $0xb2] sm:$0xff]  ;;  %v10903_v4 = vpop.f32.mrb[56].mxu1 }
 0x4a6   : > { %v3530_v33 = vld [vmem:[#allocation3 + $0xb0] sm:$0xff]  ;;  %7823 = vmatprep.mubr.f32.mxu0 %v4038_v48  ;;  %v2658_v59 = vpop.f32.mrb[34].mxu0  ;;  %v10905_v34 = vpop.f32.mrb[57].mxu1 }
 0x4a7   : > { %4383 = vmatmul.mubr.f32.gmra.mrb[94].mxu1 %v3530_v33  ;;  %7824 = vmatmul.mubr.f32.gmra.mrb[138].mxu0 %v4039_v35  ;;  %v3293_v17 = vmax.f32 %v3039_v25, 0.0  ;;  %v8369_v23 = vadd.f32 %v10781_v62, %v2658_v59  ;;  %v2660_v3 = vpop.f32.mrb[35].mxu0  ;;  %v4148_v59 = vld [vmem:[%s10544_s14 + $0x1c0] sm:$0xff] }
 0x4a8   : > { %v3595_v11 = vld [vmem:[#allocation3 + $0xc1] sm:$0xff] }
 0x4a9   : > { %v3531_v10 = vld [vmem:[#allocation3 + $0xc0] sm:$0xff]  ;;  %3467 = vst.msk [vmem:[#allocation3 + $0xd9] sm:$0xff] %vm3450_vm1, %v3293_v17  ;;  %v3044_v0 = vadd.f32 %v8369_v23, %v10716_v16  ;;  %4387 = vmatprep.mubr.f32.mxu1 %v3595_v11  ;;  %v4149_v17 = vld [vmem:[%s10544_s14 + $0x1c8] sm:$0xff]  ;;  %v10912_v23 = vpop.f32.mrb[58].mxu1 }
 0x4aa   : > { %v2663_v53 = vpop.f32.mrb[36].mxu0  ;;  %v8213_v11 = vpack.c.bf16 %v4149_v17, %v4148_v59 }
 0x4ab   : > { %4388 = vmatmul.mubr.f32.gmra.mrb[96].mxu1 %v3531_v10  ;;  %v3294_v41 = vmax.f32 %v3044_v0, 0.0  ;;  %v8370_v61 = vadd.f32 %v10781_v62, %v2663_v53  ;;  %v2665_v45 = vpop.f32.mrb[37].mxu0  ;;  %v10914_v10 = vpop.f32.mrb[59].mxu1 }
 0x4ac   : > { %v3596_v5 = vld [vmem:[#allocation3 + $0xc9] sm:$0xff]  ;;  %8214 = vmatpush1.bf16.msra.mxu1 %v8213_v11 }
 0x4ad   : > { %v4040_v9 = vld [vmem:[#allocation3 + $0xc2] sm:$0xff]  ;;  %3468 = vst.msk [vmem:[#allocation3 + $0xe1] sm:$0xff] %vm3450_vm1, %v3294_v41  ;;  %v3049_v21 = vadd.f32 %v8370_v61, %v10725_v29  ;;  %4392 = vmatprep.mubr.f32.mxu1 %v3596_v5  ;;  %v4041_v16 = vld [vmem:[#allocation3 + $0xca] sm:$0xff]  ;;  %8215 = vmatprep.subr.bf16.mxu1 %v12260_v56 }
 0x4ae   : > { %v3532_v19 = vld [vmem:[#allocation3 + $0xc8] sm:$0xff]  ;;  %7826 = vmatprep.mubr.f32.mxu0 %v4040_v9  ;;  %v2668_v49 = vpop.f32.mrb[38].mxu0 }
 0x4af   : > { %4393 = vmatmul.mubr.f32.gmra.mrb[98].mxu1 %v3532_v19  ;;  %7827 = vmatmul.mubr.f32.gmra.mrb[140].mxu0 %v4041_v16  ;;  %v3295_v37 = vmax.f32 %v3049_v21, 0.0  ;;  %v8371_v48 = vadd.f32 %v10781_v62, %v2668_v49  ;;  %v2670_v33 = vpop.f32.mrb[39].mxu0  ;;  %v10919_v19 = vpop.f32.mrb[60].mxu1 }
 0x4b0   : > { %v3597_v25 = vld [vmem:[#allocation3 + $0xd9] sm:$0xff]  ;;  %v10921_v16 = vpop.f32.mrb[61].mxu1 }
 0x4b1   : > { %v3533_v35 = vld [vmem:[#allocation3 + $0xd8] sm:$0xff]  ;;  %3469 = vst.msk [vmem:[#allocation3 + $0xf1] sm:$0xff] %vm3450_vm1, %v3295_v37  ;;  %v3054_v29 = vadd.f32 %v8371_v48, %v10722_v51  ;;  %4397 = vmatprep.mubr.f32.mxu1 %v3597_v25 }
 0x4b2   : > { %v2673_v3 = vpop.f32.mrb[40].mxu0 }
 0x4b3   : > { %4398 = vmatmul.mubr.f32.gmra.mrb[100].mxu1 %v3533_v35  ;;  %v3296_v0 = vmax.f32 %v3054_v29, 0.0  ;;  %v8372_v53 = vadd.f32 %v10781_v62, %v2673_v3  ;;  %v2675_v41 = vpop.f32.mrb[41].mxu0  ;;  %v10927_v35 = vpop.f32.mrb[62].mxu1 }
 0x4b4   : > { %v3598_v61 = vld [vmem:[#allocation3 + $0xe1] sm:$0xff]  ;;  %v10929_v59 = vpop.f32.mrb[63].mxu1 }
 0x4b5   : > { %v4042_v45 = vld [vmem:[#allocation3 + $0xda] sm:$0xff]  ;;  %3470 = vst.msk [vmem:[#allocation3 + $0xf9] sm:$0xff] %vm3450_vm1, %v3296_v0  ;;  %v3059_v51 = vadd.f32 %v8372_v53, %v10734_v15  ;;  %4402 = vmatprep.mubr.f32.mxu1 %v3598_v61  ;;  %v4043_v9 = vld [vmem:[#allocation3 + $0xe2] sm:$0xff] }
 0x4b6   : > { %v3534_v5 = vld [vmem:[#allocation3 + $0xe0] sm:$0xff]  ;;  %7829 = vmatprep.mubr.f32.mxu0 %v4042_v45  ;;  %v2678_v21 = vpop.f32.mrb[42].mxu0 }
 0x4b7   : > { %4403 = vmatmul.mubr.f32.gmra.mrb[102].mxu1 %v3534_v5  ;;  %7830 = vmatmul.mubr.f32.gmra.mrb[142].mxu0 %v4043_v9  ;;  %v3297_v49 = vmax.f32 %v3059_v51, 0.0  ;;  %v8373_v37 = vadd.f32 %v10781_v62, %v2678_v21  ;;  %v2680_v48 = vpop.f32.mrb[43].mxu0 }
 0x4b8   : > { %v3599_v33 = vld [vmem:[#allocation3 + $0xf1] sm:$0xff] }
 0x4b9   : > { %v3535_v25 = vld [vmem:[#allocation3 + $0xf0] sm:$0xff]  ;;  %3471 = vst.msk [vmem:[#allocation3 + $0x109] sm:$0xff] %vm3450_vm1, %v3297_v49  ;;  %v3064_v15 = vadd.f32 %v8373_v37, %v10731_v43  ;;  %4407 = vmatprep.mubr.f32.mxu1 %v3599_v33 }
 0x4ba   : > { %v2683_v29 = vpop.f32.mrb[44].mxu0  ;;  %v4150_v48 = vld [vmem:[%s10544_s14 + $0x1d0] sm:$0xff] }
 0x4bb   : > { %4408 = vmatmul.mubr.f32.gmra.mrb[104].mxu1 %v3535_v25  ;;  %v3298_v17 = vmax.f32 %v3064_v15, 0.0  ;;  %v8374_v3 = vadd.f32 %v10781_v62, %v2683_v29  ;;  %v2685_v11 = vpop.f32.mrb[45].mxu0 }
 0x4bc   : > { %v3600_v0 = vld [vmem:[#allocation3 + $0xf9] sm:$0xff] }
 0x4bd   : > { %v4044_v53 = vld [vmem:[#allocation3 + $0xf2] sm:$0xff]  ;;  %3472 = vst.msk [vmem:[#allocation3 + $0x111] sm:$0xff] %vm3450_vm1, %v3298_v17  ;;  %v3069_v61 = vadd.f32 %v8374_v3, %v10740_v58  ;;  %4412 = vmatprep.mubr.f32.mxu1 %v3600_v0  ;;  %v4045_v43 = vld [vmem:[#allocation3 + $0xfa] sm:$0xff] }
 0x4be   : > { %v3536_v41 = vld [vmem:[#allocation3 + $0xf8] sm:$0xff]  ;;  %7832 = vmatprep.mubr.f32.mxu0 %v4044_v53  ;;  %v2688_v45 = vpop.f32.mrb[46].mxu0 }
 0x4bf   : > { %4413 = vmatmul.mubr.f32.gmra.mrb[106].mxu1 %v3536_v41  ;;  %7833 = vmatmul.mubr.f32.gmra.mrb[144].mxu0 %v4045_v43  ;;  %v3299_v5 = vmax.f32 %v3069_v61, 0.0  ;;  %v8375_v51 = vadd.f32 %v10781_v62, %v2688_v45  ;;  %v2690_v9 = vpop.f32.mrb[47].mxu0  ;;  %v4151_v58 = vld [vmem:[%s10544_s14 + $0x1d8] sm:$0xff] }
 0x4c0   : > { %v3601_v21 = vld [vmem:[#allocation3 + $0x109] sm:$0xff]  ;;  %v8216_v25 = vpack.c.bf16 %v4151_v58, %v4150_v48 }
 0x4c1   : > { %v3537_v49 = vld [vmem:[#allocation3 + $0x108] sm:$0xff]  ;;  %3473 = vst.msk [vmem:[#allocation3 + $0x121] sm:$0xff] %vm3450_vm1, %v3299_v5  ;;  %v3074_v37 = vadd.f32 %v8375_v51, %v10737_v47  ;;  %4417 = vmatprep.mubr.f32.mxu1 %v3601_v21 }
 0x4c2   : > { %v2693_v33 = vpop.f32.mrb[48].mxu0  ;;  %8217 = vmatpush1.bf16.msra.mxu1 %v8216_v25 }
 0x4c3   : > { %4418 = vmatmul.mubr.f32.gmra.mrb[108].mxu1 %v3537_v49  ;;  %v3300_v15 = vmax.f32 %v3074_v37, 0.0  ;;  %v8376_v29 = vadd.f32 %v10781_v62, %v2693_v33  ;;  %v2695_v17 = vpop.f32.mrb[49].mxu0  ;;  %8218 = vmatprep.subr.bf16.mxu1 %v12260_v56 }
 0x4c4   : > { %v3602_v3 = vld [vmem:[#allocation3 + $0x111] sm:$0xff] }
 0x4c5   : > { %v4046_v11 = vld [vmem:[#allocation3 + $0x10a] sm:$0xff]  ;;  %3474 = vst.msk [vmem:[#allocation3 + $0x129] sm:$0xff] %vm3450_vm1, %v3300_v15  ;;  %v3079_v53 = vadd.f32 %v8376_v29, %v10749_v52  ;;  %4422 = vmatprep.mubr.f32.mxu1 %v3602_v3  ;;  %v4047_v47 = vld [vmem:[#allocation3 + $0x112] sm:$0xff] }
 0x4c6   : > { %v3538_v0 = vld [vmem:[#allocation3 + $0x110] sm:$0xff]  ;;  %7835 = vmatprep.mubr.f32.mxu0 %v4046_v11  ;;  %v2698_v41 = vpop.f32.mrb[50].mxu0 }
 0x4c7   : > { %4423 = vmatmul.mubr.f32.gmra.mrb[110].mxu1 %v3538_v0  ;;  %7836 = vmatmul.mubr.f32.gmra.mrb[146].mxu0 %v4047_v47  ;;  %v3301_v61 = vmax.f32 %v3079_v53, 0.0  ;;  %v8377_v43 = vadd.f32 %v10781_v62, %v2698_v41  ;;  %v2700_v45 = vpop.f32.mrb[51].mxu0  ;;  %v4152_v47 = vld [vmem:[%s10544_s14 + $0x1e0] sm:$0xff] }
 0x4c8   : > { %v3603_v5 = vld [vmem:[#allocation3 + $0x121] sm:$0xff] }
 0x4c9   : > { %v3539_v51 = vld [vmem:[#allocation3 + $0x120] sm:$0xff]  ;;  %3475 = vst.msk [vmem:[#allocation3 + $0x139] sm:$0xff] %vm3450_vm1, %v3301_v61  ;;  %v3084_v9 = vadd.f32 %v8377_v43, %v10746_v1  ;;  %4427 = vmatprep.mubr.f32.mxu1 %v3603_v5 }
 0x4ca   : > { %v2703_v52 = vpop.f32.mrb[52].mxu0 }
 0x4cb   : > { %4428 = vmatmul.mubr.f32.gmra.mrb[112].mxu1 %v3539_v51  ;;  %v3302_v21 = vmax.f32 %v3084_v9, 0.0  ;;  %v8378_v49 = vadd.f32 %v10781_v62, %v2703_v52  ;;  %v2705_v37 = vpop.f32.mrb[53].mxu0 }
 0x4cc   : > { %v3604_v48 = vld [vmem:[#allocation3 + $0x129] sm:$0xff] }
 0x4cd   : > { %v4048_v58 = vld [vmem:[#allocation3 + $0x122] sm:$0xff]  ;;  %3476 = vst.msk [vmem:[#allocation3 + $0x141] sm:$0xff] %vm3450_vm1, %v3302_v21  ;;  %v3089_v25 = vadd.f32 %v8378_v49, %v10755_v13  ;;  %4432 = vmatprep.mubr.f32.mxu1 %v3604_v48  ;;  %v4049_v15 = vld [vmem:[#allocation3 + $0x12a] sm:$0xff] }
 0x4ce   : > { %v3540_v33 = vld [vmem:[#allocation3 + $0x128] sm:$0xff]  ;;  %7838 = vmatprep.mubr.f32.mxu0 %v4048_v58  ;;  %v2708_v1 = vpop.f32.mrb[54].mxu0 }
 0x4cf   : > { %4433 = vmatmul.mubr.f32.gmra.mrb[114].mxu1 %v3540_v33  ;;  %7839 = vmatmul.mubr.f32.gmra.mrb[148].mxu0 %v4049_v15  ;;  %v3303_v29 = vmax.f32 %v3089_v25, 0.0  ;;  %v8379_v17 = vadd.f32 %v10781_v62, %v2708_v1  ;;  %v2710_v3 = vpop.f32.mrb[55].mxu0  ;;  %v4153_v13 = vld [vmem:[%s10544_s14 + $0x1e8] sm:$0xff] }
 0x4d0   : > { %v3605_v11 = vld [vmem:[#allocation3 + $0x139] sm:$0xff]  ;;  %v8219_v61 = vpack.c.bf16 %v4153_v13, %v4152_v47 }
 0x4d1   : > { %v3541_v0 = vld [vmem:[#allocation3 + $0x138] sm:$0xff]  ;;  %3477 = vst.msk [vmem:[#allocation3 + $0x151] sm:$0xff] %vm3450_vm1, %v3303_v29  ;;  %v3094_v53 = vadd.f32 %v8379_v17, %v10752_v12  ;;  %4437 = vmatprep.mubr.f32.mxu1 %v3605_v11 }
 0x4d2   : > { %v2713_v41 = vpop.f32.mrb[56].mxu0  ;;  %8220 = vmatpush1.bf16.msra.mxu1 %v8219_v61 }
 0x4d3   : > { %4438 = vmatmul.mubr.f32.gmra.mrb[116].mxu1 %v3541_v0  ;;  %v3304_v43 = vmax.f32 %v3094_v53, 0.0  ;;  %v8380_v45 = vadd.f32 %v10781_v62, %v2713_v41  ;;  %v2715_v5 = vpop.f32.mrb[57].mxu0  ;;  %8221 = vmatprep.subr.bf16.mxu1 %v12260_v56 }
 0x4d4   : > { %v3606_v51 = vld [vmem:[#allocation3 + $0x141] sm:$0xff] }
 0x4d5   : > { %v4050_v9 = vld [vmem:[#allocation3 + $0x13a] sm:$0xff]  ;;  %3478 = vst.msk [vmem:[#allocation3 + $0x159] sm:$0xff] %vm3450_vm1, %v3304_v43  ;;  %v3099_v21 = vadd.f32 %v8380_v45, %v10764_v42  ;;  %4442 = vmatprep.mubr.f32.mxu1 %v3606_v51  ;;  %v4051_v12 = vld [vmem:[#allocation3 + $0x142] sm:$0xff]  ;;  %v4154_v51 = vld [vmem:[%s10544_s14 + $0x1f0] sm:$0xff] }
 0x4d6   : > { %v3542_v52 = vld [vmem:[#allocation3 + $0x140] sm:$0xff]  ;;  %7841 = vmatprep.mubr.f32.mxu0 %v4050_v9  ;;  %v2718_v49 = vpop.f32.mrb[58].mxu0 }
 0x4d7   : > { %4443 = vmatmul.mubr.f32.gmra.mrb[118].mxu1 %v3542_v52  ;;  %7842 = vmatmul.mubr.f32.gmra.mrb[150].mxu0 %v4051_v12  ;;  %v3305_v37 = vmax.f32 %v3099_v21, 0.0  ;;  %v8381_v48 = vadd.f32 %v10781_v62, %v2718_v49  ;;  %v2720_v58 = vpop.f32.mrb[59].mxu0 }
 0x4d8   : > { %v3607_v33 = vld [vmem:[#allocation3 + $0x151] sm:$0xff] }
 0x4d9   : > { %v3543_v25 = vld [vmem:[#allocation3 + $0x150] sm:$0xff]  ;;  %3479 = vst.msk [vmem:[#allocation3 + $0x169] sm:$0xff] %vm3450_vm1, %v3305_v37  ;;  %v3104_v15 = vadd.f32 %v8381_v48, %v10761_v46  ;;  %4447 = vmatprep.mubr.f32.mxu1 %v3607_v33 }
 0x4da   : > { %v2723_v42 = vpop.f32.mrb[60].mxu0  ;;  %v3611_v37 = vld [vmem:[#allocation3 + $0x1b1] sm:$0xff] }
 0x4db   : > { %4448 = vmatmul.mubr.f32.gmra.mrb[120].mxu1 %v3543_v25  ;;  %v3306_v1 = vmax.f32 %v3104_v15, 0.0  ;;  %v8382_v29 = vadd.f32 %v10781_v62, %v2723_v42  ;;  %v2725_v17 = vpop.f32.mrb[61].mxu0 }
 0x4dc   : > { %v3608_v3 = vld [vmem:[#allocation3 + $0x159] sm:$0xff] }
 0x4dd   : > { %v4052_v11 = vld [vmem:[#allocation3 + $0x152] sm:$0xff]  ;;  %3480 = vst.msk [vmem:[#allocation3 + $0x171] sm:$0xff] %vm3450_vm1, %v3306_v1  ;;  %v3109_v53 = vadd.f32 %v8382_v29, %v10778_v50  ;;  %4452 = vmatprep.mubr.f32.mxu1 %v3608_v3  ;;  %v4053_v47 = vld [vmem:[#allocation3 + $0x15a] sm:$0xff] }
 0x4de   : > { %v3544_v0 = vld [vmem:[#allocation3 + $0x158] sm:$0xff]  ;;  %7844 = vmatprep.mubr.f32.mxu0 %v4052_v11  ;;  %v2728_v46 = vpop.f32.mrb[62].mxu0 }
 0x4df   : > { %4453 = vmatmul.mubr.f32.gmra.mrb[122].mxu1 %v3544_v0  ;;  %7845 = vmatmul.mubr.f32.gmra.mrb[152].mxu0 %v4053_v47  ;;  %v3307_v13 = vmax.f32 %v3109_v53, 0.0  ;;  %v8383_v41 = vadd.f32 %v10781_v62, %v2728_v46  ;;  %v2730_v61 = vpop.f32.mrb[63].mxu0  ;;  %v4155_v50 = vld [vmem:[%s10544_s14 + $0x1f8] sm:$0xff] }
 0x4e0   : > { %v3609_v43 = vld [vmem:[#allocation3 + $0x169] sm:$0xff]  ;;  %v8222_v52 = vpack.c.bf16 %v4155_v50, %v4154_v51  ;;  %v3612_v17 = vld [vmem:[#allocation3 + $0x1b9] sm:$0xff] }
 0x4e1   : > { %v3545_v45 = vld [vmem:[#allocation3 + $0x168] sm:$0xff]  ;;  %3481 = vst.msk [vmem:[#allocation3 + $0x181] sm:$0xff] %vm3450_vm1, %v3307_v13  ;;  %v3114_v5 = vadd.f32 %v8383_v41, %v10768_v40  ;;  %4457 = vmatprep.mubr.f32.mxu1 %v3609_v43  ;;  %v4058_v41 = vld [vmem:[#allocation3 + $0x19a] sm:$0xff] }
 0x4e2   : > { %v2733_v9 = vpop.f32.mrb[64].mxu0  ;;  %8223 = vmatpush1.bf16.msra.mxu1 %v8222_v52 }
 0x4e3   : > { %4458 = vmatmul.mubr.f32.gmra.mrb[124].mxu1 %v3545_v45  ;;  %v3308_v21 = vmax.f32 %v3114_v5, 0.0  ;;  %v8384_v12 = vadd.f32 %v10781_v62, %v2733_v9  ;;  %v2735_v49 = vpop.f32.mrb[65].mxu0  ;;  %8224 = vmatprep.subr.bf16.mxu1 %v12260_v56  ;;  %v10980_v45 = vld [vmem:[%s10774_s17] ss:$0 sm:$0xff] }
 0x4e4   : > { %v3610_v48 = vld [vmem:[#allocation3 + $0x171] sm:$0xff] }
 0x4e5   : > { %v4054_v58 = vld [vmem:[#allocation3 + $0x16a] sm:$0xff]  ;;  %3482 = vst.msk [vmem:[#allocation3 + $0x189] sm:$0xff] %vm3450_vm1, %v3308_v21  ;;  %v3119_v25 = vadd.f32 %v8384_v12, %v10788_v31  ;;  %4462 = vmatprep.mubr.f32.mxu1 %v3610_v48  ;;  %v4055_v40 = vld [vmem:[#allocation3 + $0x172] sm:$0xff]  ;;  %v9263_v31 = vld [vmem:[#allocation2] sm:$0xff] }
 0x4e6   : > { %v3546_v33 = vld [vmem:[#allocation3 + $0x170] sm:$0xff]  ;;  %7847 = vmatprep.mubr.f32.mxu0 %v4054_v58  ;;  %v2738_v15 = vpop.f32.mrb[66].mxu0 }
 0x4e7   : > { %4463 = vmatmul.mubr.f32.gmra.mrb[126].mxu1 %v3546_v33  ;;  %7848 = vmatmul.mubr.f32.gmra.mrb[154].mxu0 %v4055_v40  ;;  %v3309_v42 = vmax.f32 %v3119_v25, 0.0  ;;  %v8385_v1 = vadd.f32 %v10781_v62, %v2738_v15  ;;  %v2740_v29 = vpop.f32.mrb[67].mxu0 }
 0x4e8   : > { %4467 = vmatprep.mubr.f32.mxu1 %v3611_v37 }
 0x4e9   : > { %3483 = vst.msk [vmem:[#allocation3 + $0x1c9] sm:$0xff] %vm3450_vm1, %v3309_v42  ;;  %v3124_v3 = vadd.f32 %v8385_v1, %v10786_v14 }
 0x4ea   : > { %v2743_v11 = vpop.f32.mrb[68].mxu0 }
 0x4eb   : > { %4468 = vmatmul.mubr.f32.gmra.mrb[128].mxu1 %v9263_v31  ;;  %v3310_v0 = vmax.f32 %v3124_v3, 0.0  ;;  %v8386_v53 = vadd.f32 %v10781_v62, %v2743_v11  ;;  %v2745_v47 = vpop.f32.mrb[69].mxu0  ;;  %v4059_v62 = vld [vmem:[#allocation3 + $0x1a2] sm:$0xff] }
 0x4ec   : > { %4472 = vmatprep.mubr.f32.mxu1 %v3612_v17  ;;  %v4056_v46 = vld [vmem:[#allocation3 + $0x182] sm:$0xff]  ;;  %v4057_v13 = vld [vmem:[#allocation3 + $0x18a] sm:$0xff] }
 0x4ed   : > { %3484 = vst.msk [vmem:[#allocation3 + $0x1d1] sm:$0xff] %vm3450_vm1, %v3310_v0  ;;  %v3129_v61 = vadd.f32 %v8386_v53, %v10797_v18  ;;  %7850 = vmatprep.mubr.f32.mxu0 %v4056_v46 }
 0x4ee   : > { %v2748_v43 = vpop.f32.mrb[70].mxu0  ;;  %7851 = vmatmul.mubr.f32.gmra.mrb[156].mxu0 %v4057_v13 }
 0x4ef   : > { %4473 = vmatmul.mubr.f32.gmra.mrb[130].mxu1 %v9263_v31  ;;  %v3311_v14 = vmax.f32 %v3129_v61, 0.0  ;;  %v8387_v5 = vadd.f32 %v10980_v45, %v2748_v43  ;;  %v2750_v51 = vpop.f32.mrb[71].mxu0  ;;  %7853 = vmatprep.mubr.f32.mxu0 %v4058_v41 }
 0x4f0   : > { %v3613_v50 = vld [vmem:[#allocation3 + $0x1c9] sm:$0xff] }
 0x4f1   : > { %v3549_v9 = vld [vmem:[#allocation3 + $0x1c8] sm:$0xff]  ;;  %3485 = vst.msk [vmem:[#allocation3 + $0x1e1] sm:$0xff] %vm3450_vm1, %v3311_v14  ;;  %v3134_v52 = vadd.f32 %v8387_v5, %v10795_v60  ;;  %4477 = vmatprep.mubr.f32.mxu1 %v3613_v50 }
 0x4f2   : > { %v2753_v18 = vpop.f32.mrb[72].mxu0  ;;  %7854 = vmatmul.mubr.f32.gmra.mrb[158].mxu0 %v4059_v62 }
 0x4f3   : > { %4478 = vmatmul.mubr.f32.gmra.mrb[132].mxu1 %v3549_v9  ;;  %v3312_v21 = vmax.f32 %v3134_v52, 0.0  ;;  %v8388_v12 = vadd.f32 %v10980_v45, %v2753_v18  ;;  %v2755_v49 = vpop.f32.mrb[73].mxu0 }
 0x4f4   : > { %v3614_v37 = vld [vmem:[#allocation3 + $0x1d1] sm:$0xff] }
 0x4f5   : > { %v3550_v48 = vld [vmem:[#allocation3 + $0x1d0] sm:$0xff]  ;;  %3486 = vst.msk [vmem:[#allocation3 + $0x1e9] sm:$0xff] %vm3450_vm1, %v3312_v21  ;;  %v3139_v58 = vadd.f32 %v8388_v12, %v10810_v36  ;;  %4482 = vmatprep.mubr.f32.mxu1 %v3614_v37 }
 0x4f6   : > { %v2758_v33 = vpop.f32.mrb[74].mxu0 }
 0x4f7   : > { %4483 = vmatmul.mubr.f32.gmra.mrb[134].mxu1 %v3550_v48  ;;  %v3313_v25 = vmax.f32 %v3139_v58, 0.0  ;;  %v8389_v60 = vadd.f32 %v10980_v45, %v2758_v33  ;;  %v2760_v40 = vpop.f32.mrb[75].mxu0 }
 0x4f8   : > { %v3615_v15 = vld [vmem:[#allocation3 + $0x1e1] sm:$0xff] }
 0x4f9   : > { %v3551_v42 = vld [vmem:[#allocation3 + $0x1e0] sm:$0xff]  ;;  %3487 = vst.msk [vmem:[#allocation3 + $0x1f9] sm:$0xff] %vm3450_vm1, %v3313_v25  ;;  %v3144_v1 = vadd.f32 %v8389_v60, %v10808_v27  ;;  %4487 = vmatprep.mubr.f32.mxu1 %v3615_v15 }
 0x4fa   : > { %v2763_v29 = vpop.f32.mrb[76].mxu0 }
 0x4fb   : > { %4488 = vmatmul.mubr.f32.gmra.mrb[136].mxu1 %v3551_v42  ;;  %v3314_v17 = vmax.f32 %v3144_v1, 0.0  ;;  %v8390_v3 = vadd.f32 %v10980_v45, %v2763_v29  ;;  %v2765_v36 = vpop.f32.mrb[77].mxu0 }
 0x4fc   : > { %v3616_v11 = vld [vmem:[#allocation3 + $0x1e9] sm:$0xff] }
 0x4fd   : > { %v4060_v31 = vld [vmem:[#allocation3 + $0x1e2] sm:$0xff]  ;;  %3488 = vst.msk [vmem:[#allocation3 + $0x201] sm:$0xff] %vm3450_vm1, %v3314_v17  ;;  %v3149_v53 = vadd.f32 %v8390_v3, %v10820_v38  ;;  %4492 = vmatprep.mubr.f32.mxu1 %v3616_v11  ;;  %v4061_v47 = vld [vmem:[#allocation3 + $0x1ea] sm:$0xff] }
 0x4fe   : > { %v3552_v0 = vld [vmem:[#allocation3 + $0x1e8] sm:$0xff]  ;;  %7856 = vmatprep.mubr.f32.mxu0 %v4060_v31  ;;  %v2768_v46 = vpop.f32.mrb[78].mxu0 }
 0x4ff   : > { %4493 = vmatmul.mubr.f32.gmra.mrb[138].mxu1 %v3552_v0  ;;  %7857 = vmatmul.mubr.f32.gmra.mrb[160].mxu0 %v4061_v47  ;;  %v3315_v27 = vmax.f32 %v3149_v53, 0.0  ;;  %v8391_v13 = vadd.f32 %v10980_v45, %v2768_v46  ;;  %v2770_v41 = vpop.f32.mrb[79].mxu0 }
 0x500   : > { %v3617_v61 = vld [vmem:[#allocation3 + $0x1f9] sm:$0xff] }
 0x501   : > { %v3553_v43 = vld [vmem:[#allocation3 + $0x1f8] sm:$0xff]  ;;  %3489 = vst.msk [vmem:[#allocation3 + $0x211] sm:$0xff] %vm3450_vm1, %v3315_v27  ;;  %v3154_v14 = vadd.f32 %v8391_v13, %v10818_v22  ;;  %4497 = vmatprep.mubr.f32.mxu1 %v3617_v61 }
 0x502   : > { %v2773_v5 = vpop.f32.mrb[80].mxu0 }
 0x503   : > { %4498 = vmatmul.mubr.f32.gmra.mrb[140].mxu1 %v3553_v43  ;;  %v3316_v38 = vmax.f32 %v3154_v14, 0.0  ;;  %v8392_v51 = vadd.f32 %v10980_v45, %v2773_v5  ;;  %v2775_v62 = vpop.f32.mrb[81].mxu0 }
 0x504   : > { %v3618_v50 = vld [vmem:[#allocation3 + $0x201] sm:$0xff] }
 0x505   : > { %v4062_v9 = vld [vmem:[#allocation3 + $0x1fa] sm:$0xff]  ;;  %3490 = vst.msk [vmem:[#allocation3 + $0x219] sm:$0xff] %vm3450_vm1, %v3316_v38  ;;  %v3159_v18 = vadd.f32 %v8392_v51, %v10833_v55  ;;  %4502 = vmatprep.mubr.f32.mxu1 %v3618_v50  ;;  %v4063_v21 = vld [vmem:[#allocation3 + $0x202] sm:$0xff] }
 0x506   : > { %v3554_v52 = vld [vmem:[#allocation3 + $0x200] sm:$0xff]  ;;  %7859 = vmatprep.mubr.f32.mxu0 %v4062_v9  ;;  %v2778_v12 = vpop.f32.mrb[82].mxu0 }
 0x507   : > { %4503 = vmatmul.mubr.f32.gmra.mrb[142].mxu1 %v3554_v52  ;;  %7860 = vmatmul.mubr.f32.gmra.mrb[162].mxu0 %v4063_v21  ;;  %v3317_v22 = vmax.f32 %v3159_v18, 0.0  ;;  %v8393_v49 = vadd.f32 %v10980_v45, %v2778_v12  ;;  %v2780_v37 = vpop.f32.mrb[83].mxu0 }
 0x508   : > { %v3619_v48 = vld [vmem:[#allocation3 + $0x211] sm:$0xff] }
 0x509   : > { %v3555_v58 = vld [vmem:[#allocation3 + $0x210] sm:$0xff]  ;;  %3491 = vst.msk [vmem:[#allocation3 + $0x229] sm:$0xff] %vm3450_vm1, %v3317_v22  ;;  %v3164_v33 = vadd.f32 %v8393_v49, %v10831_v30  ;;  %4507 = vmatprep.mubr.f32.mxu1 %v3619_v48 }
 0x50a   : > { %v2783_v25 = vpop.f32.mrb[84].mxu0 }
 0x50b   : > { %4508 = vmatmul.mubr.f32.gmra.mrb[144].mxu1 %v3555_v58  ;;  %v3318_v55 = vmax.f32 %v3164_v33, 0.0  ;;  %v8394_v60 = vadd.f32 %v10980_v45, %v2783_v25  ;;  %v2785_v40 = vpop.f32.mrb[85].mxu0 }
 0x50c   : > { %v3620_v15 = vld [vmem:[#allocation3 + $0x219] sm:$0xff] }
 0x50d   : > { %v4064_v42 = vld [vmem:[#allocation3 + $0x212] sm:$0xff]  ;;  %3492 = vst.msk [vmem:[#allocation3 + $0x231] sm:$0xff] %vm3450_vm1, %v3318_v55  ;;  %v3169_v29 = vadd.f32 %v8394_v60, %v10845_v6  ;;  %4512 = vmatprep.mubr.f32.mxu1 %v3620_v15  ;;  %v4065_v17 = vld [vmem:[#allocation3 + $0x21a] sm:$0xff] }
 0x50e   : > { %v3556_v1 = vld [vmem:[#allocation3 + $0x218] sm:$0xff]  ;;  %7862 = vmatprep.mubr.f32.mxu0 %v4064_v42  ;;  %v2788_v3 = vpop.f32.mrb[86].mxu0 }
 0x50f   : > { %4513 = vmatmul.mubr.f32.gmra.mrb[146].mxu1 %v3556_v1  ;;  %7863 = vmatmul.mubr.f32.gmra.mrb[164].mxu0 %v4065_v17  ;;  %v3319_v30 = vmax.f32 %v3169_v29, 0.0  ;;  %v8395_v36 = vadd.f32 %v10980_v45, %v2788_v3  ;;  %v2790_v11 = vpop.f32.mrb[87].mxu0 }
 0x510   : > { %v3621_v31 = vld [vmem:[#allocation3 + $0x229] sm:$0xff] }
 0x511   : > { %v3557_v0 = vld [vmem:[#allocation3 + $0x228] sm:$0xff]  ;;  %3493 = vst.msk [vmem:[#allocation3 + $0x241] sm:$0xff] %vm3450_vm1, %v3319_v30  ;;  %v3174_v53 = vadd.f32 %v8395_v36, %v10843_v24  ;;  %4517 = vmatprep.mubr.f32.mxu1 %v3621_v31 }
 0x512   : > { %v2793_v47 = vpop.f32.mrb[88].mxu0 }
 0x513   : > { %4518 = vmatmul.mubr.f32.gmra.mrb[148].mxu1 %v3557_v0  ;;  %v3320_v6 = vmax.f32 %v3174_v53, 0.0  ;;  %v8396_v46 = vadd.f32 %v10980_v45, %v2793_v47  ;;  %v2795_v27 = vpop.f32.mrb[89].mxu0 }
 0x514   : > { %v3622_v13 = vld [vmem:[#allocation3 + $0x231] sm:$0xff] }
 0x515   : > { %v4066_v41 = vld [vmem:[#allocation3 + $0x22a] sm:$0xff]  ;;  %3494 = vst.msk [vmem:[#allocation3 + $0x249] sm:$0xff] %vm3450_vm1, %v3320_v6  ;;  %v3179_v43 = vadd.f32 %v8396_v46, %v10858_v63  ;;  %4522 = vmatprep.mubr.f32.mxu1 %v3622_v13  ;;  %v4067_v14 = vld [vmem:[#allocation3 + $0x232] sm:$0xff] }
 0x516   : > { %v3558_v61 = vld [vmem:[#allocation3 + $0x230] sm:$0xff]  ;;  %7865 = vmatprep.mubr.f32.mxu0 %v4066_v41  ;;  %v2798_v5 = vpop.f32.mrb[90].mxu0 }
 0x517   : > { %4523 = vmatmul.mubr.f32.gmra.mrb[150].mxu1 %v3558_v61  ;;  %7866 = vmatmul.mubr.f32.gmra.mrb[166].mxu0 %v4067_v14  ;;  %v3321_v24 = vmax.f32 %v3179_v43, 0.0  ;;  %v8397_v38 = vadd.f32 %v10980_v45, %v2798_v5  ;;  %v2800_v51 = vpop.f32.mrb[91].mxu0 }
 0x518   : > { %v3623_v62 = vld [vmem:[#allocation3 + $0x241] sm:$0xff] }
 0x519   : > { %v3559_v50 = vld [vmem:[#allocation3 + $0x240] sm:$0xff]  ;;  %3495 = vst.msk [vmem:[#allocation3 + $0x259] sm:$0xff] %vm3450_vm1, %v3321_v24  ;;  %v3184_v9 = vadd.f32 %v8397_v38, %v10856_v7  ;;  %4527 = vmatprep.mubr.f32.mxu1 %v3623_v62 }
 0x51a   : > { %v2803_v52 = vpop.f32.mrb[92].mxu0 }
 0x51b   : > { %4528 = vmatmul.mubr.f32.gmra.mrb[152].mxu1 %v3559_v50  ;;  %v3322_v63 = vmax.f32 %v3184_v9, 0.0  ;;  %v8398_v18 = vadd.f32 %v10980_v45, %v2803_v52  ;;  %v2805_v21 = vpop.f32.mrb[93].mxu0 }
 0x51c   : > { %v3624_v12 = vld [vmem:[#allocation3 + $0x249] sm:$0xff] }
 0x51d   : > { %v4068_v22 = vld [vmem:[#allocation3 + $0x242] sm:$0xff]  ;;  %3496 = vst.msk [vmem:[#allocation3 + $0x261] sm:$0xff] %vm3450_vm1, %v3322_v63  ;;  %v3189_v37 = vadd.f32 %v8398_v18, %v10867_v44  ;;  %4532 = vmatprep.mubr.f32.mxu1 %v3624_v12  ;;  %v4069_v48 = vld [vmem:[#allocation3 + $0x24a] sm:$0xff] }
 0x51e   : > { %v3560_v49 = vld [vmem:[#allocation3 + $0x248] sm:$0xff]  ;;  %7868 = vmatprep.mubr.f32.mxu0 %v4068_v22  ;;  %v2808_v58 = vpop.f32.mrb[94].mxu0 }
 0x51f   : > { %4533 = vmatmul.mubr.f32.gmra.mrb[154].mxu1 %v3560_v49  ;;  %7869 = vmatmul.mubr.f32.gmra.mrb[168].mxu0 %v4069_v48  ;;  %v3323_v7 = vmax.f32 %v3189_v37, 0.0  ;;  %v8399_v33 = vadd.f32 %v10980_v45, %v2808_v58  ;;  %v2810_v25 = vpop.f32.mrb[95].mxu0 }
 0x520   : > { %v3625_v55 = vld [vmem:[#allocation3 + $0x259] sm:$0xff] }
 0x521   : > { %v3561_v60 = vld [vmem:[#allocation3 + $0x258] sm:$0xff]  ;;  %3497 = vst.msk [vmem:[#allocation3 + $0x271] sm:$0xff] %vm3450_vm1, %v3323_v7  ;;  %v3194_v40 = vadd.f32 %v8399_v33, %v10865_v54  ;;  %4537 = vmatprep.mubr.f32.mxu1 %v3625_v55 }
 0x522   : > { %v2813_v15 = vpop.f32.mrb[96].mxu0 }
 0x523   : > { %4538 = vmatmul.mubr.f32.gmra.mrb[156].mxu1 %v3561_v60  ;;  %v3324_v44 = vmax.f32 %v3194_v40, 0.0  ;;  %v8400_v42 = vadd.f32 %v10980_v45, %v2813_v15  ;;  %v2815_v1 = vpop.f32.mrb[97].mxu0 }
 0x524   : > { %v3626_v29 = vld [vmem:[#allocation3 + $0x261] sm:$0xff] }
 0x525   : > { %v4070_v17 = vld [vmem:[#allocation3 + $0x25a] sm:$0xff]  ;;  %3498 = vst.msk [vmem:[#allocation3 + $0x279] sm:$0xff] %vm3450_vm1, %v3324_v44  ;;  %v3199_v30 = vadd.f32 %v8400_v42, %v10874_v26  ;;  %4542 = vmatprep.mubr.f32.mxu1 %v3626_v29  ;;  %v4071_v36 = vld [vmem:[#allocation3 + $0x262] sm:$0xff] }
 0x526   : > { %v3562_v3 = vld [vmem:[#allocation3 + $0x260] sm:$0xff]  ;;  %7871 = vmatprep.mubr.f32.mxu0 %v4070_v17  ;;  %v2818_v11 = vpop.f32.mrb[98].mxu0 }
 0x527   : > { %4543 = vmatmul.mubr.f32.gmra.mrb[158].mxu1 %v3562_v3  ;;  %7872 = vmatmul.mubr.f32.gmra.mrb[170].mxu0 %v4071_v36  ;;  %v3325_v54 = vmax.f32 %v3199_v30, 0.0  ;;  %v8401_v31 = vadd.f32 %v10980_v45, %v2818_v11  ;;  %v2820_v0 = vpop.f32.mrb[99].mxu0 }
 0x528   : > { %v3627_v53 = vld [vmem:[#allocation3 + $0x271] sm:$0xff] }
 0x529   : > { %v11025_v47 = vld [vmem:[#allocation3 + $0x270] sm:$0xff]  ;;  %3499 = vst.msk [vmem:[#allocation3 + $0x289] sm:$0xff] %vm3450_vm1, %v3325_v54  ;;  %v3204_v6 = vadd.f32 %v8401_v31, %v10872_v8  ;;  %4547 = vmatprep.mubr.f32.mxu1 %v3627_v53 }
 0x52a   : > { %v2823_v46 = vpop.f32.mrb[100].mxu0 }
 0x52b   : > { %4548 = vmatmul.mubr.f32.gmra.mrb[160].mxu1 %v11025_v47  ;;  %v3326_v26 = vmax.f32 %v3204_v6, 0.0  ;;  %v8402_v27 = vadd.f32 %v10980_v45, %v2823_v46  ;;  %v2825_v13 = vpop.f32.mrb[101].mxu0 }
 0x52c   : > { %v3628_v41 = vld [vmem:[#allocation3 + $0x279] sm:$0xff] }
 0x52d   : > { %v11031_v61 = vld [vmem:[#allocation3 + $0x272] sm:$0xff]  ;;  %3500 = vst.msk [vmem:[#allocation3 + $0x291] sm:$0xff] %vm3450_vm1, %v3326_v26  ;;  %v3209_v14 = vadd.f32 %v8402_v27, %v10883_v32  ;;  %4552 = vmatprep.mubr.f32.mxu1 %v3628_v41  ;;  %v11038_v8 = vld [vmem:[#allocation3 + $0x27a] sm:$0xff] }
 0x52e   : > { %v11033_v43 = vld [vmem:[#allocation3 + $0x278] sm:$0xff]  ;;  %7874 = vmatprep.mubr.f32.mxu0 %v11031_v61  ;;  %v2828_v5 = vpop.f32.mrb[102].mxu0 }
 0x52f   : > { %4553 = vmatmul.mubr.f32.gmra.mrb[162].mxu1 %v11033_v43  ;;  %7875 = vmatmul.mubr.f32.gmra.mrb[172].mxu0 %v11038_v8  ;;  %v3327_v24 = vmax.f32 %v3209_v14, 0.0  ;;  %v8403_v38 = vadd.f32 %v10980_v45, %v2828_v5  ;;  %v2830_v51 = vpop.f32.mrb[103].mxu0 }
 0x530   : > { %v3629_v62 = vld [vmem:[#allocation3 + $0x289] sm:$0xff] }
 0x531   : > { %v11043_v50 = vld [vmem:[#allocation3 + $0x288] sm:$0xff]  ;;  %3501 = vst.msk [vmem:[#allocation3 + $0x2a1] sm:$0xff] %vm3450_vm1, %v3327_v24  ;;  %v3214_v32 = vadd.f32 %v8403_v38, %v10881_v2  ;;  %4557 = vmatprep.mubr.f32.mxu1 %v3629_v62 }
 0x532   : > { %v2833_v9 = vpop.f32.mrb[104].mxu0 }
 0x533   : > { %4558 = vmatmul.mubr.f32.gmra.mrb[164].mxu1 %v11043_v50  ;;  %v3328_v52 = vmax.f32 %v3214_v32, 0.0  ;;  %v8404_v63 = vadd.f32 %v10980_v45, %v2833_v9  ;;  %v2835_v18 = vpop.f32.mrb[105].mxu0 }
 0x534   : > { %v3630_v21 = vld [vmem:[#allocation3 + $0x291] sm:$0xff] }
 0x535   : > { %v11049_v12 = vld [vmem:[#allocation3 + $0x28a] sm:$0xff]  ;;  %3502 = vst.msk [vmem:[#allocation3 + $0x2a9] sm:$0xff] %vm3450_vm1, %v3328_v52  ;;  %v3219_v49 = vadd.f32 %v8404_v63, %v10890_v20  ;;  %4562 = vmatprep.mubr.f32.mxu1 %v3630_v21  ;;  %v11056_v2 = vld [vmem:[#allocation3 + $0x292] sm:$0xff] }
 0x536   : > { %v11051_v22 = vld [vmem:[#allocation3 + $0x290] sm:$0xff]  ;;  %7877 = vmatprep.mubr.f32.mxu0 %v11049_v12  ;;  %v2838_v37 = vpop.f32.mrb[106].mxu0 }
 0x537   : > { %4563 = vmatmul.mubr.f32.gmra.mrb[166].mxu1 %v11051_v22  ;;  %7878 = vmatmul.mubr.f32.gmra.mrb[174].mxu0 %v11056_v2  ;;  %v3329_v48 = vmax.f32 %v3219_v49, 0.0  ;;  %v8405_v58 = vadd.f32 %v10980_v45, %v2838_v37  ;;  %v2840_v7 = vpop.f32.mrb[107].mxu0 }
 0x538   : > { %v3631_v33 = vld [vmem:[#allocation3 + $0x2a1] sm:$0xff] }
 0x539   : > { %v11061_v25 = vld [vmem:[#allocation3 + $0x2a0] sm:$0xff]  ;;  %3503 = vst.msk [vmem:[#allocation3 + $0x2b9] sm:$0xff] %vm3450_vm1, %v3329_v48  ;;  %v3224_v20 = vadd.f32 %v8405_v58, %v10888_v39  ;;  %4567 = vmatprep.mubr.f32.mxu1 %v3631_v33 }
 0x53a   : > { %v2843_v55 = vpop.f32.mrb[108].mxu0 }
 0x53b   : > { %4568 = vmatmul.mubr.f32.gmra.mrb[168].mxu1 %v11061_v25  ;;  %v3330_v60 = vmax.f32 %v3224_v20, 0.0  ;;  %v8406_v40 = vadd.f32 %v10980_v45, %v2843_v55  ;;  %v2845_v15 = vpop.f32.mrb[109].mxu0 }
 0x53c   : > { %v3632_v44 = vld [vmem:[#allocation3 + $0x2a9] sm:$0xff] }
 0x53d   : > { %v11067_v42 = vld [vmem:[#allocation3 + $0x2a2] sm:$0xff]  ;;  %3504 = vst.msk [vmem:[#allocation3 + $0x2c1] sm:$0xff] %vm3450_vm1, %v3330_v60  ;;  %v3229_v29 = vadd.f32 %v8406_v40, %v10898_v57  ;;  %4572 = vmatprep.mubr.f32.mxu1 %v3632_v44  ;;  %v11074_v39 = vld [vmem:[#allocation3 + $0x2aa] sm:$0xff] }
 0x53e   : > { %v11069_v1 = vld [vmem:[#allocation3 + $0x2a8] sm:$0xff]  ;;  %7880 = vmatprep.mubr.f32.mxu0 %v11067_v42  ;;  %v2848_v17 = vpop.f32.mrb[110].mxu0 }
 0x53f   : > { %4573 = vmatmul.mubr.f32.gmra.mrb[170].mxu1 %v11069_v1  ;;  %7881 = vmatmul.mubr.f32.gmra.mrb[176].mxu0 %v11074_v39  ;;  %v3331_v3 = vmax.f32 %v3229_v29, 0.0  ;;  %v8407_v30 = vadd.f32 %v10980_v45, %v2848_v17  ;;  %v2850_v36 = vpop.f32.mrb[111].mxu0 }
 0x540   : > { %v3633_v11 = vld [vmem:[#allocation3 + $0x2b9] sm:$0xff] }
 0x541   : > { %v11079_v54 = vld [vmem:[#allocation3 + $0x2b8] sm:$0xff]  ;;  %3505 = vst.msk [vmem:[#allocation3 + $0x2d1] sm:$0xff] %vm3450_vm1, %v3331_v3  ;;  %v3234_v57 = vadd.f32 %v8407_v30, %v10896_v28  ;;  %4577 = vmatprep.mubr.f32.mxu1 %v3633_v11 }
 0x542   : > { %v2853_v31 = vpop.f32.mrb[112].mxu0 }
 0x543   : > { %4578 = vmatmul.mubr.f32.gmra.mrb[172].mxu1 %v11079_v54  ;;  %v3332_v0 = vmax.f32 %v3234_v57, 0.0  ;;  %v8408_v53 = vadd.f32 %v10980_v45, %v2853_v31  ;;  %v2855_v6 = vpop.f32.mrb[113].mxu0 }
 0x544   : > { %v3634_v46 = vld [vmem:[#allocation3 + $0x2c1] sm:$0xff] }
 0x545   : > { %v11085_v26 = vld [vmem:[#allocation3 + $0x2ba] sm:$0xff]  ;;  %3506 = vst.msk [vmem:[#allocation3 + $0x2d9] sm:$0xff] %vm3450_vm1, %v3332_v0  ;;  %v3239_v13 = vadd.f32 %v8408_v53, %v10905_v34  ;;  %4582 = vmatprep.mubr.f32.mxu1 %v3634_v46  ;;  %v11092_v28 = vld [vmem:[#allocation3 + $0x2c2] sm:$0xff] }
 0x546   : > { %v11087_v27 = vld [vmem:[#allocation3 + $0x2c0] sm:$0xff]  ;;  %7883 = vmatprep.mubr.f32.mxu0 %v11085_v26  ;;  %v2858_v41 = vpop.f32.mrb[114].mxu0 }
 0x547   : > { %4583 = vmatmul.mubr.f32.gmra.mrb[174].mxu1 %v11087_v27  ;;  %7884 = vmatmul.mubr.f32.gmra.mrb[178].mxu0 %v11092_v28  ;;  %v3333_v14 = vmax.f32 %v3239_v13, 0.0  ;;  %v8409_v5 = vadd.f32 %v10980_v45, %v2858_v41  ;;  %v2860_v24 = vpop.f32.mrb[115].mxu0 }
 0x548   : > { %v3635_v38 = vld [vmem:[#allocation3 + $0x2d1] sm:$0xff] }
 0x549   : > { %v11097_v51 = vld [vmem:[#allocation3 + $0x2d0] sm:$0xff]  ;;  %3507 = vst.msk [vmem:[#allocation3 + $0x2e9] sm:$0xff] %vm3450_vm1, %v3333_v14  ;;  %v3244_v34 = vadd.f32 %v8409_v5, %v10903_v4  ;;  %4587 = vmatprep.mubr.f32.mxu1 %v3635_v38 }
 0x54a   : > { %v2863_v62 = vpop.f32.mrb[116].mxu0 }
 0x54b   : > { %4588 = vmatmul.mubr.f32.gmra.mrb[176].mxu1 %v11097_v51  ;;  %v3334_v32 = vmax.f32 %v3244_v34, 0.0  ;;  %v8410_v9 = vadd.f32 %v10980_v45, %v2863_v62  ;;  %v2865_v52 = vpop.f32.mrb[117].mxu0 }
 0x54c   : > { %v3636_v63 = vld [vmem:[#allocation3 + $0x2d9] sm:$0xff] }
 0x54d   : > { %v11103_v18 = vld [vmem:[#allocation3 + $0x2d2] sm:$0xff]  ;;  %3508 = vst.msk [vmem:[#allocation3 + $0x2f1] sm:$0xff] %vm3450_vm1, %v3334_v32  ;;  %v3249_v49 = vadd.f32 %v8410_v9, %v10914_v10  ;;  %4592 = vmatprep.mubr.f32.mxu1 %v3636_v63  ;;  %v11110_v4 = vld [vmem:[#allocation3 + $0x2da] sm:$0xff] }
 0x54e   : > { %v11105_v21 = vld [vmem:[#allocation3 + $0x2d8] sm:$0xff]  ;;  %7886 = vmatprep.mubr.f32.mxu0 %v11103_v18  ;;  %v2868_v37 = vpop.f32.mrb[118].mxu0 }
 0x54f   : > { %4593 = vmatmul.mubr.f32.gmra.mrb[178].mxu1 %v11105_v21  ;;  %7887 = vmatmul.mubr.f32.gmra.mrb[180].mxu0 %v11110_v4  ;;  %v3335_v48 = vmax.f32 %v3249_v49, 0.0  ;;  %v8411_v58 = vadd.f32 %v10980_v45, %v2868_v37  ;;  %v2870_v7 = vpop.f32.mrb[119].mxu0 }
 0x550   : > { %v3637_v33 = vld [vmem:[#allocation3 + $0x2e9] sm:$0xff] }
 0x551   : > { %v11115_v20 = vld [vmem:[#allocation3 + $0x2e8] sm:$0xff]  ;;  %3509 = vst.msk [vmem:[#allocation3 + $0x301] sm:$0xff] %vm3450_vm1, %v3335_v48  ;;  %v3254_v10 = vadd.f32 %v8411_v58, %v10912_v23  ;;  %4597 = vmatprep.mubr.f32.mxu1 %v3637_v33  ;;  %v4156_v48 = vld [vmem:[%s10544_s14 + $0x200] sm:$0xff] }
 0x552   : > { %v2873_v55 = vpop.f32.mrb[120].mxu0  ;;  %v4157_v58 = vld [vmem:[%s10544_s14 + $0x208] sm:$0xff] }
 0x553   : > { %4598 = vmatmul.mubr.f32.gmra.mrb[180].mxu1 %v11115_v20  ;;  %v3336_v60 = vmax.f32 %v3254_v10, 0.0  ;;  %v8412_v40 = vadd.f32 %v10980_v45, %v2873_v55  ;;  %v2875_v15 = vpop.f32.mrb[121].mxu0  ;;  %v3707_v55 = vld [vmem:[#allocation3 + $0x18] sm:$0xff] }
 0x554   : > { %v3638_v44 = vld [vmem:[#allocation3 + $0x2f1] sm:$0xff]  ;;  %v8225_v15 = vpack.c.bf16 %v4157_v58, %v4156_v48  ;;  %v4164_v58 = vld [vmem:[%s10544_s14 + $0x240] sm:$0xff] }
 0x555   : > { %v11121_v29 = vld [vmem:[#allocation3 + $0x2ea] sm:$0xff]  ;;  %3510 = vst.msk [vmem:[#allocation3 + $0x309] sm:$0xff] %vm3450_vm1, %v3336_v60  ;;  %v3259_v3 = vadd.f32 %v8412_v40, %v10921_v16  ;;  %4602 = vmatprep.mubr.f32.mxu1 %v3638_v44  ;;  %v11128_v23 = vld [vmem:[#allocation3 + $0x2f2] sm:$0xff]  ;;  %v3643_v40 = vld [vmem:[#allocation3 + $0x2] sm:$0xff] }
 0x556   : > { %v11123_v17 = vld [vmem:[#allocation3 + $0x2f0] sm:$0xff]  ;;  %7889 = vmatprep.mubr.f32.mxu0 %v11121_v29  ;;  %v2878_v30 = vpop.f32.mrb[122].mxu0 }
 0x557   : > { %4603 = vmatmul.mubr.f32.gmra.mrb[182].mxu1 %v11123_v17  ;;  %7890 = vmatmul.mubr.f32.gmra.mrb[182].mxu0 %v11128_v23  ;;  %v3337_v36 = vmax.f32 %v3259_v3, 0.0  ;;  %v8413_v11 = vadd.f32 %v10980_v45, %v2878_v30  ;;  %v2880_v57 = vpop.f32.mrb[123].mxu0  ;;  %v4158_v44 = vld [vmem:[%s10544_s14 + $0x210] sm:$0xff]  ;;  %v4159_v3 = vld [vmem:[%s10544_s14 + $0x218] sm:$0xff] }
 0x558   : > { %v3639_v31 = vld [vmem:[#allocation3 + $0x301] sm:$0xff]  ;;  %v3644_v57 = vld [vmem:[#allocation3 + $0xa] sm:$0xff] }
 0x559   : > { %v11133_v0 = vld [vmem:[#allocation3 + $0x300] sm:$0xff]  ;;  %3511 = vst.msk [vmem:[#allocation3 + $0x319] sm:$0xff] %vm3450_vm1, %v3337_v36  ;;  %v3264_v16 = vadd.f32 %v8413_v11, %v10919_v19  ;;  %4607 = vmatprep.mubr.f32.mxu1 %v3639_v31  ;;  %v8228_v31 = vpack.c.bf16 %v4159_v3, %v4158_v44  ;;  %v4166_v44 = vld [vmem:[%s10544_s14 + $0x250] sm:$0xff]  ;;  %v4167_v3 = vld [vmem:[%s10544_s14 + $0x258] sm:$0xff] }
 0x55a   : > { %v2883_v53 = vpop.f32.mrb[124].mxu0  ;;  %v3708_v36 = vld [vmem:[#allocation3 + $0x20] sm:$0xff] }
 0x55b   : > { %4608 = vmatmul.mubr.f32.gmra.mrb[184].mxu1 %v11133_v0  ;;  %v3338_v6 = vmax.f32 %v3264_v16, 0.0  ;;  %v8414_v46 = vadd.f32 %v10980_v45, %v2883_v53  ;;  %v2885_v13 = vpop.f32.mrb[125].mxu0  ;;  %v4160_v16 = vld [vmem:[%s10544_s14 + $0x220] sm:$0xff] }
 0x55c   : > { %v3640_v41 = vld [vmem:[#allocation3 + $0x309] sm:$0xff] }
 0x55d   : > { %v11139_v14 = vld [vmem:[#allocation3 + $0x302] sm:$0xff]  ;;  %3512 = vst.msk [vmem:[#allocation3 + $0x321] sm:$0xff] %vm3450_vm1, %v3338_v6  ;;  %v3269_v24 = vadd.f32 %v8414_v46, %v10929_v59  ;;  %4612 = vmatprep.mubr.f32.mxu1 %v3640_v41  ;;  %v11146_v19 = vld [vmem:[#allocation3 + $0x30a] sm:$0xff] }
 0x55e   : > { %v11141_v5 = vld [vmem:[#allocation3 + $0x308] sm:$0xff]  ;;  %7892 = vmatprep.mubr.f32.mxu0 %v11139_v14  ;;  %v2888_v38 = vpop.f32.mrb[126].mxu0  ;;  %v3709_v41 = vld [vmem:[#allocation3 + $0x30] sm:$0xff] }
 0x55f   : > { %4613 = vmatmul.mubr.f32.gmra.mrb[186].mxu1 %v11141_v5  ;;  %7893 = vmatmul.mubr.f32.gmra.mrb[184].mxu0 %v11146_v19  ;;  %v3339_v34 = vmax.f32 %v3269_v24, 0.0  ;;  %v8415_v62 = vadd.f32 %v10980_v45, %v2888_v38  ;;  %v2890_v32 = vpop.f32.mrb[127].mxu0  ;;  %v4161_v46 = vld [vmem:[%s10544_s14 + $0x228] sm:$0xff] }
 0x560   : > { %v3641_v9 = vld [vmem:[#allocation3 + $0x319] sm:$0xff]  ;;  %v8231_v38 = vpack.c.bf16 %v4161_v46, %v4160_v16  ;;  %v3712_v16 = vld [vmem:[#allocation3 + $0x50] sm:$0xff]  ;;  %v4169_v46 = vld [vmem:[%s10544_s14 + $0x268] sm:$0xff] }
 0x561   : > { %v11151_v52 = vld [vmem:[#allocation3 + $0x318] sm:$0xff]  ;;  %3513 = vst.msk [vmem:[#allocation3 + $0x331] sm:$0xff] %vm3450_vm1, %v3339_v34  ;;  %v3274_v59 = vadd.f32 %v8415_v62, %v10927_v35  ;;  %4617 = vmatprep.mubr.f32.mxu1 %v3641_v9  ;;  %v4162_v34 = vld [vmem:[%s10544_s14 + $0x230] sm:$0xff] }
 0x562   : > { %v11156_v63 = vpop.f32.mrb[128].mxu0  ;;  %v4163_v62 = vld [vmem:[%s10544_s14 + $0x238] sm:$0xff] }
 0x563   : > { %4618 = vmatmul.mubr.f32.gmra.mrb[188].mxu1 %v11151_v52  ;;  %12290 = vst [vmem:[#allocation6_spill] sm:$0xff] %v11156_v63  ;;  %v3340_v49 = vmax.f32 %v3274_v59, 0.0  ;;  %v11158_v37 = vpop.f32.mrb[129].mxu0  ;;  %v11192_v32 = vld [vmem:[#allocation3 + $0x1a] sm:$0xff]  ;;  %v8234_v48 = vpack.c.bf16 %v4163_v62, %v4162_v34  ;;  %v4170_v62 = vld [vmem:[%s10544_s14 + $0x270] sm:$0xff] }
 0x564   : > { %12291 = vst [vmem:[#allocation7_spill] sm:$0xff] %v11158_v37  ;;  %v3642_v45 = vld [vmem:[#allocation3 + $0x321] sm:$0xff]  ;;  %v3710_v59 = vld [vmem:[#allocation3 + $0x38] sm:$0xff] }
 0x565   : > { %v11162_v7 = vld [vmem:[#allocation3 + $0x31a] sm:$0xff]  ;;  %3514 = vst.msk [vmem:[#allocation3 + $0x339] sm:$0xff] %vm3450_vm1, %v3340_v49  ;;  %4622 = vmatprep.mubr.f32.mxu1 %v3642_v45  ;;  %v11168_v35 = vld [vmem:[#allocation3 + $0x322] sm:$0xff] }
 0x566   : > { %v11164_v33 = vld [vmem:[#allocation3 + $0x320] sm:$0xff]  ;;  %7895 = vmatprep.mubr.f32.mxu0 %v11162_v7  ;;  %v11171_v10 = vpop.f32.mrb[130].mxu0  ;;  %v4165_v45 = vld [vmem:[%s10544_s14 + $0x248] sm:$0xff] }
 0x567   : > { %4623 = vmatmul.mubr.f32.gmra.mrb[190].mxu1 %v11164_v33  ;;  %12292 = vst [vmem:[#allocation8_spill] sm:$0xff] %v11171_v10  ;;  %7896 = vmatmul.mubr.f32.gmra.mrb[186].mxu0 %v11168_v35  ;;  %v11174_v60 = vpop.f32.mrb[131].mxu0  ;;  %v3729_v10 = vld [vmem:[#allocation3 + $0x120] sm:$0xff] }
 0x568   : > { %4692 = vmatprep.mubr.f32.mxu1 %v3707_v55  ;;  %12293 = vst [vmem:[#allocation9_spill] sm:$0xff] %v11174_v60  ;;  %v11202_v55 = vld [vmem:[#allocation3 + $0x22] sm:$0xff] }
 0x569   : > { %v3732_v60 = vld [vmem:[#allocation3 + $0x140] sm:$0xff] }
 0x56a   : > { %v11178_v30 = vpop.f32.mrb[132].mxu0  ;;  %v4184_v63 = vld [vmem:[%s10544_s14 + $0x2e0] sm:$0xff] }
 0x56b   : > { %4693 = vmatmul.mubr.f32.vlgmr.msra.gmra.mrb[64].mxu1 %v3643_v40  ;;  %12294 = vst [vmem:[#allocation10_spill] sm:$0xff] %v11178_v30  ;;  %v11180_v11 = vpop.f32.mrb[133].mxu0  ;;  %v3711_v40 = vld [vmem:[#allocation3 + $0x48] sm:$0xff]  ;;  %v4182_v30 = vld [vmem:[%s10544_s14 + $0x2d0] sm:$0xff] }
 0x56c   : > { %4697 = vmatprep.mubr.f32.mxu1 %v3708_v36  ;;  %8226 = vmatpush1.bf16.msra.mxu1 %v8225_v15  ;;  %12295 = vst [vmem:[#allocation11_spill] sm:$0xff] %v11180_v11  ;;  %v4088_v53 = vld [vmem:[#allocation3 + $0x332] sm:$0xff]  ;;  %v4089_v6 = vld [vmem:[#allocation3 + $0x33a] sm:$0xff]  ;;  %v8237_v15 = vpack.c.bf16 %v4165_v45, %v4164_v58  ;;  %v11226_v58 = vld [vmem:[#allocation3 + $0x4a] sm:$0xff] }
 0x56d   : > { %8227 = vmatprep.subr.bf16.mxu1 %v12260_v56  ;;  %7898 = vmatprep.mubr.f32.mxu0 %v4088_v53  ;;  %v8240_v53 = vpack.c.bf16 %v4167_v3, %v4166_v44  ;;  %v4172_v44 = vld [vmem:[%s10544_s14 + $0x280] sm:$0xff]  ;;  %v4173_v3 = vld [vmem:[%s10544_s14 + $0x288] sm:$0xff] }
 0x56e   : > { %v11185_v13 = vpop.f32.mrb[134].mxu0  ;;  %7899 = vmatmul.mubr.f32.gmra.mrb[188].mxu0 %v4089_v6  ;;  %v4168_v6 = vld [vmem:[%s10544_s14 + $0x260] sm:$0xff] }
 0x56f   : > { %4698 = vmatmul.mubr.f32.gmra.mrb[66].mxu1 %v3644_v57  ;;  %12296 = vst [vmem:[#allocation12_spill] sm:$0xff] %v11185_v13  ;;  %v11187_v24 = vpop.f32.mrb[135].mxu0  ;;  %v11210_v57 = vld [vmem:[#allocation3 + $0x32] sm:$0xff]  ;;  %v8243_v34 = vpack.c.bf16 %v4169_v46, %v4168_v6  ;;  %v8249_v6 = vpack.c.bf16 %v4173_v3, %v4172_v44  ;;  %v4177_v44 = vld [vmem:[%s10544_s14 + $0x2a8] sm:$0xff] }
 0x570   : > { %4702 = vmatprep.mubr.f32.mxu1 %v3709_v41  ;;  %12297 = vst [vmem:[#allocation4_spill] sm:$0xff] %v11187_v24  ;;  %8229 = vmatpush1.bf16.msra.mxu1 %v8228_v31  ;;  %v11218_v41 = vld [vmem:[#allocation3 + $0x3a] sm:$0xff]  ;;  %v4174_v46 = vld [vmem:[%s10544_s14 + $0x290] sm:$0xff] }
 0x571   : > { %8230 = vmatprep.subr.bf16.mxu1 %v12260_v56  ;;  %v11250_v3 = vld [vmem:[#allocation3 + $0x6a] sm:$0xff] }
 0x572   : > { %v11195_v9 = vpop.f32.mrb[136].mxu0  ;;  %v3725_v13 = vld [vmem:[#allocation3 + $0xf0] sm:$0xff] }
 0x573   : > { %4703 = vmatmul.mubr.f32.gmra.mrb[68].mxu1 %v11192_v32  ;;  %12298 = vst [vmem:[#allocation5_spill] sm:$0xff] %v11195_v9  ;;  %v11197_v49 = vpop.f32.mrb[137].mxu0  ;;  %v4180_v9 = vld [vmem:[%s10544_s14 + $0x2c0] sm:$0xff]  ;;  %v3728_v24 = vld [vmem:[#allocation3 + $0x110] sm:$0xff] }
 0x574   : > { %4707 = vmatprep.mubr.f32.mxu1 %v3710_v59  ;;  %12299 = vst [vmem:[#allocation13_spill] sm:$0xff] %v11197_v49  ;;  %8232 = vmatpush1.bf16.msra.mxu1 %v8231_v38  ;;  %v3713_v38 = vld [vmem:[#allocation3 + $0x60] sm:$0xff]  ;;  %v4171_v59 = vld [vmem:[%s10544_s14 + $0x278] sm:$0xff] }
 0x575   : > { %8233 = vmatprep.subr.bf16.mxu1 %v12260_v56 }
 0x577   : > { %4708 = vmatmul.mubr.f32.gmra.mrb[70].mxu1 %v11202_v55 }
 0x578   : > { %4712 = vmatprep.mubr.f32.mxu1 %v3711_v40  ;;  %8235 = vmatpush1.bf16.msra.mxu1 %v8234_v48  ;;  %v3714_v40 = vld [vmem:[#allocation3 + $0x68] sm:$0xff] }
 0x579   : > { %8236 = vmatprep.subr.bf16.mxu1 %v12260_v56 }
 0x57a   : > { %v11208_v36 = vpop.f32.mrb[138].mxu0 }
 0x57b   : > { %12300 = vst [vmem:[#allocation14_spill] sm:$0xff] %v11208_v36  ;;  %4713 = vmatmul.mubr.f32.gmra.mrb[72].mxu1 %v11210_v57  ;;  %v11213_v31 = vpop.f32.mrb[139].mxu0  ;;  %v3721_v36 = vld [vmem:[#allocation3 + $0xc0] sm:$0xff] }
 0x57c   : > { %12301 = vst [vmem:[#allocation15_spill] sm:$0xff] %v11213_v31  ;;  %4717 = vmatprep.mubr.f32.mxu1 %v3712_v16  ;;  %8238 = vmatpush1.bf16.msra.mxu1 %v8237_v15  ;;  %v8246_v15 = vpack.c.bf16 %v4171_v59, %v4170_v62  ;;  %v11234_v16 = vld [vmem:[#allocation3 + $0x52] sm:$0xff]  ;;  %v11242_v62 = vld [vmem:[#allocation3 + $0x62] sm:$0xff] }
 0x57d   : > { %8239 = vmatprep.subr.bf16.mxu1 %v12260_v56  ;;  %v3724_v31 = vld [vmem:[#allocation3 + $0xe0] sm:$0xff] }
 0x57f   : > { %4718 = vmatmul.mubr.f32.gmra.mrb[74].mxu1 %v11218_v41 }
 0x580   : > { %4722 = vmatprep.mubr.f32.mxu1 %v3713_v38  ;;  %8241 = vmatpush1.bf16.msra.mxu1 %v8240_v53  ;;  %v3715_v53 = vld [vmem:[#allocation3 + $0x78] sm:$0xff] }
 0x581   : > { %8242 = vmatprep.subr.bf16.mxu1 %v12260_v56  ;;  %v4175_v38 = vld [vmem:[%s10544_s14 + $0x298] sm:$0xff] }
 0x582   : > { %v11224_v48 = vpop.f32.mrb[140].mxu0 }
 0x583   : > { %12302 = vst [vmem:[#allocation16_spill] sm:$0xff] %v11224_v48  ;;  %4723 = vmatmul.mubr.f32.gmra.mrb[76].mxu1 %v11226_v58  ;;  %v11229_v45 = vpop.f32.mrb[141].mxu0  ;;  %v8252_v48 = vpack.c.bf16 %v4175_v38, %v4174_v46  ;;  %v3718_v46 = vld [vmem:[#allocation3 + $0x98] sm:$0xff]  ;;  %v11262_v38 = vld [vmem:[#allocation3 + $0x82] sm:$0xff] }
 0x584   : > { %12303 = vst [vmem:[#allocation17_spill] sm:$0xff] %v11229_v45  ;;  %4727 = vmatprep.mubr.f32.mxu1 %v3714_v40  ;;  %8244 = vmatpush1.bf16.msra.mxu1 %v8243_v34  ;;  %v3716_v40 = vld [vmem:[#allocation3 + $0x80] sm:$0xff] }
 0x585   : > { %8245 = vmatprep.subr.bf16.mxu1 %v12260_v56 }
 0x587   : > { %4728 = vmatmul.mubr.f32.gmra.mrb[78].mxu1 %v11234_v16 }
 0x588   : > { %4732 = vmatprep.mubr.f32.mxu1 %v3715_v53  ;;  %8247 = vmatpush1.bf16.msra.mxu1 %v8246_v15  ;;  %v4176_v15 = vld [vmem:[%s10544_s14 + $0x2a0] sm:$0xff]  ;;  %v3717_v53 = vld [vmem:[#allocation3 + $0x90] sm:$0xff] }
 0x589   : > { %8248 = vmatprep.subr.bf16.mxu1 %v12260_v56 }
 0x58a   : > { %v11240_v34 = vpop.f32.mrb[142].mxu0 }
 0x58b   : > { %12304 = vst [vmem:[#allocation18_spill] sm:$0xff] %v11240_v34  ;;  %4733 = vmatmul.mubr.f32.gmra.mrb[80].mxu1 %v11242_v62  ;;  %v11245_v59 = vpop.f32.mrb[143].mxu0  ;;  %v8255_v34 = vpack.c.bf16 %v4177_v44, %v4176_v15  ;;  %v11267_v15 = vld [vmem:[#allocation3 + $0x92] sm:$0xff] }
 0x58c   : > { %12305 = vst [vmem:[#allocation19_spill] sm:$0xff] %v11245_v59  ;;  %4737 = vmatprep.mubr.f32.mxu1 %v3716_v40  ;;  %8250 = vmatpush1.bf16.msra.mxu1 %v8249_v6  ;;  %v11256_v59 = vld [vmem:[#allocation3 + $0x7a] sm:$0xff] }
 0x58d   : > { %8251 = vmatprep.subr.bf16.mxu1 %v12260_v56 }
 0x58f   : > { %4738 = vmatmul.mubr.f32.gmra.mrb[82].mxu1 %v11250_v3 }
 0x590   : > { %4742 = vmatprep.mubr.f32.mxu1 %v3717_v53  ;;  %8253 = vmatpush1.bf16.msra.mxu1 %v8252_v48  ;;  %v3719_v48 = vld [vmem:[#allocation3 + $0xa8] sm:$0xff]  ;;  %v3720_v53 = vld [vmem:[#allocation3 + $0xb0] sm:$0xff] }
 0x591   : > { %8254 = vmatprep.subr.bf16.mxu1 %v12260_v56 }
 0x592   : > { %v11254_v45 = vpop.f32.mrb[144].mxu0 }
 0x593   : > { %12306 = vst [vmem:[#allocation20_spill] sm:$0xff] %v11254_v45  ;;  %4743 = vmatmul.mubr.f32.gmra.mrb[84].mxu1 %v11256_v59  ;;  %v11259_v6 = vpop.f32.mrb[145].mxu0 }
 0x594   : > { %12307 = vst [vmem:[#allocation21_spill] sm:$0xff] %v11259_v6  ;;  %4747 = vmatprep.mubr.f32.mxu1 %v3718_v46  ;;  %8256 = vmatpush1.bf16.msra.mxu1 %v8255_v34  ;;  %v4178_v46 = vld [vmem:[%s10544_s14 + $0x2b0] sm:$0xff]  ;;  %v4179_v34 = vld [vmem:[%s10544_s14 + $0x2b8] sm:$0xff] }
 0x595   : > { %8257 = vmatprep.subr.bf16.mxu1 %v12260_v56  ;;  %v8258_v45 = vpack.c.bf16 %v4179_v34, %v4178_v46  ;;  %v11274_v6 = vld [vmem:[#allocation3 + $0x9a] sm:$0xff]  ;;  %v3722_v46 = vld [vmem:[#allocation3 + $0xc8] sm:$0xff]  ;;  %v11285_v34 = vld [vmem:[#allocation3 + $0xb2] sm:$0xff] }
 0x597   : > { %4748 = vmatmul.mubr.f32.gmra.mrb[86].mxu1 %v11262_v38 }
 0x598   : > { %4752 = vmatprep.mubr.f32.mxu1 %v3719_v48  ;;  %8259 = vmatpush1.bf16.msra.mxu1 %v8258_v45 }
 0x599   : > { %8260 = vmatprep.subr.bf16.mxu1 %v12260_v56 }
 0x59a   : > { %v11265_v40 = vpop.f32.mrb[146].mxu0 }
 0x59b   : > { %12308 = vst [vmem:[#allocation22_spill] sm:$0xff] %v11265_v40  ;;  %4753 = vmatmul.mubr.f32.gmra.mrb[88].mxu1 %v11267_v15  ;;  %v11270_v44 = vpop.f32.mrb[147].mxu0  ;;  %v11280_v40 = vld [vmem:[#allocation3 + $0xaa] sm:$0xff] }
 0x59c   : > { %12309 = vst [vmem:[#allocation23_spill] sm:$0xff] %v11270_v44  ;;  %4757 = vmatprep.mubr.f32.mxu1 %v3720_v53  ;;  %v11290_v44 = vld [vmem:[#allocation3 + $0xc2] sm:$0xff] }
 0x59f   : > { %4758 = vmatmul.mubr.f32.gmra.mrb[90].mxu1 %v11274_v6 }
 0x5a0   : > { %4762 = vmatprep.mubr.f32.mxu1 %v3721_v36  ;;  %v3723_v36 = vld [vmem:[#allocation3 + $0xd8] sm:$0xff] }
 0x5a2   : > { %v11278_v48 = vpop.f32.mrb[148].mxu0 }
 0x5a3   : > { %12310 = vst [vmem:[#allocation24_spill] sm:$0xff] %v11278_v48  ;;  %4763 = vmatmul.mubr.f32.gmra.mrb[92].mxu1 %v11280_v40  ;;  %v11283_v53 = vpop.f32.mrb[149].mxu0 }
 0x5a4   : > { %12311 = vst [vmem:[#allocation25_spill] sm:$0xff] %v11283_v53  ;;  %4767 = vmatprep.mubr.f32.mxu1 %v3722_v46  ;;  %v4181_v53 = vld [vmem:[%s10544_s14 + $0x2c8] sm:$0xff] }
 0x5a5   : > { %v8261_v49 = vpack.c.bf16 %v4181_v53, %v4180_v9  ;;  %v11297_v46 = vld [vmem:[#allocation3 + $0xca] sm:$0xff]  ;;  %v3726_v9 = vld [vmem:[#allocation3 + $0xf8] sm:$0xff]  ;;  %v11308_v53 = vld [vmem:[#allocation3 + $0xe2] sm:$0xff] }
 0x5a7   : > { %4768 = vmatmul.mubr.f32.gmra.mrb[94].mxu1 %v11285_v34 }
 0x5a8   : > { %4772 = vmatprep.mubr.f32.mxu1 %v3723_v36  ;;  %8262 = vmatpush1.bf16.msra.mxu1 %v8261_v49 }
 0x5a9   : > { %8263 = vmatprep.subr.bf16.mxu1 %v12260_v56 }
 0x5aa   : > { %v11288_v45 = vpop.f32.mrb[150].mxu0 }
 0x5ab   : > { %12312 = vst [vmem:[#allocation26_spill] sm:$0xff] %v11288_v45  ;;  %4773 = vmatmul.mubr.f32.gmra.mrb[96].mxu1 %v11290_v44  ;;  %v11293_v48 = vpop.f32.mrb[151].mxu0  ;;  %v11303_v45 = vld [vmem:[#allocation3 + $0xda] sm:$0xff] }
 0x5ac   : > { %12313 = vst [vmem:[#allocation27_spill] sm:$0xff] %v11293_v48  ;;  %4777 = vmatprep.mubr.f32.mxu1 %v3724_v31  ;;  %v11313_v48 = vld [vmem:[#allocation3 + $0xf2] sm:$0xff] }
 0x5af   : > { %4778 = vmatmul.mubr.f32.gmra.mrb[98].mxu1 %v11297_v46 }
 0x5b0   : > { %4782 = vmatprep.mubr.f32.mxu1 %v3725_v13  ;;  %v3727_v13 = vld [vmem:[#allocation3 + $0x108] sm:$0xff] }
 0x5b2   : > { %v11301_v36 = vpop.f32.mrb[152].mxu0 }
 0x5b3   : > { %12314 = vst [vmem:[#allocation28_spill] sm:$0xff] %v11301_v36  ;;  %4783 = vmatmul.mubr.f32.gmra.mrb[100].mxu1 %v11303_v45  ;;  %v11306_v31 = vpop.f32.mrb[153].mxu0 }
 0x5b4   : > { %12315 = vst [vmem:[#allocation29_spill] sm:$0xff] %v11306_v31  ;;  %4787 = vmatprep.mubr.f32.mxu1 %v3726_v9  ;;  %v4183_v31 = vld [vmem:[%s10544_s14 + $0x2d8] sm:$0xff] }
 0x5b5   : > { %v8264_v11 = vpack.c.bf16 %v4183_v31, %v4182_v30  ;;  %v11320_v9 = vld [vmem:[#allocation3 + $0xfa] sm:$0xff]  ;;  %v3730_v30 = vld [vmem:[#allocation3 + $0x128] sm:$0xff]  ;;  %v11331_v31 = vld [vmem:[#allocation3 + $0x112] sm:$0xff] }
 0x5b6   : > { %12320 = vst [vmem:[#allocation34_spill] sm:$0xff] %v11331_v31 }
 0x5b7   : > { %4788 = vmatmul.mubr.f32.gmra.mrb[102].mxu1 %v11308_v53 }
 0x5b8   : > { %4792 = vmatprep.mubr.f32.mxu1 %v3727_v13  ;;  %8265 = vmatpush1.bf16.msra.mxu1 %v8264_v11 }
 0x5b9   : > { %8266 = vmatprep.subr.bf16.mxu1 %v12260_v56 }
 0x5ba   : > { %v11311_v49 = vpop.f32.mrb[154].mxu0 }
 0x5bb   : > { %12316 = vst [vmem:[#allocation30_spill] sm:$0xff] %v11311_v49  ;;  %4793 = vmatmul.mubr.f32.gmra.mrb[104].mxu1 %v11313_v48  ;;  %v11316_v36 = vpop.f32.mrb[155].mxu0  ;;  %v11326_v49 = vld [vmem:[#allocation3 + $0x10a] sm:$0xff] }
 0x5bc   : > { %12317 = vst [vmem:[#allocation31_spill] sm:$0xff] %v11316_v36  ;;  %4797 = vmatprep.mubr.f32.mxu1 %v3728_v24 }
 0x5bf   : > { %4798 = vmatmul.mubr.f32.gmra.mrb[106].mxu1 %v11320_v9 }
 0x5c0   : > { %4802 = vmatprep.mubr.f32.mxu1 %v3729_v10  ;;  %v3731_v10 = vld [vmem:[#allocation3 + $0x138] sm:$0xff] }
 0x5c1   : > { %v11324_v13 = vpop.f32.mrb[156].mxu0 }
 0x5c2   : > { %12318 = vst [vmem:[#allocation32_spill] sm:$0xff] %v11324_v13  ;;  %v11329_v24 = vpop.f32.mrb[157].mxu0  ;;  %v11338_v13 = vld [vmem:[#allocation3 + $0x122] sm:$0xff] }
 0x5c3   : > { %4803 = vmatmul.mubr.f32.gmra.mrb[108].mxu1 %v11326_v49  ;;  %12319 = vst [vmem:[#allocation33_spill] sm:$0xff] %v11329_v24  ;;  %12323 = vst [vmem:[#allocation37_spill] sm:$0xff] %v11338_v13  ;;  %v4185_v24 = vld [vmem:[%s10544_s14 + $0x2e8] sm:$0xff] }
 0x5c4   : > { %4807 = vmatprep.mubr.f32.mxu1 %v3730_v30  ;;  %v8267_v37 = vpack.c.bf16 %v4185_v24, %v4184_v63  ;;  %v11343_v30 = vld [vmem:[#allocation3 + $0x12a] sm:$0xff]  ;;  %v3734_v63 = vld [vmem:[#allocation3 + $0x158] sm:$0xff]  ;;  %v11354_v24 = vld [vmem:[#allocation3 + $0x142] sm:$0xff] }
 0x5c5   : > { %v11333_v36 = vpop.f32.mrb[158].mxu0  ;;  %12324 = vst [vmem:[#allocation38_spill] sm:$0xff] %v11343_v30  ;;  %12328 = vst [vmem:[#allocation42_spill] sm:$0xff] %v11354_v24 }
 0x5c6   : > { %12321 = vst [vmem:[#allocation35_spill] sm:$0xff] %v11333_v36  ;;  %v11336_v11 = vpop.f32.mrb[159].mxu0  ;;  %v3733_v36 = vld [vmem:[#allocation3 + $0x150] sm:$0xff]  ;;  %8268 = vmatpush1.bf16.msra.mxu1 %v8267_v37 }
 0x5c7   : > { %4808 = vmatmul.mubr.f32.gmra.mrb[110].mxu1 %v11331_v31  ;;  %12322 = vst [vmem:[#allocation36_spill] sm:$0xff] %v11336_v11  ;;  %8269 = vmatprep.subr.bf16.mxu1 %v12260_v56 }
 0x5c8   : > { %4812 = vmatprep.mubr.f32.mxu1 %v3731_v10  ;;  %v11349_v10 = vld [vmem:[#allocation3 + $0x13a] sm:$0xff] }
 0x5c9   : > { %12326 = vst [vmem:[#allocation40_spill] sm:$0xff] %v11349_v10 }
 0x5cb   : > { %4813 = vmatmul.mubr.f32.gmra.mrb[112].mxu1 %v11338_v13  ;;  %v3736_v13 = vld [vmem:[#allocation3 + $0x170] sm:$0xff] }
 0x5cc   : > { %4817 = vmatprep.mubr.f32.mxu1 %v3732_v60 }
 0x5cf   : > { %4818 = vmatmul.mubr.f32.gmra.mrb[114].mxu1 %v11343_v30  ;;  %v11359_v30 = vld [vmem:[#allocation3 + $0x152] sm:$0xff] }
 0x5d0   : > { %4822 = vmatprep.mubr.f32.mxu1 %v3733_v36  ;;  %v3735_v36 = vld [vmem:[#allocation3 + $0x168] sm:$0xff]  ;;  %12330 = vst [vmem:[#allocation44_spill] sm:$0xff] %v11359_v30 }
 0x5d2   : > { %v11347_v11 = vpop.f32.mrb[160].mxu0 }
 0x5d3   : > { %12325 = vst [vmem:[#allocation39_spill] sm:$0xff] %v11347_v11  ;;  %4823 = vmatmul.mubr.f32.gmra.mrb[116].mxu1 %v11349_v10  ;;  %v11352_v60 = vpop.f32.mrb[161].mxu0  ;;  %v4186_v10 = vld [vmem:[%s10544_s14 + $0x2f0] sm:$0xff] }
 0x5d4   : > { %12327 = vst [vmem:[#allocation41_spill] sm:$0xff] %v11352_v60  ;;  %4827 = vmatprep.mubr.f32.mxu1 %v3734_v63  ;;  %v4187_v60 = vld [vmem:[%s10544_s14 + $0x2f8] sm:$0xff] }
 0x5d5   : > { %v8270_v31 = vpack.c.bf16 %v4187_v60, %v4186_v10  ;;  %v11366_v63 = vld [vmem:[#allocation3 + $0x15a] sm:$0xff]  ;;  %v11377_v10 = vld [vmem:[#allocation3 + $0x172] sm:$0xff]  ;;  %v3739_v60 = vld [vmem:[#allocation3 + $0x1c8] sm:$0xff] }
 0x5d6   : > { %12332 = vst [vmem:[#allocation46_spill] sm:$0xff] %v11366_v63  ;;  %12336 = vst [vmem:[#allocation50_spill] sm:$0xff] %v11377_v10 }
 0x5d7   : > { %4828 = vmatmul.mubr.f32.gmra.mrb[118].mxu1 %v11354_v24  ;;  %v3737_v24 = vld [vmem:[#allocation3 + $0x180] sm:$0xff] }
 0x5d8   : > { %4832 = vmatprep.mubr.f32.mxu1 %v3735_v36  ;;  %8271 = vmatpush1.bf16.msra.mxu1 %v8270_v31 }
 0x5d9   : > { %8272 = vmatprep.subr.bf16.mxu1 %v12260_v56 }
 0x5da   : > { %v11357_v37 = vpop.f32.mrb[162].mxu0 }
 0x5db   : > { %12329 = vst [vmem:[#allocation43_spill] sm:$0xff] %v11357_v37  ;;  %4833 = vmatmul.mubr.f32.gmra.mrb[120].mxu1 %v11359_v30  ;;  %v11362_v11 = vpop.f32.mrb[163].mxu0  ;;  %v11372_v37 = vld [vmem:[#allocation3 + $0x16a] sm:$0xff]  ;;  %v3676_v30 = vld [vmem:[#allocation3 + $0x1ba] sm:$0xff] }
 0x5dc   : > { %12331 = vst [vmem:[#allocation45_spill] sm:$0xff] %v11362_v11  ;;  %4837 = vmatprep.mubr.f32.mxu1 %v3736_v13  ;;  %12334 = vst [vmem:[#allocation48_spill] sm:$0xff] %v11372_v37  ;;  %v3738_v13 = vld [vmem:[#allocation3 + $0x188] sm:$0xff] }
 0x5df   : > { %4838 = vmatmul.mubr.f32.gmra.mrb[122].mxu1 %v11366_v63 }
 0x5e0   : > { %4842 = vmatprep.mubr.f32.mxu1 %v3737_v24  ;;  %v3675_v24 = vld [vmem:[#allocation3 + $0x1b2] sm:$0xff] }
 0x5e2   : > { %v11370_v36 = vpop.f32.mrb[164].mxu0 }
 0x5e3   : > { %12333 = vst [vmem:[#allocation47_spill] sm:$0xff] %v11370_v36  ;;  %4843 = vmatmul.mubr.f32.gmra.mrb[124].mxu1 %v11372_v37  ;;  %v11375_v11 = vpop.f32.mrb[165].mxu0  ;;  %v3740_v36 = vld [vmem:[#allocation3 + $0x1d0] sm:$0xff]  ;;  %v3741_v37 = vld [vmem:[#allocation3 + $0x1e0] sm:$0xff] }
 0x5e4   : > { %12335 = vst [vmem:[#allocation49_spill] sm:$0xff] %v11375_v11  ;;  %4847 = vmatprep.mubr.f32.mxu1 %v3738_v13  ;;  %v11386_v13 = vld [vmem:[#allocation3 + $0x1ca] sm:$0xff] }
 0x5e7   : > { %4848 = vmatmul.mubr.f32.gmra.mrb[126].mxu1 %v11377_v10 }
 0x5e8   : > { %4852 = vmatprep.mubr.f32.mxu1 %v3739_v60  ;;  %v3742_v60 = vld [vmem:[#allocation3 + $0x1e8] sm:$0xff] }
 0x5ea   : > { %v11380_v31 = vpop.f32.mrb[166].mxu0 }
 0x5eb   : > { %12337 = vst [vmem:[#allocation51_spill] sm:$0xff] %v11380_v31  ;;  %4853 = vmatmul.mubr.f32.gmra.mrb[128].mxu1 %v3675_v24  ;;  %v11382_v63 = vpop.f32.mrb[167].mxu0  ;;  %v11391_v31 = vld [vmem:[#allocation3 + $0x1d2] sm:$0xff] }
 0x5ec   : > { %12338 = vst [vmem:[#allocation52_spill] sm:$0xff] %v11382_v63  ;;  %4857 = vmatprep.mubr.f32.mxu1 %v3740_v36  ;;  %12341 = vst [vmem:[#allocation55_spill] sm:$0xff] %v11391_v31  ;;  %v3743_v24 = vld [vmem:[#allocation3 + $0x1f8] sm:$0xff]  ;;  %v11401_v63 = vld [vmem:[#allocation3 + $0x1ea] sm:$0xff] }
 0x5ed   : > { %12345 = vst [vmem:[#allocation59_spill] sm:$0xff] %v11401_v63 }
 0x5ef   : > { %4858 = vmatmul.mubr.f32.gmra.mrb[130].mxu1 %v3676_v30  ;;  %v11396_v30 = vld [vmem:[#allocation3 + $0x1e2] sm:$0xff] }
 0x5f0   : > { %4862 = vmatprep.mubr.f32.mxu1 %v3741_v37  ;;  %12343 = vst [vmem:[#allocation57_spill] sm:$0xff] %v11396_v30 }
 0x5f2   : > { %v11384_v11 = vpop.f32.mrb[168].mxu0 }
 0x5f3   : > { %12339 = vst [vmem:[#allocation53_spill] sm:$0xff] %v11384_v11  ;;  %4863 = vmatmul.mubr.f32.gmra.mrb[132].mxu1 %v11386_v13  ;;  %v11389_v10 = vpop.f32.mrb[169].mxu0  ;;  %v3744_v11 = vld [vmem:[#allocation3 + $0x200] sm:$0xff] }
 0x5f4   : > { %12340 = vst [vmem:[#allocation54_spill] sm:$0xff] %v11389_v10  ;;  %4867 = vmatprep.mubr.f32.mxu1 %v3742_v60  ;;  %v3745_v60 = vld [vmem:[#allocation3 + $0x210] sm:$0xff] }
 0x5f7   : > { %4868 = vmatmul.mubr.f32.gmra.mrb[134].mxu1 %v11391_v31  ;;  %v11406_v31 = vld [vmem:[#allocation3 + $0x1fa] sm:$0xff] }
 0x5f8   : > { %4872 = vmatprep.mubr.f32.mxu1 %v3743_v24  ;;  %12347 = vst [vmem:[#allocation61_spill] sm:$0xff] %v11406_v31 }
 0x5fa   : > { %v11394_v36 = vpop.f32.mrb[170].mxu0 }
 0x5fb   : > { %12342 = vst [vmem:[#allocation56_spill] sm:$0xff] %v11394_v36  ;;  %4873 = vmatmul.mubr.f32.gmra.mrb[136].mxu1 %v11396_v30  ;;  %v11399_v37 = vpop.f32.mrb[171].mxu0  ;;  %v3746_v36 = vld [vmem:[#allocation3 + $0x218] sm:$0xff]  ;;  %v11411_v30 = vld [vmem:[#allocation3 + $0x202] sm:$0xff] }
 0x5fc   : > { %12344 = vst [vmem:[#allocation58_spill] sm:$0xff] %v11399_v37  ;;  %4877 = vmatprep.mubr.f32.mxu1 %v3744_v11  ;;  %12349 = vst [vmem:[#allocation63_spill] sm:$0xff] %v11411_v30  ;;  %v3747_v11 = vld [vmem:[#allocation3 + $0x228] sm:$0xff] }
 0x5ff   : > { %4878 = vmatmul.mubr.f32.gmra.mrb[138].mxu1 %v11401_v63  ;;  %v11416_v63 = vld [vmem:[#allocation3 + $0x212] sm:$0xff] }
 0x600   : > { %4882 = vmatprep.mubr.f32.mxu1 %v3745_v60  ;;  %12351 = vst [vmem:[#allocation65_spill] sm:$0xff] %v11416_v63 }
 0x602   : > { %v11404_v10 = vpop.f32.mrb[172].mxu0 }
 0x603   : > { %12346 = vst [vmem:[#allocation60_spill] sm:$0xff] %v11404_v10  ;;  %4883 = vmatmul.mubr.f32.gmra.mrb[140].mxu1 %v11406_v31  ;;  %v11409_v24 = vpop.f32.mrb[173].mxu0  ;;  %v3748_v10 = vld [vmem:[#allocation3 + $0x230] sm:$0xff]  ;;  %v11421_v31 = vld [vmem:[#allocation3 + $0x21a] sm:$0xff] }
 0x604   : > { %12348 = vst [vmem:[#allocation62_spill] sm:$0xff] %v11409_v24  ;;  %4887 = vmatprep.mubr.f32.mxu1 %v3746_v36  ;;  %12353 = vst [vmem:[#allocation67_spill] sm:$0xff] %v11421_v31  ;;  %v3749_v36 = vld [vmem:[#allocation3 + $0x240] sm:$0xff] }
 0x607   : > { %4888 = vmatmul.mubr.f32.gmra.mrb[142].mxu1 %v11411_v30  ;;  %v11426_v30 = vld [vmem:[#allocation3 + $0x22a] sm:$0xff] }
 0x608   : > { %4892 = vmatprep.mubr.f32.mxu1 %v3747_v11  ;;  %12355 = vst [vmem:[#allocation69_spill] sm:$0xff] %v11426_v30 }
 0x60a   : > { %v11414_v37 = vpop.f32.mrb[174].mxu0 }
 0x60b   : > { %12350 = vst [vmem:[#allocation64_spill] sm:$0xff] %v11414_v37  ;;  %4893 = vmatmul.mubr.f32.gmra.mrb[144].mxu1 %v11416_v63  ;;  %v11419_v60 = vpop.f32.mrb[175].mxu0  ;;  %v3750_v37 = vld [vmem:[#allocation3 + $0x248] sm:$0xff]  ;;  %v11431_v63 = vld [vmem:[#allocation3 + $0x232] sm:$0xff] }
 0x60c   : > { %12352 = vst [vmem:[#allocation66_spill] sm:$0xff] %v11419_v60  ;;  %4897 = vmatprep.mubr.f32.mxu1 %v3748_v10  ;;  %v3751_v10 = vld [vmem:[#allocation3 + $0x258] sm:$0xff] }
 0x60f   : > { %4898 = vmatmul.mubr.f32.gmra.mrb[146].mxu1 %v11421_v31  ;;  %v11436_v31 = vld [vmem:[#allocation3 + $0x242] sm:$0xff] }
 0x610   : > { %4902 = vmatprep.mubr.f32.mxu1 %v3749_v36 }
 0x612   : > { %v11424_v24 = vpop.f32.mrb[176].mxu0 }
 0x613   : > { %12354 = vst [vmem:[#allocation68_spill] sm:$0xff] %v11424_v24  ;;  %4903 = vmatmul.mubr.f32.gmra.mrb[148].mxu1 %v11426_v30  ;;  %v11429_v11 = vpop.f32.mrb[177].mxu0  ;;  %v9265_v24 = vld [vmem:[#allocation3 + $0x260] sm:$0xff]  ;;  %v11441_v30 = vld [vmem:[#allocation3 + $0x24a] sm:$0xff] }
 0x614   : > { %12356 = vst [vmem:[#allocation70_spill] sm:$0xff] %v11429_v11  ;;  %4907 = vmatprep.mubr.f32.mxu1 %v3750_v37  ;;  %v11447_v11 = vld [vmem:[#allocation3 + $0x25a] sm:$0xff] }
 0x617   : > { %4908 = vmatmul.mubr.f32.gmra.mrb[150].mxu1 %v11431_v63 }
 0x618   : > { %4912 = vmatprep.mubr.f32.mxu1 %v3751_v10 }
 0x61a   : > { %v11434_v60 = vpop.f32.mrb[178].mxu0 }
 0x61b   : > { %12357 = vst [vmem:[#allocation71_spill] sm:$0xff] %v11434_v60  ;;  %4913 = vmatmul.mubr.f32.gmra.mrb[152].mxu1 %v11436_v31  ;;  %v11439_v36 = vpop.f32.mrb[179].mxu0  ;;  %v11453_v60 = vld [vmem:[#allocation3 + $0x262] sm:$0xff] }
 0x61c   : > { %12358 = vst [vmem:[#allocation72_spill] sm:$0xff] %v11439_v36  ;;  %4917 = vmatprep.mubr.f32.mxu1 %v9265_v24  ;;  %v11770_v36 = vld [vmem:[#allocation3 + $0x339] sm:$0xff] }
 0x61f   : > { %4918 = vmatmul.mubr.f32.gmra.mrb[154].mxu1 %v11441_v30 }
 0x620   : > { %4922 = vmatprep.mubr.f32.mxu1 %v11025_v47 }
 0x622   : > { %v11445_v37 = vpop.f32.mrb[180].mxu0 }
 0x623   : > { %12359 = vst [vmem:[#allocation73_spill] sm:$0xff] %v11445_v37  ;;  %4923 = vmatmul.mubr.f32.gmra.mrb[156].mxu1 %v11447_v11  ;;  %v11450_v10 = vpop.f32.mrb[181].mxu0 }
 0x624   : > { %12360 = vst [vmem:[#allocation74_spill] sm:$0xff] %v11450_v10  ;;  %4927 = vmatprep.mubr.f32.mxu1 %v11033_v43  ;;  %v11767_v10 = vld [vmem:[#allocation3 + $0x331] sm:$0xff] }
 0x627   : > { %4928 = vmatmul.mubr.f32.gmra.mrb[158].mxu1 %v11453_v60 }
 0x628   : > { %4932 = vmatprep.mubr.f32.mxu1 %v11043_v50 }
 0x62a   : > { %v11457_v24 = vpop.f32.mrb[182].mxu0 }
 0x62b   : > { %12361 = vst [vmem:[#allocation75_spill] sm:$0xff] %v11457_v24  ;;  %4933 = vmatmul.mubr.f32.gmra.mrb[160].mxu1 %v11031_v61  ;;  %v11460_v47 = vpop.f32.mrb[183].mxu0  ;;  %v11761_v24 = vld [vmem:[#allocation3 + $0x319] sm:$0xff] }
 0x62c   : > { %12362 = vst [vmem:[#allocation76_spill] sm:$0xff] %v11460_v47  ;;  %4937 = vmatprep.mubr.f32.mxu1 %v11051_v22  ;;  %v3769_v22 = vld [vmem:[#allocation3 + $0x330] sm:$0xff]  ;;  %v11764_v47 = vld [vmem:[#allocation3 + $0x321] sm:$0xff] }
 0x62f   : > { %4938 = vmatmul.mubr.f32.gmra.mrb[162].mxu1 %v11038_v8 }
 0x630   : > { %4942 = vmatprep.mubr.f32.mxu1 %v11061_v25  ;;  %v4188_v25 = vld [vmem:[%s10544_s14 + $0x300] sm:$0xff] }
 0x632   : > { %v11465_v37 = vpop.f32.mrb[184].mxu0 }
 0x633   : > { %12363 = vst [vmem:[#allocation77_spill] sm:$0xff] %v11465_v37  ;;  %4943 = vmatmul.mubr.f32.gmra.mrb[164].mxu1 %v11049_v12  ;;  %v11468_v43 = vpop.f32.mrb[185].mxu0  ;;  %v11755_v37 = vld [vmem:[#allocation3 + $0x301] sm:$0xff] }
 0x634   : > { %12364 = vst [vmem:[#allocation78_spill] sm:$0xff] %v11468_v43  ;;  %4947 = vmatprep.mubr.f32.mxu1 %v11069_v1  ;;  %v11758_v43 = vld [vmem:[#allocation3 + $0x309] sm:$0xff] }
 0x637   : > { %4948 = vmatmul.mubr.f32.gmra.mrb[166].mxu1 %v11056_v2  ;;  %v3770_v2 = vld [vmem:[#allocation3 + $0x338] sm:$0xff] }
 0x638   : > { %4952 = vmatprep.mubr.f32.mxu1 %v11079_v54  ;;  %v4191_v54 = vld [vmem:[%s10544_s14 + $0x318] sm:$0xff] }
 0x63a   : > { %v11473_v61 = vpop.f32.mrb[186].mxu0 }
 0x63b   : > { %12365 = vst [vmem:[#allocation79_spill] sm:$0xff] %v11473_v61  ;;  %4953 = vmatmul.mubr.f32.gmra.mrb[168].mxu1 %v11067_v42  ;;  %v11476_v50 = vpop.f32.mrb[187].mxu0  ;;  %v4189_v42 = vld [vmem:[%s10544_s14 + $0x308] sm:$0xff] }
 0x63c   : > { %12366 = vst [vmem:[#allocation80_spill] sm:$0xff] %v11476_v50  ;;  %4957 = vmatprep.mubr.f32.mxu1 %v11087_v27  ;;  %v8273_v1 = vpack.c.bf16 %v4189_v42, %v4188_v25  ;;  %v11550_v25 = vld [vmem:[#allocation3 + $0x69] sm:$0xff]  ;;  %v11752_v50 = vld [vmem:[#allocation3 + $0x2f1] sm:$0xff] }
 0x63d   : > { %v11749_v61 = vld [vmem:[#allocation3 + $0x2e9] sm:$0xff] }
 0x63f   : > { %4958 = vmatmul.mubr.f32.gmra.mrb[170].mxu1 %v11074_v39  ;;  %v4190_v39 = vld [vmem:[%s10544_s14 + $0x310] sm:$0xff] }
 0x640   : > { %4962 = vmatprep.mubr.f32.mxu1 %v11097_v51  ;;  %v8276_v27 = vpack.c.bf16 %v4191_v54, %v4190_v39  ;;  %v4193_v51 = vld [vmem:[%s10544_s14 + $0x328] sm:$0xff]  ;;  %v11557_v39 = vld [vmem:[#allocation3 + $0x79] sm:$0xff] }
 0x641   : > { %v11481_v8 = vpop.f32.mrb[188].mxu0 }
 0x642   : > { %12367 = vst [vmem:[#allocation81_spill] sm:$0xff] %v11481_v8  ;;  %v11484_v12 = vpop.f32.mrb[189].mxu0  ;;  %v11743_v8 = vld [vmem:[#allocation3 + $0x2d1] sm:$0xff] }
 0x643   : > { %4963 = vmatmul.mubr.f32.gmra.mrb[172].mxu1 %v11085_v26  ;;  %12368 = vst [vmem:[#allocation82_spill] sm:$0xff] %v11484_v12  ;;  %v3771_v26 = vld [vmem:[#allocation3 + $0x19] sm:$0xff] }
 0x644   : > { %4967 = vmatprep.mubr.f32.mxu1 %v11105_v21  ;;  %v11746_v12 = vld [vmem:[#allocation3 + $0x2d9] sm:$0xff] }
 0x647   : > { %4968 = vmatmul.mubr.f32.gmra.mrb[174].mxu1 %v11092_v28  ;;  %v4192_v28 = vld [vmem:[%s10544_s14 + $0x320] sm:$0xff] }
 0x648   : > { %4972 = vmatprep.mubr.f32.mxu1 %v11115_v20  ;;  %v8279_v21 = vpack.c.bf16 %v4193_v51, %v4192_v28  ;;  %v4195_v20 = vld [vmem:[%s10544_s14 + $0x338] sm:$0xff]  ;;  %v11564_v28 = vld [vmem:[#allocation3 + $0x81] sm:$0xff] }
 0x649   : > { %v11569_v51 = vld [vmem:[#allocation3 + $0x91] sm:$0xff] }
 0x64b   : > { %4973 = vmatmul.mubr.f32.gmra.mrb[176].mxu1 %v11103_v18  ;;  %v3772_v18 = vld [vmem:[#allocation3 + $0x21] sm:$0xff] }
 0x64c   : > { %4977 = vmatprep.mubr.f32.mxu1 %v11123_v17 }
 0x64f   : > { %4978 = vmatmul.mubr.f32.gmra.mrb[178].mxu1 %v11110_v4  ;;  %v4194_v4 = vld [vmem:[%s10544_s14 + $0x330] sm:$0xff] }
 0x650   : > { %4982 = vmatprep.mubr.f32.mxu1 %v11133_v0  ;;  %v8282_v17 = vpack.c.bf16 %v4195_v20, %v4194_v4  ;;  %v4197_v0 = vld [vmem:[%s10544_s14 + $0x348] sm:$0xff]  ;;  %v11597_v20 = vld [vmem:[#allocation3 + $0xd9] sm:$0xff] }
 0x653   : > { %4983 = vmatmul.mubr.f32.gmra.mrb[180].mxu1 %v11121_v29  ;;  %v11515_v29 = vld [vmem:[#allocation3 + $0x31] sm:$0xff] }
 0x654   : > { %4987 = vmatprep.mubr.f32.mxu1 %v11141_v5 }
 0x657   : > { %4988 = vmatmul.mubr.f32.gmra.mrb[182].mxu1 %v11128_v23  ;;  %v4196_v23 = vld [vmem:[%s10544_s14 + $0x340] sm:$0xff] }
 0x658   : > { %4992 = vmatprep.mubr.f32.mxu1 %v11151_v52  ;;  %v8285_v5 = vpack.c.bf16 %v4197_v0, %v4196_v23  ;;  %v4199_v52 = vld [vmem:[%s10544_s14 + $0x358] sm:$0xff]  ;;  %v11603_v0 = vld [vmem:[#allocation3 + $0xe1] sm:$0xff] }
 0x65b   : > { %4993 = vmatmul.mubr.f32.gmra.mrb[184].mxu1 %v11139_v14  ;;  %v11522_v14 = vld [vmem:[#allocation3 + $0x39] sm:$0xff] }
 0x65c   : > { %4997 = vmatprep.mubr.f32.mxu1 %v11164_v33 }
 0x65f   : > { %4998 = vmatmul.mubr.f32.gmra.mrb[186].mxu1 %v11146_v19  ;;  %v4198_v19 = vld [vmem:[%s10544_s14 + $0x350] sm:$0xff] }
 0x660   : > { %5002 = vmatprep.mubr.f32.mxu1 %v3769_v22  ;;  %v8288_v33 = vpack.c.bf16 %v4199_v52, %v4198_v19  ;;  %v4215_v19 = vld [vmem:[%s10544_s14 + $0x3d8] sm:$0xff] }
 0x663   : > { %5003 = vmatmul.mubr.f32.gmra.mrb[188].mxu1 %v11162_v7  ;;  %v11529_v7 = vld [vmem:[#allocation3 + $0x49] sm:$0xff] }
 0x664   : > { %5007 = vmatprep.mubr.f32.mxu1 %v3770_v2  ;;  %v4204_v2 = vld [vmem:[%s10544_s14 + $0x380] sm:$0xff] }
 0x667   : > { %5008 = vmatmul.mubr.f32.gmra.mrb[190].mxu1 %v11168_v35  ;;  %v4200_v35 = vld [vmem:[%s10544_s14 + $0x360] sm:$0xff] }
 0x668   : > { %5077 = vmatprep.mubr.f32.mxu1 %v11192_v32  ;;  %v4201_v32 = vld [vmem:[%s10544_s14 + $0x368] sm:$0xff] }
 0x66b   : > { %5078 = vmatmul.mubr.f32.vlgmr.msra.gmra.mrb[64].mxu1 %v3771_v26  ;;  %v4208_v26 = vld [vmem:[%s10544_s14 + $0x3a0] sm:$0xff] }
 0x66c   : > { %5082 = vmatprep.mubr.f32.mxu1 %v11202_v55  ;;  %8274 = vmatpush1.bf16.msra.mxu1 %v8273_v1  ;;  %v11536_v55 = vld [vmem:[#allocation3 + $0x51] sm:$0xff] }
 0x66d   : > { %8275 = vmatprep.subr.bf16.mxu1 %v12260_v56  ;;  %v4206_v1 = vld [vmem:[%s10544_s14 + $0x390] sm:$0xff] }
 0x66f   : > { %5083 = vmatmul.mubr.f32.gmra.mrb[66].mxu1 %v3772_v18  ;;  %v4210_v18 = vld [vmem:[%s10544_s14 + $0x3b0] sm:$0xff] }
 0x670   : > { %5087 = vmatprep.mubr.f32.mxu1 %v11210_v57  ;;  %8277 = vmatpush1.bf16.msra.mxu1 %v8276_v27  ;;  %v8291_v57 = vpack.c.bf16 %v4201_v32, %v4200_v35  ;;  %v4209_v27 = vld [vmem:[%s10544_s14 + $0x3a8] sm:$0xff]  ;;  %v12371_v35 = vld [vmem:[#allocation38_spill] sm:$0xff] }
 0x671   : > { %8278 = vmatprep.subr.bf16.mxu1 %v12260_v56  ;;  %v11631_v32 = vld [vmem:[#allocation3 + $0x129] sm:$0xff] }
 0x673   : > { %5088 = vmatmul.mubr.f32.gmra.mrb[68].mxu1 %v11515_v29 }
 0x674   : > { %5092 = vmatprep.mubr.f32.mxu1 %v11218_v41  ;;  %8280 = vmatpush1.bf16.msra.mxu1 %v8279_v21  ;;  %v4202_v41 = vld [vmem:[%s10544_s14 + $0x370] sm:$0xff]  ;;  %v4211_v21 = vld [vmem:[%s10544_s14 + $0x3b8] sm:$0xff] }
 0x675   : > { %8281 = vmatprep.subr.bf16.mxu1 %v12260_v56  ;;  %v8306_v4 = vpack.c.bf16 %v4211_v21, %v4210_v18  ;;  %v12377_v18 = vld [vmem:[#allocation50_spill] sm:$0xff] }
 0x676   : > { %v4218_v21 = vld [vmem:[%s10544_s14 + $0x3f0] sm:$0xff] }
 0x677   : > { %5093 = vmatmul.mubr.f32.gmra.mrb[70].mxu1 %v11522_v14 }
 0x678   : > { %5097 = vmatprep.mubr.f32.mxu1 %v11226_v58  ;;  %8283 = vmatpush1.bf16.msra.mxu1 %v8282_v17  ;;  %v4203_v58 = vld [vmem:[%s10544_s14 + $0x378] sm:$0xff]  ;;  %v4213_v17 = vld [vmem:[%s10544_s14 + $0x3c8] sm:$0xff] }
 0x679   : > { %8284 = vmatprep.subr.bf16.mxu1 %v12260_v56  ;;  %v8294_v22 = vpack.c.bf16 %v4203_v58, %v4202_v41  ;;  %v11635_v41 = vld [vmem:[#allocation3 + $0x139] sm:$0xff]  ;;  %v12373_v58 = vld [vmem:[#allocation42_spill] sm:$0xff] }
 0x67b   : > { %5098 = vmatmul.mubr.f32.gmra.mrb[72].mxu1 %v11529_v7 }
 0x67c   : > { %5102 = vmatprep.mubr.f32.mxu1 %v11234_v16  ;;  %8286 = vmatpush1.bf16.msra.mxu1 %v8285_v5  ;;  %v11543_v16 = vld [vmem:[#allocation3 + $0x61] sm:$0xff]  ;;  %v4214_v5 = vld [vmem:[%s10544_s14 + $0x3d0] sm:$0xff] }
 0x67d   : > { %8287 = vmatprep.subr.bf16.mxu1 %v12260_v56  ;;  %v8312_v52 = vpack.c.bf16 %v4215_v19, %v4214_v5  ;;  %v11666_v5 = vld [vmem:[#allocation3 + $0x189] sm:$0xff] }
 0x67e   : > { %v3803_v19 = vld [vmem:[#allocation3 + $0x1c9] sm:$0xff] }
 0x67f   : > { %5103 = vmatmul.mubr.f32.gmra.mrb[74].mxu1 %v11536_v55 }
 0x680   : > { %5107 = vmatprep.mubr.f32.mxu1 %v11242_v62  ;;  %8289 = vmatpush1.bf16.msra.mxu1 %v8288_v33  ;;  %v4205_v62 = vld [vmem:[%s10544_s14 + $0x388] sm:$0xff]  ;;  %v11622_v33 = vld [vmem:[#allocation3 + $0x111] sm:$0xff] }
 0x681   : > { %8290 = vmatprep.subr.bf16.mxu1 %v12260_v56  ;;  %v8297_v42 = vpack.c.bf16 %v4205_v62, %v4204_v2  ;;  %v4217_v2 = vld [vmem:[%s10544_s14 + $0x3e8] sm:$0xff] }
 0x683   : > { %5108 = vmatmul.mubr.f32.gmra.mrb[76].mxu1 %v11543_v16 }
 0x684   : > { %5112 = vmatprep.mubr.f32.mxu1 %v11250_v3  ;;  %8292 = vmatpush1.bf16.msra.mxu1 %v8291_v57  ;;  %v4207_v3 = vld [vmem:[%s10544_s14 + $0x398] sm:$0xff]  ;;  %v12372_v57 = vld [vmem:[#allocation40_spill] sm:$0xff] }
 0x685   : > { %8293 = vmatprep.subr.bf16.mxu1 %v12260_v56  ;;  %v8300_v54 = vpack.c.bf16 %v4207_v3, %v4206_v1  ;;  %v12374_v1 = vld [vmem:[#allocation44_spill] sm:$0xff]  ;;  %v11646_v3 = vld [vmem:[#allocation3 + $0x151] sm:$0xff] }
 0x687   : > { %5113 = vmatmul.mubr.f32.gmra.mrb[78].mxu1 %v11550_v25 }
 0x688   : > { %5117 = vmatprep.mubr.f32.mxu1 %v11256_v59  ;;  %8295 = vmatpush1.bf16.msra.mxu1 %v8294_v22  ;;  %v8303_v59 = vpack.c.bf16 %v4209_v27, %v4208_v26  ;;  %v4216_v22 = vld [vmem:[%s10544_s14 + $0x3e0] sm:$0xff] }
 0x689   : > { %8296 = vmatprep.subr.bf16.mxu1 %v12260_v56  ;;  %v8315_v62 = vpack.c.bf16 %v4217_v2, %v4216_v22  ;;  %v11650_v26 = vld [vmem:[#allocation3 + $0x159] sm:$0xff]  ;;  %v11676_v22 = vld [vmem:[#allocation3 + $0x1e9] sm:$0xff] }
 0x68a   : > { %v12376_v27 = vld [vmem:[#allocation48_spill] sm:$0xff]  ;;  %v12381_v2 = vld [vmem:[#allocation61_spill] sm:$0xff] }
 0x68b   : > { %5118 = vmatmul.mubr.f32.gmra.mrb[80].mxu1 %v11557_v39 }
 0x68c   : > { %5122 = vmatprep.mubr.f32.mxu1 %v11262_v38  ;;  %8298 = vmatpush1.bf16.msra.mxu1 %v8297_v42  ;;  %v11574_v38 = vld [vmem:[#allocation3 + $0x99] sm:$0xff]  ;;  %v11641_v42 = vld [vmem:[#allocation3 + $0x141] sm:$0xff] }
 0x68d   : > { %8299 = vmatprep.subr.bf16.mxu1 %v12260_v56 }
 0x68f   : > { %5123 = vmatmul.mubr.f32.gmra.mrb[82].mxu1 %v11564_v28 }
 0x690   : > { %5127 = vmatprep.mubr.f32.mxu1 %v11267_v15  ;;  %8301 = vmatpush1.bf16.msra.mxu1 %v8300_v54  ;;  %v11578_v15 = vld [vmem:[#allocation3 + $0xa9] sm:$0xff] }
 0x691   : > { %8302 = vmatprep.subr.bf16.mxu1 %v12260_v56  ;;  %v12375_v54 = vld [vmem:[#allocation46_spill] sm:$0xff] }
 0x693   : > { %5128 = vmatmul.mubr.f32.gmra.mrb[84].mxu1 %v11569_v51 }
 0x694   : > { %5132 = vmatprep.mubr.f32.mxu1 %v11274_v6  ;;  %8304 = vmatpush1.bf16.msra.mxu1 %v8303_v59  ;;  %v11584_v6 = vld [vmem:[#allocation3 + $0xb1] sm:$0xff]  ;;  %v11654_v59 = vld [vmem:[#allocation3 + $0x169] sm:$0xff] }
 0x695   : > { %8305 = vmatprep.subr.bf16.mxu1 %v12260_v56 }
 0x697   : > { %5133 = vmatmul.mubr.f32.gmra.mrb[86].mxu1 %v11574_v38 }
 0x698   : > { %5137 = vmatprep.mubr.f32.mxu1 %v11280_v40  ;;  %8307 = vmatpush1.bf16.msra.mxu1 %v8306_v4  ;;  %v11589_v40 = vld [vmem:[#allocation3 + $0xc1] sm:$0xff] }
 0x699   : > { %8308 = vmatprep.subr.bf16.mxu1 %v12260_v56 }
 0x69b   : > { %5138 = vmatmul.mubr.f32.gmra.mrb[88].mxu1 %v11578_v15 }
 0x69c   : > { %5142 = vmatprep.mubr.f32.mxu1 %v11285_v34  ;;  %v11593_v34 = vld [vmem:[#allocation3 + $0xc9] sm:$0xff] }
 0x69f   : > { %5143 = vmatmul.mubr.f32.gmra.mrb[90].mxu1 %v11584_v6 }
 0x6a0   : > { %5147 = vmatprep.mubr.f32.mxu1 %v11290_v44  ;;  %v4212_v44 = vld [vmem:[%s10544_s14 + $0x3c0] sm:$0xff] }
 0x6a1   : > { %v8309_v23 = vpack.c.bf16 %v4213_v17, %v4212_v44  ;;  %v11660_v44 = vld [vmem:[#allocation3 + $0x171] sm:$0xff]  ;;  %v3865_v17 = vld [vmem:[#allocation3 + $0x182] sm:$0xff] }
 0x6a3   : > { %5148 = vmatmul.mubr.f32.gmra.mrb[92].mxu1 %v11589_v40 }
 0x6a4   : > { %5152 = vmatprep.mubr.f32.mxu1 %v11297_v46  ;;  %8310 = vmatpush1.bf16.msra.mxu1 %v8309_v23  ;;  %v11612_v46 = vld [vmem:[#allocation3 + $0xf9] sm:$0xff]  ;;  %v11663_v23 = vld [vmem:[#allocation3 + $0x181] sm:$0xff] }
 0x6a5   : > { %8311 = vmatprep.subr.bf16.mxu1 %v12260_v56 }
 0x6a7   : > { %5153 = vmatmul.mubr.f32.gmra.mrb[94].mxu1 %v11593_v34 }
 0x6a8   : > { %5157 = vmatprep.mubr.f32.mxu1 %v11303_v45  ;;  %v11608_v45 = vld [vmem:[#allocation3 + $0xf1] sm:$0xff]  ;;  %8313 = vmatpush1.bf16.msra.mxu1 %v8312_v52 }
 0x6a9   : > { %8314 = vmatprep.subr.bf16.mxu1 %v12260_v56  ;;  %v12378_v52 = vld [vmem:[#allocation55_spill] sm:$0xff] }
 0x6ab   : > { %5158 = vmatmul.mubr.f32.gmra.mrb[96].mxu1 %v11597_v20 }
 0x6ac   : > { %5162 = vmatprep.mubr.f32.mxu1 %v11308_v53  ;;  %v11616_v53 = vld [vmem:[#allocation3 + $0x109] sm:$0xff]  ;;  %8316 = vmatpush1.bf16.msra.mxu1 %v8315_v62  ;;  %v12382_v62 = vld [vmem:[#allocation63_spill] sm:$0xff] }
 0x6ad   : > { %8317 = vmatprep.subr.bf16.mxu1 %v12260_v56  ;;  %v4219_v56 = vld [vmem:[%s10544_s14 + $0x3f8] sm:$0xff] }
 0x6ae   : > { %v8318_v4 = vpack.c.bf16 %v4219_v56, %v4218_v21  ;;  %v11692_v21 = vld [vmem:[#allocation3 + $0x219] sm:$0xff]  ;;  %v12385_v56 = vld [vmem:[#allocation69_spill] sm:$0xff] }
 0x6af   : > { %5163 = vmatmul.mubr.f32.gmra.mrb[98].mxu1 %v11603_v0 }
 0x6b0   : > { %5167 = vmatprep.mubr.f32.mxu1 %v11313_v48  ;;  %v12369_v48 = vld [vmem:[#allocation34_spill] sm:$0xff]  ;;  %8319 = vmatpush1.bf16.msra.mxu1 %v8318_v4 }
 0x6b1   : > { %v11696_v4 = vld [vmem:[#allocation3 + $0x229] sm:$0xff]  ;;  %12386 = vst [vmem:[#allocation34_spill] sm:$0xff] %v11767_v10 }
 0x6b3   : > { %5168 = vmatmul.mubr.f32.gmra.mrb[100].mxu1 %v11608_v45 }
 0x6b4   : > { %5172 = vmatprep.mubr.f32.mxu1 %v11320_v9  ;;  %v12370_v9 = vld [vmem:[#allocation37_spill] sm:$0xff] }
 0x6b7   : > { %5173 = vmatmul.mubr.f32.gmra.mrb[102].mxu1 %v11612_v46 }
 0x6b8   : > { %5177 = vmatprep.mubr.f32.mxu1 %v11326_v49  ;;  %v11627_v49 = vld [vmem:[#allocation3 + $0x121] sm:$0xff] }
 0x6bb   : > { %5178 = vmatmul.mubr.f32.gmra.mrb[104].mxu1 %v11616_v53 }
 0x6bc   : > { %5182 = vmatprep.mubr.f32.mxu1 %v12369_v48  ;;  %v3866_v48 = vld [vmem:[#allocation3 + $0x18a] sm:$0xff] }
 0x6bf   : > { %5183 = vmatmul.mubr.f32.gmra.mrb[106].mxu1 %v11622_v33 }
 0x6c0   : > { %5187 = vmatprep.mubr.f32.mxu1 %v12370_v9  ;;  %v3804_v9 = vld [vmem:[#allocation3 + $0x1d1] sm:$0xff] }
 0x6c3   : > { %5188 = vmatmul.mubr.f32.gmra.mrb[108].mxu1 %v11627_v49 }
 0x6c4   : > { %5192 = vmatprep.mubr.f32.mxu1 %v12371_v35  ;;  %v12379_v35 = vld [vmem:[#allocation57_spill] sm:$0xff] }
 0x6c7   : > { %5193 = vmatmul.mubr.f32.gmra.mrb[110].mxu1 %v11631_v32 }
 0x6c8   : > { %5197 = vmatprep.mubr.f32.mxu1 %v12372_v57  ;;  %v11672_v57 = vld [vmem:[#allocation3 + $0x1e1] sm:$0xff] }
 0x6cb   : > { %5198 = vmatmul.mubr.f32.gmra.mrb[112].mxu1 %v11635_v41 }
 0x6cc   : > { %5202 = vmatprep.mubr.f32.mxu1 %v12373_v58  ;;  %v12380_v58 = vld [vmem:[#allocation59_spill] sm:$0xff] }
 0x6cf   : > { %5203 = vmatmul.mubr.f32.gmra.mrb[114].mxu1 %v11641_v42 }
 0x6d0   : > { %5207 = vmatprep.mubr.f32.mxu1 %v12374_v1  ;;  %v11684_v1 = vld [vmem:[#allocation3 + $0x201] sm:$0xff] }
 0x6d3   : > { %5208 = vmatmul.mubr.f32.gmra.mrb[116].mxu1 %v11646_v3 }
 0x6d4   : > { %5212 = vmatprep.mubr.f32.mxu1 %v12375_v54  ;;  %v12383_v54 = vld [vmem:[#allocation65_spill] sm:$0xff] }
 0x6d7   : > { %5213 = vmatmul.mubr.f32.gmra.mrb[118].mxu1 %v11650_v26 }
 0x6d8   : > { %5217 = vmatprep.mubr.f32.mxu1 %v12376_v27  ;;  %v11688_v27 = vld [vmem:[#allocation3 + $0x211] sm:$0xff] }
 0x6db   : > { %5218 = vmatmul.mubr.f32.gmra.mrb[120].mxu1 %v11654_v59 }
 0x6dc   : > { %5222 = vmatprep.mubr.f32.mxu1 %v12377_v18  ;;  %v12384_v18 = vld [vmem:[#allocation67_spill] sm:$0xff] }
 0x6df   : > { %5223 = vmatmul.mubr.f32.gmra.mrb[122].mxu1 %v11660_v44 }
 0x6e0   : > { %5227 = vmatprep.mubr.f32.mxu1 %v3865_v17  ;;  %v11700_v17 = vld [vmem:[#allocation3 + $0x231] sm:$0xff] }
 0x6e3   : > { %5228 = vmatmul.mubr.f32.gmra.mrb[124].mxu1 %v11663_v23 }
 0x6e4   : > { %5232 = vmatprep.mubr.f32.mxu1 %v3866_v48  ;;  %v11704_v48 = vld [vmem:[#allocation3 + $0x241] sm:$0xff] }
 0x6e7   : > { %5233 = vmatmul.mubr.f32.gmra.mrb[126].mxu1 %v11666_v5 }
 0x6e8   : > { %5237 = vmatprep.mubr.f32.mxu1 %v11386_v13  ;;  %v11680_v13 = vld [vmem:[#allocation3 + $0x1f9] sm:$0xff] }
 0x6eb   : > { %5238 = vmatmul.mubr.f32.gmra.mrb[128].mxu1 %v3803_v19  ;;  %v11708_v19 = vld [vmem:[#allocation3 + $0x249] sm:$0xff] }
 0x6ec   : > { %5242 = vmatprep.mubr.f32.mxu1 %v12378_v52  ;;  %v11712_v52 = vld [vmem:[#allocation3 + $0x259] sm:$0xff] }
 0x6ef   : > { %5243 = vmatmul.mubr.f32.gmra.mrb[130].mxu1 %v3804_v9  ;;  %v11719_v9 = vld [vmem:[#allocation3 + $0x271] sm:$0xff] }
 0x6f0   : > { %5247 = vmatprep.mubr.f32.mxu1 %v12379_v35  ;;  %v11722_v35 = vld [vmem:[#allocation3 + $0x279] sm:$0xff] }
 0x6f3   : > { %5248 = vmatmul.mubr.f32.gmra.mrb[132].mxu1 %v11672_v57 }
 0x6f4   : > { %5252 = vmatprep.mubr.f32.mxu1 %v12380_v58  ;;  %v11725_v58 = vld [vmem:[#allocation3 + $0x289] sm:$0xff] }
 0x6f7   : > { %5253 = vmatmul.mubr.f32.gmra.mrb[134].mxu1 %v11676_v22 }
 0x6f8   : > { %5257 = vmatprep.mubr.f32.mxu1 %v12381_v2  ;;  %v11728_v2 = vld [vmem:[#allocation3 + $0x291] sm:$0xff] }
 0x6fb   : > { %5258 = vmatmul.mubr.f32.gmra.mrb[136].mxu1 %v11680_v13 }
 0x6fc   : > { %5262 = vmatprep.mubr.f32.mxu1 %v12382_v62  ;;  %v3885_v62 = vld [vmem:[#allocation3 + $0x2a2] sm:$0xff] }
 0x6ff   : > { %5263 = vmatmul.mubr.f32.gmra.mrb[138].mxu1 %v11684_v1 }
 0x700   : > { %5267 = vmatprep.mubr.f32.mxu1 %v12383_v54  ;;  %v11731_v54 = vld [vmem:[#allocation3 + $0x2a1] sm:$0xff] }
 0x703   : > { %5268 = vmatmul.mubr.f32.gmra.mrb[140].mxu1 %v11688_v27 }
 0x704   : > { %5272 = vmatprep.mubr.f32.mxu1 %v12384_v18  ;;  %v3886_v18 = vld [vmem:[#allocation3 + $0x2aa] sm:$0xff] }
 0x707   : > { %5273 = vmatmul.mubr.f32.gmra.mrb[142].mxu1 %v11692_v21 }
 0x708   : > { %5277 = vmatprep.mubr.f32.mxu1 %v12385_v56  ;;  %v11734_v56 = vld [vmem:[#allocation3 + $0x2a9] sm:$0xff] }
 0x70b   : > { %5278 = vmatmul.mubr.f32.gmra.mrb[144].mxu1 %v11696_v4 }
 0x70c   : > { %5282 = vmatprep.mubr.f32.mxu1 %v11431_v63  ;;  %v11716_v63 = vld [vmem:[#allocation3 + $0x261] sm:$0xff] }
 0x70f   : > { %5283 = vmatmul.mubr.f32.gmra.mrb[146].mxu1 %v11700_v17 }
 0x710   : > { %5287 = vmatprep.mubr.f32.mxu1 %v11436_v31  ;;  %v3881_v31 = vld [vmem:[#allocation3 + $0x272] sm:$0xff] }
 0x713   : > { %5288 = vmatmul.mubr.f32.gmra.mrb[148].mxu1 %v11704_v48 }
 0x714   : > { %5292 = vmatprep.mubr.f32.mxu1 %v11441_v30  ;;  %v3882_v30 = vld [vmem:[#allocation3 + $0x27a] sm:$0xff] }
 0x717   : > { %5293 = vmatmul.mubr.f32.gmra.mrb[150].mxu1 %v11708_v19 }
 0x718   : > { %5297 = vmatprep.mubr.f32.mxu1 %v11447_v11  ;;  %v3883_v11 = vld [vmem:[#allocation3 + $0x28a] sm:$0xff] }
 0x71b   : > { %5298 = vmatmul.mubr.f32.gmra.mrb[152].mxu1 %v11712_v52 }
 0x71c   : > { %5302 = vmatprep.mubr.f32.mxu1 %v11453_v60  ;;  %v3884_v60 = vld [vmem:[#allocation3 + $0x292] sm:$0xff] }
 0x71f   : > { %5303 = vmatmul.mubr.f32.gmra.mrb[154].mxu1 %v11716_v63 }
 0x720   : > { %5307 = vmatprep.mubr.f32.mxu1 %v3881_v31  ;;  %v3887_v31 = vld [vmem:[#allocation3 + $0x2ba] sm:$0xff] }
 0x723   : > { %5308 = vmatmul.mubr.f32.gmra.mrb[156].mxu1 %v11719_v9 }
 0x724   : > { %5312 = vmatprep.mubr.f32.mxu1 %v3882_v30  ;;  %v11737_v30 = vld [vmem:[#allocation3 + $0x2b9] sm:$0xff] }
 0x727   : > { %5313 = vmatmul.mubr.f32.gmra.mrb[158].mxu1 %v11722_v35 }
 0x728   : > { %5317 = vmatprep.mubr.f32.mxu1 %v3883_v11  ;;  %v3888_v11 = vld [vmem:[#allocation3 + $0x2c2] sm:$0xff] }
 0x72b   : > { %5318 = vmatmul.mubr.f32.gmra.mrb[160].mxu1 %v11725_v58 }
 0x72c   : > { %5322 = vmatprep.mubr.f32.mxu1 %v3884_v60  ;;  %v11740_v60 = vld [vmem:[#allocation3 + $0x2c1] sm:$0xff] }
 0x72f   : > { %5323 = vmatmul.mubr.f32.gmra.mrb[162].mxu1 %v11728_v2 }
 0x730   : > { %5327 = vmatprep.mubr.f32.mxu1 %v3885_v62  ;;  %v3889_v62 = vld [vmem:[#allocation3 + $0x2d2] sm:$0xff] }
 0x733   : > { %5328 = vmatmul.mubr.f32.gmra.mrb[164].mxu1 %v11731_v54 }
 0x734   : > { %5332 = vmatprep.mubr.f32.mxu1 %v3886_v18  ;;  %v3890_v18 = vld [vmem:[#allocation3 + $0x2da] sm:$0xff] }
 0x737   : > { %5333 = vmatmul.mubr.f32.gmra.mrb[166].mxu1 %v11734_v56 }
 0x738   : > { %5337 = vmatprep.mubr.f32.mxu1 %v3887_v31  ;;  %v3891_v31 = vld [vmem:[#allocation3 + $0x2ea] sm:$0xff] }
 0x73b   : > { %5338 = vmatmul.mubr.f32.gmra.mrb[168].mxu1 %v11737_v30 }
 0x73c   : > { %5342 = vmatprep.mubr.f32.mxu1 %v3888_v11  ;;  %v3892_v11 = vld [vmem:[#allocation3 + $0x2f2] sm:$0xff] }
 0x73f   : > { %5343 = vmatmul.mubr.f32.gmra.mrb[170].mxu1 %v11740_v60 }
 0x740   : > { %5347 = vmatprep.mubr.f32.mxu1 %v3889_v62  ;;  %v3893_v62 = vld [vmem:[#allocation3 + $0x302] sm:$0xff] }
 0x743   : > { %5348 = vmatmul.mubr.f32.gmra.mrb[172].mxu1 %v11743_v8 }
 0x744   : > { %5352 = vmatprep.mubr.f32.mxu1 %v3890_v18  ;;  %v3894_v18 = vld [vmem:[#allocation3 + $0x30a] sm:$0xff] }
 0x747   : > { %5353 = vmatmul.mubr.f32.gmra.mrb[174].mxu1 %v11746_v12 }
 0x748   : > { %5357 = vmatprep.mubr.f32.mxu1 %v3891_v31  ;;  %v3895_v31 = vld [vmem:[#allocation3 + $0x31a] sm:$0xff] }
 0x74b   : > { %5358 = vmatmul.mubr.f32.gmra.mrb[176].mxu1 %v11749_v61 }
 0x74c   : > { %5362 = vmatprep.mubr.f32.mxu1 %v3892_v11  ;;  %v3896_v11 = vld [vmem:[#allocation3 + $0x322] sm:$0xff] }
 0x74f   : > { %5363 = vmatmul.mubr.f32.gmra.mrb[178].mxu1 %v11752_v50 }
 0x750   : > { %5367 = vmatprep.mubr.f32.mxu1 %v3893_v62  ;;  %v3897_v62 = vld [vmem:[#allocation3 + $0x332] sm:$0xff] }
 0x753   : > { %5368 = vmatmul.mubr.f32.gmra.mrb[180].mxu1 %v11755_v37 }
 0x754   : > { %5372 = vmatprep.mubr.f32.mxu1 %v3894_v18  ;;  %v3898_v18 = vld [vmem:[#allocation3 + $0x33a] sm:$0xff] }
 0x757   : > { %5373 = vmatmul.mubr.f32.gmra.mrb[182].mxu1 %v11758_v43 }
 0x758   : > { %5377 = vmatprep.mubr.f32.mxu1 %v3895_v31  ;;  %v3900_v31 = vld [vmem:[#allocation3 + $0x30] sm:$0xff] }
 0x75b   : > { %5378 = vmatmul.mubr.f32.gmra.mrb[184].mxu1 %v11761_v24 }
 0x75c   : > { %5382 = vmatprep.mubr.f32.mxu1 %v3896_v11  ;;  %v3901_v11 = vld [vmem:[#allocation3 + $0x38] sm:$0xff] }
 0x75f   : > { %5383 = vmatmul.mubr.f32.gmra.mrb[186].mxu1 %v11764_v47 }
 0x760   : > { %5387 = vmatprep.mubr.f32.mxu1 %v3897_v62  ;;  %v3902_v62 = vld [vmem:[#allocation3 + $0x48] sm:$0xff] }
 0x763   : > { %5388 = vmatmul.mubr.f32.gmra.mrb[188].mxu1 %v11767_v10  ;;  %v3903_v10 = vld [vmem:[#allocation3 + $0x50] sm:$0xff] }
 0x764   : > { %5392 = vmatprep.mubr.f32.mxu1 %v3898_v18  ;;  %v3904_v18 = vld [vmem:[#allocation3 + $0x60] sm:$0xff] }
 0x767   : > { %5393 = vmatmul.mubr.f32.gmra.mrb[190].mxu1 %v11770_v36 }
 0x768   : > { %5462 = vmatprep.mubr.f32.mxu1 %v11515_v29  ;;  %v3905_v29 = vld [vmem:[#allocation3 + $0x68] sm:$0xff] }
 0x76b   : > { %5463 = vmatmul.mubr.f32.vlgmr.msra.gmra.mrb[64].mxu1 %v3900_v31  ;;  %v3995_v31 = vld [vmem:[#allocation3 + $0x1a1] sm:$0xff] }
 0x76c   : > { %5467 = vmatprep.mubr.f32.mxu1 %v11522_v14  ;;  %v3906_v14 = vld [vmem:[#allocation3 + $0x78] sm:$0xff] }
 0x76f   : > { %5468 = vmatmul.mubr.f32.gmra.mrb[66].mxu1 %v3901_v11  ;;  %v11812_v11 = vld [vmem:[#allocation2] sm:$0xff] }
 0x770   : > { %5472 = vmatprep.mubr.f32.mxu1 %v11529_v7  ;;  %v3907_v7 = vld [vmem:[#allocation3 + $0x80] sm:$0xff] }
 0x773   : > { %5473 = vmatmul.mubr.f32.gmra.mrb[68].mxu1 %v3902_v62  ;;  %v4091_v62 = vld [vmem:[#allocation3 + $0x352] sm:$0xff] }
 0x774   : > { %5477 = vmatprep.mubr.f32.mxu1 %v11536_v55  ;;  %v3908_v55 = vld [vmem:[#allocation3 + $0x90] sm:$0xff] }
 0x777   : > { %5478 = vmatmul.mubr.f32.gmra.mrb[70].mxu1 %v3903_v10  ;;  %v3909_v10 = vld [vmem:[#allocation3 + $0x98] sm:$0xff] }
 0x778   : > { %5482 = vmatprep.mubr.f32.mxu1 %v11543_v16  ;;  %v3910_v16 = vld [vmem:[#allocation3 + $0xa8] sm:$0xff] }
 0x77b   : > { %5483 = vmatmul.mubr.f32.gmra.mrb[72].mxu1 %v3904_v18  ;;  %v3932_v18 = vld [vmem:[#allocation3 + $0x1e0] sm:$0xff] }
 0x77c   : > { %5487 = vmatprep.mubr.f32.mxu1 %v11550_v25  ;;  %v3911_v25 = vld [vmem:[#allocation3 + $0xb0] sm:$0xff] }
 0x77f   : > { %5488 = vmatmul.mubr.f32.gmra.mrb[74].mxu1 %v3905_v29  ;;  %v3933_v29 = vld [vmem:[#allocation3 + $0x1e8] sm:$0xff] }
 0x780   : > { %5492 = vmatprep.mubr.f32.mxu1 %v11557_v39  ;;  %v3912_v39 = vld [vmem:[#allocation3 + $0xc0] sm:$0xff] }
 0x783   : > { %5493 = vmatmul.mubr.f32.gmra.mrb[76].mxu1 %v3906_v14  ;;  %v3934_v14 = vld [vmem:[#allocation3 + $0x1f8] sm:$0xff] }
 0x784   : > { %5497 = vmatprep.mubr.f32.mxu1 %v11564_v28  ;;  %v3913_v28 = vld [vmem:[#allocation3 + $0xc8] sm:$0xff] }
 0x787   : > { %5498 = vmatmul.mubr.f32.gmra.mrb[78].mxu1 %v3907_v7  ;;  %v3935_v7 = vld [vmem:[#allocation3 + $0x200] sm:$0xff] }
 0x788   : > { %5502 = vmatprep.mubr.f32.mxu1 %v11569_v51  ;;  %v3914_v51 = vld [vmem:[#allocation3 + $0xd8] sm:$0xff] }
 0x78b   : > { %5503 = vmatmul.mubr.f32.gmra.mrb[80].mxu1 %v3908_v55  ;;  %v3936_v55 = vld [vmem:[#allocation3 + $0x210] sm:$0xff] }
 0x78c   : > { %5507 = vmatprep.mubr.f32.mxu1 %v11574_v38  ;;  %v3915_v38 = vld [vmem:[#allocation3 + $0xe0] sm:$0xff] }
 0x78f   : > { %5508 = vmatmul.mubr.f32.gmra.mrb[82].mxu1 %v3909_v10  ;;  %v6392_v10 = vld [vmem:[%s11808_s20 + $0x80] sm:$0xff] }
 0x790   : > { %5512 = vmatprep.mubr.f32.mxu1 %v11578_v15  ;;  %v3916_v15 = vld [vmem:[#allocation3 + $0xf0] sm:$0xff] }
 0x793   : > { %5513 = vmatmul.mubr.f32.gmra.mrb[84].mxu1 %v3910_v16  ;;  %v6400_v16 = vld [vmem:[%s11808_s20 + $0xc0] sm:$0xff] }
 0x794   : > { %5517 = vmatprep.mubr.f32.mxu1 %v11584_v6  ;;  %v3917_v6 = vld [vmem:[#allocation3 + $0xf8] sm:$0xff] }
 0x797   : > { %5518 = vmatmul.mubr.f32.gmra.mrb[86].mxu1 %v3911_v25  ;;  %v7429_v25 = vcombine.high %v6392_v10, %v6400_v16 }
 0x798   : > { %5522 = vmatprep.mubr.f32.mxu1 %v11589_v40  ;;  %v3918_v40 = vld [vmem:[#allocation3 + $0x108] sm:$0xff] }
 0x79b   : > { %5523 = vmatmul.mubr.f32.gmra.mrb[88].mxu1 %v3912_v39  ;;  %v3951_v39 = vld [vmem:[#allocation3 + $0x2c0] sm:$0xff] }
 0x79c   : > { %5527 = vmatprep.mubr.f32.mxu1 %v11593_v34  ;;  %v3919_v34 = vld [vmem:[#allocation3 + $0x110] sm:$0xff] }
 0x79f   : > { %5528 = vmatmul.mubr.f32.gmra.mrb[90].mxu1 %v3913_v28 }
 0x7a0   : > { %5532 = vmatprep.mubr.f32.mxu1 %v11597_v20  ;;  %v3920_v20 = vld [vmem:[#allocation3 + $0x120] sm:$0xff] }
 0x7a3   : > { %5533 = vmatmul.mubr.f32.gmra.mrb[92].mxu1 %v3914_v51 }
 0x7a4   : > { %5537 = vmatprep.mubr.f32.mxu1 %v11603_v0  ;;  %v3921_v0 = vld [vmem:[#allocation3 + $0x128] sm:$0xff] }
 0x7a7   : > { %5538 = vmatmul.mubr.f32.gmra.mrb[94].mxu1 %v3915_v38 }
 0x7a8   : > { %5542 = vmatprep.mubr.f32.mxu1 %v11608_v45  ;;  %v3922_v45 = vld [vmem:[#allocation3 + $0x138] sm:$0xff] }
 0x7ab   : > { %5543 = vmatmul.mubr.f32.gmra.mrb[96].mxu1 %v3916_v15  ;;  %v3954_v15 = vld [vmem:[#allocation3 + $0x2e8] sm:$0xff] }
 0x7ac   : > { %5547 = vmatprep.mubr.f32.mxu1 %v11612_v46  ;;  %v3923_v46 = vld [vmem:[#allocation3 + $0x140] sm:$0xff] }
 0x7af   : > { %5548 = vmatmul.mubr.f32.gmra.mrb[98].mxu1 %v3917_v6 }
 0x7b0   : > { %5552 = vmatprep.mubr.f32.mxu1 %v11616_v53  ;;  %v3924_v53 = vld [vmem:[#allocation3 + $0x150] sm:$0xff] }
 0x7b3   : > { %5553 = vmatmul.mubr.f32.gmra.mrb[100].mxu1 %v3918_v40 }
 0x7b4   : > { %5557 = vmatprep.mubr.f32.mxu1 %v11622_v33  ;;  %v3925_v33 = vld [vmem:[#allocation3 + $0x158] sm:$0xff] }
 0x7b7   : > { %5558 = vmatmul.mubr.f32.gmra.mrb[102].mxu1 %v3919_v34  ;;  %v12388_v34 = vld [vmem:[#allocation6_spill] sm:$0xff] }
 0x7b8   : > { %5562 = vmatprep.mubr.f32.mxu1 %v11627_v49  ;;  %v3926_v49 = vld [vmem:[#allocation3 + $0x168] sm:$0xff] }
 0x7bb   : > { %5563 = vmatmul.mubr.f32.gmra.mrb[104].mxu1 %v3920_v20 }
 0x7bc   : > { %5567 = vmatprep.mubr.f32.mxu1 %v11631_v32  ;;  %v3927_v32 = vld [vmem:[#allocation3 + $0x170] sm:$0xff] }
 0x7bf   : > { %5568 = vmatmul.mubr.f32.gmra.mrb[106].mxu1 %v3921_v0 }
 0x7c0   : > { %5572 = vmatprep.mubr.f32.mxu1 %v11635_v41  ;;  %v3928_v41 = vld [vmem:[#allocation3 + $0x180] sm:$0xff] }
 0x7c3   : > { %5573 = vmatmul.mubr.f32.gmra.mrb[108].mxu1 %v3922_v45  ;;  %v3955_v45 = vld [vmem:[#allocation3 + $0x2f0] sm:$0xff] }
 0x7c4   : > { %5577 = vmatprep.mubr.f32.mxu1 %v11641_v42  ;;  %v3994_v42 = vld [vmem:[#allocation3 + $0x199] sm:$0xff] }
 0x7c7   : > { %5578 = vmatmul.mubr.f32.gmra.mrb[110].mxu1 %v3923_v46 }
 0x7c8   : > { %5582 = vmatprep.mubr.f32.mxu1 %v11646_v3  ;;  %v3929_v3 = vld [vmem:[#allocation3 + $0x188] sm:$0xff] }
 0x7cb   : > { %5583 = vmatmul.mubr.f32.gmra.mrb[112].mxu1 %v3924_v53 }
 0x7cc   : > { %5587 = vmatprep.mubr.f32.mxu1 %v11650_v26  ;;  %v6376_v26 = vld [vmem:[%s11808_s20] sm:$0xff] }
 0x7cf   : > { %5588 = vmatmul.mubr.f32.gmra.mrb[114].mxu1 %v3925_v33 }
 0x7d0   : > { %5592 = vmatprep.mubr.f32.mxu1 %v11654_v59  ;;  %v6384_v59 = vld [vmem:[%s11808_s20 + $0x40] sm:$0xff] }
 0x7d3   : > { %5593 = vmatmul.mubr.f32.gmra.mrb[116].mxu1 %v3926_v49 }
 0x7d4   : > { %5597 = vmatprep.mubr.f32.mxu1 %v11660_v44  ;;  %v7412_v44 = vcombine.low %v6376_v26, %v6384_v59 }
 0x7d7   : > { %5598 = vmatmul.mubr.f32.gmra.mrb[118].mxu1 %v3927_v32  ;;  %v12389_v32 = vld [vmem:[#allocation9_spill] sm:$0xff] }
 0x7d8   : > { %5602 = vmatprep.mubr.f32.mxu1 %v11663_v23  ;;  %v7413_v23 = vcombine.high %v6376_v26, %v6384_v59 }
 0x7da   : > { %6854 = vmatprep.subr.bf16.mxu1 %v7413_v23 }
 0x7db   : > { %5603 = vmatmul.mubr.f32.gmra.mrb[120].mxu1 %v3928_v41 }
 0x7dc   : > { %5607 = vmatprep.mubr.f32.mxu1 %v11666_v5  ;;  %6855 = vmatpush1.bf16.msra.mxu1 %v7412_v44  ;;  %v4090_v5 = vld [vmem:[#allocation3 + $0x34a] sm:$0xff] }
 0x7dd   : > { %7901 = vmatprep.mubr.f32.mxu0 %v4090_v5  ;;  %6856 = vmatprep.subr.bf16.mxu1 %v7429_v25 }
 0x7de   : > { %7902 = vmatmul.mubr.f32.gmra.mrb[190].mxu0 %v4091_v62 }
 0x7df   : > { %5608 = vmatmul.mubr.f32.gmra.mrb[122].mxu1 %v3929_v3  ;;  %v3956_v3 = vld [vmem:[#allocation3 + $0x300] sm:$0xff] }
 0x7e0   : > { %5612 = vmatprep.mubr.f32.mxu1 %v3994_v42 }
 0x7e3   : > { %5613 = vmatmul.mubr.f32.gmra.mrb[124].mxu1 %v11812_v11 }
 0x7e4   : > { %5617 = vmatprep.mubr.f32.mxu1 %v3995_v31  ;;  %v12390_v31 = vld [vmem:[#allocation8_spill] sm:$0xff] }
 0x7e7   : > { %5618 = vmatmul.mubr.f32.gmra.mrb[126].mxu1 %v11812_v11 }
 0x7e8   : > { %5622 = vmatprep.mubr.f32.mxu1 %v11672_v57  ;;  %v3937_v57 = vld [vmem:[#allocation3 + $0x218] sm:$0xff] }
 0x7eb   : > { %5623 = vmatmul.mubr.f32.gmra.mrb[128].mxu1 %v3932_v18  ;;  %v3957_v18 = vld [vmem:[#allocation3 + $0x308] sm:$0xff] }
 0x7ec   : > { %5627 = vmatprep.mubr.f32.mxu1 %v11676_v22  ;;  %v3938_v22 = vld [vmem:[#allocation3 + $0x228] sm:$0xff] }
 0x7ef   : > { %5628 = vmatmul.mubr.f32.gmra.mrb[130].mxu1 %v3933_v29 }
 0x7f0   : > { %5632 = vmatprep.mubr.f32.mxu1 %v11680_v13  ;;  %v3939_v13 = vld [vmem:[#allocation3 + $0x230] sm:$0xff] }
 0x7f3   : > { %5633 = vmatmul.mubr.f32.gmra.mrb[132].mxu1 %v3934_v14 }
 0x7f4   : > { %5637 = vmatprep.mubr.f32.mxu1 %v11684_v1  ;;  %v3940_v1 = vld [vmem:[#allocation3 + $0x240] sm:$0xff] }
 0x7f7   : > { %5638 = vmatmul.mubr.f32.gmra.mrb[134].mxu1 %v3935_v7 }
 0x7f8   : > { %5642 = vmatprep.mubr.f32.mxu1 %v11688_v27  ;;  %v3941_v27 = vld [vmem:[#allocation3 + $0x248] sm:$0xff] }
 0x7fb   : > { %5643 = vmatmul.mubr.f32.gmra.mrb[136].mxu1 %v3936_v55 }
 0x7fc   : > { %5647 = vmatprep.mubr.f32.mxu1 %v11692_v21  ;;  %v3942_v21 = vld [vmem:[#allocation3 + $0x258] sm:$0xff] }
 0x7ff   : > { %5648 = vmatmul.mubr.f32.gmra.mrb[138].mxu1 %v3937_v57  ;;  %v12391_v57 = vld [vmem:[#allocation11_spill] sm:$0xff] }
 0x800   : > { %5652 = vmatprep.mubr.f32.mxu1 %v11696_v4  ;;  %v3943_v4 = vld [vmem:[#allocation3 + $0x260] sm:$0xff] }
 0x803   : > { %5653 = vmatmul.mubr.f32.gmra.mrb[140].mxu1 %v3938_v22 }
 0x804   : > { %5657 = vmatprep.mubr.f32.mxu1 %v11700_v17  ;;  %v3944_v17 = vld [vmem:[#allocation3 + $0x270] sm:$0xff] }
 0x807   : > { %5658 = vmatmul.mubr.f32.gmra.mrb[142].mxu1 %v3939_v13 }
 0x808   : > { %5662 = vmatprep.mubr.f32.mxu1 %v11704_v48  ;;  %v3945_v48 = vld [vmem:[#allocation3 + $0x278] sm:$0xff] }
 0x80b   : > { %5663 = vmatmul.mubr.f32.gmra.mrb[144].mxu1 %v3940_v1  ;;  %v3958_v1 = vld [vmem:[#allocation3 + $0x318] sm:$0xff] }
 0x80c   : > { %5667 = vmatprep.mubr.f32.mxu1 %v11708_v19  ;;  %v7428_v19 = vcombine.low %v6392_v10, %v6400_v16 }
 0x80e   : > { %6857 = vmatpush1.bf16.msra.mxu1 %v7428_v19  ;;  %v3959_v19 = vld [vmem:[#allocation3 + $0x320] sm:$0xff] }
 0x80f   : > { %5668 = vmatmul.mubr.f32.gmra.mrb[146].mxu1 %v3941_v27 }
 0x810   : > { %5672 = vmatprep.mubr.f32.mxu1 %v11712_v52  ;;  %v3946_v52 = vld [vmem:[#allocation3 + $0x288] sm:$0xff] }
 0x813   : > { %5673 = vmatmul.mubr.f32.gmra.mrb[148].mxu1 %v3942_v21 }
 0x814   : > { %5677 = vmatprep.mubr.f32.mxu1 %v11716_v63  ;;  %v3947_v63 = vld [vmem:[#allocation3 + $0x290] sm:$0xff] }
 0x817   : > { %5678 = vmatmul.mubr.f32.gmra.mrb[150].mxu1 %v3943_v4 }
 0x818   : > { %5682 = vmatprep.mubr.f32.mxu1 %v11719_v9  ;;  %v3948_v9 = vld [vmem:[#allocation3 + $0x2a0] sm:$0xff] }
 0x81b   : > { %5683 = vmatmul.mubr.f32.gmra.mrb[152].mxu1 %v3944_v17 }
 0x81c   : > { %5687 = vmatprep.mubr.f32.mxu1 %v11722_v35  ;;  %v3949_v35 = vld [vmem:[#allocation3 + $0x2a8] sm:$0xff] }
 0x81f   : > { %5688 = vmatmul.mubr.f32.gmra.mrb[154].mxu1 %v3945_v48  ;;  %v12392_v48 = vld [vmem:[#allocation10_spill] sm:$0xff] }
 0x820   : > { %5692 = vmatprep.mubr.f32.mxu1 %v11725_v58  ;;  %v3950_v58 = vld [vmem:[#allocation3 + $0x2b8] sm:$0xff] }
 0x823   : > { %5693 = vmatmul.mubr.f32.gmra.mrb[156].mxu1 %v3946_v52 }
 0x824   : > { %5697 = vmatprep.mubr.f32.mxu1 %v11728_v2  ;;  %v3952_v2 = vld [vmem:[#allocation3 + $0x2d0] sm:$0xff] }
 0x827   : > { %5698 = vmatmul.mubr.f32.gmra.mrb[158].mxu1 %v3947_v63 }
 0x828   : > { %5702 = vmatprep.mubr.f32.mxu1 %v11731_v54  ;;  %v11847_v54 = vld [vmem:[%s11843_s23] ss:$0 sm:$0xff] }
 0x82b   : > { %5703 = vmatmul.mubr.f32.gmra.mrb[160].mxu1 %v3948_v9  ;;  %v12393_v9 = vld [vmem:[#allocation34_spill] sm:$0xff] }
 0x82c   : > { %5707 = vmatprep.mubr.f32.mxu1 %v11734_v56 }
 0x82f   : > { %5708 = vmatmul.mubr.f32.gmra.mrb[162].mxu1 %v3949_v35 }
 0x830   : > { %5712 = vmatprep.mubr.f32.mxu1 %v11737_v30  ;;  %v3953_v30 = vld [vmem:[#allocation3 + $0x2d8] sm:$0xff] }
 0x833   : > { %5713 = vmatmul.mubr.f32.gmra.mrb[164].mxu1 %v3950_v58  ;;  %v12394_v58 = vld [vmem:[#allocation4_spill] sm:$0xff] }
 0x834   : > { %5717 = vmatprep.mubr.f32.mxu1 %v11740_v60 }
 0x837   : > { %5718 = vmatmul.mubr.f32.gmra.mrb[166].mxu1 %v3951_v39 }
 0x838   : > { %5722 = vmatprep.mubr.f32.mxu1 %v11743_v8  ;;  %v12387_v8 = vld [vmem:[#allocation7_spill] sm:$0xff] }
 0x83b   : > { %5723 = vmatmul.mubr.f32.gmra.mrb[168].mxu1 %v3952_v2 }
 0x83c   : > { %5727 = vmatprep.mubr.f32.mxu1 %v11746_v12 }
 0x83e   : > { %v5464_v56 = vpop.f32.mrb[64].mxu1 }
 0x83f   : > { %v8416_v60 = vadd.f32 %v11847_v54, %v5464_v56  ;;  %v5466_v28 = vpop.f32.mrb[65].mxu1  ;;  %5728 = vmatmul.mubr.f32.gmra.mrb[170].mxu1 %v3953_v30  ;;  %v3960_v56 = vld [vmem:[#allocation3 + $0x330] sm:$0xff] }
 0x840   : > { %5732 = vmatprep.mubr.f32.mxu1 %v11749_v61 }
 0x841   : > { %v5850_v51 = vadd.f32 %v8416_v60, %v12387_v8 }
 0x842   : > { %v5469_v38 = vpop.f32.mrb[66].mxu1 }
 0x843   : > { %v8417_v6 = vadd.f32 %v11847_v54, %v5469_v38  ;;  %v5471_v40 = vpop.f32.mrb[67].mxu1  ;;  %5733 = vmatmul.mubr.f32.gmra.mrb[172].mxu1 %v3954_v15  ;;  %v6168_v12 = vmax.f32 %v5850_v51, 0.0  ;;  %v12395_v51 = vld [vmem:[#allocation12_spill] sm:$0xff]  ;;  %v4026_v15 = vld [vmem:[#allocation3 + $0x349] sm:$0xff] }
 0x844   : > { %5737 = vmatprep.mubr.f32.mxu1 %v11752_v50 }
 0x845   : > { %v5855_v20 = vadd.f32 %v8417_v6, %v12388_v34  ;;  %v6233_v33 = vsel %vm6232_vm2, %v6168_v12, 0.0  ;;  %v3961_v12 = vld [vmem:[#allocation3 + $0x338] sm:$0xff]  ;;  %v6408_v34 = vld [vmem:[%s11808_s20 + $0x100] sm:$0xff] }
 0x846   : > { %v5474_v0 = vpop.f32.mrb[68].mxu1 }
 0x847   : > { %v6169_v46 = vmax.f32 %v5855_v20, 0.0  ;;  %v8418_v53 = vadd.f32 %v11847_v54, %v5474_v0  ;;  %v5476_v61 = vpop.f32.mrb[69].mxu1  ;;  %5738 = vmatmul.mubr.f32.gmra.mrb[174].mxu1 %v3955_v45  ;;  %v6416_v20 = vld [vmem:[%s11808_s20 + $0x140] sm:$0xff] }
 0x848   : > { %5742 = vmatprep.mubr.f32.mxu1 %v11755_v37  ;;  %v7445_v61 = vcombine.high %v6408_v34, %v6416_v20 }
 0x849   : > { %v6234_v49 = vsel %vm6232_vm2, %v6169_v46, 0.0  ;;  %v5860_v41 = vadd.f32 %v8418_v53, %v12389_v32  ;;  %v7444_v53 = vcombine.low %v6408_v34, %v6416_v20  ;;  %v4027_v32 = vld [vmem:[#allocation3 + $0x351] sm:$0xff] }
 0x84a   : > { %v6235_v50 = vadd.f32 %v6234_v49, %v6233_v33  ;;  %v5479_v42 = vpop.f32.mrb[70].mxu1  ;;  %v12396_v33 = vld [vmem:[#allocation13_spill] sm:$0xff]  ;;  %6858 = vmatprep.subr.bf16.mxu1 %v7445_v61  ;;  %v6378_v61 = vld [vmem:[%s11808_s20 + $0x10] sm:$0xff] }
 0x84b   : > { %v6170_v26 = vmax.f32 %v5860_v41, 0.0  ;;  %v8419_v59 = vadd.f32 %v11847_v54, %v5479_v42  ;;  %v5481_v44 = vpop.f32.mrb[71].mxu1  ;;  %5743 = vmatmul.mubr.f32.gmra.mrb[176].mxu1 %v3956_v3 }
 0x84c   : > { %5747 = vmatprep.mubr.f32.mxu1 %v11758_v43  ;;  %6859 = vmatpush1.bf16.msra.mxu1 %v7444_v53  ;;  %v12397_v44 = vld [vmem:[#allocation5_spill] sm:$0xff] }
 0x84d   : > { %v6236_v23 = vsel %vm6232_vm2, %v6170_v26, 0.0  ;;  %v5865_v37 = vadd.f32 %v8419_v59, %v12390_v31 }
 0x84e   : > { %v6237_v5 = vadd.f32 %v6236_v23, %v6235_v50  ;;  %v5484_v62 = vpop.f32.mrb[72].mxu1 }
 0x84f   : > { %v6171_v29 = vmax.f32 %v5865_v37, 0.0  ;;  %v8420_v14 = vadd.f32 %v11847_v54, %v5484_v62  ;;  %v5486_v7 = vpop.f32.mrb[73].mxu1  ;;  %5748 = vmatmul.mubr.f32.gmra.mrb[178].mxu1 %v3957_v18 }
 0x850   : > { %5752 = vmatprep.mubr.f32.mxu1 %v11761_v24 }
 0x851   : > { %v6238_v55 = vsel %vm6232_vm2, %v6171_v29, 0.0  ;;  %v5870_v22 = vadd.f32 %v8420_v14, %v12391_v57  ;;  %v12398_v14 = vld [vmem:[#allocation15_spill] sm:$0xff] }
 0x852   : > { %v6239_v13 = vadd.f32 %v6238_v55, %v6237_v5  ;;  %v5489_v43 = vpop.f32.mrb[74].mxu1 }
 0x853   : > { %v6172_v27 = vmax.f32 %v5870_v22, 0.0  ;;  %v8421_v21 = vadd.f32 %v11847_v54, %v5489_v43  ;;  %v5491_v4 = vpop.f32.mrb[75].mxu1  ;;  %5753 = vmatmul.mubr.f32.gmra.mrb[180].mxu1 %v3958_v1 }
 0x854   : > { %5757 = vmatprep.mubr.f32.mxu1 %v11764_v47 }
 0x855   : > { %v6240_v17 = vsel %vm6232_vm2, %v6172_v27, 0.0  ;;  %v5875_v10 = vadd.f32 %v8421_v21, %v12392_v48  ;;  %v12399_v27 = vld [vmem:[#allocation14_spill] sm:$0xff] }
 0x856   : > { %v6241_v16 = vadd.f32 %v6240_v17, %v6239_v13  ;;  %v5494_v24 = vpop.f32.mrb[76].mxu1 }
 0x857   : > { %v6173_v25 = vmax.f32 %v5875_v10, 0.0  ;;  %v8422_v52 = vadd.f32 %v11847_v54, %v5494_v24  ;;  %v5496_v63 = vpop.f32.mrb[77].mxu1  ;;  %5758 = vmatmul.mubr.f32.gmra.mrb[182].mxu1 %v3959_v19  ;;  %v12400_v24 = vld [vmem:[#allocation17_spill] sm:$0xff] }
 0x858   : > { %5762 = vmatprep.mubr.f32.mxu1 %v12393_v9 }
 0x859   : > { %v6242_v35 = vsel %vm6232_vm2, %v6173_v25, 0.0  ;;  %v5880_v39 = vadd.f32 %v8422_v52, %v12394_v58 }
 0x85a   : > { %v6243_v47 = vadd.f32 %v6242_v35, %v6241_v16  ;;  %v5499_v2 = vpop.f32.mrb[78].mxu1 }
 0x85b   : > { %v6174_v30 = vmax.f32 %v5880_v39, 0.0  ;;  %v8423_v60 = vadd.f32 %v11847_v54, %v5499_v2  ;;  %v5501_v28 = vpop.f32.mrb[79].mxu1  ;;  %5763 = vmatmul.mubr.f32.gmra.mrb[184].mxu1 %v3960_v56  ;;  %v12401_v39 = vld [vmem:[#allocation16_spill] sm:$0xff] }
 0x85c   : > { %5767 = vmatprep.mubr.f32.mxu1 %v11770_v36 }
 0x85d   : > { %v6244_v8 = vsel %vm6232_vm2, %v6174_v30, 0.0  ;;  %v5885_v38 = vadd.f32 %v8423_v60, %v12395_v51  ;;  %v12402_v51 = vld [vmem:[#allocation19_spill] sm:$0xff] }
 0x85e   : > { %v6245_v6 = vadd.f32 %v6244_v8, %v6243_v47  ;;  %v5504_v40 = vpop.f32.mrb[80].mxu1 }
 0x85f   : > { %v6175_v0 = vmax.f32 %v5885_v38, 0.0  ;;  %v8424_v45 = vadd.f32 %v11847_v54, %v5504_v40  ;;  %v5506_v46 = vpop.f32.mrb[81].mxu1  ;;  %5768 = vmatmul.mubr.f32.gmra.mrb[186].mxu1 %v3961_v12 }
 0x860   : > { %5772 = vmatprep.mubr.f32.mxu1 %v4026_v15 }
 0x861   : > { %v6246_v36 = vsel %vm6232_vm2, %v6175_v0, 0.0  ;;  %v5890_v49 = vadd.f32 %v8424_v45, %v12396_v33  ;;  %v12403_v0 = vld [vmem:[#allocation18_spill] sm:$0xff] }
 0x862   : > { %v6247_v41 = vadd.f32 %v6246_v36, %v6245_v6  ;;  %v5509_v50 = vpop.f32.mrb[82].mxu1  ;;  %v6386_v36 = vld [vmem:[%s11808_s20 + $0x50] sm:$0xff] }
 0x863   : > { %v6176_v42 = vmax.f32 %v5890_v49, 0.0  ;;  %v8425_v3 = vadd.f32 %v11847_v54, %v5509_v50  ;;  %v5511_v26 = vpop.f32.mrb[83].mxu1  ;;  %5773 = vmatmul.mubr.f32.gmra.mrb[188].mxu1 %v11812_v11  ;;  %v7417_v50 = vcombine.high %v6378_v61, %v6386_v36 }
 0x864   : > { %5777 = vmatprep.mubr.f32.mxu1 %v4027_v32 }
 0x865   : > { %v6248_v59 = vsel %vm6232_vm2, %v6176_v42, 0.0  ;;  %v5895_v23 = vadd.f32 %v8425_v3, %v12397_v44  ;;  %v12404_v3 = vld [vmem:[#allocation21_spill] sm:$0xff]  ;;  %6936 = vmatprep.subr.bf16.mxu0 %v7417_v50  ;;  %v6432_v50 = vld [vmem:[%s11808_s20 + $0x1c0] sm:$0xff] }
 0x866   : > { %v6249_v31 = vadd.f32 %v6248_v59, %v6247_v41  ;;  %v5514_v37 = vpop.f32.mrb[84].mxu1  ;;  %v7416_v41 = vcombine.low %v6378_v61, %v6386_v36  ;;  %v12411_v36 = vld [vmem:[#allocation26_spill] sm:$0xff] }
 0x867   : > { %v6177_v5 = vmax.f32 %v5895_v23, 0.0  ;;  %v8426_v62 = vadd.f32 %v11847_v54, %v5514_v37  ;;  %v5516_v18 = vpop.f32.mrb[85].mxu1  ;;  %5778 = vmatmul.mubr.f32.gmra.mrb[190].mxu1 %v11812_v11 }
 0x868   : > { %6937 = vmatpush1.bf16.msra.mxu0 %v7416_v41  ;;  %v6424_v41 = vld [vmem:[%s11808_s20 + $0x180] sm:$0xff] }
 0x869   : > { %v6250_v29 = vsel %vm6232_vm2, %v6177_v5, 0.0  ;;  %v5900_v7 = vadd.f32 %v8426_v62, %v12398_v14  ;;  %v12405_v62 = vld [vmem:[#allocation20_spill] sm:$0xff] }
 0x86a   : > { %v6251_v55 = vadd.f32 %v6250_v29, %v6249_v31  ;;  %v5519_v57 = vpop.f32.mrb[86].mxu1 }
 0x86b   : > { %v6178_v22 = vmax.f32 %v5900_v7, 0.0  ;;  %v8427_v13 = vadd.f32 %v11847_v54, %v5519_v57  ;;  %v5521_v43 = vpop.f32.mrb[87].mxu1 }
 0x86d   : > { %v6252_v1 = vsel %vm6232_vm2, %v6178_v22, 0.0  ;;  %v5905_v21 = vadd.f32 %v8427_v13, %v12399_v27  ;;  %v12406_v13 = vld [vmem:[#allocation23_spill] sm:$0xff] }
 0x86e   : > { %v6253_v4 = vadd.f32 %v6252_v1, %v6251_v55  ;;  %v5524_v17 = vpop.f32.mrb[88].mxu1 }
 0x86f   : > { %v6179_v48 = vmax.f32 %v5905_v21, 0.0  ;;  %v8428_v10 = vadd.f32 %v11847_v54, %v5524_v17  ;;  %v5526_v11 = vpop.f32.mrb[89].mxu1 }
 0x871   : > { %v6254_v16 = vsel %vm6232_vm2, %v6179_v48, 0.0  ;;  %v5910_v19 = vadd.f32 %v8428_v10, %v12400_v24  ;;  %v12407_v10 = vld [vmem:[#allocation22_spill] sm:$0xff] }
 0x872   : > { %v6255_v25 = vadd.f32 %v6254_v16, %v6253_v4  ;;  %v5529_v52 = vpop.f32.mrb[90].mxu1 }
 0x873   : > { %v6180_v63 = vmax.f32 %v5910_v19, 0.0  ;;  %v8429_v9 = vadd.f32 %v11847_v54, %v5529_v52  ;;  %v5531_v35 = vpop.f32.mrb[91].mxu1 }
 0x875   : > { %v6256_v58 = vsel %vm6232_vm2, %v6180_v63, 0.0  ;;  %v5915_v47 = vadd.f32 %v8429_v9, %v12401_v39  ;;  %v12408_v9 = vld [vmem:[#allocation25_spill] sm:$0xff] }
 0x876   : > { %v6257_v2 = vadd.f32 %v6256_v58, %v6255_v25  ;;  %v5534_v56 = vpop.f32.mrb[92].mxu1 }
 0x877   : > { %v6181_v30 = vmax.f32 %v5915_v47, 0.0  ;;  %v8430_v60 = vadd.f32 %v11847_v54, %v5534_v56  ;;  %v5536_v28 = vpop.f32.mrb[93].mxu1 }
 0x879   : > { %v6258_v8 = vsel %vm6232_vm2, %v6181_v30, 0.0  ;;  %v5920_v38 = vadd.f32 %v8430_v60, %v12402_v51  ;;  %v12409_v60 = vld [vmem:[#allocation24_spill] sm:$0xff] }
 0x87a   : > { %v6259_v15 = vadd.f32 %v6258_v8, %v6257_v2  ;;  %v5539_v6 = vpop.f32.mrb[94].mxu1 }
 0x87b   : > { %v6182_v40 = vmax.f32 %v5920_v38, 0.0  ;;  %v8431_v12 = vadd.f32 %v11847_v54, %v5539_v6  ;;  %v5541_v34 = vpop.f32.mrb[95].mxu1 }
 0x87d   : > { %v6260_v20 = vsel %vm6232_vm2, %v6182_v40, 0.0  ;;  %v5925_v45 = vadd.f32 %v8431_v12, %v12403_v0  ;;  %v12410_v12 = vld [vmem:[#allocation27_spill] sm:$0xff] }
 0x87e   : > { %v6261_v46 = vadd.f32 %v6260_v20, %v6259_v15  ;;  %v5544_v53 = vpop.f32.mrb[96].mxu1 }
 0x87f   : > { %v6183_v33 = vmax.f32 %v5925_v45, 0.0  ;;  %v8432_v49 = vadd.f32 %v11847_v54, %v5544_v53  ;;  %v5546_v32 = vpop.f32.mrb[97].mxu1 }
 0x881   : > { %v6262_v42 = vsel %vm6232_vm2, %v6183_v33, 0.0  ;;  %v5930_v26 = vadd.f32 %v8432_v49, %v12404_v3 }
 0x882   : > { %v6263_v59 = vadd.f32 %v6262_v42, %v6261_v46  ;;  %v5549_v44 = vpop.f32.mrb[98].mxu1  ;;  %v6394_v42 = vld [vmem:[%s11808_s20 + $0x90] sm:$0xff] }
 0x883   : > { %v6184_v23 = vmax.f32 %v5930_v26, 0.0  ;;  %v8433_v31 = vadd.f32 %v11847_v54, %v5549_v44  ;;  %v5551_v37 = vpop.f32.mrb[99].mxu1  ;;  %v7460_v44 = vcombine.low %v6424_v41, %v6432_v50 }
 0x885   : > { %v6264_v5 = vsel %vm6232_vm2, %v6184_v23, 0.0  ;;  %v5935_v18 = vadd.f32 %v8433_v31, %v12405_v62  ;;  %v7461_v23 = vcombine.high %v6424_v41, %v6432_v50  ;;  %v6402_v31 = vld [vmem:[%s11808_s20 + $0xd0] sm:$0xff] }
 0x886   : > { %v6265_v29 = vadd.f32 %v6264_v5, %v6263_v59  ;;  %v5554_v14 = vpop.f32.mrb[100].mxu1  ;;  %v7432_v37 = vcombine.low %v6394_v42, %v6402_v31  ;;  %v7433_v5 = vcombine.high %v6394_v42, %v6402_v31 }
 0x887   : > { %v6185_v7 = vmax.f32 %v5935_v18, 0.0  ;;  %v8434_v55 = vadd.f32 %v11847_v54, %v5554_v14  ;;  %v5556_v57 = vpop.f32.mrb[101].mxu1  ;;  %v12412_v18 = vld [vmem:[#allocation29_spill] sm:$0xff]  ;;  %6860 = vmatprep.subr.bf16.mxu1 %v7461_v23  ;;  %v12419_v23 = vld [vmem:[#allocation35_spill] sm:$0xff] }
 0x888   : > { %6938 = vmatprep.subr.bf16.mxu0 %v7433_v5  ;;  %6861 = vmatpush1.bf16.msra.mxu1 %v7460_v44 }
 0x889   : > { %v6266_v22 = vsel %vm6232_vm2, %v6185_v7, 0.0  ;;  %v5940_v43 = vadd.f32 %v8434_v55, %v12406_v13  ;;  %6939 = vmatpush1.bf16.msra.mxu0 %v7432_v37 }
 0x88a   : > { %v6267_v1 = vadd.f32 %v6266_v22, %v6265_v29  ;;  %v5559_v27 = vpop.f32.mrb[102].mxu1 }
 0x88b   : > { %v6186_v21 = vmax.f32 %v5940_v43, 0.0  ;;  %v8435_v4 = vadd.f32 %v11847_v54, %v5559_v27  ;;  %v5561_v17 = vpop.f32.mrb[103].mxu1  ;;  %v12413_v43 = vld [vmem:[#allocation28_spill] sm:$0xff] }
 0x88d   : > { %v6268_v48 = vsel %vm6232_vm2, %v6186_v21, 0.0  ;;  %v5945_v11 = vadd.f32 %v8435_v4, %v12407_v10 }
 0x88e   : > { %v6269_v16 = vadd.f32 %v6268_v48, %v6267_v1  ;;  %v5564_v24 = vpop.f32.mrb[104].mxu1 }
 0x88f   : > { %v6187_v19 = vmax.f32 %v5945_v11, 0.0  ;;  %v8436_v25 = vadd.f32 %v11847_v54, %v5564_v24  ;;  %v5566_v52 = vpop.f32.mrb[105].mxu1  ;;  %v12414_v11 = vld [vmem:[#allocation31_spill] sm:$0xff] }
 0x891   : > { %v6270_v63 = vsel %vm6232_vm2, %v6187_v19, 0.0  ;;  %v5950_v35 = vadd.f32 %v8436_v25, %v12408_v9 }
 0x892   : > { %v6271_v58 = vadd.f32 %v6270_v63, %v6269_v16  ;;  %v5569_v39 = vpop.f32.mrb[106].mxu1 }
 0x893   : > { %v6188_v47 = vmax.f32 %v5950_v35, 0.0  ;;  %v8437_v2 = vadd.f32 %v11847_v54, %v5569_v39  ;;  %v5571_v56 = vpop.f32.mrb[107].mxu1  ;;  %v12415_v35 = vld [vmem:[#allocation30_spill] sm:$0xff] }
 0x895   : > { %v6272_v30 = vsel %vm6232_vm2, %v6188_v47, 0.0  ;;  %v5955_v28 = vadd.f32 %v8437_v2, %v12409_v60 }
 0x896   : > { %v6273_v8 = vadd.f32 %v6272_v30, %v6271_v58  ;;  %v5574_v51 = vpop.f32.mrb[108].mxu1 }
 0x897   : > { %v6189_v38 = vmax.f32 %v5955_v28, 0.0  ;;  %v8438_v15 = vadd.f32 %v11847_v54, %v5574_v51  ;;  %v5576_v6 = vpop.f32.mrb[109].mxu1  ;;  %v12416_v28 = vld [vmem:[#allocation33_spill] sm:$0xff] }
 0x899   : > { %v6274_v40 = vsel %vm6232_vm2, %v6189_v38, 0.0  ;;  %v5960_v34 = vadd.f32 %v8438_v15, %v12410_v12 }
 0x89a   : > { %v6275_v20 = vadd.f32 %v6274_v40, %v6273_v8  ;;  %v5579_v0 = vpop.f32.mrb[110].mxu1 }
 0x89b   : > { %v6190_v45 = vmax.f32 %v5960_v34, 0.0  ;;  %v8439_v46 = vadd.f32 %v11847_v54, %v5579_v0  ;;  %v5581_v53 = vpop.f32.mrb[111].mxu1  ;;  %v12417_v34 = vld [vmem:[#allocation32_spill] sm:$0xff] }
 0x89d   : > { %v6276_v61 = vsel %vm6232_vm2, %v6190_v45, 0.0  ;;  %v5965_v33 = vadd.f32 %v8439_v46, %v12411_v36 }
 0x89e   : > { %v6277_v49 = vadd.f32 %v6276_v61, %v6275_v20  ;;  %v5584_v32 = vpop.f32.mrb[112].mxu1 }
 0x89f   : > { %v6191_v3 = vmax.f32 %v5965_v33, 0.0  ;;  %v8440_v26 = vadd.f32 %v11847_v54, %v5584_v32  ;;  %v5586_v59 = vpop.f32.mrb[113].mxu1  ;;  %v12418_v33 = vld [vmem:[#allocation36_spill] sm:$0xff] }
 0x8a1   : > { %v6278_v62 = vsel %vm6232_vm2, %v6191_v3, 0.0  ;;  %v5970_v29 = vadd.f32 %v8440_v26, %v12412_v18  ;;  %v6418_v18 = vld [vmem:[%s11808_s20 + $0x150] sm:$0xff] }
 0x8a2   : > { %v6279_v14 = vadd.f32 %v6278_v62, %v6277_v49  ;;  %v5589_v7 = vpop.f32.mrb[114].mxu1  ;;  %v6410_v62 = vld [vmem:[%s11808_s20 + $0x110] sm:$0xff] }
 0x8a3   : > { %v6192_v55 = vmax.f32 %v5970_v29, 0.0  ;;  %v8441_v57 = vadd.f32 %v11847_v54, %v5589_v7  ;;  %v5591_v22 = vpop.f32.mrb[115].mxu1 }
 0x8a5   : > { %v6280_v13 = vsel %vm6232_vm2, %v6192_v55, 0.0  ;;  %v5975_v1 = vadd.f32 %v8441_v57, %v12413_v43  ;;  %v7448_v55 = vcombine.low %v6410_v62, %v6418_v18  ;;  %v7449_v57 = vcombine.high %v6410_v62, %v6418_v18 }
 0x8a6   : > { %v6281_v27 = vadd.f32 %v6280_v13, %v6279_v14  ;;  %v5594_v21 = vpop.f32.mrb[116].mxu1  ;;  %v12420_v13 = vld [vmem:[#allocation41_spill] sm:$0xff]  ;;  %v9278_v62 = vmov 0  }
 0x8a7   : > { %v6193_v4 = vmax.f32 %v5975_v1, 0.0  ;;  %v8442_v17 = vadd.f32 %v11847_v54, %v5594_v21  ;;  %v5596_v48 = vpop.f32.mrb[117].mxu1  ;;  %6940 = vmatprep.subr.bf16.mxu0 %v7449_v57  ;;  %6886 = vmatprep.mubr.bf16.mxu1 %v9278_v62 }
 0x8a8   : > { %6941 = vmatpush1.bf16.msra.mxu0 %v7448_v55  ;;  %v12421_v48 = vld [vmem:[#allocation39_spill] sm:$0xff]  ;;  %v12426_v55 = vld [vmem:[#allocation52_spill] sm:$0xff]  ;;  %6968 = vmatprep.mubr.bf16.mxu0 %v9278_v62 }
 0x8a9   : > { %v6282_v10 = vsel %vm6232_vm2, %v6193_v4, 0.0  ;;  %v5980_v16 = vadd.f32 %v8442_v17, %v12414_v11 }
 0x8aa   : > { %v6283_v24 = vadd.f32 %v6282_v10, %v6281_v27  ;;  %v5599_v19 = vpop.f32.mrb[118].mxu1 }
 0x8ab   : > { %v6194_v25 = vmax.f32 %v5980_v16, 0.0  ;;  %v8443_v52 = vadd.f32 %v11847_v54, %v5599_v19  ;;  %v5601_v63 = vpop.f32.mrb[119].mxu1 }
 0x8ac   : > { %v12422_v63 = vld [vmem:[#allocation45_spill] sm:$0xff] }
 0x8ad   : > { %v6284_v9 = vsel %vm6232_vm2, %v6194_v25, 0.0  ;;  %v5985_v58 = vadd.f32 %v8443_v52, %v12415_v35 }
 0x8ae   : > { %v6285_v39 = vadd.f32 %v6284_v9, %v6283_v24  ;;  %v5604_v47 = vpop.f32.mrb[120].mxu1 }
 0x8af   : > { %v6195_v2 = vmax.f32 %v5985_v58, 0.0  ;;  %v8444_v56 = vadd.f32 %v11847_v54, %v5604_v47  ;;  %v5606_v30 = vpop.f32.mrb[121].mxu1 }
 0x8b0   : > { %v12423_v30 = vld [vmem:[#allocation43_spill] sm:$0xff] }
 0x8b1   : > { %v6286_v60 = vsel %vm6232_vm2, %v6195_v2, 0.0  ;;  %v5990_v8 = vadd.f32 %v8444_v56, %v12416_v28  ;;  %v11959_v50 = vpop.f32.mrb[190].mxu0 }
 0x8b2   : > { %v6287_v51 = vadd.f32 %v6286_v60, %v6285_v39  ;;  %v5609_v38 = vpop.f32.mrb[122].mxu1  ;;  %v11962_v59 = vpop.f32.mrb[191].mxu0 }
 0x8b3   : > { %v6196_v15 = vmax.f32 %v5990_v8, 0.0  ;;  %v8445_v6 = vadd.f32 %v11847_v54, %v5609_v38  ;;  %v5611_v40 = vpop.f32.mrb[123].mxu1 }
 0x8b4   : > { %v12424_v40 = vld [vmem:[#allocation49_spill] sm:$0xff] }
 0x8b5   : > { %v6288_v12 = vsel %vm6232_vm2, %v6196_v15, 0.0  ;;  %v5995_v20 = vadd.f32 %v8445_v6, %v12417_v34 }
 0x8b6   : > { %v6289_v0 = vadd.f32 %v6288_v12, %v6287_v51  ;;  %v5614_v45 = vpop.f32.mrb[124].mxu1 }
 0x8b7   : > { %v6197_v46 = vmax.f32 %v5995_v20, 0.0  ;;  %v8446_v53 = vadd.f32 %v11847_v54, %v5614_v45  ;;  %v5616_v61 = vpop.f32.mrb[125].mxu1 }
 0x8b8   : > { %v6434_v61 = vld [vmem:[%s11808_s20 + $0x1d0] sm:$0xff] }
 0x8b9   : > { %v6290_v36 = vsel %vm6232_vm2, %v6197_v46, 0.0  ;;  %v6000_v49 = vadd.f32 %v8446_v53, %v12418_v33  ;;  %v6426_v53 = vld [vmem:[%s11808_s20 + $0x190] sm:$0xff]  ;;  %v12425_v33 = vld [vmem:[#allocation47_spill] sm:$0xff] }
 0x8ba   : > { %v6291_v32 = vadd.f32 %v6290_v36, %v6289_v0  ;;  %v5619_v41 = vpop.f32.mrb[126].mxu1 }
 0x8bb   : > { %v6198_v42 = vmax.f32 %v6000_v49, 0.0  ;;  %v8447_v3 = vadd.f32 %v11847_v54, %v5619_v41  ;;  %v5621_v26 = vpop.f32.mrb[127].mxu1 }
 0x8bd   : > { %v6292_v44 = vsel %vm6232_vm2, %v6198_v42, 0.0  ;;  %v6005_v31 = vadd.f32 %v8447_v3, %v12419_v23  ;;  %v7464_v3 = vcombine.low %v6426_v53, %v6434_v61 }
 0x8be   : > { %v6293_v37 = vadd.f32 %v6292_v44, %v6291_v32  ;;  %v5624_v5 = vpop.f32.mrb[128].mxu1  ;;  %v7465_v32 = vcombine.high %v6426_v53, %v6434_v61 }
 0x8bf   : > { %v6199_v29 = vmax.f32 %v6005_v31, 0.0  ;;  %v8448_v14 = vadd.f32 %v11847_v54, %v5624_v5  ;;  %v5626_v7 = vpop.f32.mrb[129].mxu1  ;;  %v11992_v31 = vld [vmem:[%s11808_s20 + $0x8] sm:$0xff]  ;;  %v11998_v5 = vld [vmem:[%s11808_s20 + $0x20] sm:$0xff] }
 0x8c0   : > { %6942 = vmatprep.subr.bf16.mxu0 %v7465_v32 }
 0x8c1   : > { %v6294_v22 = vsel %vm6232_vm2, %v6199_v29, 0.0  ;;  %v6010_v43 = vadd.f32 %v8448_v14, %v12420_v13  ;;  %6943 = vmatpush1.bf16.msra.mxu0 %v7464_v3  ;;  %v12006_v14 = vld [vmem:[%s11808_s20 + $0x60] sm:$0xff] }
 0x8c2   : > { %v11971_v1 = vadd.f32 %v6294_v22, %v6293_v37  ;;  %v5629_v27 = vpop.f32.mrb[130].mxu1  ;;  %v11995_v37 = vld [vmem:[%s11808_s20 + $0x48] sm:$0xff]  ;;  %v7420_v22 = vcombine.low %v11998_v5, %v12006_v14  ;;  %v7421_v13 = vcombine.high %v11998_v5, %v12006_v14  ;;  %v6379_v14 = vld [vmem:[%s11808_s20 + $0x18] sm:$0xff] }
 0x8c3   : > { %v8449_v21 = vadd.f32 %v11847_v54, %v5629_v27  ;;  %v5631_v4 = vpop.f32.mrb[131].mxu1  ;;  %v6200_v17 = vmax.f32 %v6010_v43, 0.0  ;;  %v7414_v18 = vcombine.low %v11992_v31, %v11995_v37  ;;  %v7415_v29 = vcombine.high %v11992_v31, %v11995_v37 }
 0x8c4   : > { %7018 = vmatprep.subr.bf16.mxu0 %v7421_v13 }
 0x8c5   : > { %v6015_v10 = vadd.f32 %v8449_v21, %v12421_v48  ;;  %v6302_v25 = vsel %vm6232_vm2, %v6200_v17, 0.0  ;;  %6895 = vmatprep.subr.bf16.mxu1 %v7415_v29 }
 0x8c6   : > { %v5634_v11 = vpop.f32.mrb[132].mxu1 }
 0x8c7   : > { %v6201_v16 = vmax.f32 %v6015_v10, 0.0  ;;  %v8450_v24 = vadd.f32 %v11847_v54, %v5634_v11  ;;  %v5636_v19 = vpop.f32.mrb[133].mxu1  ;;  %v12427_v10 = vld [vmem:[#allocation51_spill] sm:$0xff] }
 0x8c9   : > { %v6303_v52 = vsel %vm6232_vm2, %v6201_v16, 0.0  ;;  %v6020_v9 = vadd.f32 %v8450_v24, %v12422_v63 }
 0x8ca   : > { %v6304_v35 = vadd.f32 %v6303_v52, %v6302_v25  ;;  %v5639_v58 = vpop.f32.mrb[134].mxu1 }
 0x8cb   : > { %v6202_v39 = vmax.f32 %v6020_v9, 0.0  ;;  %v8451_v47 = vadd.f32 %v11847_v54, %v5639_v58  ;;  %v5641_v2 = vpop.f32.mrb[135].mxu1  ;;  %v12428_v9 = vld [vmem:[#allocation54_spill] sm:$0xff] }
 0x8cd   : > { %v6305_v56 = vsel %vm6232_vm2, %v6202_v39, 0.0  ;;  %v6025_v60 = vadd.f32 %v8451_v47, %v12423_v30 }
 0x8ce   : > { %v6306_v28 = vadd.f32 %v6305_v56, %v6304_v35  ;;  %v5644_v8 = vpop.f32.mrb[136].mxu1 }
 0x8cf   : > { %v6203_v51 = vmax.f32 %v6025_v60, 0.0  ;;  %v8452_v38 = vadd.f32 %v11847_v54, %v5644_v8  ;;  %v5646_v15 = vpop.f32.mrb[137].mxu1  ;;  %v12429_v60 = vld [vmem:[#allocation53_spill] sm:$0xff] }
 0x8d1   : > { %v6307_v6 = vsel %vm6232_vm2, %v6203_v51, 0.0  ;;  %v6030_v12 = vadd.f32 %v8452_v38, %v12424_v40 }
 0x8d2   : > { %v6308_v34 = vadd.f32 %v6307_v6, %v6306_v28  ;;  %v5649_v20 = vpop.f32.mrb[138].mxu1 }
 0x8d3   : > { %v6204_v0 = vmax.f32 %v6030_v12, 0.0  ;;  %v8453_v45 = vadd.f32 %v11847_v54, %v5649_v20  ;;  %v5651_v46 = vpop.f32.mrb[139].mxu1  ;;  %v12430_v12 = vld [vmem:[#allocation58_spill] sm:$0xff] }
 0x8d5   : > { %v6309_v36 = vsel %vm6232_vm2, %v6204_v0, 0.0  ;;  %v6035_v49 = vadd.f32 %v8453_v45, %v12425_v33 }
 0x8d6   : > { %v6310_v41 = vadd.f32 %v6309_v36, %v6308_v34  ;;  %v5654_v42 = vpop.f32.mrb[140].mxu1  ;;  %v12431_v36 = vld [vmem:[#allocation56_spill] sm:$0xff] }
 0x8d7   : > { %v6205_v26 = vmax.f32 %v6035_v49, 0.0  ;;  %v8454_v44 = vadd.f32 %v11847_v54, %v5654_v42  ;;  %v5656_v23 = vpop.f32.mrb[141].mxu1 }
 0x8d9   : > { %v6311_v7 = vsel %vm6232_vm2, %v6205_v26, 0.0  ;;  %v6040_v57 = vadd.f32 %v8454_v44, %v12426_v55  ;;  %v12432_v44 = vld [vmem:[#allocation62_spill] sm:$0xff] }
 0x8da   : > { %v6312_v43 = vadd.f32 %v6311_v7, %v6310_v41  ;;  %v5659_v27 = vpop.f32.mrb[142].mxu1 }
 0x8db   : > { %v6206_v21 = vmax.f32 %v6040_v57, 0.0  ;;  %v8455_v4 = vadd.f32 %v11847_v54, %v5659_v27  ;;  %v5661_v17 = vpop.f32.mrb[143].mxu1  ;;  %v12433_v27 = vld [vmem:[#allocation60_spill] sm:$0xff] }
 0x8dd   : > { %v6313_v48 = vsel %vm6232_vm2, %v6206_v21, 0.0  ;;  %v6045_v11 = vadd.f32 %v8455_v4, %v12427_v10 }
 0x8de   : > { %v6314_v16 = vadd.f32 %v6313_v48, %v6312_v43  ;;  %v5664_v24 = vpop.f32.mrb[144].mxu1 }
 0x8df   : > { %v6207_v19 = vmax.f32 %v6045_v11, 0.0  ;;  %v8456_v25 = vadd.f32 %v11847_v54, %v5664_v24  ;;  %v5666_v52 = vpop.f32.mrb[145].mxu1  ;;  %v12434_v24 = vld [vmem:[#allocation66_spill] sm:$0xff] }
 0x8e1   : > { %v6315_v63 = vsel %vm6232_vm2, %v6207_v19, 0.0  ;;  %v6050_v35 = vadd.f32 %v8456_v25, %v12428_v9 }
 0x8e2   : > { %v6316_v58 = vadd.f32 %v6315_v63, %v6314_v16  ;;  %v5669_v39 = vpop.f32.mrb[146].mxu1 }
 0x8e3   : > { %v6208_v47 = vmax.f32 %v6050_v35, 0.0  ;;  %v8457_v2 = vadd.f32 %v11847_v54, %v5669_v39  ;;  %v5671_v56 = vpop.f32.mrb[147].mxu1  ;;  %v12435_v39 = vld [vmem:[#allocation64_spill] sm:$0xff] }
 0x8e5   : > { %v6317_v30 = vsel %vm6232_vm2, %v6208_v47, 0.0  ;;  %v6055_v28 = vadd.f32 %v8457_v2, %v12429_v60 }
 0x8e6   : > { %v6318_v8 = vadd.f32 %v6317_v30, %v6316_v58  ;;  %v5674_v51 = vpop.f32.mrb[148].mxu1 }
 0x8e7   : > { %v6209_v38 = vmax.f32 %v6055_v28, 0.0  ;;  %v8458_v15 = vadd.f32 %v11847_v54, %v5674_v51  ;;  %v5676_v6 = vpop.f32.mrb[149].mxu1  ;;  %v12436_v51 = vld [vmem:[#allocation70_spill] sm:$0xff] }
 0x8e9   : > { %v6319_v40 = vsel %vm6232_vm2, %v6209_v38, 0.0  ;;  %v6060_v34 = vadd.f32 %v8458_v15, %v12430_v12 }
 0x8ea   : > { %v6320_v20 = vadd.f32 %v6319_v40, %v6318_v8  ;;  %v5679_v0 = vpop.f32.mrb[150].mxu1 }
 0x8eb   : > { %v6210_v45 = vmax.f32 %v6060_v34, 0.0  ;;  %v8459_v46 = vadd.f32 %v11847_v54, %v5679_v0  ;;  %v5681_v53 = vpop.f32.mrb[151].mxu1  ;;  %v12437_v0 = vld [vmem:[#allocation68_spill] sm:$0xff] }
 0x8ed   : > { %v6321_v61 = vsel %vm6232_vm2, %v6210_v45, 0.0  ;;  %v6065_v33 = vadd.f32 %v8459_v46, %v12431_v36 }
 0x8ee   : > { %v6322_v49 = vadd.f32 %v6321_v61, %v6320_v20  ;;  %v5684_v32 = vpop.f32.mrb[152].mxu1 }
 0x8ef   : > { %v6211_v41 = vmax.f32 %v6065_v33, 0.0  ;;  %v8460_v42 = vadd.f32 %v11847_v54, %v5684_v32  ;;  %v5686_v3 = vpop.f32.mrb[153].mxu1  ;;  %v12438_v32 = vld [vmem:[#allocation72_spill] sm:$0xff] }
 0x8f1   : > { %v6323_v26 = vsel %vm6232_vm2, %v6211_v41, 0.0  ;;  %v6070_v23 = vadd.f32 %v8460_v42, %v12432_v44 }
 0x8f2   : > { %v6324_v29 = vadd.f32 %v6323_v26, %v6322_v49  ;;  %v5689_v7 = vpop.f32.mrb[154].mxu1 }
 0x8f3   : > { %v6212_v55 = vmax.f32 %v6070_v23, 0.0  ;;  %v8461_v57 = vadd.f32 %v11847_v54, %v5689_v7  ;;  %v5691_v13 = vpop.f32.mrb[155].mxu1  ;;  %v12439_v7 = vld [vmem:[#allocation71_spill] sm:$0xff] }
 0x8f5   : > { %v6325_v43 = vsel %vm6232_vm2, %v6212_v55, 0.0  ;;  %v6075_v21 = vadd.f32 %v8461_v57, %v12433_v27 }
 0x8f6   : > { %v6326_v4 = vadd.f32 %v6325_v43, %v6324_v29  ;;  %v5694_v17 = vpop.f32.mrb[156].mxu1 }
 0x8f7   : > { %v6213_v48 = vmax.f32 %v6075_v21, 0.0  ;;  %v8462_v10 = vadd.f32 %v11847_v54, %v5694_v17  ;;  %v5696_v11 = vpop.f32.mrb[157].mxu1  ;;  %v12440_v17 = vld [vmem:[#allocation74_spill] sm:$0xff] }
 0x8f9   : > { %v6327_v16 = vsel %vm6232_vm2, %v6213_v48, 0.0  ;;  %v6080_v19 = vadd.f32 %v8462_v10, %v12434_v24 }
 0x8fa   : > { %v6328_v25 = vadd.f32 %v6327_v16, %v6326_v4  ;;  %v5699_v52 = vpop.f32.mrb[158].mxu1 }
 0x8fb   : > { %v6214_v63 = vmax.f32 %v6080_v19, 0.0  ;;  %v8463_v9 = vadd.f32 %v11847_v54, %v5699_v52  ;;  %v5701_v35 = vpop.f32.mrb[159].mxu1  ;;  %v12441_v52 = vld [vmem:[#allocation73_spill] sm:$0xff] }
 0x8fd   : > { %v6329_v58 = vsel %vm6232_vm2, %v6214_v63, 0.0  ;;  %v6085_v47 = vadd.f32 %v8463_v9, %v12435_v39 }
 0x8fe   : > { %v6330_v2 = vadd.f32 %v6329_v58, %v6328_v25  ;;  %v5704_v56 = vpop.f32.mrb[160].mxu1 }
 0x8ff   : > { %v6215_v30 = vmax.f32 %v6085_v47, 0.0  ;;  %v8464_v60 = vadd.f32 %v11847_v54, %v5704_v56  ;;  %v5706_v28 = vpop.f32.mrb[161].mxu1  ;;  %v12442_v56 = vld [vmem:[#allocation76_spill] sm:$0xff] }
 0x901   : > { %v6331_v8 = vsel %vm6232_vm2, %v6215_v30, 0.0  ;;  %v6090_v38 = vadd.f32 %v8464_v60, %v12436_v51 }
 0x902   : > { %v6332_v15 = vadd.f32 %v6331_v8, %v6330_v2  ;;  %v5709_v6 = vpop.f32.mrb[162].mxu1 }
 0x903   : > { %v6216_v40 = vmax.f32 %v6090_v38, 0.0  ;;  %v8465_v12 = vadd.f32 %v11847_v54, %v5709_v6  ;;  %v5711_v34 = vpop.f32.mrb[163].mxu1  ;;  %v12443_v6 = vld [vmem:[#allocation75_spill] sm:$0xff] }
 0x905   : > { %v6333_v20 = vsel %vm6232_vm2, %v6216_v40, 0.0  ;;  %v6095_v45 = vadd.f32 %v8465_v12, %v12437_v0 }
 0x906   : > { %v6334_v46 = vadd.f32 %v6333_v20, %v6332_v15  ;;  %v5714_v53 = vpop.f32.mrb[164].mxu1 }
 0x907   : > { %v6217_v61 = vmax.f32 %v6095_v45, 0.0  ;;  %v8466_v36 = vadd.f32 %v11847_v54, %v5714_v53  ;;  %v5716_v33 = vpop.f32.mrb[165].mxu1  ;;  %v12444_v53 = vld [vmem:[#allocation78_spill] sm:$0xff] }
 0x909   : > { %v6335_v49 = vsel %vm6232_vm2, %v6217_v61, 0.0  ;;  %v6100_v41 = vadd.f32 %v8466_v36, %v12438_v32 }
 0x90a   : > { %v6336_v42 = vadd.f32 %v6335_v49, %v6334_v46  ;;  %v5719_v3 = vpop.f32.mrb[166].mxu1 }
 0x90b   : > { %v6218_v26 = vmax.f32 %v6100_v41, 0.0  ;;  %v8467_v44 = vadd.f32 %v11847_v54, %v5719_v3  ;;  %v5721_v23 = vpop.f32.mrb[167].mxu1  ;;  %v12445_v3 = vld [vmem:[#allocation77_spill] sm:$0xff] }
 0x90d   : > { %v6337_v29 = vsel %vm6232_vm2, %v6218_v26, 0.0  ;;  %v6105_v55 = vadd.f32 %v8467_v44, %v12439_v7 }
 0x90e   : > { %v6338_v57 = vadd.f32 %v6337_v29, %v6336_v42  ;;  %v5724_v13 = vpop.f32.mrb[168].mxu1 }
 0x90f   : > { %v6219_v43 = vmax.f32 %v6105_v55, 0.0  ;;  %v8468_v27 = vadd.f32 %v11847_v54, %v5724_v13  ;;  %v5726_v21 = vpop.f32.mrb[169].mxu1  ;;  %v12446_v13 = vld [vmem:[#allocation80_spill] sm:$0xff] }
 0x911   : > { %v6339_v4 = vsel %vm6232_vm2, %v6219_v43, 0.0  ;;  %v6110_v48 = vadd.f32 %v8468_v27, %v12440_v17 }
 0x912   : > { %v6340_v10 = vadd.f32 %v6339_v4, %v6338_v57  ;;  %v5729_v11 = vpop.f32.mrb[170].mxu1 }
 0x913   : > { %v6220_v16 = vmax.f32 %v6110_v48, 0.0  ;;  %v8469_v24 = vadd.f32 %v11847_v54, %v5729_v11  ;;  %v5731_v19 = vpop.f32.mrb[171].mxu1  ;;  %v12447_v11 = vld [vmem:[#allocation79_spill] sm:$0xff] }
 0x915   : > { %v6341_v25 = vsel %vm6232_vm2, %v6220_v16, 0.0  ;;  %v6115_v63 = vadd.f32 %v8469_v24, %v12441_v52 }
 0x916   : > { %v6342_v9 = vadd.f32 %v6341_v25, %v6340_v10  ;;  %v5734_v35 = vpop.f32.mrb[172].mxu1 }
 0x917   : > { %v6221_v58 = vmax.f32 %v6115_v63, 0.0  ;;  %v8470_v39 = vadd.f32 %v11847_v54, %v5734_v35  ;;  %v5736_v47 = vpop.f32.mrb[173].mxu1  ;;  %v12448_v35 = vld [vmem:[#allocation82_spill] sm:$0xff] }
 0x919   : > { %v6343_v2 = vsel %vm6232_vm2, %v6221_v58, 0.0  ;;  %v6120_v30 = vadd.f32 %v8470_v39, %v12442_v56 }
 0x91a   : > { %v6344_v60 = vadd.f32 %v6343_v2, %v6342_v9  ;;  %v5739_v28 = vpop.f32.mrb[174].mxu1 }
 0x91b   : > { %v6222_v8 = vmax.f32 %v6120_v30, 0.0  ;;  %v8471_v51 = vadd.f32 %v11847_v54, %v5739_v28  ;;  %v5741_v38 = vpop.f32.mrb[175].mxu1 }
 0x91d   : > { %v6345_v15 = vsel %vm6232_vm2, %v6222_v8, 0.0  ;;  %v6125_v40 = vadd.f32 %v8471_v51, %v12443_v6  ;;  %v12449_v8 = vld [vmem:[#allocation81_spill] sm:$0xff] }
 0x91e   : > { %v6346_v12 = vadd.f32 %v6345_v15, %v6344_v60  ;;  %v5744_v34 = vpop.f32.mrb[176].mxu1  ;;  %v6296_v60 = vrot.slane %v11971_v1, 4 }
 0x91f   : > { %v6223_v20 = vmax.f32 %v6125_v40, 0.0  ;;  %v8472_v0 = vadd.f32 %v11847_v54, %v5744_v34  ;;  %v5746_v45 = vpop.f32.mrb[177].mxu1  ;;  %v9267_v40 = vld [vmem:[%s11843_s23] ss:$0 sm:$0xff] }
 0x921   : > { %v6347_v46 = vsel %vm6232_vm2, %v6223_v20, 0.0  ;;  %v6130_v61 = vadd.f32 %v8472_v0, %v12444_v53  ;;  %v6297_v20 = vadd.f32 %v6296_v60, %v11971_v1  ;;  %v6433_v60 = vld [vmem:[%s11808_s20 + $0x1c8] sm:$0xff] }
 0x922   : > { %v6348_v36 = vadd.f32 %v6347_v46, %v6346_v12  ;;  %v5749_v33 = vpop.f32.mrb[178].mxu1 }
 0x923   : > { %v6224_v49 = vmax.f32 %v6130_v61, 0.0  ;;  %v8473_v32 = vadd.f32 %v11847_v54, %v5749_v33  ;;  %v5751_v41 = vpop.f32.mrb[179].mxu1  ;;  %v6298_v33 = vrot.slane %v6297_v20, 2 }
 0x925   : > { %v6349_v42 = vsel %vm6232_vm2, %v6224_v49, 0.0  ;;  %v6135_v26 = vadd.f32 %v8473_v32, %v12445_v3  ;;  %v6299_v3 = vadd.f32 %v6298_v33, %v6297_v20  ;;  %v6403_v20 = vld [vmem:[%s11808_s20 + $0xd8] sm:$0xff] }
 0x926   : > { %v6350_v44 = vadd.f32 %v6349_v42, %v6348_v36  ;;  %v5754_v23 = vpop.f32.mrb[180].mxu1  ;;  %v6419_v33 = vld [vmem:[%s11808_s20 + $0x158] sm:$0xff] }
 0x927   : > { %v6225_v29 = vmax.f32 %v6135_v26, 0.0  ;;  %v8474_v7 = vadd.f32 %v11847_v54, %v5754_v23  ;;  %v5756_v55 = vpop.f32.mrb[181].mxu1 }
 0x929   : > { %v6351_v57 = vsel %vm6232_vm2, %v6225_v29, 0.0  ;;  %v6140_v43 = vadd.f32 %v8474_v7, %v12446_v13 }
 0x92a   : > { %v6352_v27 = vadd.f32 %v6351_v57, %v6350_v44  ;;  %v5759_v21 = vpop.f32.mrb[182].mxu1  ;;  %v6300_v44 = vrot.slane %v6299_v3, 1 }
 0x92b   : > { %v6226_v4 = vmax.f32 %v6140_v43, 0.0  ;;  %v8475_v17 = vadd.f32 %v11847_v54, %v5759_v21  ;;  %v5761_v48 = vpop.f32.mrb[183].mxu1 }
 0x92c   : > { %v6301_v29 = vadd.f32 %v6300_v44, %v6299_v3  ;;  %v6435_v44 = vld [vmem:[%s11808_s20 + $0x1d8] sm:$0xff] }
 0x92d   : > { %v6353_v10 = vsel %vm6232_vm2, %v6226_v4, 0.0  ;;  %v6145_v16 = vadd.f32 %v8475_v17, %v12447_v11  ;;  %v6393_v4 = vld [vmem:[%s11808_s20 + $0x88] sm:$0xff]  ;;  %v6396_v11 = vld [vmem:[%s11808_s20 + $0xa0] sm:$0xff] }
 0x92e   : > { %v6354_v24 = vadd.f32 %v6353_v10, %v6352_v27  ;;  %v5764_v19 = vpop.f32.mrb[184].mxu1  ;;  %v6372_v57 = vmul.f32 0.00390625, %v6301_v29  ;;  %v6401_v10 = vld [vmem:[%s11808_s20 + $0xc8] sm:$0xff] }
 0x92f   : > { %v6227_v25 = vmax.f32 %v6145_v16, 0.0  ;;  %v8476_v52 = vadd.f32 %v11847_v54, %v5764_v19  ;;  %v5766_v63 = vpop.f32.mrb[185].mxu1  ;;  %v6404_v16 = vld [vmem:[%s11808_s20 + $0xe0] sm:$0xff] }
 0x930   : > { %v6374_v43 = vpack.c.bf16 %v6372_v57, %v6372_v57  ;;  %v6409_v63 = vld [vmem:[%s11808_s20 + $0x108] sm:$0xff] }
 0x931   : > { %v6355_v9 = vsel %vm6232_vm2, %v6227_v25, 0.0  ;;  %v6150_v58 = vadd.f32 %v8476_v52, %v12448_v35  ;;  %v7431_v25 = vcombine.high %v6393_v4, %v6401_v10  ;;  %v7437_v52 = vcombine.high %v6396_v11, %v6404_v16  ;;  %v6412_v35 = vld [vmem:[%s11808_s20 + $0x120] sm:$0xff] }
 0x932   : > { %v6356_v39 = vadd.f32 %v6355_v9, %v6354_v24  ;;  %v5769_v47 = vpop.f32.mrb[186].mxu1  ;;  %v6526_v17 = vunpack.c.l.b16 %v6374_v43  ;;  %v6417_v9 = vld [vmem:[%s11808_s20 + $0x148] sm:$0xff] }
 0x933   : > { %v6228_v2 = vmax.f32 %v6150_v58, 0.0  ;;  %v8477_v56 = vadd.f32 %v11847_v54, %v5769_v47  ;;  %v5771_v30 = vpop.f32.mrb[187].mxu1  ;;  %v6420_v58 = vld [vmem:[%s11808_s20 + $0x160] sm:$0xff]  ;;  %v7436_v47 = vcombine.low %v6396_v11, %v6404_v16  ;;  %v7446_v31 = vcombine.low %v6409_v63, %v6417_v9  ;;  %v6413_v11 = vld [vmem:[%s11808_s20 + $0x128] sm:$0xff] }
 0x934   : > { %v6425_v30 = vld [vmem:[%s11808_s20 + $0x188] sm:$0xff]  ;;  %v7452_v37 = vcombine.low %v6412_v35, %v6420_v58 }
 0x935   : > { %v6357_v28 = vsel %vm6232_vm2, %v6228_v2, 0.0  ;;  %v6155_v51 = vadd.f32 %v8477_v56, %v12449_v8  ;;  %v7447_v2 = vcombine.high %v6409_v63, %v6417_v9  ;;  %v7453_v56 = vcombine.high %v6412_v35, %v6420_v58  ;;  %v6436_v8 = vld [vmem:[%s11808_s20 + $0x1e0] sm:$0xff]  ;;  %v6421_v16 = vld [vmem:[%s11808_s20 + $0x168] sm:$0xff]  ;;  %v6383_v58 = vld [vmem:[%s11808_s20 + $0x38] sm:$0xff] }
 0x936   : > { %v6358_v38 = vadd.f32 %v6357_v28, %v6356_v39  ;;  %v5774_v15 = vpop.f32.mrb[188].mxu1  ;;  %v7430_v39 = vcombine.low %v6393_v4, %v6401_v10  ;;  %v6428_v28 = vld [vmem:[%s11808_s20 + $0x1a0] sm:$0xff]  ;;  %v7463_v5 = vcombine.high %v6425_v30, %v6433_v60  ;;  %v6397_v4 = vld [vmem:[%s11808_s20 + $0xa8] sm:$0xff]  ;;  %v7454_v9 = vcombine.low %v6413_v11, %v6421_v16 }
 0x937   : > { %v6229_v6 = vmax.f32 %v6155_v51, 0.0  ;;  %v8478_v12 = vadd.f32 %v9267_v40, %v5774_v15  ;;  %v5776_v34 = vpop.f32.mrb[189].mxu1  ;;  %v6382_v51 = vld [vmem:[%s11808_s20 + $0x30] sm:$0xff]  ;;  %v7462_v15 = vcombine.low %v6425_v30, %v6433_v60  ;;  %v6437_v63 = vld [vmem:[%s11808_s20 + $0x1e8] sm:$0xff]  ;;  %v6407_v30 = vld [vmem:[%s11808_s20 + $0xf8] sm:$0xff] }
 0x938   : > { %v6395_v34 = vld [vmem:[%s11808_s20 + $0x98] sm:$0xff] }
 0x939   : > { %v6359_v0 = vsel %vm6232_vm2, %v6229_v6, 0.0  ;;  %v6160_v45 = vadd.f32 %v8478_v12, %v11962_v59  ;;  %v7468_v6 = vcombine.low %v6428_v28, %v6436_v8 }
 0x93a   : > { %v6360_v54 = vadd.f32 %v6359_v0, %v6358_v38  ;;  %v5779_v46 = vpop.f32.mrb[190].mxu1  ;;  %v6390_v38 = vld [vmem:[%s11808_s20 + $0x70] sm:$0xff] }
 0x93b   : > { %v6230_v53 = vmax.f32 %v6160_v45, 0.0  ;;  %v8479_v61 = vadd.f32 %v9267_v40, %v5779_v46  ;;  %v5781_v36 = vpop.f32.mrb[191].mxu1  ;;  %v7425_v12 = vcombine.high %v6382_v51, %v6390_v38  ;;  %v6398_v0 = vld [vmem:[%s11808_s20 + $0xb0] sm:$0xff]  ;;  %v7424_v46 = vcombine.low %v6382_v51, %v6390_v38 }
 0x93c   : > { %v6406_v45 = vld [vmem:[%s11808_s20 + $0xf0] sm:$0xff]  ;;  %v6411_v36 = vld [vmem:[%s11808_s20 + $0x118] sm:$0xff] }
 0x93d   : > { %v6361_v49 = vsel %vm6232_vm2, %v6230_v53, 0.0  ;;  %v6165_v32 = vadd.f32 %v8479_v61, %v11959_v50  ;;  %v7435_v53 = vcombine.high %v6395_v34, %v6403_v20  ;;  %v7441_v61 = vcombine.high %v6398_v0, %v6406_v45 }
 0x93e   : > { %v6362_v41 = vadd.f32 %v6361_v49, %v6360_v54  ;;  %v6414_v49 = vld [vmem:[%s11808_s20 + $0x130] sm:$0xff]  ;;  %v7451_v3 = vcombine.high %v6411_v36, %v6419_v33  ;;  %v7450_v29 = vcombine.low %v6411_v36, %v6419_v33 }
 0x93f   : > { %v6231_v42 = vmax.f32 %v6165_v32, 0.0  ;;  %v6422_v32 = vld [vmem:[%s11808_s20 + $0x170] sm:$0xff] }
 0x941   : > { %v6363_v1 = vsel %vm6232_vm2, %v6231_v42, 0.0  ;;  %v7440_v42 = vcombine.low %v6398_v0, %v6406_v45 }
 0x942   : > { %v6364_v26 = vadd.f32 %v6363_v1, %v6362_v41  ;;  %v7434_v41 = vcombine.low %v6395_v34, %v6403_v20  ;;  %v7457_v1 = vcombine.high %v6414_v49, %v6422_v32 }
 0x944   : > { %v6365_v59 = vrot.slane %v6364_v26, 4 }
 0x946   : > { %v6366_v23 = vadd.f32 %v6365_v59, %v6364_v26  ;;  %v6427_v26 = vld [vmem:[%s11808_s20 + $0x198] sm:$0xff]  ;;  %v6430_v59 = vld [vmem:[%s11808_s20 + $0x1b0] sm:$0xff] }
 0x947   : > { %v7466_v43 = vcombine.low %v6427_v26, %v6435_v44 }
 0x948   : > { %v6367_v7 = vrot.slane %v6366_v23, 2 }
 0x94a   : > { %v6368_v55 = vadd.f32 %v6367_v7, %v6366_v23  ;;  %v6438_v23 = vld [vmem:[%s11808_s20 + $0x1f0] sm:$0xff]  ;;  %v7456_v7 = vcombine.low %v6414_v49, %v6422_v32 }
 0x94b   : > { %v7473_v57 = vcombine.high %v6430_v59, %v6438_v23 }
 0x94c   : > { %v6369_v13 = vrot.slane %v6368_v55, 1 }
 0x94e   : > { %v6370_v50 = vadd.f32 %v6369_v13, %v6368_v55  ;;  %v7467_v55 = vcombine.high %v6427_v26, %v6435_v44  ;;  %v6381_v13 = vld [vmem:[%s11808_s20 + $0x28] sm:$0xff] }
 0x950   : > { %v6373_v27 = vmul.f32 0.00390625, %v6370_v50  ;;  %v6389_v50 = vld [vmem:[%s11808_s20 + $0x68] sm:$0xff] }
 0x952   : > { %v6375_v21 = vpack.c.bf16 %v6373_v27, %v6373_v27  ;;  %v7472_v27 = vcombine.low %v6430_v59, %v6438_v23 }
 0x954   : > { %v6527_v48 = vunpack.c.l.b16 %v6375_v21  ;;  %v7423_v21 = vcombine.high %v6381_v13, %v6389_v50 }
 0x956   : > { %v6529_v24 = vsel %vm6528_vm3, %v6527_v48, %v6526_v17  ;;  %v6405_v17 = vld [vmem:[%s11808_s20 + $0xe8] sm:$0xff]  ;;  %v7422_v48 = vcombine.low %v6381_v13, %v6389_v50 }
 0x957   : > { %v12096_v19 = vpack.c.b16 %v6529_v24, %v6529_v24  ;;  %v7439_v10 = vcombine.high %v6397_v4, %v6405_v17  ;;  %v7438_v24 = vcombine.low %v6397_v4, %v6405_v17 }
 0x959   : > { %7476 = vmatmul.mubr.msk.bf16.vlgmr.msra.gmra.mrb[192].mxu1 %vm6232_vm2, %v12096_v19  ;;  %7478 = vmatmul.mubr.msk.bf16.vlgmr.msra.gmra.mrb[192].mxu0 %vm6232_vm2, %v12096_v19 }
 0x95a   : > { %6896 = vmatpush1.bf16.msra.mxu1 %v7414_v18  ;;  %7019 = vmatpush1.bf16.msra.mxu0 %v7420_v22  ;;  %v7469_v18 = vcombine.high %v6428_v28, %v6436_v8  ;;  %v6387_v22 = vld [vmem:[%s11808_s20 + $0x58] sm:$0xff] }
 0x95b   : > { %6897 = vmatprep.subr.bf16.mxu1 %v7431_v25  ;;  %7020 = vmatprep.subr.bf16.mxu0 %v7437_v52  ;;  %v7419_v40 = vcombine.high %v6379_v14, %v6387_v22  ;;  %v7418_v54 = vcombine.low %v6379_v14, %v6387_v22  ;;  %v7455_v25 = vcombine.high %v6413_v11, %v6421_v16  ;;  %v6429_v52 = vld [vmem:[%s11808_s20 + $0x1a8] sm:$0xff]  ;;  %v6415_v8 = vld [vmem:[%s11808_s20 + $0x138] sm:$0xff] }
 0x95c   : > { %6927 = vmatprep.mubr.bf16.mxu1 %v9278_v62  ;;  %7050 = vmatprep.mubr.bf16.mxu0 %v9278_v62  ;;  %v7471_v35 = vcombine.high %v6429_v52, %v6437_v63  ;;  %v6439_v14 = vld [vmem:[%s11808_s20 + $0x1f8] sm:$0xff] }
 0x95e   : > { %6898 = vmatpush1.bf16.msra.mxu1 %v7430_v39  ;;  %7021 = vmatpush1.bf16.msra.mxu0 %v7436_v47  ;;  %v6391_v39 = vld [vmem:[%s11808_s20 + $0x78] sm:$0xff]  ;;  %v7470_v47 = vcombine.low %v6429_v52, %v6437_v63 }
 0x95f   : > { %6899 = vmatprep.subr.bf16.mxu1 %v7447_v2  ;;  %7022 = vmatprep.subr.bf16.mxu0 %v7453_v56  ;;  %v7427_v2 = vcombine.high %v6383_v58, %v6391_v39  ;;  %v6399_v56 = vld [vmem:[%s11808_s20 + $0xb8] sm:$0xff]  ;;  %v7426_v60 = vcombine.low %v6383_v58, %v6391_v39 }
 0x960   : > { %v7443_v28 = vcombine.high %v6399_v56, %v6407_v30 }
 0x962   : > { %6900 = vmatpush1.bf16.msra.mxu1 %v7446_v31  ;;  %7023 = vmatpush1.bf16.msra.mxu0 %v7452_v37  ;;  %v6423_v31 = vld [vmem:[%s11808_s20 + $0x178] sm:$0xff]  ;;  %v7442_v37 = vcombine.low %v6399_v56, %v6407_v30 }
 0x963   : > { %6901 = vmatprep.subr.bf16.mxu1 %v7463_v5  ;;  %7024 = vmatprep.subr.bf16.mxu0 %v7469_v18  ;;  %v7459_v5 = vcombine.high %v6415_v8, %v6423_v31  ;;  %v6431_v18 = vld [vmem:[%s11808_s20 + $0x1b8] sm:$0xff]  ;;  %v7458_v22 = vcombine.low %v6415_v8, %v6423_v31 }
 0x964   : > { %v7475_v51 = vcombine.high %v6431_v18, %v6439_v14  ;;  %v7474_v38 = vcombine.low %v6431_v18, %v6439_v14 }
 0x966   : > { %6902 = vmatpush1.bf16.msra.mxu1 %v7462_v15  ;;  %7025 = vmatpush1.bf16.msra.mxu0 %v7468_v6  ;;  %v6444_v15 = vlaneseq }
 0x967   : > { %6977 = vmatprep.subr.bf16.mxu1 %v7419_v40  ;;  %7100 = vmatprep.subr.bf16.mxu0 %v7425_v12  ;;  %v6440_v12 = vld [vmem:[%s378_s30] sm:$0xff] }
 0x968   : > { %v12167_v6 = vshrl.u32 %v6444_v15, 7 }
 0x969   : > { %7477 = vmatmul.mubr.msk.bf16.vlgmr.msra.gmra.mrb[196].mxu1 %vm6232_vm2, %v12096_v19  ;;  %7480 = vmatmul.mubr.msk.bf16.vlgmr.msra.gmra.mrb[196].mxu0 %vm6232_vm2, %v12096_v19 }
 0x96a   : > { %6978 = vmatpush1.bf16.msra.mxu1 %v7418_v54  ;;  %7101 = vmatpush1.bf16.msra.mxu0 %v7424_v46  ;;  %v6462_v40 = vsub.s32 4, %v12167_v6  ;;  %v6450_v34 = vsub.s32 1, %v12167_v6  ;;  %v6466_v20 = vsub.s32 5, %v12167_v6  ;;  %v6454_v23 = vsub.s32 2, %v12167_v6 }
 0x96b   : > { %6979 = vmatprep.subr.bf16.mxu1 %v7435_v53  ;;  %7102 = vmatprep.subr.bf16.mxu0 %v7441_v61 }
 0x96c   : > { %7009 = vmatprep.mubr.bf16.mxu1 %v9278_v62  ;;  %7132 = vmatprep.mubr.bf16.mxu0 %v9278_v62  ;;  %v6463_v45 = vrot.slane %v6440_v12, %v6462_v40  ;;  %v6467_v54 = vrot.slane %v6440_v12, %v6466_v20  ;;  %v6455_v13 = vrot.slane %v6440_v12, %v6454_v23 }
 0x96e   : > { %6980 = vmatpush1.bf16.msra.mxu1 %v7434_v41  ;;  %7103 = vmatpush1.bf16.msra.mxu0 %v7440_v42 }
 0x96f   : > { %6981 = vmatprep.subr.bf16.mxu1 %v7451_v3  ;;  %7104 = vmatprep.subr.bf16.mxu0 %v7457_v1 }
 0x972   : > { %6982 = vmatpush1.bf16.msra.mxu1 %v7450_v29  ;;  %7105 = vmatpush1.bf16.msra.mxu0 %v7456_v7  ;;  %v9279_v29 = vmov 1983009808  }
 0x973   : > { %6983 = vmatprep.subr.bf16.mxu1 %v7467_v55  ;;  %7106 = vmatprep.subr.bf16.mxu0 %v7473_v57  ;;  %v7201_v7 = vunpack.c.l.s4 %v9279_v29  ;;  %v12181_v55 = vld [vmem:[%s378_s30 + $0x8] sm:$0xff]  ;;  %v6458_v57 = vsub.s32 3, %v12167_v6 }
 0x974   : > { %v6495_v31 = vrot.slane %v12181_v55, %v6462_v40 }
 0x976   : > { %6984 = vmatpush1.bf16.msra.mxu1 %v7466_v43  ;;  %7107 = vmatpush1.bf16.msra.mxu0 %v7472_v27  ;;  %v7202_v43 = vunpack.c.0.s8 %v7201_v7  ;;  %v6459_v27 = vrot.slane %v6440_v12, %v6458_v57 }
 0x977   : > { %7059 = vmatprep.subr.bf16.mxu1 %v7423_v21  ;;  %v6483_v21 = vrot.slane %v12181_v55, %v6450_v34 }
 0x979   : > { %7479 = vmatmul.mubr.msk.bf16.vlgmr.msra.gmra.mrb[200].mxu1 %vm6232_vm2, %v12096_v19  ;;  %7482 = vmatmul.mubr.msk.bf16.vlgmr.msra.gmra.mrb[200].mxu0 %vm6232_vm2, %v12096_v19 }
 0x97a   : > { %7060 = vmatpush1.bf16.msra.mxu1 %v7422_v48  ;;  %7091 = vmatprep.mubr.bf16.mxu1 %v9278_v62 }
 0x97b   : > { %7061 = vmatprep.subr.bf16.mxu1 %v7439_v10 }
 0x97e   : > { %7062 = vmatpush1.bf16.msra.mxu1 %v7438_v24  ;;  %v7205_v24 = vsub.s32 %v7202_v43, %v12167_v6 }
 0x97f   : > { %7063 = vmatprep.subr.bf16.mxu1 %v7455_v25 }
 0x982   : > { %7064 = vmatpush1.bf16.msra.mxu1 %v7454_v9 }
 0x983   : > { %7065 = vmatprep.subr.bf16.mxu1 %v7471_v35 }
 0x986   : > { %7066 = vmatpush1.bf16.msra.mxu1 %v7470_v47 }
 0x987   : > { %7141 = vmatprep.subr.bf16.mxu1 %v7427_v2 }
 0x989   : > { %7481 = vmatmul.mubr.msk.bf16.vlgmr.msra.gmra.mrb[204].mxu1 %vm6232_vm2, %v12096_v19 }
 0x98a   : > { %7142 = vmatpush1.bf16.msra.mxu1 %v7426_v60  ;;  %7173 = vmatprep.mubr.bf16.mxu1 %v9278_v62  ;;  %v6446_v62 = vsub.s32 0, %v12167_v6  ;;  %v6470_v60 = vsub.s32 6, %v12167_v6 }
 0x98b   : > { %7143 = vmatprep.subr.bf16.mxu1 %v7443_v28  ;;  %v6474_v28 = vsub.s32 7, %v12167_v6 }
 0x98c   : > { %v6447_v0 = vrot.slane %v6440_v12, %v6446_v62  ;;  %v6479_v50 = vrot.slane %v12181_v55, %v6446_v62  ;;  %v6471_v8 = vrot.slane %v6440_v12, %v6470_v60 }
 0x98d   : > { %v6507_v29 = vrot.slane %v12181_v55, %v6474_v28 }
 0x98e   : > { %7144 = vmatpush1.bf16.msra.mxu1 %v7442_v37  ;;  %v6475_v37 = vrot.slane %v6440_v12, %v6474_v28 }
 0x98f   : > { %7145 = vmatprep.subr.bf16.mxu1 %v7459_v5  ;;  %v6499_v5 = vrot.slane %v12181_v55, %v6466_v20  ;;  %v6487_v20 = vrot.slane %v12181_v55, %v6454_v23 }
 0x992   : > { %7146 = vmatpush1.bf16.msra.mxu1 %v7458_v22 }
 0x993   : > { %7147 = vmatprep.subr.bf16.mxu1 %v7475_v51 }
 0x996   : > { %7148 = vmatpush1.bf16.msra.mxu1 %v7474_v38 }
 0x999   : > { %7483 = vmatmul.mubr.msk.bf16.vlgmr.msra.gmra.mrb[208].mxu1 %vm6232_vm2, %v12096_v19  ;;  %v6451_v19 = vrot.slane %v6440_v12, %v6450_v34 }
 0xa2c   : > { %v6888_v46 = vpop.f32.mrb[192].mxu1  ;;  %v6970_v53 = vpop.f32.mrb[192].mxu0 }
 0xa2d   : > { %v6889_v61 = vadd.f32 %v6888_v46, %v6447_v0  ;;  %v12176_v36 = vadd.f32 %v6970_v53, %v6463_v45  ;;  %v6890_v33 = vpop.f32.mrb[193].mxu1  ;;  %v6972_v49 = vpop.f32.mrb[193].mxu0 }
 0xa2e   : > { %v6891_v32 = vadd.f32 %v6890_v33, %v6451_v19  ;;  %v6973_v41 = vadd.f32 %v6972_v49, %v6467_v54  ;;  %v6892_v42 = vpop.f32.mrb[194].mxu1  ;;  %v6974_v3 = vpop.f32.mrb[194].mxu0 }
 0xa2f   : > { %v6893_v1 = vpop.f32.mrb[195].mxu1  ;;  %v6975_v26 = vpop.f32.mrb[195].mxu0 }
 0xa30   : > { %v7198_v44 = vcombine.low %v6889_v61, %v6891_v32  ;;  %v7215_v59 = vcombine.low %v12176_v36, %v6973_v41  ;;  %v6491_v61 = vrot.slane %v12181_v55, %v6458_v57 }
 0xa32   : > { %v7206_v2 = vrot.slane %v7198_v44, %v7205_v24  ;;  %v7223_v53 = vrot.slane %v7215_v59, %v7205_v24  ;;  %v6503_v59 = vrot.slane %v12181_v55, %v6470_v60 }
 0xa3c   : > { %v6929_v4 = vpop.f32.mrb[196].mxu1  ;;  %v7052_v17 = vpop.f32.mrb[196].mxu0 }
 0xa3d   : > { %v6930_v48 = vadd.f32 %v6929_v4, %v6455_v13  ;;  %v7053_v10 = vadd.f32 %v7052_v17, %v6479_v50  ;;  %v6931_v11 = vpop.f32.mrb[197].mxu1  ;;  %v7054_v16 = vpop.f32.mrb[197].mxu0 }
 0xa3e   : > { %v6932_v25 = vadd.f32 %v6931_v11, %v6459_v27  ;;  %v7055_v52 = vadd.f32 %v7054_v16, %v6483_v21  ;;  %v6933_v63 = vpop.f32.mrb[198].mxu1  ;;  %v7056_v9 = vpop.f32.mrb[198].mxu0 }
 0xa3f   : > { %v6934_v35 = vpop.f32.mrb[199].mxu1  ;;  %v7057_v58 = vpop.f32.mrb[199].mxu0 }
 0xa40   : > { %v7199_v39 = vcombine.low %v6930_v48, %v6932_v25  ;;  %v7232_v47 = vcombine.low %v7053_v10, %v7055_v52 }
 0xa42   : > { %v7213_v56 = vrot.slane %v7199_v39, %v7205_v24  ;;  %v7240_v1 = vrot.slane %v7232_v47, %v7205_v24 }
 0xa44   : > { %v7214_v30 = vcombine.low %v7206_v2, %v7213_v56 }
 0xa46   : > { %7270 = vst [vmem:[%s12190_s10] sm:$0xff] %v7214_v30 }
 0xa4c   : > { %v7011_v18 = vpop.f32.mrb[200].mxu1  ;;  %v7134_v14 = vpop.f32.mrb[200].mxu0 }
 0xa4d   : > { %v7012_v22 = vadd.f32 %v7011_v18, %v6471_v8  ;;  %v7135_v51 = vadd.f32 %v7134_v14, %v6495_v31  ;;  %v7013_v38 = vpop.f32.mrb[201].mxu1  ;;  %v7136_v15 = vpop.f32.mrb[201].mxu0 }
 0xa4e   : > { %v7014_v62 = vadd.f32 %v7013_v38, %v6475_v37  ;;  %v7137_v34 = vadd.f32 %v7136_v15, %v6499_v5  ;;  %v7015_v0 = vpop.f32.mrb[202].mxu1  ;;  %v7138_v45 = vpop.f32.mrb[202].mxu0 }
 0xa4f   : > { %v7016_v19 = vpop.f32.mrb[203].mxu1  ;;  %v7139_v54 = vpop.f32.mrb[203].mxu0 }
 0xa50   : > { %v7216_v6 = vcombine.low %v7012_v22, %v7014_v62  ;;  %v7249_v46 = vcombine.low %v7135_v51, %v7137_v34 }
 0xa52   : > { %v7230_v40 = vrot.slane %v7216_v6, %v7205_v24  ;;  %v7257_v21 = vrot.slane %v7249_v46, %v7205_v24 }
 0xa54   : > { %v7231_v12 = vcombine.low %v7223_v53, %v7230_v40 }
 0xa56   : > { %7271 = vst [vmem:[%s12190_s10 + $0x8] sm:$0xff] %v7231_v12 }
 0xa5c   : > { %v7093_v36 = vpop.f32.mrb[204].mxu1 }
 0xa5d   : > { %v7094_v33 = vadd.f32 %v7093_v36, %v6487_v20  ;;  %v7095_v49 = vpop.f32.mrb[205].mxu1 }
 0xa5e   : > { %v7096_v32 = vadd.f32 %v7095_v49, %v6491_v61  ;;  %v7097_v41 = vpop.f32.mrb[206].mxu1 }
 0xa5f   : > { %v7098_v42 = vpop.f32.mrb[207].mxu1 }
 0xa60   : > { %v7233_v3 = vcombine.low %v7094_v33, %v7096_v32 }
 0xa62   : > { %v7247_v26 = vrot.slane %v7233_v3, %v7205_v24 }
 0xa64   : > { %v7248_v44 = vcombine.low %v7240_v1, %v7247_v26 }
 0xa66   : > { %7272 = vst [vmem:[%s12190_s10 + $0x10] sm:$0xff] %v7248_v44 }
 0xa6c   : > { %v7175_v7 = vpop.f32.mrb[208].mxu1 }
 0xa6d   : > { %v7176_v23 = vadd.f32 %v7175_v7, %v6503_v59  ;;  %v7177_v13 = vpop.f32.mrb[209].mxu1 }
 0xa6e   : > { %v7178_v57 = vadd.f32 %v7177_v13, %v6507_v29  ;;  %v7179_v50 = vpop.f32.mrb[210].mxu1 }
 0xa6f   : > { %v7180_v43 = vpop.f32.mrb[211].mxu1 }
 0xa70   : > { %v7250_v27 = vcombine.low %v7176_v23, %v7178_v57 }
 0xa72   : > { %v7264_v4 = vrot.slane %v7250_v27, %v7205_v24 }
 0xa74   : > { %v7265_v17 = vcombine.low %v7257_v21, %v7264_v4 }
 0xa76   : > { %7273 = vst [vmem:[%s12190_s10 + $0x18] sm:$0xff] %v7265_v17 }
 0xa77 PF: > { %s17_s24 = sadd.s32 1, %s9274_s24  }
 0xa78   : > { %p14_p5 = scmp.ge.s32.totalorder %s17_s24, 4  }
 0xa7a   :  { %16 = sbr.rel (!%p14_p5) target bundleno = 1 (0x1), region = 100 }

</bundles_post_ra>
